<compile_context>
chip_gen: v7x
topology: tpu7x:2x2x1
jax: 0.10.0
libtpu: 0.0.40
codegen_flags: <defaults>
</compile_context>

<pallas_src>
import jax
import jax.numpy as jnp
from jax.experimental import pallas as pl
from jax.experimental.pallas import tpu as pltpu

EPS = 1e-5


# ---------------------------------------------------------------------------
# Pallas kernels
# ---------------------------------------------------------------------------
def _conv1_pool_kernel(p0_ref, p1_ref, p2_ref, p3_ref, w_ref, b_ref, o_ref):
    """Fused conv1(5x5 valid) + bias + ReLU + 2x2/2 maxpool for ONE image.

    Inputs are the four pool-phase im2col slabs, transposed so the long
    spatial dim (14*14 = 196) sits on the 128-lane axis (lane-dense stores).
    """
    w = w_ref[...]                                              # (6, 75) bf16

    def tap(p_ref):
        return jnp.dot(w, p_ref[0], preferred_element_type=jnp.float32)   # (6, 196)

    conv = jnp.maximum(jnp.maximum(tap(p0_ref), tap(p1_ref)),
                       jnp.maximum(tap(p2_ref), tap(p3_ref)))   # maxpool over 4 phases
    o_ref[0] = jnp.maximum(conv + b_ref[...], 0.0)              # bias + ReLU


def _tail_kernel(p0_ref, p1_ref, p2_ref, p3_ref, w2_ref, b2_ref, sel_ref, mask_ref,
                 taps_ref, sc_ref, sh_ref, dsw_ref, dss_ref, dsh_ref,
                 fcw_ref, fcb_ref, o_ref, fra, frb):
    """conv2+ReLU+pool -> 4 residual blocks -> flatten -> fc, for ONE image.

    The 5x5x{16,32} activations live in two VMEM scratch "frames" of shape
    (8 + 49 + 8, 32): a zero-padded 7x7 spatial grid (rows, row = py*7 + px)
    x 32 channels (lanes, channel-padded to 32), with an 8-row halo top and
    bottom so every shifted-tap read stays in bounds.
    """
    R = 49                                                      # 7*7 padded positions
    H = 8                                                       # halo rows
    mask = mask_ref[...]                                        # (49,1): 1=interior

    # -------- conv2 (5x5 valid) + bias + ReLU + 2x2 maxpool (phase-fused) --------
    w2 = w2_ref[...]                                            # (150, 32) bf16

    def phase(p_ref):
        return jnp.dot(p_ref[0], w2, preferred_element_type=jnp.float32)  # (25, 32)

    conv = jnp.maximum(jnp.maximum(phase(p0_ref), phase(p1_ref)),
                       jnp.maximum(phase(p2_ref), phase(p3_ref)))
    pooled = jnp.maximum(conv + b2_ref[...], 0.0)               # (25, 32)

    # Scatter the 5x5 pooled grid into the zero-padded 7x7 frame via a 0/1
    # selection matmul (borders + halo stay exactly zero).
    fra[...] = jnp.zeros_like(fra)
    frb[...] = jnp.zeros_like(frb)
    fra[H:H + R, :] = jnp.dot(sel_ref[...], pooled, preferred_element_type=jnp.float32)

    # -------- 3x3 conv (pad=1) + folded BN [+ residual] + ReLU, frame->frame -----
    def conv3x3(src_ref, dst_ref, idx, residual=None):
        xf = src_ref[...]                                       # (65, 32) f32 incl. halo
        acc = None
        for t in range(9):                                      # t = dy*3 + dx
            off = (t // 3 - 1) * 7 + (t % 3 - 1)                # row shift of this tap
            xs = xf[H + off: H + off + R, :].astype(jnp.bfloat16)
            d = jnp.dot(xs, taps_ref[idx, t], preferred_element_type=jnp.float32)
            acc = d if acc is None else acc + d
        y = acc * sc_ref[idx] + sh_ref[idx]                     # folded BatchNorm
        if residual is not None:
            y = y + residual
        y = jnp.maximum(y, 0.0) * mask                          # ReLU, keep pad ring = 0
        if dst_ref is not None:
            dst_ref[H:H + R, :] = y
        return y

    # layer1, block 1                      (16 -> 16, identity skip)
    res = fra[H:H + R, :]
    conv3x3(fra, frb, 0)
    conv3x3(frb, fra, 1, residual=res)
    # layer1, block 2
    res = fra[H:H + R, :]
    conv3x3(fra, frb, 2)
    conv3x3(frb, fra, 3, residual=res)
    # layer2, block 1                      (16 -> 32, 1x1-conv + BN downsample skip)
    xin = fra[H:H + R, :]
    res = (jnp.dot(xin.astype(jnp.bfloat16), dsw_ref[...],
                   preferred_element_type=jnp.float32) * dss_ref[...] + dsh_ref[...]) * mask
    conv3x3(fra, frb, 4)
    conv3x3(frb, fra, 5, residual=res)
    # layer2, block 2                      (32 -> 32, identity skip)
    res = fra[H:H + R, :]
    conv3x3(fra, frb, 6)
    yfin = conv3x3(frb, None, 7, residual=res)                  # (49, 32) value

    # -------- flatten in PyTorch NCHW .view order + fc --------
    logit = fcb_ref[...]                                        # (1, 10)
    for p in range(25):                                         # p = y*5 + x
        r = (p // 5 + 1) * 7 + (p % 5 + 1)                      # frame row of (y, x)
        row = yfin[r:r + 1, :].astype(jnp.bfloat16)             # (1, 32)
        logit = logit + jnp.dot(row, fcw_ref[p], preferred_element_type=jnp.float32)
    o_ref[0] = logit


# ---------------------------------------------------------------------------
# Plain-JAX glue: pool-phase patch extraction + parameter packing
# ---------------------------------------------------------------------------
def _pool_phase_patches(x, k, ho, wo, dy2, dx2):
    """im2col patches for the conv outputs at positions (2i+dy2, 2j+dx2).

    x: (N, H, W, C) NHWC.  Returns (N, ho*wo, k*k*C); patch order (dy, dx, c),
    row order (i, j) - i.e. one phase of a stride-2 (pooling) output grid.
    """
    taps = []
    for dy in range(k):
        for dx in range(k):
            taps.append(x[:, dy2 + dy: dy2 + dy + 2 * ho - 1: 2,
                           dx2 + dx: dx2 + dx + 2 * wo - 1: 2, :])
    n, c = x.shape[0], x.shape[-1]
    return jnp.concatenate(taps, axis=-1).reshape(n, ho * wo, k * k * c)


def _pack_taps(w):
    """(Cout, Cin, 3, 3) OIHW -> (9, 32, 32) zero-padded per-tap (Cin, Cout) slabs."""
    cout, cin = w.shape[0], w.shape[1]
    t = jnp.transpose(w, (2, 3, 1, 0)).reshape(9, cin, cout)
    return jnp.zeros((9, 32, 32), jnp.float32).at[:, :cin, :cout].set(t)


def _fold_bn(bn, cout, width=32):
    """Fold BN (eval mode) into per-channel scale/shift, zero-padded to `width`."""
    gamma, beta, mean, var = bn
    s = gamma / jnp.sqrt(var + EPS)
    sh = beta - mean * s
    return (jnp.ones((1, width), jnp.float32).at[0, :cout].set(s),
            jnp.zeros((1, width), jnp.float32).at[0, :cout].set(sh))


# ---------------------------------------------------------------------------
# Full network forward
# ---------------------------------------------------------------------------
def net_forward(x_nchw, params):
    n = x_nchw.shape[0]
    x = jnp.transpose(x_nchw, (0, 2, 3, 1)).astype(jnp.float32)       # NHWC (n,32,32,3)

    # ---------------- stage 1: conv1 + ReLU + maxpool (one fused call) ------------
    phases1 = [jnp.transpose(_pool_phase_patches(x, 5, 14, 14, dy2, dx2), (0, 2, 1))
               .astype(jnp.bfloat16)
               for dy2 in (0, 1) for dx2 in (0, 1)]                   # 4 x (n, 75, 196)
    w1t = params["conv1_w"].transpose(0, 2, 3, 1).reshape(6, 75).astype(jnp.bfloat16)
    b1 = params["conv1_b"].reshape(6, 1).astype(jnp.float32)

    h1 = pl.pallas_call(
        _conv1_pool_kernel,
        out_shape=jax.ShapeDtypeStruct((n, 6, 196), jnp.float32),
        grid=(n,),
        in_specs=[pl.BlockSpec((1, 75, 196), lambda i: (i, 0, 0)) for _ in range(4)]
                + [pl.BlockSpec((6, 75), lambda i: (0, 0)),
                   pl.BlockSpec((6, 1), lambda i: (0, 0))],
        out_specs=pl.BlockSpec((1, 6, 196), lambda i: (i, 0, 0)),
        compiler_params=pltpu.CompilerParams(dimension_semantics=("parallel",)),
        cost_estimate=pl.CostEstimate(
            flops=2 * n * 4 * 6 * 75 * 196, transcendentals=0,
            bytes_accessed=n * (4 * 75 * 196 * 2 + 6 * 196 * 4)),
    )(*phases1, w1t, b1)
    h1 = jnp.transpose(h1.reshape(n, 6, 14, 14), (0, 2, 3, 1))        # (n,14,14,6)

    # ------- stage 2: conv2+ReLU+pool + residual tail + fc (one fused call) -------
    phases2 = [_pool_phase_patches(h1, 5, 5, 5, dy2, dx2).astype(jnp.bfloat16)
               for dy2 in (0, 1) for dx2 in (0, 1)]                   # 4 x (n, 25, 150)

    w2p = (jnp.zeros((150, 32), jnp.float32)
           .at[:, :16].set(params["conv2_w"].transpose(2, 3, 1, 0).reshape(150, 16))
           .astype(jnp.bfloat16))
    b2p = jnp.zeros((1, 32), jnp.float32).at[0, :16].set(params["conv2_b"])

    pos = jnp.arange(25)                                               # scatter 5x5 -> 7x7
    sel = (jnp.zeros((49, 25), jnp.float32)
           .at[(pos // 5 + 1) * 7 + (pos % 5 + 1), pos].set(1.0))
    fy, fx = jnp.arange(49) // 7, jnp.arange(49) % 7                   # interior mask
    mask = (((fy >= 1) & (fy <= 5) & (fx >= 1) & (fx <= 5))
            .astype(jnp.float32).reshape(49, 1))

    taps_l, sc_l, sh_l = [], [], []
    for bp in params["layer1"] + params["layer2"]:
        for wname, bnname in (("conv1_w", "bn1"), ("conv2_w", "bn2")):
            taps_l.append(_pack_taps(bp[wname]))
            s, sh = _fold_bn(bp[bnname], bp[wname].shape[0])
            sc_l.append(s)
            sh_l.append(sh)
    taps = jnp.stack(taps_l).astype(jnp.bfloat16)                      # (8, 9, 32, 32)
    scales = jnp.stack(sc_l)                                           # (8, 1, 32)
    shifts = jnp.stack(sh_l)                                           # (8, 1, 32)

    dsp = params["layer2"][0]
    dsw = (jnp.zeros((32, 32), jnp.float32)
           .at[:16, :].set(dsp["ds_w"][:, :, 0, 0].T).astype(jnp.bfloat16))
    dss, dsh = _fold_bn(dsp["ds_bn"], 32)

    fcw = params["fc_w"].reshape(10, 32, 25).transpose(2, 1, 0).astype(jnp.bfloat16)
    fcb = params["fc_b"].reshape(1, 10).astype(jnp.float32)

    logits = pl.pallas_call(
        _tail_kernel,
        out_shape=jax.ShapeDtypeStruct((n, 1, 10), jnp.float32),
        grid=(n,),
        in_specs=[pl.BlockSpec((1, 25, 150), lambda i: (i, 0, 0)) for _ in range(4)]
                + [pl.BlockSpec((150, 32), lambda i: (0, 0)),
                   pl.BlockSpec((1, 32), lambda i: (0, 0)),
                   pl.BlockSpec((49, 25), lambda i: (0, 0)),
                   pl.BlockSpec((49, 1), lambda i: (0, 0)),
                   pl.BlockSpec((8, 9, 32, 32), lambda i: (0, 0, 0, 0)),
                   pl.BlockSpec((8, 1, 32), lambda i: (0, 0, 0)),
                   pl.BlockSpec((8, 1, 32), lambda i: (0, 0, 0)),
                   pl.BlockSpec((32, 32), lambda i: (0, 0)),
                   pl.BlockSpec((1, 32), lambda i: (0, 0)),
                   pl.BlockSpec((1, 32), lambda i: (0, 0)),
                   pl.BlockSpec((25, 32, 10), lambda i: (0, 0, 0)),
                   pl.BlockSpec((1, 10), lambda i: (0, 0))],
        out_specs=pl.BlockSpec((1, 1, 10), lambda i: (i, 0, 0)),
        scratch_shapes=[pltpu.VMEM((65, 32), jnp.float32),
                        pltpu.VMEM((65, 32), jnp.float32)],
        compiler_params=pltpu.CompilerParams(dimension_semantics=("parallel",)),
        cost_estimate=pl.CostEstimate(
            flops=2 * n * (4 * 25 * 150 * 32 + 49 * 25 * 32 + 8 * 9 * 49 * 32 * 32
                           + 49 * 32 * 32 + 25 * 32 * 10),
            transcendentals=0,
            bytes_accessed=n * (4 * 25 * 150 * 2 + 8 * 9 * 32 * 32 * 2 + 10 * 4)),
    )(*phases2, w2p, b2p, sel, mask, taps, scales, shifts, dsw, dss, dsh, fcw, fcb)
    return logits.reshape(n, 10)


# ---------------------------------------------------------------------------
# Deterministic parameter initialization (shapes from the PyTorch __init__)
# ---------------------------------------------------------------------------
def init_params(key):
    keys = iter(jax.random.split(key, 128))

    def nrm(shape, s=0.1):
        return s * jax.random.normal(next(keys), shape, jnp.float32)

    def bn(c):
        gamma = 1.0 + 0.1 * jax.random.normal(next(keys), (c,), jnp.float32)
        beta = 0.1 * jax.random.normal(next(keys), (c,), jnp.float32)
        mean = 0.1 * jax.random.normal(next(keys), (c,), jnp.float32)
        var = 1.0 + 0.1 * jnp.abs(jax.random.normal(next(keys), (c,), jnp.float32))
        return (gamma, beta, mean, var)

    def basic_block(cin, cout, downsample):
        p = {
            "conv1_w": nrm((cout, cin, 3, 3)),
            "bn1": bn(cout),
            "conv2_w": nrm((cout, cout, 3, 3)),
            "bn2": bn(cout),
        }
        if downsample:
            p["ds_w"] = nrm((cout, cin, 1, 1))
            p["ds_bn"] = bn(cout)
        return p

    return {
        "conv1_w": nrm((6, 3, 5, 5)),
        "conv1_b": nrm((6,)),
        "conv2_w": nrm((16, 6, 5, 5)),
        "conv2_b": nrm((16,)),
        "layer1": [basic_block(16, 16, False), basic_block(16, 16, False)],
        "layer2": [basic_block(16, 32, True), basic_block(32, 32, False)],
        "fc_w": nrm((10, 32 * 5 * 5)),
        "fc_b": nrm((10,)),
    }


if __name__ == "__main__":
    key = jax.random.PRNGKey(0)
    kx, kp = jax.random.split(key)
    # CIFAR-sized input is required by the fc layer (32*5*5): NCHW (2, 3, 32, 32)
    x = jax.random.normal(kx, (2, 3, 32, 32), jnp.float32)
    params = init_params(kp)

    logits = jax.jit(net_forward)(x, params)
    jax.block_until_ready(logits)
    assert logits.shape == (2, 10)
    assert bool(jnp.all(jnp.isfinite(logits)))
    print("KERNEL_OK")
</pallas_src>

<mosaic_0001>
module attributes {stable_mosaic.version = 11 : i64} {
  func.func @_conv1_pool_kernel(%arg0: i32, %arg1: memref<1x75x196xbf16, #tpu.memory_space<vmem>>, %arg2: memref<1x75x196xbf16, #tpu.memory_space<vmem>>, %arg3: memref<1x75x196xbf16, #tpu.memory_space<vmem>>, %arg4: memref<1x75x196xbf16, #tpu.memory_space<vmem>>, %arg5: memref<6x75xbf16, #tpu.memory_space<vmem>>, %arg6: memref<6x1xf32, #tpu.memory_space<vmem>>, %arg7: memref<1x6x196xf32, #tpu.memory_space<vmem>>) attributes {dimension_semantics = [#tpu.dimension_semantics<parallel>], iteration_bounds = array<i64: 2>, scalar_prefetch = 0 : i64, scratch_operands = 0 : i64, tpu.core_type = #tpu.core_type<tc>, window_params = [{transform_indices = @transform_0, window_bounds = array<i64: 1, 75, 196>}, {transform_indices = @transform_1, window_bounds = array<i64: 1, 75, 196>}, {transform_indices = @transform_2, window_bounds = array<i64: 1, 75, 196>}, {transform_indices = @transform_3, window_bounds = array<i64: 1, 75, 196>}, {pipeline_mode = #tpu.pipeline_mode<synchronous>, transform_indices = @transform_4, window_bounds = array<i64: 6, 75>}, {pipeline_mode = #tpu.pipeline_mode<synchronous>, transform_indices = @transform_5, window_bounds = array<i64: 6, 1>}, {transform_indices = @transform_6, window_bounds = array<i64: 1, 6, 196>}]} {
    %c0 = arith.constant 0 : index
    %c0_0 = arith.constant 0 : index
    %0 = vector.load %arg5[%c0, %c0_0] : memref<6x75xbf16, #tpu.memory_space<vmem>>, vector<6x75xbf16>
    %c0_1 = arith.constant 0 : index
    %c0_2 = arith.constant 0 : index
    %c0_3 = arith.constant 0 : index
    %1 = vector.load %arg1[%c0_1, %c0_2, %c0_3] : memref<1x75x196xbf16, #tpu.memory_space<vmem>>, vector<1x75x196xbf16>
    %2 = vector.shape_cast %1 : vector<1x75x196xbf16> to vector<75x196xbf16>
    %cst = arith.constant dense<0.000000e+00> : vector<6x196xf32>
    %3 = tpu.matmul %0, %2, %cst {dimension_numbers = #tpu.dot_dimension_numbers<[1], [0], [0], [1], [0, 0, 1, 1], [], []>} : vector<6x75xbf16>, vector<75x196xbf16>, vector<6x196xf32> -> vector<6x196xf32>
    %c0_4 = arith.constant 0 : index
    %c0_5 = arith.constant 0 : index
    %c0_6 = arith.constant 0 : index
    %4 = vector.load %arg2[%c0_4, %c0_5, %c0_6] : memref<1x75x196xbf16, #tpu.memory_space<vmem>>, vector<1x75x196xbf16>
    %5 = vector.shape_cast %4 : vector<1x75x196xbf16> to vector<75x196xbf16>
    %cst_7 = arith.constant dense<0.000000e+00> : vector<6x196xf32>
    %6 = tpu.matmul %0, %5, %cst_7 {dimension_numbers = #tpu.dot_dimension_numbers<[1], [0], [0], [1], [0, 0, 1, 1], [], []>} : vector<6x75xbf16>, vector<75x196xbf16>, vector<6x196xf32> -> vector<6x196xf32>
    %7 = arith.maximumf %3, %6 : vector<6x196xf32>
    %c0_8 = arith.constant 0 : index
    %c0_9 = arith.constant 0 : index
    %c0_10 = arith.constant 0 : index
    %8 = vector.load %arg3[%c0_8, %c0_9, %c0_10] : memref<1x75x196xbf16, #tpu.memory_space<vmem>>, vector<1x75x196xbf16>
    %9 = vector.shape_cast %8 : vector<1x75x196xbf16> to vector<75x196xbf16>
    %cst_11 = arith.constant dense<0.000000e+00> : vector<6x196xf32>
    %10 = tpu.matmul %0, %9, %cst_11 {dimension_numbers = #tpu.dot_dimension_numbers<[1], [0], [0], [1], [0, 0, 1, 1], [], []>} : vector<6x75xbf16>, vector<75x196xbf16>, vector<6x196xf32> -> vector<6x196xf32>
    %c0_12 = arith.constant 0 : index
    %c0_13 = arith.constant 0 : index
    %c0_14 = arith.constant 0 : index
    %11 = vector.load %arg4[%c0_12, %c0_13, %c0_14] : memref<1x75x196xbf16, #tpu.memory_space<vmem>>, vector<1x75x196xbf16>
    %12 = vector.shape_cast %11 : vector<1x75x196xbf16> to vector<75x196xbf16>
    %cst_15 = arith.constant dense<0.000000e+00> : vector<6x196xf32>
    %13 = tpu.matmul %0, %12, %cst_15 {dimension_numbers = #tpu.dot_dimension_numbers<[1], [0], [0], [1], [0, 0, 1, 1], [], []>} : vector<6x75xbf16>, vector<75x196xbf16>, vector<6x196xf32> -> vector<6x196xf32>
    %14 = arith.maximumf %10, %13 : vector<6x196xf32>
    %15 = arith.maximumf %7, %14 : vector<6x196xf32>
    %c0_16 = arith.constant 0 : index
    %c0_17 = arith.constant 0 : index
    %16 = vector.load %arg6[%c0_16, %c0_17] : memref<6x1xf32, #tpu.memory_space<vmem>>, vector<6x1xf32>
    %17 = vector.broadcast %16 : vector<6x1xf32> to vector<6x196xf32>
    %18 = arith.addf %15, %17 : vector<6x196xf32>
    %cst_18 = arith.constant 0.000000e+00 : f32
    %19 = vector.broadcast %cst_18 : f32 to vector<6x196xf32>
    %20 = arith.maximumf %18, %19 : vector<6x196xf32>
    %c0_19 = arith.constant 0 : index
    %c0_20 = arith.constant 0 : index
    %c0_21 = arith.constant 0 : index
    %21 = vector.load %arg7[%c0_19, %c0_20, %c0_21] : memref<1x6x196xf32, #tpu.memory_space<vmem>>, vector<1x6x196xf32>
    %22 = vector.shape_cast %21 : vector<1x6x196xf32> to vector<6x196xf32>
    %23 = vector.shape_cast %20 : vector<6x196xf32> to vector<1x6x196xf32>
    tpu.vector_store %arg7[%c0_19, %c0_20, %c0_21], %23 {strides = array<i32>} : memref<1x6x196xf32, #tpu.memory_space<vmem>>, vector<1x6x196xf32>,
    return
  }
  func.func @transform_0(%arg0: i32) -> (i32, i32, i32) {
    %c0_i32 = arith.constant 0 : i32
    %c0_i32_0 = arith.constant 0 : i32
    %c0_i32_1 = arith.constant 0 : i32
    return %arg0, %c0_i32, %c0_i32_0 : i32, i32, i32
  }
  func.func @transform_1(%arg0: i32) -> (i32, i32, i32) {
    %c0_i32 = arith.constant 0 : i32
    %c0_i32_0 = arith.constant 0 : i32
    %c0_i32_1 = arith.constant 0 : i32
    return %arg0, %c0_i32, %c0_i32_0 : i32, i32, i32
  }
  func.func @transform_2(%arg0: i32) -> (i32, i32, i32) {
    %c0_i32 = arith.constant 0 : i32
    %c0_i32_0 = arith.constant 0 : i32
    %c0_i32_1 = arith.constant 0 : i32
    return %arg0, %c0_i32, %c0_i32_0 : i32, i32, i32
  }
  func.func @transform_3(%arg0: i32) -> (i32, i32, i32) {
    %c0_i32 = arith.constant 0 : i32
    %c0_i32_0 = arith.constant 0 : i32
    %c0_i32_1 = arith.constant 0 : i32
    return %arg0, %c0_i32, %c0_i32_0 : i32, i32, i32
  }
  func.func @transform_4(%arg0: i32) -> (i32, i32) {
    %c0_i32 = arith.constant 0 : i32
    %c0_i32_0 = arith.constant 0 : i32
    %c0_i32_1 = arith.constant 0 : i32
    return %c0_i32, %c0_i32_0 : i32, i32
  }
  func.func @transform_5(%arg0: i32) -> (i32, i32) {
    %c0_i32 = arith.constant 0 : i32
    %c0_i32_0 = arith.constant 0 : i32
    %c0_i32_1 = arith.constant 0 : i32
    return %c0_i32, %c0_i32_0 : i32, i32
  }
  func.func @transform_6(%arg0: i32) -> (i32, i32, i32) {
    %c0_i32 = arith.constant 0 : i32
    %c0_i32_0 = arith.constant 0 : i32
    %c0_i32_1 = arith.constant 0 : i32
    return %arg0, %c0_i32, %c0_i32_0 : i32, i32, i32
  }
}

module attributes {stable_mosaic.version = 11 : i64} {
  func.func @_tail_kernel(%arg0: i32, %arg1: memref<1x25x150xbf16, #tpu.memory_space<vmem>>, %arg2: memref<1x25x150xbf16, #tpu.memory_space<vmem>>, %arg3: memref<1x25x150xbf16, #tpu.memory_space<vmem>>, %arg4: memref<1x25x150xbf16, #tpu.memory_space<vmem>>, %arg5: memref<150x32xbf16, #tpu.memory_space<vmem>>, %arg6: memref<1x32xf32, #tpu.memory_space<vmem>>, %arg7: memref<49x25xf32, #tpu.memory_space<vmem>>, %arg8: memref<49x1xf32, #tpu.memory_space<vmem>>, %arg9: memref<8x9x32x32xbf16, #tpu.memory_space<vmem>>, %arg10: memref<8x1x32xf32, #tpu.memory_space<vmem>>, %arg11: memref<8x1x32xf32, #tpu.memory_space<vmem>>, %arg12: memref<32x32xbf16, #tpu.memory_space<vmem>>, %arg13: memref<1x32xf32, #tpu.memory_space<vmem>>, %arg14: memref<1x32xf32, #tpu.memory_space<vmem>>, %arg15: memref<25x32x10xbf16, #tpu.memory_space<vmem>>, %arg16: memref<1x10xf32, #tpu.memory_space<vmem>>, %arg17: memref<1x1x10xf32, #tpu.memory_space<vmem>>, %arg18: memref<65x32xf32, #tpu.memory_space<vmem>>, %arg19: memref<65x32xf32, #tpu.memory_space<vmem>>) attributes {dimension_semantics = [#tpu.dimension_semantics<parallel>], iteration_bounds = array<i64: 2>, scalar_prefetch = 0 : i64, scratch_operands = 2 : i64, tpu.core_type = #tpu.core_type<tc>, window_params = [{transform_indices = @transform_0, window_bounds = array<i64: 1, 25, 150>}, {transform_indices = @transform_1, window_bounds = array<i64: 1, 25, 150>}, {transform_indices = @transform_2, window_bounds = array<i64: 1, 25, 150>}, {transform_indices = @transform_3, window_bounds = array<i64: 1, 25, 150>}, {pipeline_mode = #tpu.pipeline_mode<synchronous>, transform_indices = @transform_4, window_bounds = array<i64: 150, 32>}, {pipeline_mode = #tpu.pipeline_mode<synchronous>, transform_indices = @transform_5, window_bounds = array<i64: 1, 32>}, {pipeline_mode = #tpu.pipeline_mode<synchronous>, transform_indices = @transform_6, window_bounds = array<i64: 49, 25>}, {pipeline_mode = #tpu.pipeline_mode<synchronous>, transform_indices = @transform_7, window_bounds = array<i64: 49, 1>}, {pipeline_mode = #tpu.pipeline_mode<synchronous>, transform_indices = @transform_8, window_bounds = array<i64: 8, 9, 32, 32>}, {pipeline_mode = #tpu.pipeline_mode<synchronous>, transform_indices = @transform_9, window_bounds = array<i64: 8, 1, 32>}, {pipeline_mode = #tpu.pipeline_mode<synchronous>, transform_indices = @transform_10, window_bounds = array<i64: 8, 1, 32>}, {pipeline_mode = #tpu.pipeline_mode<synchronous>, transform_indices = @transform_11, window_bounds = array<i64: 32, 32>}, {pipeline_mode = #tpu.pipeline_mode<synchronous>, transform_indices = @transform_12, window_bounds = array<i64: 1, 32>}, {pipeline_mode = #tpu.pipeline_mode<synchronous>, transform_indices = @transform_13, window_bounds = array<i64: 1, 32>}, {pipeline_mode = #tpu.pipeline_mode<synchronous>, transform_indices = @transform_14, window_bounds = array<i64: 25, 32, 10>}, {pipeline_mode = #tpu.pipeline_mode<synchronous>, transform_indices = @transform_15, window_bounds = array<i64: 1, 10>}, {transform_indices = @transform_16, window_bounds = array<i64: 1, 1, 10>}]} {
    %c0 = arith.constant 0 : index
    %c0_0 = arith.constant 0 : index
    %0 = vector.load %arg8[%c0, %c0_0] : memref<49x1xf32, #tpu.memory_space<vmem>>, vector<49x1xf32>
    %c0_1 = arith.constant 0 : index
    %c0_2 = arith.constant 0 : index
    %1 = vector.load %arg5[%c0_1, %c0_2] : memref<150x32xbf16, #tpu.memory_space<vmem>>, vector<150x32xbf16>
    %c0_3 = arith.constant 0 : index
    %c0_4 = arith.constant 0 : index
    %c0_5 = arith.constant 0 : index
    %2 = vector.load %arg1[%c0_3, %c0_4, %c0_5] : memref<1x25x150xbf16, #tpu.memory_space<vmem>>, vector<1x25x150xbf16>
    %3 = vector.shape_cast %2 : vector<1x25x150xbf16> to vector<25x150xbf16>
    %cst = arith.constant dense<0.000000e+00> : vector<25x32xf32>
    %4 = tpu.matmul %3, %1, %cst {dimension_numbers = #tpu.dot_dimension_numbers<[1], [0], [0], [1], [0, 0, 1, 1], [], []>} : vector<25x150xbf16>, vector<150x32xbf16>, vector<25x32xf32> -> vector<25x32xf32>
    %c0_6 = arith.constant 0 : index
    %c0_7 = arith.constant 0 : index
    %c0_8 = arith.constant 0 : index
    %5 = vector.load %arg2[%c0_6, %c0_7, %c0_8] : memref<1x25x150xbf16, #tpu.memory_space<vmem>>, vector<1x25x150xbf16>
    %6 = vector.shape_cast %5 : vector<1x25x150xbf16> to vector<25x150xbf16>
    %cst_9 = arith.constant dense<0.000000e+00> : vector<25x32xf32>
    %7 = tpu.matmul %6, %1, %cst_9 {dimension_numbers = #tpu.dot_dimension_numbers<[1], [0], [0], [1], [0, 0, 1, 1], [], []>} : vector<25x150xbf16>, vector<150x32xbf16>, vector<25x32xf32> -> vector<25x32xf32>
    %8 = arith.maximumf %4, %7 : vector<25x32xf32>
    %c0_10 = arith.constant 0 : index
    %c0_11 = arith.constant 0 : index
    %c0_12 = arith.constant 0 : index
    %9 = vector.load %arg3[%c0_10, %c0_11, %c0_12] : memref<1x25x150xbf16, #tpu.memory_space<vmem>>, vector<1x25x150xbf16>
    %10 = vector.shape_cast %9 : vector<1x25x150xbf16> to vector<25x150xbf16>
    %cst_13 = arith.constant dense<0.000000e+00> : vector<25x32xf32>
    %11 = tpu.matmul %10, %1, %cst_13 {dimension_numbers = #tpu.dot_dimension_numbers<[1], [0], [0], [1], [0, 0, 1, 1], [], []>} : vector<25x150xbf16>, vector<150x32xbf16>, vector<25x32xf32> -> vector<25x32xf32>
    %c0_14 = arith.constant 0 : index
    %c0_15 = arith.constant 0 : index
    %c0_16 = arith.constant 0 : index
    %12 = vector.load %arg4[%c0_14, %c0_15, %c0_16] : memref<1x25x150xbf16, #tpu.memory_space<vmem>>, vector<1x25x150xbf16>
    %13 = vector.shape_cast %12 : vector<1x25x150xbf16> to vector<25x150xbf16>
    %cst_17 = arith.constant dense<0.000000e+00> : vector<25x32xf32>
    %14 = tpu.matmul %13, %1, %cst_17 {dimension_numbers = #tpu.dot_dimension_numbers<[1], [0], [0], [1], [0, 0, 1, 1], [], []>} : vector<25x150xbf16>, vector<150x32xbf16>, vector<25x32xf32> -> vector<25x32xf32>
    %15 = arith.maximumf %11, %14 : vector<25x32xf32>
    %16 = arith.maximumf %8, %15 : vector<25x32xf32>
    %c0_18 = arith.constant 0 : index
    %c0_19 = arith.constant 0 : index
    %17 = vector.load %arg6[%c0_18, %c0_19] : memref<1x32xf32, #tpu.memory_space<vmem>>, vector<1x32xf32>
    %18 = vector.broadcast %17 : vector<1x32xf32> to vector<25x32xf32>
    %19 = arith.addf %16, %18 : vector<25x32xf32>
    %cst_20 = arith.constant 0.000000e+00 : f32
    %20 = vector.broadcast %cst_20 : f32 to vector<25x32xf32>
    %21 = arith.maximumf %19, %20 : vector<25x32xf32>
    %cst_21 = arith.constant 0.000000e+00 : f32
    %22 = vector.broadcast %cst_21 : f32 to vector<65x32xf32>
    %c0_22 = arith.constant 0 : index
    %c0_23 = arith.constant 0 : index
    %23 = vector.load %arg18[%c0_22, %c0_23] : memref<65x32xf32, #tpu.memory_space<vmem>>, vector<65x32xf32>
    tpu.vector_store %arg18[%c0_22, %c0_23], %22 {strides = array<i32>} : memref<65x32xf32, #tpu.memory_space<vmem>>, vector<65x32xf32>,
    %cst_24 = arith.constant 0.000000e+00 : f32
    %24 = vector.broadcast %cst_24 : f32 to vector<65x32xf32>
    %c0_25 = arith.constant 0 : index
    %c0_26 = arith.constant 0 : index
    %25 = vector.load %arg19[%c0_25, %c0_26] : memref<65x32xf32, #tpu.memory_space<vmem>>, vector<65x32xf32>
    tpu.vector_store %arg19[%c0_25, %c0_26], %24 {strides = array<i32>} : memref<65x32xf32, #tpu.memory_space<vmem>>, vector<65x32xf32>,
    %c0_27 = arith.constant 0 : index
    %c0_28 = arith.constant 0 : index
    %26 = vector.load %arg7[%c0_27, %c0_28] : memref<49x25xf32, #tpu.memory_space<vmem>>, vector<49x25xf32>
    %cst_29 = arith.constant dense<0.000000e+00> : vector<49x32xf32>
    %27 = tpu.matmul %26, %21, %cst_29 {dimension_numbers = #tpu.dot_dimension_numbers<[1], [0], [0], [1], [0, 0, 1, 1], [], []>} : vector<49x25xf32>, vector<25x32xf32>, vector<49x32xf32> -> vector<49x32xf32>
    %c8 = arith.constant 8 : index
    %c0_30 = arith.constant 0 : index
    %28 = vector.load %arg18[%c8, %c0_30] : memref<65x32xf32, #tpu.memory_space<vmem>>, vector<49x32xf32>
    tpu.vector_store %arg18[%c8, %c0_30], %27 {strides = array<i32>} : memref<65x32xf32, #tpu.memory_space<vmem>>, vector<49x32xf32>,
    %c8_31 = arith.constant 8 : index
    %c0_32 = arith.constant 0 : index
    %29 = vector.load %arg18[%c8_31, %c0_32] : memref<65x32xf32, #tpu.memory_space<vmem>>, vector<49x32xf32>
    %c0_33 = arith.constant 0 : index
    %c0_34 = arith.constant 0 : index
    %30 = vector.load %arg18[%c0_33, %c0_34] : memref<65x32xf32, #tpu.memory_space<vmem>>, vector<65x32xf32>
    %31 = vector.extract_strided_slice %30 {offsets = [0, 0], sizes = [49, 32], strides = [1, 1]} : vector<65x32xf32> to vector<49x32xf32>
    %32 = arith.truncf %31 : vector<49x32xf32> to vector<49x32xbf16>
    %c0_35 = arith.constant 0 : index
    %c0_36 = arith.constant 0 : index
    %c0_37 = arith.constant 0 : index
    %c0_38 = arith.constant 0 : index
    %33 = vector.load %arg9[%c0_35, %c0_36, %c0_37, %c0_38] : memref<8x9x32x32xbf16, #tpu.memory_space<vmem>>, vector<1x1x32x32xbf16>
    %34 = vector.shape_cast %33 : vector<1x1x32x32xbf16> to vector<32x32xbf16>
    %cst_39 = arith.constant dense<0.000000e+00> : vector<49x32xf32>
    %35 = tpu.matmul %32, %34, %cst_39 {dimension_numbers = #tpu.dot_dimension_numbers<[1], [0], [0], [1], [0, 0, 1, 1], [], []>} : vector<49x32xbf16>, vector<32x32xbf16>, vector<49x32xf32> -> vector<49x32xf32>
    %36 = vector.extract_strided_slice %30 {offsets = [1, 0], sizes = [49, 32], strides = [1, 1]} : vector<65x32xf32> to vector<49x32xf32>
    %37 = arith.truncf %36 : vector<49x32xf32> to vector<49x32xbf16>
    %c0_40 = arith.constant 0 : index
    %c1 = arith.constant 1 : index
    %c0_41 = arith.constant 0 : index
    %c0_42 = arith.constant 0 : index
    %38 = vector.load %arg9[%c0_40, %c1, %c0_41, %c0_42] : memref<8x9x32x32xbf16, #tpu.memory_space<vmem>>, vector<1x1x32x32xbf16>
    %39 = vector.shape_cast %38 : vector<1x1x32x32xbf16> to vector<32x32xbf16>
    %cst_43 = arith.constant dense<0.000000e+00> : vector<49x32xf32>
    %40 = tpu.matmul %37, %39, %cst_43 {dimension_numbers = #tpu.dot_dimension_numbers<[1], [0], [0], [1], [0, 0, 1, 1], [], []>} : vector<49x32xbf16>, vector<32x32xbf16>, vector<49x32xf32> -> vector<49x32xf32>
    %41 = arith.addf %35, %40 : vector<49x32xf32>
    %42 = vector.extract_strided_slice %30 {offsets = [2, 0], sizes = [49, 32], strides = [1, 1]} : vector<65x32xf32> to vector<49x32xf32>
    %43 = arith.truncf %42 : vector<49x32xf32> to vector<49x32xbf16>
    %c0_44 = arith.constant 0 : index
    %c2 = arith.constant 2 : index
    %c0_45 = arith.constant 0 : index
    %c0_46 = arith.constant 0 : index
    %44 = vector.load %arg9[%c0_44, %c2, %c0_45, %c0_46] : memref<8x9x32x32xbf16, #tpu.memory_space<vmem>>, vector<1x1x32x32xbf16>
    %45 = vector.shape_cast %44 : vector<1x1x32x32xbf16> to vector<32x32xbf16>
    %cst_47 = arith.constant dense<0.000000e+00> : vector<49x32xf32>
    %46 = tpu.matmul %43, %45, %cst_47 {dimension_numbers = #tpu.dot_dimension_numbers<[1], [0], [0], [1], [0, 0, 1, 1], [], []>} : vector<49x32xbf16>, vector<32x32xbf16>, vector<49x32xf32> -> vector<49x32xf32>
    %47 = arith.addf %41, %46 : vector<49x32xf32>
    %48 = vector.extract_strided_slice %30 {offsets = [7, 0], sizes = [49, 32], strides = [1, 1]} : vector<65x32xf32> to vector<49x32xf32>
    %49 = arith.truncf %48 : vector<49x32xf32> to vector<49x32xbf16>
    %c0_48 = arith.constant 0 : index
    %c3 = arith.constant 3 : index
    %c0_49 = arith.constant 0 : index
    %c0_50 = arith.constant 0 : index
    %50 = vector.load %arg9[%c0_48, %c3, %c0_49, %c0_50] : memref<8x9x32x32xbf16, #tpu.memory_space<vmem>>, vector<1x1x32x32xbf16>
    %51 = vector.shape_cast %50 : vector<1x1x32x32xbf16> to vector<32x32xbf16>
    %cst_51 = arith.constant dense<0.000000e+00> : vector<49x32xf32>
    %52 = tpu.matmul %49, %51, %cst_51 {dimension_numbers = #tpu.dot_dimension_numbers<[1], [0], [0], [1], [0, 0, 1, 1], [], []>} : vector<49x32xbf16>, vector<32x32xbf16>, vector<49x32xf32> -> vector<49x32xf32>
    %53 = arith.addf %47, %52 : vector<49x32xf32>
    %54 = vector.extract_strided_slice %30 {offsets = [8, 0], sizes = [49, 32], strides = [1, 1]} : vector<65x32xf32> to vector<49x32xf32>
    %55 = arith.truncf %54 : vector<49x32xf32> to vector<49x32xbf16>
    %c0_52 = arith.constant 0 : index
    %c4 = arith.constant 4 : index
    %c0_53 = arith.constant 0 : index
    %c0_54 = arith.constant 0 : index
    %56 = vector.load %arg9[%c0_52, %c4, %c0_53, %c0_54] : memref<8x9x32x32xbf16, #tpu.memory_space<vmem>>, vector<1x1x32x32xbf16>
    %57 = vector.shape_cast %56 : vector<1x1x32x32xbf16> to vector<32x32xbf16>
    %cst_55 = arith.constant dense<0.000000e+00> : vector<49x32xf32>
    %58 = tpu.matmul %55, %57, %cst_55 {dimension_numbers = #tpu.dot_dimension_numbers<[1], [0], [0], [1], [0, 0, 1, 1], [], []>} : vector<49x32xbf16>, vector<32x32xbf16>, vector<49x32xf32> -> vector<49x32xf32>
    %59 = arith.addf %53, %58 : vector<49x32xf32>
    %60 = vector.extract_strided_slice %30 {offsets = [9, 0], sizes = [49, 32], strides = [1, 1]} : vector<65x32xf32> to vector<49x32xf32>
    %61 = arith.truncf %60 : vector<49x32xf32> to vector<49x32xbf16>
    %c0_56 = arith.constant 0 : index
    %c5 = arith.constant 5 : index
    %c0_57 = arith.constant 0 : index
    %c0_58 = arith.constant 0 : index
    %62 = vector.load %arg9[%c0_56, %c5, %c0_57, %c0_58] : memref<8x9x32x32xbf16, #tpu.memory_space<vmem>>, vector<1x1x32x32xbf16>
    %63 = vector.shape_cast %62 : vector<1x1x32x32xbf16> to vector<32x32xbf16>
    %cst_59 = arith.constant dense<0.000000e+00> : vector<49x32xf32>
    %64 = tpu.matmul %61, %63, %cst_59 {dimension_numbers = #tpu.dot_dimension_numbers<[1], [0], [0], [1], [0, 0, 1, 1], [], []>} : vector<49x32xbf16>, vector<32x32xbf16>, vector<49x32xf32> -> vector<49x32xf32>
    %65 = arith.addf %59, %64 : vector<49x32xf32>
    %66 = vector.extract_strided_slice %30 {offsets = [14, 0], sizes = [49, 32], strides = [1, 1]} : vector<65x32xf32> to vector<49x32xf32>
    %67 = arith.truncf %66 : vector<49x32xf32> to vector<49x32xbf16>
    %c0_60 = arith.constant 0 : index
    %c6 = arith.constant 6 : index
    %c0_61 = arith.constant 0 : index
    %c0_62 = arith.constant 0 : index
    %68 = vector.load %arg9[%c0_60, %c6, %c0_61, %c0_62] : memref<8x9x32x32xbf16, #tpu.memory_space<vmem>>, vector<1x1x32x32xbf16>
    %69 = vector.shape_cast %68 : vector<1x1x32x32xbf16> to vector<32x32xbf16>
    %cst_63 = arith.constant dense<0.000000e+00> : vector<49x32xf32>
    %70 = tpu.matmul %67, %69, %cst_63 {dimension_numbers = #tpu.dot_dimension_numbers<[1], [0], [0], [1], [0, 0, 1, 1], [], []>} : vector<49x32xbf16>, vector<32x32xbf16>, vector<49x32xf32> -> vector<49x32xf32>
    %71 = arith.addf %65, %70 : vector<49x32xf32>
    %72 = vector.extract_strided_slice %30 {offsets = [15, 0], sizes = [49, 32], strides = [1, 1]} : vector<65x32xf32> to vector<49x32xf32>
    %73 = arith.truncf %72 : vector<49x32xf32> to vector<49x32xbf16>
    %c0_64 = arith.constant 0 : index
    %c7 = arith.constant 7 : index
    %c0_65 = arith.constant 0 : index
    %c0_66 = arith.constant 0 : index
    %74 = vector.load %arg9[%c0_64, %c7, %c0_65, %c0_66] : memref<8x9x32x32xbf16, #tpu.memory_space<vmem>>, vector<1x1x32x32xbf16>
    %75 = vector.shape_cast %74 : vector<1x1x32x32xbf16> to vector<32x32xbf16>
    %cst_67 = arith.constant dense<0.000000e+00> : vector<49x32xf32>
    %76 = tpu.matmul %73, %75, %cst_67 {dimension_numbers = #tpu.dot_dimension_numbers<[1], [0], [0], [1], [0, 0, 1, 1], [], []>} : vector<49x32xbf16>, vector<32x32xbf16>, vector<49x32xf32> -> vector<49x32xf32>
    %77 = arith.addf %71, %76 : vector<49x32xf32>
    %78 = vector.extract_strided_slice %30 {offsets = [16, 0], sizes = [49, 32], strides = [1, 1]} : vector<65x32xf32> to vector<49x32xf32>
    %79 = arith.truncf %78 : vector<49x32xf32> to vector<49x32xbf16>
    %c0_68 = arith.constant 0 : index
    %c8_69 = arith.constant 8 : index
    %c0_70 = arith.constant 0 : index
    %c0_71 = arith.constant 0 : index
    %80 = vector.load %arg9[%c0_68, %c8_69, %c0_70, %c0_71] : memref<8x9x32x32xbf16, #tpu.memory_space<vmem>>, vector<1x1x32x32xbf16>
    %81 = vector.shape_cast %80 : vector<1x1x32x32xbf16> to vector<32x32xbf16>
    %cst_72 = arith.constant dense<0.000000e+00> : vector<49x32xf32>
    %82 = tpu.matmul %79, %81, %cst_72 {dimension_numbers = #tpu.dot_dimension_numbers<[1], [0], [0], [1], [0, 0, 1, 1], [], []>} : vector<49x32xbf16>, vector<32x32xbf16>, vector<49x32xf32> -> vector<49x32xf32>
    %83 = arith.addf %77, %82 : vector<49x32xf32>
    %c0_73 = arith.constant 0 : index
    %c0_74 = arith.constant 0 : index
    %c0_75 = arith.constant 0 : index
    %84 = vector.load %arg10[%c0_73, %c0_74, %c0_75] : memref<8x1x32xf32, #tpu.memory_space<vmem>>, vector<1x1x32xf32>
    %85 = vector.shape_cast %84 : vector<1x1x32xf32> to vector<1x32xf32>
    %86 = vector.broadcast %85 : vector<1x32xf32> to vector<49x32xf32>
    %87 = arith.mulf %83, %86 : vector<49x32xf32>
    %c0_76 = arith.constant 0 : index
    %c0_77 = arith.constant 0 : index
    %c0_78 = arith.constant 0 : index
    %88 = vector.load %arg11[%c0_76, %c0_77, %c0_78] : memref<8x1x32xf32, #tpu.memory_space<vmem>>, vector<1x1x32xf32>
    %89 = vector.shape_cast %88 : vector<1x1x32xf32> to vector<1x32xf32>
    %90 = vector.broadcast %89 : vector<1x32xf32> to vector<49x32xf32>
    %91 = arith.addf %87, %90 : vector<49x32xf32>
    %cst_79 = arith.constant 0.000000e+00 : f32
    %92 = vector.broadcast %cst_79 : f32 to vector<49x32xf32>
    %93 = arith.maximumf %91, %92 : vector<49x32xf32>
    %94 = vector.broadcast %0 : vector<49x1xf32> to vector<49x32xf32>
    %95 = arith.mulf %93, %94 : vector<49x32xf32>
    %c8_80 = arith.constant 8 : index
    %c0_81 = arith.constant 0 : index
    %96 = vector.load %arg19[%c8_80, %c0_81] : memref<65x32xf32, #tpu.memory_space<vmem>>, vector<49x32xf32>
    tpu.vector_store %arg19[%c8_80, %c0_81], %95 {strides = array<i32>} : memref<65x32xf32, #tpu.memory_space<vmem>>, vector<49x32xf32>,
    %c0_82 = arith.constant 0 : index
    %c0_83 = arith.constant 0 : index
    %97 = vector.load %arg19[%c0_82, %c0_83] : memref<65x32xf32, #tpu.memory_space<vmem>>, vector<65x32xf32>
    %98 = vector.extract_strided_slice %97 {offsets = [0, 0], sizes = [49, 32], strides = [1, 1]} : vector<65x32xf32> to vector<49x32xf32>
    %99 = arith.truncf %98 : vector<49x32xf32> to vector<49x32xbf16>
    %c1_84 = arith.constant 1 : index
    %c0_85 = arith.constant 0 : index
    %c0_86 = arith.constant 0 : index
    %c0_87 = arith.constant 0 : index
    %100 = vector.load %arg9[%c1_84, %c0_85, %c0_86, %c0_87] : memref<8x9x32x32xbf16, #tpu.memory_space<vmem>>, vector<1x1x32x32xbf16>
    %101 = vector.shape_cast %100 : vector<1x1x32x32xbf16> to vector<32x32xbf16>
    %cst_88 = arith.constant dense<0.000000e+00> : vector<49x32xf32>
    %102 = tpu.matmul %99, %101, %cst_88 {dimension_numbers = #tpu.dot_dimension_numbers<[1], [0], [0], [1], [0, 0, 1, 1], [], []>} : vector<49x32xbf16>, vector<32x32xbf16>, vector<49x32xf32> -> vector<49x32xf32>
    %103 = vector.extract_strided_slice %97 {offsets = [1, 0], sizes = [49, 32], strides = [1, 1]} : vector<65x32xf32> to vector<49x32xf32>
    %104 = arith.truncf %103 : vector<49x32xf32> to vector<49x32xbf16>
    %c1_89 = arith.constant 1 : index
    %c1_90 = arith.constant 1 : index
    %c0_91 = arith.constant 0 : index
    %c0_92 = arith.constant 0 : index
    %105 = vector.load %arg9[%c1_89, %c1_90, %c0_91, %c0_92] : memref<8x9x32x32xbf16, #tpu.memory_space<vmem>>, vector<1x1x32x32xbf16>
    %106 = vector.shape_cast %105 : vector<1x1x32x32xbf16> to vector<32x32xbf16>
    %cst_93 = arith.constant dense<0.000000e+00> : vector<49x32xf32>
    %107 = tpu.matmul %104, %106, %cst_93 {dimension_numbers = #tpu.dot_dimension_numbers<[1], [0], [0], [1], [0, 0, 1, 1], [], []>} : vector<49x32xbf16>, vector<32x32xbf16>, vector<49x32xf32> -> vector<49x32xf32>
    %108 = arith.addf %102, %107 : vector<49x32xf32>
    %109 = vector.extract_strided_slice %97 {offsets = [2, 0], sizes = [49, 32], strides = [1, 1]} : vector<65x32xf32> to vector<49x32xf32>
    %110 = arith.truncf %109 : vector<49x32xf32> to vector<49x32xbf16>
    %c1_94 = arith.constant 1 : index
    %c2_95 = arith.constant 2 : index
    %c0_96 = arith.constant 0 : index
    %c0_97 = arith.constant 0 : index
    %111 = vector.load %arg9[%c1_94, %c2_95, %c0_96, %c0_97] : memref<8x9x32x32xbf16, #tpu.memory_space<vmem>>, vector<1x1x32x32xbf16>
    %112 = vector.shape_cast %111 : vector<1x1x32x32xbf16> to vector<32x32xbf16>
    %cst_98 = arith.constant dense<0.000000e+00> : vector<49x32xf32>
    %113 = tpu.matmul %110, %112, %cst_98 {dimension_numbers = #tpu.dot_dimension_numbers<[1], [0], [0], [1], [0, 0, 1, 1], [], []>} : vector<49x32xbf16>, vector<32x32xbf16>, vector<49x32xf32> -> vector<49x32xf32>
    %114 = arith.addf %108, %113 : vector<49x32xf32>
    %115 = vector.extract_strided_slice %97 {offsets = [7, 0], sizes = [49, 32], strides = [1, 1]} : vector<65x32xf32> to vector<49x32xf32>
    %116 = arith.truncf %115 : vector<49x32xf32> to vector<49x32xbf16>
    %c1_99 = arith.constant 1 : index
    %c3_100 = arith.constant 3 : index
    %c0_101 = arith.constant 0 : index
    %c0_102 = arith.constant 0 : index
    %117 = vector.load %arg9[%c1_99, %c3_100, %c0_101, %c0_102] : memref<8x9x32x32xbf16, #tpu.memory_space<vmem>>, vector<1x1x32x32xbf16>
    %118 = vector.shape_cast %117 : vector<1x1x32x32xbf16> to vector<32x32xbf16>
    %cst_103 = arith.constant dense<0.000000e+00> : vector<49x32xf32>
    %119 = tpu.matmul %116, %118, %cst_103 {dimension_numbers = #tpu.dot_dimension_numbers<[1], [0], [0], [1], [0, 0, 1, 1], [], []>} : vector<49x32xbf16>, vector<32x32xbf16>, vector<49x32xf32> -> vector<49x32xf32>
    %120 = arith.addf %114, %119 : vector<49x32xf32>
    %121 = vector.extract_strided_slice %97 {offsets = [8, 0], sizes = [49, 32], strides = [1, 1]} : vector<65x32xf32> to vector<49x32xf32>
    %122 = arith.truncf %121 : vector<49x32xf32> to vector<49x32xbf16>
    %c1_104 = arith.constant 1 : index
    %c4_105 = arith.constant 4 : index
    %c0_106 = arith.constant 0 : index
    %c0_107 = arith.constant 0 : index
    %123 = vector.load %arg9[%c1_104, %c4_105, %c0_106, %c0_107] : memref<8x9x32x32xbf16, #tpu.memory_space<vmem>>, vector<1x1x32x32xbf16>
    %124 = vector.shape_cast %123 : vector<1x1x32x32xbf16> to vector<32x32xbf16>
    %cst_108 = arith.constant dense<0.000000e+00> : vector<49x32xf32>
    %125 = tpu.matmul %122, %124, %cst_108 {dimension_numbers = #tpu.dot_dimension_numbers<[1], [0], [0], [1], [0, 0, 1, 1], [], []>} : vector<49x32xbf16>, vector<32x32xbf16>, vector<49x32xf32> -> vector<49x32xf32>
    %126 = arith.addf %120, %125 : vector<49x32xf32>
    %127 = vector.extract_strided_slice %97 {offsets = [9, 0], sizes = [49, 32], strides = [1, 1]} : vector<65x32xf32> to vector<49x32xf32>
    %128 = arith.truncf %127 : vector<49x32xf32> to vector<49x32xbf16>
    %c1_109 = arith.constant 1 : index
    %c5_110 = arith.constant 5 : index
    %c0_111 = arith.constant 0 : index
    %c0_112 = arith.constant 0 : index
    %129 = vector.load %arg9[%c1_109, %c5_110, %c0_111, %c0_112] : memref<8x9x32x32xbf16, #tpu.memory_space<vmem>>, vector<1x1x32x32xbf16>
    %130 = vector.shape_cast %129 : vector<1x1x32x32xbf16> to vector<32x32xbf16>
    %cst_113 = arith.constant dense<0.000000e+00> : vector<49x32xf32>
    %131 = tpu.matmul %128, %130, %cst_113 {dimension_numbers = #tpu.dot_dimension_numbers<[1], [0], [0], [1], [0, 0, 1, 1], [], []>} : vector<49x32xbf16>, vector<32x32xbf16>, vector<49x32xf32> -> vector<49x32xf32>
    %132 = arith.addf %126, %131 : vector<49x32xf32>
    %133 = vector.extract_strided_slice %97 {offsets = [14, 0], sizes = [49, 32], strides = [1, 1]} : vector<65x32xf32> to vector<49x32xf32>
    %134 = arith.truncf %133 : vector<49x32xf32> to vector<49x32xbf16>
    %c1_114 = arith.constant 1 : index
    %c6_115 = arith.constant 6 : index
    %c0_116 = arith.constant 0 : index
    %c0_117 = arith.constant 0 : index
    %135 = vector.load %arg9[%c1_114, %c6_115, %c0_116, %c0_117] : memref<8x9x32x32xbf16, #tpu.memory_space<vmem>>, vector<1x1x32x32xbf16>
    %136 = vector.shape_cast %135 : vector<1x1x32x32xbf16> to vector<32x32xbf16>
    %cst_118 = arith.constant dense<0.000000e+00> : vector<49x32xf32>
    %137 = tpu.matmul %134, %136, %cst_118 {dimension_numbers = #tpu.dot_dimension_numbers<[1], [0], [0], [1], [0, 0, 1, 1], [], []>} : vector<49x32xbf16>, vector<32x32xbf16>, vector<49x32xf32> -> vector<49x32xf32>
    %138 = arith.addf %132, %137 : vector<49x32xf32>
    %139 = vector.extract_strided_slice %97 {offsets = [15, 0], sizes = [49, 32], strides = [1, 1]} : vector<65x32xf32> to vector<49x32xf32>
    %140 = arith.truncf %139 : vector<49x32xf32> to vector<49x32xbf16>
    %c1_119 = arith.constant 1 : index
    %c7_120 = arith.constant 7 : index
    %c0_121 = arith.constant 0 : index
    %c0_122 = arith.constant 0 : index
    %141 = vector.load %arg9[%c1_119, %c7_120, %c0_121, %c0_122] : memref<8x9x32x32xbf16, #tpu.memory_space<vmem>>, vector<1x1x32x32xbf16>
    %142 = vector.shape_cast %141 : vector<1x1x32x32xbf16> to vector<32x32xbf16>
    %cst_123 = arith.constant dense<0.000000e+00> : vector<49x32xf32>
    %143 = tpu.matmul %140, %142, %cst_123 {dimension_numbers = #tpu.dot_dimension_numbers<[1], [0], [0], [1], [0, 0, 1, 1], [], []>} : vector<49x32xbf16>, vector<32x32xbf16>, vector<49x32xf32> -> vector<49x32xf32>
    %144 = arith.addf %138, %143 : vector<49x32xf32>
    %145 = vector.extract_strided_slice %97 {offsets = [16, 0], sizes = [49, 32], strides = [1, 1]} : vector<65x32xf32> to vector<49x32xf32>
    %146 = arith.truncf %145 : vector<49x32xf32> to vector<49x32xbf16>
    %c1_124 = arith.constant 1 : index
    %c8_125 = arith.constant 8 : index
    %c0_126 = arith.constant 0 : index
    %c0_127 = arith.constant 0 : index
    %147 = vector.load %arg9[%c1_124, %c8_125, %c0_126, %c0_127] : memref<8x9x32x32xbf16, #tpu.memory_space<vmem>>, vector<1x1x32x32xbf16>
    %148 = vector.shape_cast %147 : vector<1x1x32x32xbf16> to vector<32x32xbf16>
    %cst_128 = arith.constant dense<0.000000e+00> : vector<49x32xf32>
    %149 = tpu.matmul %146, %148, %cst_128 {dimension_numbers = #tpu.dot_dimension_numbers<[1], [0], [0], [1], [0, 0, 1, 1], [], []>} : vector<49x32xbf16>, vector<32x32xbf16>, vector<49x32xf32> -> vector<49x32xf32>
    %150 = arith.addf %144, %149 : vector<49x32xf32>
    %c1_129 = arith.constant 1 : index
    %c0_130 = arith.constant 0 : index
    %c0_131 = arith.constant 0 : index
    %151 = vector.load %arg10[%c1_129, %c0_130, %c0_131] : memref<8x1x32xf32, #tpu.memory_space<vmem>>, vector<1x1x32xf32>
    %152 = vector.shape_cast %151 : vector<1x1x32xf32> to vector<1x32xf32>
    %153 = vector.broadcast %152 : vector<1x32xf32> to vector<49x32xf32>
    %154 = arith.mulf %150, %153 : vector<49x32xf32>
    %c1_132 = arith.constant 1 : index
    %c0_133 = arith.constant 0 : index
    %c0_134 = arith.constant 0 : index
    %155 = vector.load %arg11[%c1_132, %c0_133, %c0_134] : memref<8x1x32xf32, #tpu.memory_space<vmem>>, vector<1x1x32xf32>
    %156 = vector.shape_cast %155 : vector<1x1x32xf32> to vector<1x32xf32>
    %157 = vector.broadcast %156 : vector<1x32xf32> to vector<49x32xf32>
    %158 = arith.addf %154, %157 : vector<49x32xf32>
    %159 = arith.addf %158, %29 : vector<49x32xf32>
    %cst_135 = arith.constant 0.000000e+00 : f32
    %160 = vector.broadcast %cst_135 : f32 to vector<49x32xf32>
    %161 = arith.maximumf %159, %160 : vector<49x32xf32>
    %162 = vector.broadcast %0 : vector<49x1xf32> to vector<49x32xf32>
    %163 = arith.mulf %161, %162 : vector<49x32xf32>
    %c8_136 = arith.constant 8 : index
    %c0_137 = arith.constant 0 : index
    %164 = vector.load %arg18[%c8_136, %c0_137] : memref<65x32xf32, #tpu.memory_space<vmem>>, vector<49x32xf32>
    tpu.vector_store %arg18[%c8_136, %c0_137], %163 {strides = array<i32>} : memref<65x32xf32, #tpu.memory_space<vmem>>, vector<49x32xf32>,
    %c8_138 = arith.constant 8 : index
    %c0_139 = arith.constant 0 : index
    %165 = vector.load %arg18[%c8_138, %c0_139] : memref<65x32xf32, #tpu.memory_space<vmem>>, vector<49x32xf32>
    %c0_140 = arith.constant 0 : index
    %c0_141 = arith.constant 0 : index
    %166 = vector.load %arg18[%c0_140, %c0_141] : memref<65x32xf32, #tpu.memory_space<vmem>>, vector<65x32xf32>
    %167 = vector.extract_strided_slice %166 {offsets = [0, 0], sizes = [49, 32], strides = [1, 1]} : vector<65x32xf32> to vector<49x32xf32>
    %168 = arith.truncf %167 : vector<49x32xf32> to vector<49x32xbf16>
    %c2_142 = arith.constant 2 : index
    %c0_143 = arith.constant 0 : index
    %c0_144 = arith.constant 0 : index
    %c0_145 = arith.constant 0 : index
    %169 = vector.load %arg9[%c2_142, %c0_143, %c0_144, %c0_145] : memref<8x9x32x32xbf16, #tpu.memory_space<vmem>>, vector<1x1x32x32xbf16>
    %170 = vector.shape_cast %169 : vector<1x1x32x32xbf16> to vector<32x32xbf16>
    %cst_146 = arith.constant dense<0.000000e+00> : vector<49x32xf32>
    %171 = tpu.matmul %168, %170, %cst_146 {dimension_numbers = #tpu.dot_dimension_numbers<[1], [0], [0], [1], [0, 0, 1, 1], [], []>} : vector<49x32xbf16>, vector<32x32xbf16>, vector<49x32xf32> -> vector<49x32xf32>
    %172 = vector.extract_strided_slice %166 {offsets = [1, 0], sizes = [49, 32], strides = [1, 1]} : vector<65x32xf32> to vector<49x32xf32>
    %173 = arith.truncf %172 : vector<49x32xf32> to vector<49x32xbf16>
    %c2_147 = arith.constant 2 : index
    %c1_148 = arith.constant 1 : index
    %c0_149 = arith.constant 0 : index
    %c0_150 = arith.constant 0 : index
    %174 = vector.load %arg9[%c2_147, %c1_148, %c0_149, %c0_150] : memref<8x9x32x32xbf16, #tpu.memory_space<vmem>>, vector<1x1x32x32xbf16>
    %175 = vector.shape_cast %174 : vector<1x1x32x32xbf16> to vector<32x32xbf16>
    %cst_151 = arith.constant dense<0.000000e+00> : vector<49x32xf32>
    %176 = tpu.matmul %173, %175, %cst_151 {dimension_numbers = #tpu.dot_dimension_numbers<[1], [0], [0], [1], [0, 0, 1, 1], [], []>} : vector<49x32xbf16>, vector<32x32xbf16>, vector<49x32xf32> -> vector<49x32xf32>
    %177 = arith.addf %171, %176 : vector<49x32xf32>
    %178 = vector.extract_strided_slice %166 {offsets = [2, 0], sizes = [49, 32], strides = [1, 1]} : vector<65x32xf32> to vector<49x32xf32>
    %179 = arith.truncf %178 : vector<49x32xf32> to vector<49x32xbf16>
    %c2_152 = arith.constant 2 : index
    %c2_153 = arith.constant 2 : index
    %c0_154 = arith.constant 0 : index
    %c0_155 = arith.constant 0 : index
    %180 = vector.load %arg9[%c2_152, %c2_153, %c0_154, %c0_155] : memref<8x9x32x32xbf16, #tpu.memory_space<vmem>>, vector<1x1x32x32xbf16>
    %181 = vector.shape_cast %180 : vector<1x1x32x32xbf16> to vector<32x32xbf16>
    %cst_156 = arith.constant dense<0.000000e+00> : vector<49x32xf32>
    %182 = tpu.matmul %179, %181, %cst_156 {dimension_numbers = #tpu.dot_dimension_numbers<[1], [0], [0], [1], [0, 0, 1, 1], [], []>} : vector<49x32xbf16>, vector<32x32xbf16>, vector<49x32xf32> -> vector<49x32xf32>
    %183 = arith.addf %177, %182 : vector<49x32xf32>
    %184 = vector.extract_strided_slice %166 {offsets = [7, 0], sizes = [49, 32], strides = [1, 1]} : vector<65x32xf32> to vector<49x32xf32>
    %185 = arith.truncf %184 : vector<49x32xf32> to vector<49x32xbf16>
    %c2_157 = arith.constant 2 : index
    %c3_158 = arith.constant 3 : index
    %c0_159 = arith.constant 0 : index
    %c0_160 = arith.constant 0 : index
    %186 = vector.load %arg9[%c2_157, %c3_158, %c0_159, %c0_160] : memref<8x9x32x32xbf16, #tpu.memory_space<vmem>>, vector<1x1x32x32xbf16>
    %187 = vector.shape_cast %186 : vector<1x1x32x32xbf16> to vector<32x32xbf16>
    %cst_161 = arith.constant dense<0.000000e+00> : vector<49x32xf32>
    %188 = tpu.matmul %185, %187, %cst_161 {dimension_numbers = #tpu.dot_dimension_numbers<[1], [0], [0], [1], [0, 0, 1, 1], [], []>} : vector<49x32xbf16>, vector<32x32xbf16>, vector<49x32xf32> -> vector<49x32xf32>
    %189 = arith.addf %183, %188 : vector<49x32xf32>
    %190 = vector.extract_strided_slice %166 {offsets = [8, 0], sizes = [49, 32], strides = [1, 1]} : vector<65x32xf32> to vector<49x32xf32>
    %191 = arith.truncf %190 : vector<49x32xf32> to vector<49x32xbf16>
    %c2_162 = arith.constant 2 : index
    %c4_163 = arith.constant 4 : index
    %c0_164 = arith.constant 0 : index
    %c0_165 = arith.constant 0 : index
    %192 = vector.load %arg9[%c2_162, %c4_163, %c0_164, %c0_165] : memref<8x9x32x32xbf16, #tpu.memory_space<vmem>>, vector<1x1x32x32xbf16>
    %193 = vector.shape_cast %192 : vector<1x1x32x32xbf16> to vector<32x32xbf16>
    %cst_166 = arith.constant dense<0.000000e+00> : vector<49x32xf32>
    %194 = tpu.matmul %191, %193, %cst_166 {dimension_numbers = #tpu.dot_dimension_numbers<[1], [0], [0], [1], [0, 0, 1, 1], [], []>} : vector<49x32xbf16>, vector<32x32xbf16>, vector<49x32xf32> -> vector<49x32xf32>
    %195 = arith.addf %189, %194 : vector<49x32xf32>
    %196 = vector.extract_strided_slice %166 {offsets = [9, 0], sizes = [49, 32], strides = [1, 1]} : vector<65x32xf32> to vector<49x32xf32>
    %197 = arith.truncf %196 : vector<49x32xf32> to vector<49x32xbf16>
    %c2_167 = arith.constant 2 : index
    %c5_168 = arith.constant 5 : index
    %c0_169 = arith.constant 0 : index
    %c0_170 = arith.constant 0 : index
    %198 = vector.load %arg9[%c2_167, %c5_168, %c0_169, %c0_170] : memref<8x9x32x32xbf16, #tpu.memory_space<vmem>>, vector<1x1x32x32xbf16>
    %199 = vector.shape_cast %198 : vector<1x1x32x32xbf16> to vector<32x32xbf16>
    %cst_171 = arith.constant dense<0.000000e+00> : vector<49x32xf32>
    %200 = tpu.matmul %197, %199, %cst_171 {dimension_numbers = #tpu.dot_dimension_numbers<[1], [0], [0], [1], [0, 0, 1, 1], [], []>} : vector<49x32xbf16>, vector<32x32xbf16>, vector<49x32xf32> -> vector<49x32xf32>
    %201 = arith.addf %195, %200 : vector<49x32xf32>
    %202 = vector.extract_strided_slice %166 {offsets = [14, 0], sizes = [49, 32], strides = [1, 1]} : vector<65x32xf32> to vector<49x32xf32>
    %203 = arith.truncf %202 : vector<49x32xf32> to vector<49x32xbf16>
    %c2_172 = arith.constant 2 : index
    %c6_173 = arith.constant 6 : index
    %c0_174 = arith.constant 0 : index
    %c0_175 = arith.constant 0 : index
    %204 = vector.load %arg9[%c2_172, %c6_173, %c0_174, %c0_175] : memref<8x9x32x32xbf16, #tpu.memory_space<vmem>>, vector<1x1x32x32xbf16>
    %205 = vector.shape_cast %204 : vector<1x1x32x32xbf16> to vector<32x32xbf16>
    %cst_176 = arith.constant dense<0.000000e+00> : vector<49x32xf32>
    %206 = tpu.matmul %203, %205, %cst_176 {dimension_numbers = #tpu.dot_dimension_numbers<[1], [0], [0], [1], [0, 0, 1, 1], [], []>} : vector<49x32xbf16>, vector<32x32xbf16>, vector<49x32xf32> -> vector<49x32xf32>
    %207 = arith.addf %201, %206 : vector<49x32xf32>
    %208 = vector.extract_strided_slice %166 {offsets = [15, 0], sizes = [49, 32], strides = [1, 1]} : vector<65x32xf32> to vector<49x32xf32>
    %209 = arith.truncf %208 : vector<49x32xf32> to vector<49x32xbf16>
    %c2_177 = arith.constant 2 : index
    %c7_178 = arith.constant 7 : index
    %c0_179 = arith.constant 0 : index
    %c0_180 = arith.constant 0 : index
    %210 = vector.load %arg9[%c2_177, %c7_178, %c0_179, %c0_180] : memref<8x9x32x32xbf16, #tpu.memory_space<vmem>>, vector<1x1x32x32xbf16>
    %211 = vector.shape_cast %210 : vector<1x1x32x32xbf16> to vector<32x32xbf16>
    %cst_181 = arith.constant dense<0.000000e+00> : vector<49x32xf32>
    %212 = tpu.matmul %209, %211, %cst_181 {dimension_numbers = #tpu.dot_dimension_numbers<[1], [0], [0], [1], [0, 0, 1, 1], [], []>} : vector<49x32xbf16>, vector<32x32xbf16>, vector<49x32xf32> -> vector<49x32xf32>
    %213 = arith.addf %207, %212 : vector<49x32xf32>
    %214 = vector.extract_strided_slice %166 {offsets = [16, 0], sizes = [49, 32], strides = [1, 1]} : vector<65x32xf32> to vector<49x32xf32>
    %215 = arith.truncf %214 : vector<49x32xf32> to vector<49x32xbf16>
    %c2_182 = arith.constant 2 : index
    %c8_183 = arith.constant 8 : index
    %c0_184 = arith.constant 0 : index
    %c0_185 = arith.constant 0 : index
    %216 = vector.load %arg9[%c2_182, %c8_183, %c0_184, %c0_185] : memref<8x9x32x32xbf16, #tpu.memory_space<vmem>>, vector<1x1x32x32xbf16>
    %217 = vector.shape_cast %216 : vector<1x1x32x32xbf16> to vector<32x32xbf16>
    %cst_186 = arith.constant dense<0.000000e+00> : vector<49x32xf32>
    %218 = tpu.matmul %215, %217, %cst_186 {dimension_numbers = #tpu.dot_dimension_numbers<[1], [0], [0], [1], [0, 0, 1, 1], [], []>} : vector<49x32xbf16>, vector<32x32xbf16>, vector<49x32xf32> -> vector<49x32xf32>
    %219 = arith.addf %213, %218 : vector<49x32xf32>
    %c2_187 = arith.constant 2 : index
    %c0_188 = arith.constant 0 : index
    %c0_189 = arith.constant 0 : index
    %220 = vector.load %arg10[%c2_187, %c0_188, %c0_189] : memref<8x1x32xf32, #tpu.memory_space<vmem>>, vector<1x1x32xf32>
    %221 = vector.shape_cast %220 : vector<1x1x32xf32> to vector<1x32xf32>
    %222 = vector.broadcast %221 : vector<1x32xf32> to vector<49x32xf32>
    %223 = arith.mulf %219, %222 : vector<49x32xf32>
    %c2_190 = arith.constant 2 : index
    %c0_191 = arith.constant 0 : index
    %c0_192 = arith.constant 0 : index
    %224 = vector.load %arg11[%c2_190, %c0_191, %c0_192] : memref<8x1x32xf32, #tpu.memory_space<vmem>>, vector<1x1x32xf32>
    %225 = vector.shape_cast %224 : vector<1x1x32xf32> to vector<1x32xf32>
    %226 = vector.broadcast %225 : vector<1x32xf32> to vector<49x32xf32>
    %227 = arith.addf %223, %226 : vector<49x32xf32>
    %cst_193 = arith.constant 0.000000e+00 : f32
    %228 = vector.broadcast %cst_193 : f32 to vector<49x32xf32>
    %229 = arith.maximumf %227, %228 : vector<49x32xf32>
    %230 = vector.broadcast %0 : vector<49x1xf32> to vector<49x32xf32>
    %231 = arith.mulf %229, %230 : vector<49x32xf32>
    %c8_194 = arith.constant 8 : index
    %c0_195 = arith.constant 0 : index
    %232 = vector.load %arg19[%c8_194, %c0_195] : memref<65x32xf32, #tpu.memory_space<vmem>>, vector<49x32xf32>
    tpu.vector_store %arg19[%c8_194, %c0_195], %231 {strides = array<i32>} : memref<65x32xf32, #tpu.memory_space<vmem>>, vector<49x32xf32>,
    %c0_196 = arith.constant 0 : index
    %c0_197 = arith.constant 0 : index
    %233 = vector.load %arg19[%c0_196, %c0_197] : memref<65x32xf32, #tpu.memory_space<vmem>>, vector<65x32xf32>
    %234 = vector.extract_strided_slice %233 {offsets = [0, 0], sizes = [49, 32], strides = [1, 1]} : vector<65x32xf32> to vector<49x32xf32>
    %235 = arith.truncf %234 : vector<49x32xf32> to vector<49x32xbf16>
    %c3_198 = arith.constant 3 : index
    %c0_199 = arith.constant 0 : index
    %c0_200 = arith.constant 0 : index
    %c0_201 = arith.constant 0 : index
    %236 = vector.load %arg9[%c3_198, %c0_199, %c0_200, %c0_201] : memref<8x9x32x32xbf16, #tpu.memory_space<vmem>>, vector<1x1x32x32xbf16>
    %237 = vector.shape_cast %236 : vector<1x1x32x32xbf16> to vector<32x32xbf16>
    %cst_202 = arith.constant dense<0.000000e+00> : vector<49x32xf32>
    %238 = tpu.matmul %235, %237, %cst_202 {dimension_numbers = #tpu.dot_dimension_numbers<[1], [0], [0], [1], [0, 0, 1, 1], [], []>} : vector<49x32xbf16>, vector<32x32xbf16>, vector<49x32xf32> -> vector<49x32xf32>
    %239 = vector.extract_strided_slice %233 {offsets = [1, 0], sizes = [49, 32], strides = [1, 1]} : vector<65x32xf32> to vector<49x32xf32>
    %240 = arith.truncf %239 : vector<49x32xf32> to vector<49x32xbf16>
    %c3_203 = arith.constant 3 : index
    %c1_204 = arith.constant 1 : index
    %c0_205 = arith.constant 0 : index
    %c0_206 = arith.constant 0 : index
    %241 = vector.load %arg9[%c3_203, %c1_204, %c0_205, %c0_206] : memref<8x9x32x32xbf16, #tpu.memory_space<vmem>>, vector<1x1x32x32xbf16>
    %242 = vector.shape_cast %241 : vector<1x1x32x32xbf16> to vector<32x32xbf16>
    %cst_207 = arith.constant dense<0.000000e+00> : vector<49x32xf32>
    %243 = tpu.matmul %240, %242, %cst_207 {dimension_numbers = #tpu.dot_dimension_numbers<[1], [0], [0], [1], [0, 0, 1, 1], [], []>} : vector<49x32xbf16>, vector<32x32xbf16>, vector<49x32xf32> -> vector<49x32xf32>
    %244 = arith.addf %238, %243 : vector<49x32xf32>
    %245 = vector.extract_strided_slice %233 {offsets = [2, 0], sizes = [49, 32], strides = [1, 1]} : vector<65x32xf32> to vector<49x32xf32>
    %246 = arith.truncf %245 : vector<49x32xf32> to vector<49x32xbf16>
    %c3_208 = arith.constant 3 : index
    %c2_209 = arith.constant 2 : index
    %c0_210 = arith.constant 0 : index
    %c0_211 = arith.constant 0 : index
    %247 = vector.load %arg9[%c3_208, %c2_209, %c0_210, %c0_211] : memref<8x9x32x32xbf16, #tpu.memory_space<vmem>>, vector<1x1x32x32xbf16>
    %248 = vector.shape_cast %247 : vector<1x1x32x32xbf16> to vector<32x32xbf16>
    %cst_212 = arith.constant dense<0.000000e+00> : vector<49x32xf32>
    %249 = tpu.matmul %246, %248, %cst_212 {dimension_numbers = #tpu.dot_dimension_numbers<[1], [0], [0], [1], [0, 0, 1, 1], [], []>} : vector<49x32xbf16>, vector<32x32xbf16>, vector<49x32xf32> -> vector<49x32xf32>
    %250 = arith.addf %244, %249 : vector<49x32xf32>
    %251 = vector.extract_strided_slice %233 {offsets = [7, 0], sizes = [49, 32], strides = [1, 1]} : vector<65x32xf32> to vector<49x32xf32>
    %252 = arith.truncf %251 : vector<49x32xf32> to vector<49x32xbf16>
    %c3_213 = arith.constant 3 : index
    %c3_214 = arith.constant 3 : index
    %c0_215 = arith.constant 0 : index
    %c0_216 = arith.constant 0 : index
    %253 = vector.load %arg9[%c3_213, %c3_214, %c0_215, %c0_216] : memref<8x9x32x32xbf16, #tpu.memory_space<vmem>>, vector<1x1x32x32xbf16>
    %254 = vector.shape_cast %253 : vector<1x1x32x32xbf16> to vector<32x32xbf16>
    %cst_217 = arith.constant dense<0.000000e+00> : vector<49x32xf32>
    %255 = tpu.matmul %252, %254, %cst_217 {dimension_numbers = #tpu.dot_dimension_numbers<[1], [0], [0], [1], [0, 0, 1, 1], [], []>} : vector<49x32xbf16>, vector<32x32xbf16>, vector<49x32xf32> -> vector<49x32xf32>
    %256 = arith.addf %250, %255 : vector<49x32xf32>
    %257 = vector.extract_strided_slice %233 {offsets = [8, 0], sizes = [49, 32], strides = [1, 1]} : vector<65x32xf32> to vector<49x32xf32>
    %258 = arith.truncf %257 : vector<49x32xf32> to vector<49x32xbf16>
    %c3_218 = arith.constant 3 : index
    %c4_219 = arith.constant 4 : index
    %c0_220 = arith.constant 0 : index
    %c0_221 = arith.constant 0 : index
    %259 = vector.load %arg9[%c3_218, %c4_219, %c0_220, %c0_221] : memref<8x9x32x32xbf16, #tpu.memory_space<vmem>>, vector<1x1x32x32xbf16>
    %260 = vector.shape_cast %259 : vector<1x1x32x32xbf16> to vector<32x32xbf16>
    %cst_222 = arith.constant dense<0.000000e+00> : vector<49x32xf32>
    %261 = tpu.matmul %258, %260, %cst_222 {dimension_numbers = #tpu.dot_dimension_numbers<[1], [0], [0], [1], [0, 0, 1, 1], [], []>} : vector<49x32xbf16>, vector<32x32xbf16>, vector<49x32xf32> -> vector<49x32xf32>
    %262 = arith.addf %256, %261 : vector<49x32xf32>
    %263 = vector.extract_strided_slice %233 {offsets = [9, 0], sizes = [49, 32], strides = [1, 1]} : vector<65x32xf32> to vector<49x32xf32>
    %264 = arith.truncf %263 : vector<49x32xf32> to vector<49x32xbf16>
    %c3_223 = arith.constant 3 : index
    %c5_224 = arith.constant 5 : index
    %c0_225 = arith.constant 0 : index
    %c0_226 = arith.constant 0 : index
    %265 = vector.load %arg9[%c3_223, %c5_224, %c0_225, %c0_226] : memref<8x9x32x32xbf16, #tpu.memory_space<vmem>>, vector<1x1x32x32xbf16>
    %266 = vector.shape_cast %265 : vector<1x1x32x32xbf16> to vector<32x32xbf16>
    %cst_227 = arith.constant dense<0.000000e+00> : vector<49x32xf32>
    %267 = tpu.matmul %264, %266, %cst_227 {dimension_numbers = #tpu.dot_dimension_numbers<[1], [0], [0], [1], [0, 0, 1, 1], [], []>} : vector<49x32xbf16>, vector<32x32xbf16>, vector<49x32xf32> -> vector<49x32xf32>
    %268 = arith.addf %262, %267 : vector<49x32xf32>
    %269 = vector.extract_strided_slice %233 {offsets = [14, 0], sizes = [49, 32], strides = [1, 1]} : vector<65x32xf32> to vector<49x32xf32>
    %270 = arith.truncf %269 : vector<49x32xf32> to vector<49x32xbf16>
    %c3_228 = arith.constant 3 : index
    %c6_229 = arith.constant 6 : index
    %c0_230 = arith.constant 0 : index
    %c0_231 = arith.constant 0 : index
    %271 = vector.load %arg9[%c3_228, %c6_229, %c0_230, %c0_231] : memref<8x9x32x32xbf16, #tpu.memory_space<vmem>>, vector<1x1x32x32xbf16>
    %272 = vector.shape_cast %271 : vector<1x1x32x32xbf16> to vector<32x32xbf16>
    %cst_232 = arith.constant dense<0.000000e+00> : vector<49x32xf32>
    %273 = tpu.matmul %270, %272, %cst_232 {dimension_numbers = #tpu.dot_dimension_numbers<[1], [0], [0], [1], [0, 0, 1, 1], [], []>} : vector<49x32xbf16>, vector<32x32xbf16>, vector<49x32xf32> -> vector<49x32xf32>
    %274 = arith.addf %268, %273 : vector<49x32xf32>
    %275 = vector.extract_strided_slice %233 {offsets = [15, 0], sizes = [49, 32], strides = [1, 1]} : vector<65x32xf32> to vector<49x32xf32>
    %276 = arith.truncf %275 : vector<49x32xf32> to vector<49x32xbf16>
    %c3_233 = arith.constant 3 : index
    %c7_234 = arith.constant 7 : index
    %c0_235 = arith.constant 0 : index
    %c0_236 = arith.constant 0 : index
    %277 = vector.load %arg9[%c3_233, %c7_234, %c0_235, %c0_236] : memref<8x9x32x32xbf16, #tpu.memory_space<vmem>>, vector<1x1x32x32xbf16>
    %278 = vector.shape_cast %277 : vector<1x1x32x32xbf16> to vector<32x32xbf16>
    %cst_237 = arith.constant dense<0.000000e+00> : vector<49x32xf32>
    %279 = tpu.matmul %276, %278, %cst_237 {dimension_numbers = #tpu.dot_dimension_numbers<[1], [0], [0], [1], [0, 0, 1, 1], [], []>} : vector<49x32xbf16>, vector<32x32xbf16>, vector<49x32xf32> -> vector<49x32xf32>
    %280 = arith.addf %274, %279 : vector<49x32xf32>
    %281 = vector.extract_strided_slice %233 {offsets = [16, 0], sizes = [49, 32], strides = [1, 1]} : vector<65x32xf32> to vector<49x32xf32>
    %282 = arith.truncf %281 : vector<49x32xf32> to vector<49x32xbf16>
    %c3_238 = arith.constant 3 : index
    %c8_239 = arith.constant 8 : index
    %c0_240 = arith.constant 0 : index
    %c0_241 = arith.constant 0 : index
    %283 = vector.load %arg9[%c3_238, %c8_239, %c0_240, %c0_241] : memref<8x9x32x32xbf16, #tpu.memory_space<vmem>>, vector<1x1x32x32xbf16>
    %284 = vector.shape_cast %283 : vector<1x1x32x32xbf16> to vector<32x32xbf16>
    %cst_242 = arith.constant dense<0.000000e+00> : vector<49x32xf32>
    %285 = tpu.matmul %282, %284, %cst_242 {dimension_numbers = #tpu.dot_dimension_numbers<[1], [0], [0], [1], [0, 0, 1, 1], [], []>} : vector<49x32xbf16>, vector<32x32xbf16>, vector<49x32xf32> -> vector<49x32xf32>
    %286 = arith.addf %280, %285 : vector<49x32xf32>
    %c3_243 = arith.constant 3 : index
    %c0_244 = arith.constant 0 : index
    %c0_245 = arith.constant 0 : index
    %287 = vector.load %arg10[%c3_243, %c0_244, %c0_245] : memref<8x1x32xf32, #tpu.memory_space<vmem>>, vector<1x1x32xf32>
    %288 = vector.shape_cast %287 : vector<1x1x32xf32> to vector<1x32xf32>
    %289 = vector.broadcast %288 : vector<1x32xf32> to vector<49x32xf32>
    %290 = arith.mulf %286, %289 : vector<49x32xf32>
    %c3_246 = arith.constant 3 : index
    %c0_247 = arith.constant 0 : index
    %c0_248 = arith.constant 0 : index
    %291 = vector.load %arg11[%c3_246, %c0_247, %c0_248] : memref<8x1x32xf32, #tpu.memory_space<vmem>>, vector<1x1x32xf32>
    %292 = vector.shape_cast %291 : vector<1x1x32xf32> to vector<1x32xf32>
    %293 = vector.broadcast %292 : vector<1x32xf32> to vector<49x32xf32>
    %294 = arith.addf %290, %293 : vector<49x32xf32>
    %295 = arith.addf %294, %165 : vector<49x32xf32>
    %cst_249 = arith.constant 0.000000e+00 : f32
    %296 = vector.broadcast %cst_249 : f32 to vector<49x32xf32>
    %297 = arith.maximumf %295, %296 : vector<49x32xf32>
    %298 = vector.broadcast %0 : vector<49x1xf32> to vector<49x32xf32>
    %299 = arith.mulf %297, %298 : vector<49x32xf32>
    %c8_250 = arith.constant 8 : index
    %c0_251 = arith.constant 0 : index
    %300 = vector.load %arg18[%c8_250, %c0_251] : memref<65x32xf32, #tpu.memory_space<vmem>>, vector<49x32xf32>
    tpu.vector_store %arg18[%c8_250, %c0_251], %299 {strides = array<i32>} : memref<65x32xf32, #tpu.memory_space<vmem>>, vector<49x32xf32>,
    %c8_252 = arith.constant 8 : index
    %c0_253 = arith.constant 0 : index
    %301 = vector.load %arg18[%c8_252, %c0_253] : memref<65x32xf32, #tpu.memory_space<vmem>>, vector<49x32xf32>
    %302 = arith.truncf %301 : vector<49x32xf32> to vector<49x32xbf16>
    %c0_254 = arith.constant 0 : index
    %c0_255 = arith.constant 0 : index
    %303 = vector.load %arg12[%c0_254, %c0_255] : memref<32x32xbf16, #tpu.memory_space<vmem>>, vector<32x32xbf16>
    %cst_256 = arith.constant dense<0.000000e+00> : vector<49x32xf32>
    %304 = tpu.matmul %302, %303, %cst_256 {dimension_numbers = #tpu.dot_dimension_numbers<[1], [0], [0], [1], [0, 0, 1, 1], [], []>} : vector<49x32xbf16>, vector<32x32xbf16>, vector<49x32xf32> -> vector<49x32xf32>
    %c0_257 = arith.constant 0 : index
    %c0_258 = arith.constant 0 : index
    %305 = vector.load %arg13[%c0_257, %c0_258] : memref<1x32xf32, #tpu.memory_space<vmem>>, vector<1x32xf32>
    %306 = vector.broadcast %305 : vector<1x32xf32> to vector<49x32xf32>
    %307 = arith.mulf %304, %306 : vector<49x32xf32>
    %c0_259 = arith.constant 0 : index
    %c0_260 = arith.constant 0 : index
    %308 = vector.load %arg14[%c0_259, %c0_260] : memref<1x32xf32, #tpu.memory_space<vmem>>, vector<1x32xf32>
    %309 = vector.broadcast %308 : vector<1x32xf32> to vector<49x32xf32>
    %310 = arith.addf %307, %309 : vector<49x32xf32>
    %311 = vector.broadcast %0 : vector<49x1xf32> to vector<49x32xf32>
    %312 = arith.mulf %310, %311 : vector<49x32xf32>
    %c0_261 = arith.constant 0 : index
    %c0_262 = arith.constant 0 : index
    %313 = vector.load %arg18[%c0_261, %c0_262] : memref<65x32xf32, #tpu.memory_space<vmem>>, vector<65x32xf32>
    %314 = vector.extract_strided_slice %313 {offsets = [0, 0], sizes = [49, 32], strides = [1, 1]} : vector<65x32xf32> to vector<49x32xf32>
    %315 = arith.truncf %314 : vector<49x32xf32> to vector<49x32xbf16>
    %c4_263 = arith.constant 4 : index
    %c0_264 = arith.constant 0 : index
    %c0_265 = arith.constant 0 : index
    %c0_266 = arith.constant 0 : index
    %316 = vector.load %arg9[%c4_263, %c0_264, %c0_265, %c0_266] : memref<8x9x32x32xbf16, #tpu.memory_space<vmem>>, vector<1x1x32x32xbf16>
    %317 = vector.shape_cast %316 : vector<1x1x32x32xbf16> to vector<32x32xbf16>
    %cst_267 = arith.constant dense<0.000000e+00> : vector<49x32xf32>
    %318 = tpu.matmul %315, %317, %cst_267 {dimension_numbers = #tpu.dot_dimension_numbers<[1], [0], [0], [1], [0, 0, 1, 1], [], []>} : vector<49x32xbf16>, vector<32x32xbf16>, vector<49x32xf32> -> vector<49x32xf32>
    %319 = vector.extract_strided_slice %313 {offsets = [1, 0], sizes = [49, 32], strides = [1, 1]} : vector<65x32xf32> to vector<49x32xf32>
    %320 = arith.truncf %319 : vector<49x32xf32> to vector<49x32xbf16>
    %c4_268 = arith.constant 4 : index
    %c1_269 = arith.constant 1 : index
    %c0_270 = arith.constant 0 : index
    %c0_271 = arith.constant 0 : index
    %321 = vector.load %arg9[%c4_268, %c1_269, %c0_270, %c0_271] : memref<8x9x32x32xbf16, #tpu.memory_space<vmem>>, vector<1x1x32x32xbf16>
    %322 = vector.shape_cast %321 : vector<1x1x32x32xbf16> to vector<32x32xbf16>
    %cst_272 = arith.constant dense<0.000000e+00> : vector<49x32xf32>
    %323 = tpu.matmul %320, %322, %cst_272 {dimension_numbers = #tpu.dot_dimension_numbers<[1], [0], [0], [1], [0, 0, 1, 1], [], []>} : vector<49x32xbf16>, vector<32x32xbf16>, vector<49x32xf32> -> vector<49x32xf32>
    %324 = arith.addf %318, %323 : vector<49x32xf32>
    %325 = vector.extract_strided_slice %313 {offsets = [2, 0], sizes = [49, 32], strides = [1, 1]} : vector<65x32xf32> to vector<49x32xf32>
    %326 = arith.truncf %325 : vector<49x32xf32> to vector<49x32xbf16>
    %c4_273 = arith.constant 4 : index
    %c2_274 = arith.constant 2 : index
    %c0_275 = arith.constant 0 : index
    %c0_276 = arith.constant 0 : index
    %327 = vector.load %arg9[%c4_273, %c2_274, %c0_275, %c0_276] : memref<8x9x32x32xbf16, #tpu.memory_space<vmem>>, vector<1x1x32x32xbf16>
    %328 = vector.shape_cast %327 : vector<1x1x32x32xbf16> to vector<32x32xbf16>
    %cst_277 = arith.constant dense<0.000000e+00> : vector<49x32xf32>
    %329 = tpu.matmul %326, %328, %cst_277 {dimension_numbers = #tpu.dot_dimension_numbers<[1], [0], [0], [1], [0, 0, 1, 1], [], []>} : vector<49x32xbf16>, vector<32x32xbf16>, vector<49x32xf32> -> vector<49x32xf32>
    %330 = arith.addf %324, %329 : vector<49x32xf32>
    %331 = vector.extract_strided_slice %313 {offsets = [7, 0], sizes = [49, 32], strides = [1, 1]} : vector<65x32xf32> to vector<49x32xf32>
    %332 = arith.truncf %331 : vector<49x32xf32> to vector<49x32xbf16>
    %c4_278 = arith.constant 4 : index
    %c3_279 = arith.constant 3 : index
    %c0_280 = arith.constant 0 : index
    %c0_281 = arith.constant 0 : index
    %333 = vector.load %arg9[%c4_278, %c3_279, %c0_280, %c0_281] : memref<8x9x32x32xbf16, #tpu.memory_space<vmem>>, vector<1x1x32x32xbf16>
    %334 = vector.shape_cast %333 : vector<1x1x32x32xbf16> to vector<32x32xbf16>
    %cst_282 = arith.constant dense<0.000000e+00> : vector<49x32xf32>
    %335 = tpu.matmul %332, %334, %cst_282 {dimension_numbers = #tpu.dot_dimension_numbers<[1], [0], [0], [1], [0, 0, 1, 1], [], []>} : vector<49x32xbf16>, vector<32x32xbf16>, vector<49x32xf32> -> vector<49x32xf32>
    %336 = arith.addf %330, %335 : vector<49x32xf32>
    %337 = vector.extract_strided_slice %313 {offsets = [8, 0], sizes = [49, 32], strides = [1, 1]} : vector<65x32xf32> to vector<49x32xf32>
    %338 = arith.truncf %337 : vector<49x32xf32> to vector<49x32xbf16>
    %c4_283 = arith.constant 4 : index
    %c4_284 = arith.constant 4 : index
    %c0_285 = arith.constant 0 : index
    %c0_286 = arith.constant 0 : index
    %339 = vector.load %arg9[%c4_283, %c4_284, %c0_285, %c0_286] : memref<8x9x32x32xbf16, #tpu.memory_space<vmem>>, vector<1x1x32x32xbf16>
    %340 = vector.shape_cast %339 : vector<1x1x32x32xbf16> to vector<32x32xbf16>
    %cst_287 = arith.constant dense<0.000000e+00> : vector<49x32xf32>
    %341 = tpu.matmul %338, %340, %cst_287 {dimension_numbers = #tpu.dot_dimension_numbers<[1], [0], [0], [1], [0, 0, 1, 1], [], []>} : vector<49x32xbf16>, vector<32x32xbf16>, vector<49x32xf32> -> vector<49x32xf32>
    %342 = arith.addf %336, %341 : vector<49x32xf32>
    %343 = vector.extract_strided_slice %313 {offsets = [9, 0], sizes = [49, 32], strides = [1, 1]} : vector<65x32xf32> to vector<49x32xf32>
    %344 = arith.truncf %343 : vector<49x32xf32> to vector<49x32xbf16>
    %c4_288 = arith.constant 4 : index
    %c5_289 = arith.constant 5 : index
    %c0_290 = arith.constant 0 : index
    %c0_291 = arith.constant 0 : index
    %345 = vector.load %arg9[%c4_288, %c5_289, %c0_290, %c0_291] : memref<8x9x32x32xbf16, #tpu.memory_space<vmem>>, vector<1x1x32x32xbf16>
    %346 = vector.shape_cast %345 : vector<1x1x32x32xbf16> to vector<32x32xbf16>
    %cst_292 = arith.constant dense<0.000000e+00> : vector<49x32xf32>
    %347 = tpu.matmul %344, %346, %cst_292 {dimension_numbers = #tpu.dot_dimension_numbers<[1], [0], [0], [1], [0, 0, 1, 1], [], []>} : vector<49x32xbf16>, vector<32x32xbf16>, vector<49x32xf32> -> vector<49x32xf32>
    %348 = arith.addf %342, %347 : vector<49x32xf32>
    %349 = vector.extract_strided_slice %313 {offsets = [14, 0], sizes = [49, 32], strides = [1, 1]} : vector<65x32xf32> to vector<49x32xf32>
    %350 = arith.truncf %349 : vector<49x32xf32> to vector<49x32xbf16>
    %c4_293 = arith.constant 4 : index
    %c6_294 = arith.constant 6 : index
    %c0_295 = arith.constant 0 : index
    %c0_296 = arith.constant 0 : index
    %351 = vector.load %arg9[%c4_293, %c6_294, %c0_295, %c0_296] : memref<8x9x32x32xbf16, #tpu.memory_space<vmem>>, vector<1x1x32x32xbf16>
    %352 = vector.shape_cast %351 : vector<1x1x32x32xbf16> to vector<32x32xbf16>
    %cst_297 = arith.constant dense<0.000000e+00> : vector<49x32xf32>
    %353 = tpu.matmul %350, %352, %cst_297 {dimension_numbers = #tpu.dot_dimension_numbers<[1], [0], [0], [1], [0, 0, 1, 1], [], []>} : vector<49x32xbf16>, vector<32x32xbf16>, vector<49x32xf32> -> vector<49x32xf32>
    %354 = arith.addf %348, %353 : vector<49x32xf32>
    %355 = vector.extract_strided_slice %313 {offsets = [15, 0], sizes = [49, 32], strides = [1, 1]} : vector<65x32xf32> to vector<49x32xf32>
    %356 = arith.truncf %355 : vector<49x32xf32> to vector<49x32xbf16>
    %c4_298 = arith.constant 4 : index
    %c7_299 = arith.constant 7 : index
    %c0_300 = arith.constant 0 : index
    %c0_301 = arith.constant 0 : index
    %357 = vector.load %arg9[%c4_298, %c7_299, %c0_300, %c0_301] : memref<8x9x32x32xbf16, #tpu.memory_space<vmem>>, vector<1x1x32x32xbf16>
    %358 = vector.shape_cast %357 : vector<1x1x32x32xbf16> to vector<32x32xbf16>
    %cst_302 = arith.constant dense<0.000000e+00> : vector<49x32xf32>
    %359 = tpu.matmul %356, %358, %cst_302 {dimension_numbers = #tpu.dot_dimension_numbers<[1], [0], [0], [1], [0, 0, 1, 1], [], []>} : vector<49x32xbf16>, vector<32x32xbf16>, vector<49x32xf32> -> vector<49x32xf32>
    %360 = arith.addf %354, %359 : vector<49x32xf32>
    %361 = vector.extract_strided_slice %313 {offsets = [16, 0], sizes = [49, 32], strides = [1, 1]} : vector<65x32xf32> to vector<49x32xf32>
    %362 = arith.truncf %361 : vector<49x32xf32> to vector<49x32xbf16>
    %c4_303 = arith.constant 4 : index
    %c8_304 = arith.constant 8 : index
    %c0_305 = arith.constant 0 : index
    %c0_306 = arith.constant 0 : index
    %363 = vector.load %arg9[%c4_303, %c8_304, %c0_305, %c0_306] : memref<8x9x32x32xbf16, #tpu.memory_space<vmem>>, vector<1x1x32x32xbf16>
    %364 = vector.shape_cast %363 : vector<1x1x32x32xbf16> to vector<32x32xbf16>
    %cst_307 = arith.constant dense<0.000000e+00> : vector<49x32xf32>
    %365 = tpu.matmul %362, %364, %cst_307 {dimension_numbers = #tpu.dot_dimension_numbers<[1], [0], [0], [1], [0, 0, 1, 1], [], []>} : vector<49x32xbf16>, vector<32x32xbf16>, vector<49x32xf32> -> vector<49x32xf32>
    %366 = arith.addf %360, %365 : vector<49x32xf32>
    %c4_308 = arith.constant 4 : index
    %c0_309 = arith.constant 0 : index
    %c0_310 = arith.constant 0 : index
    %367 = vector.load %arg10[%c4_308, %c0_309, %c0_310] : memref<8x1x32xf32, #tpu.memory_space<vmem>>, vector<1x1x32xf32>
    %368 = vector.shape_cast %367 : vector<1x1x32xf32> to vector<1x32xf32>
    %369 = vector.broadcast %368 : vector<1x32xf32> to vector<49x32xf32>
    %370 = arith.mulf %366, %369 : vector<49x32xf32>
    %c4_311 = arith.constant 4 : index
    %c0_312 = arith.constant 0 : index
    %c0_313 = arith.constant 0 : index
    %371 = vector.load %arg11[%c4_311, %c0_312, %c0_313] : memref<8x1x32xf32, #tpu.memory_space<vmem>>, vector<1x1x32xf32>
    %372 = vector.shape_cast %371 : vector<1x1x32xf32> to vector<1x32xf32>
    %373 = vector.broadcast %372 : vector<1x32xf32> to vector<49x32xf32>
    %374 = arith.addf %370, %373 : vector<49x32xf32>
    %cst_314 = arith.constant 0.000000e+00 : f32
    %375 = vector.broadcast %cst_314 : f32 to vector<49x32xf32>
    %376 = arith.maximumf %374, %375 : vector<49x32xf32>
    %377 = vector.broadcast %0 : vector<49x1xf32> to vector<49x32xf32>
    %378 = arith.mulf %376, %377 : vector<49x32xf32>
    %c8_315 = arith.constant 8 : index
    %c0_316 = arith.constant 0 : index
    %379 = vector.load %arg19[%c8_315, %c0_316] : memref<65x32xf32, #tpu.memory_space<vmem>>, vector<49x32xf32>
    tpu.vector_store %arg19[%c8_315, %c0_316], %378 {strides = array<i32>} : memref<65x32xf32, #tpu.memory_space<vmem>>, vector<49x32xf32>,
    %c0_317 = arith.constant 0 : index
    %c0_318 = arith.constant 0 : index
    %380 = vector.load %arg19[%c0_317, %c0_318] : memref<65x32xf32, #tpu.memory_space<vmem>>, vector<65x32xf32>
    %381 = vector.extract_strided_slice %380 {offsets = [0, 0], sizes = [49, 32], strides = [1, 1]} : vector<65x32xf32> to vector<49x32xf32>
    %382 = arith.truncf %381 : vector<49x32xf32> to vector<49x32xbf16>
    %c5_319 = arith.constant 5 : index
    %c0_320 = arith.constant 0 : index
    %c0_321 = arith.constant 0 : index
    %c0_322 = arith.constant 0 : index
    %383 = vector.load %arg9[%c5_319, %c0_320, %c0_321, %c0_322] : memref<8x9x32x32xbf16, #tpu.memory_space<vmem>>, vector<1x1x32x32xbf16>
    %384 = vector.shape_cast %383 : vector<1x1x32x32xbf16> to vector<32x32xbf16>
    %cst_323 = arith.constant dense<0.000000e+00> : vector<49x32xf32>
    %385 = tpu.matmul %382, %384, %cst_323 {dimension_numbers = #tpu.dot_dimension_numbers<[1], [0], [0], [1], [0, 0, 1, 1], [], []>} : vector<49x32xbf16>, vector<32x32xbf16>, vector<49x32xf32> -> vector<49x32xf32>
    %386 = vector.extract_strided_slice %380 {offsets = [1, 0], sizes = [49, 32], strides = [1, 1]} : vector<65x32xf32> to vector<49x32xf32>
    %387 = arith.truncf %386 : vector<49x32xf32> to vector<49x32xbf16>
    %c5_324 = arith.constant 5 : index
    %c1_325 = arith.constant 1 : index
    %c0_326 = arith.constant 0 : index
    %c0_327 = arith.constant 0 : index
    %388 = vector.load %arg9[%c5_324, %c1_325, %c0_326, %c0_327] : memref<8x9x32x32xbf16, #tpu.memory_space<vmem>>, vector<1x1x32x32xbf16>
    %389 = vector.shape_cast %388 : vector<1x1x32x32xbf16> to vector<32x32xbf16>
    %cst_328 = arith.constant dense<0.000000e+00> : vector<49x32xf32>
    %390 = tpu.matmul %387, %389, %cst_328 {dimension_numbers = #tpu.dot_dimension_numbers<[1], [0], [0], [1], [0, 0, 1, 1], [], []>} : vector<49x32xbf16>, vector<32x32xbf16>, vector<49x32xf32> -> vector<49x32xf32>
    %391 = arith.addf %385, %390 : vector<49x32xf32>
    %392 = vector.extract_strided_slice %380 {offsets = [2, 0], sizes = [49, 32], strides = [1, 1]} : vector<65x32xf32> to vector<49x32xf32>
    %393 = arith.truncf %392 : vector<49x32xf32> to vector<49x32xbf16>
    %c5_329 = arith.constant 5 : index
    %c2_330 = arith.constant 2 : index
    %c0_331 = arith.constant 0 : index
    %c0_332 = arith.constant 0 : index
    %394 = vector.load %arg9[%c5_329, %c2_330, %c0_331, %c0_332] : memref<8x9x32x32xbf16, #tpu.memory_space<vmem>>, vector<1x1x32x32xbf16>
    %395 = vector.shape_cast %394 : vector<1x1x32x32xbf16> to vector<32x32xbf16>
    %cst_333 = arith.constant dense<0.000000e+00> : vector<49x32xf32>
    %396 = tpu.matmul %393, %395, %cst_333 {dimension_numbers = #tpu.dot_dimension_numbers<[1], [0], [0], [1], [0, 0, 1, 1], [], []>} : vector<49x32xbf16>, vector<32x32xbf16>, vector<49x32xf32> -> vector<49x32xf32>
    %397 = arith.addf %391, %396 : vector<49x32xf32>
    %398 = vector.extract_strided_slice %380 {offsets = [7, 0], sizes = [49, 32], strides = [1, 1]} : vector<65x32xf32> to vector<49x32xf32>
    %399 = arith.truncf %398 : vector<49x32xf32> to vector<49x32xbf16>
    %c5_334 = arith.constant 5 : index
    %c3_335 = arith.constant 3 : index
    %c0_336 = arith.constant 0 : index
    %c0_337 = arith.constant 0 : index
    %400 = vector.load %arg9[%c5_334, %c3_335, %c0_336, %c0_337] : memref<8x9x32x32xbf16, #tpu.memory_space<vmem>>, vector<1x1x32x32xbf16>
    %401 = vector.shape_cast %400 : vector<1x1x32x32xbf16> to vector<32x32xbf16>
    %cst_338 = arith.constant dense<0.000000e+00> : vector<49x32xf32>
    %402 = tpu.matmul %399, %401, %cst_338 {dimension_numbers = #tpu.dot_dimension_numbers<[1], [0], [0], [1], [0, 0, 1, 1], [], []>} : vector<49x32xbf16>, vector<32x32xbf16>, vector<49x32xf32> -> vector<49x32xf32>
    %403 = arith.addf %397, %402 : vector<49x32xf32>
    %404 = vector.extract_strided_slice %380 {offsets = [8, 0], sizes = [49, 32], strides = [1, 1]} : vector<65x32xf32> to vector<49x32xf32>
    %405 = arith.truncf %404 : vector<49x32xf32> to vector<49x32xbf16>
    %c5_339 = arith.constant 5 : index
    %c4_340 = arith.constant 4 : index
    %c0_341 = arith.constant 0 : index
    %c0_342 = arith.constant 0 : index
    %406 = vector.load %arg9[%c5_339, %c4_340, %c0_341, %c0_342] : memref<8x9x32x32xbf16, #tpu.memory_space<vmem>>, vector<1x1x32x32xbf16>
    %407 = vector.shape_cast %406 : vector<1x1x32x32xbf16> to vector<32x32xbf16>
    %cst_343 = arith.constant dense<0.000000e+00> : vector<49x32xf32>
    %408 = tpu.matmul %405, %407, %cst_343 {dimension_numbers = #tpu.dot_dimension_numbers<[1], [0], [0], [1], [0, 0, 1, 1], [], []>} : vector<49x32xbf16>, vector<32x32xbf16>, vector<49x32xf32> -> vector<49x32xf32>
    %409 = arith.addf %403, %408 : vector<49x32xf32>
    %410 = vector.extract_strided_slice %380 {offsets = [9, 0], sizes = [49, 32], strides = [1, 1]} : vector<65x32xf32> to vector<49x32xf32>
    %411 = arith.truncf %410 : vector<49x32xf32> to vector<49x32xbf16>
    %c5_344 = arith.constant 5 : index
    %c5_345 = arith.constant 5 : index
    %c0_346 = arith.constant 0 : index
    %c0_347 = arith.constant 0 : index
    %412 = vector.load %arg9[%c5_344, %c5_345, %c0_346, %c0_347] : memref<8x9x32x32xbf16, #tpu.memory_space<vmem>>, vector<1x1x32x32xbf16>
    %413 = vector.shape_cast %412 : vector<1x1x32x32xbf16> to vector<32x32xbf16>
    %cst_348 = arith.constant dense<0.000000e+00> : vector<49x32xf32>
    %414 = tpu.matmul %411, %413, %cst_348 {dimension_numbers = #tpu.dot_dimension_numbers<[1], [0], [0], [1], [0, 0, 1, 1], [], []>} : vector<49x32xbf16>, vector<32x32xbf16>, vector<49x32xf32> -> vector<49x32xf32>
    %415 = arith.addf %409, %414 : vector<49x32xf32>
    %416 = vector.extract_strided_slice %380 {offsets = [14, 0], sizes = [49, 32], strides = [1, 1]} : vector<65x32xf32> to vector<49x32xf32>
    %417 = arith.truncf %416 : vector<49x32xf32> to vector<49x32xbf16>
    %c5_349 = arith.constant 5 : index
    %c6_350 = arith.constant 6 : index
    %c0_351 = arith.constant 0 : index
    %c0_352 = arith.constant 0 : index
    %418 = vector.load %arg9[%c5_349, %c6_350, %c0_351, %c0_352] : memref<8x9x32x32xbf16, #tpu.memory_space<vmem>>, vector<1x1x32x32xbf16>
    %419 = vector.shape_cast %418 : vector<1x1x32x32xbf16> to vector<32x32xbf16>
    %cst_353 = arith.constant dense<0.000000e+00> : vector<49x32xf32>
    %420 = tpu.matmul %417, %419, %cst_353 {dimension_numbers = #tpu.dot_dimension_numbers<[1], [0], [0], [1], [0, 0, 1, 1], [], []>} : vector<49x32xbf16>, vector<32x32xbf16>, vector<49x32xf32> -> vector<49x32xf32>
    %421 = arith.addf %415, %420 : vector<49x32xf32>
    %422 = vector.extract_strided_slice %380 {offsets = [15, 0], sizes = [49, 32], strides = [1, 1]} : vector<65x32xf32> to vector<49x32xf32>
    %423 = arith.truncf %422 : vector<49x32xf32> to vector<49x32xbf16>
    %c5_354 = arith.constant 5 : index
    %c7_355 = arith.constant 7 : index
    %c0_356 = arith.constant 0 : index
    %c0_357 = arith.constant 0 : index
    %424 = vector.load %arg9[%c5_354, %c7_355, %c0_356, %c0_357] : memref<8x9x32x32xbf16, #tpu.memory_space<vmem>>, vector<1x1x32x32xbf16>
    %425 = vector.shape_cast %424 : vector<1x1x32x32xbf16> to vector<32x32xbf16>
    %cst_358 = arith.constant dense<0.000000e+00> : vector<49x32xf32>
    %426 = tpu.matmul %423, %425, %cst_358 {dimension_numbers = #tpu.dot_dimension_numbers<[1], [0], [0], [1], [0, 0, 1, 1], [], []>} : vector<49x32xbf16>, vector<32x32xbf16>, vector<49x32xf32> -> vector<49x32xf32>
    %427 = arith.addf %421, %426 : vector<49x32xf32>
    %428 = vector.extract_strided_slice %380 {offsets = [16, 0], sizes = [49, 32], strides = [1, 1]} : vector<65x32xf32> to vector<49x32xf32>
    %429 = arith.truncf %428 : vector<49x32xf32> to vector<49x32xbf16>
    %c5_359 = arith.constant 5 : index
    %c8_360 = arith.constant 8 : index
    %c0_361 = arith.constant 0 : index
    %c0_362 = arith.constant 0 : index
    %430 = vector.load %arg9[%c5_359, %c8_360, %c0_361, %c0_362] : memref<8x9x32x32xbf16, #tpu.memory_space<vmem>>, vector<1x1x32x32xbf16>
    %431 = vector.shape_cast %430 : vector<1x1x32x32xbf16> to vector<32x32xbf16>
    %cst_363 = arith.constant dense<0.000000e+00> : vector<49x32xf32>
    %432 = tpu.matmul %429, %431, %cst_363 {dimension_numbers = #tpu.dot_dimension_numbers<[1], [0], [0], [1], [0, 0, 1, 1], [], []>} : vector<49x32xbf16>, vector<32x32xbf16>, vector<49x32xf32> -> vector<49x32xf32>
    %433 = arith.addf %427, %432 : vector<49x32xf32>
    %c5_364 = arith.constant 5 : index
    %c0_365 = arith.constant 0 : index
    %c0_366 = arith.constant 0 : index
    %434 = vector.load %arg10[%c5_364, %c0_365, %c0_366] : memref<8x1x32xf32, #tpu.memory_space<vmem>>, vector<1x1x32xf32>
    %435 = vector.shape_cast %434 : vector<1x1x32xf32> to vector<1x32xf32>
    %436 = vector.broadcast %435 : vector<1x32xf32> to vector<49x32xf32>
    %437 = arith.mulf %433, %436 : vector<49x32xf32>
    %c5_367 = arith.constant 5 : index
    %c0_368 = arith.constant 0 : index
    %c0_369 = arith.constant 0 : index
    %438 = vector.load %arg11[%c5_367, %c0_368, %c0_369] : memref<8x1x32xf32, #tpu.memory_space<vmem>>, vector<1x1x32xf32>
    %439 = vector.shape_cast %438 : vector<1x1x32xf32> to vector<1x32xf32>
    %440 = vector.broadcast %439 : vector<1x32xf32> to vector<49x32xf32>
    %441 = arith.addf %437, %440 : vector<49x32xf32>
    %442 = arith.addf %441, %312 : vector<49x32xf32>
    %cst_370 = arith.constant 0.000000e+00 : f32
    %443 = vector.broadcast %cst_370 : f32 to vector<49x32xf32>
    %444 = arith.maximumf %442, %443 : vector<49x32xf32>
    %445 = vector.broadcast %0 : vector<49x1xf32> to vector<49x32xf32>
    %446 = arith.mulf %444, %445 : vector<49x32xf32>
    %c8_371 = arith.constant 8 : index
    %c0_372 = arith.constant 0 : index
    %447 = vector.load %arg18[%c8_371, %c0_372] : memref<65x32xf32, #tpu.memory_space<vmem>>, vector<49x32xf32>
    tpu.vector_store %arg18[%c8_371, %c0_372], %446 {strides = array<i32>} : memref<65x32xf32, #tpu.memory_space<vmem>>, vector<49x32xf32>,
    %c8_373 = arith.constant 8 : index
    %c0_374 = arith.constant 0 : index
    %448 = vector.load %arg18[%c8_373, %c0_374] : memref<65x32xf32, #tpu.memory_space<vmem>>, vector<49x32xf32>
    %c0_375 = arith.constant 0 : index
    %c0_376 = arith.constant 0 : index
    %449 = vector.load %arg18[%c0_375, %c0_376] : memref<65x32xf32, #tpu.memory_space<vmem>>, vector<65x32xf32>
    %450 = vector.extract_strided_slice %449 {offsets = [0, 0], sizes = [49, 32], strides = [1, 1]} : vector<65x32xf32> to vector<49x32xf32>
    %451 = arith.truncf %450 : vector<49x32xf32> to vector<49x32xbf16>
    %c6_377 = arith.constant 6 : index
    %c0_378 = arith.constant 0 : index
    %c0_379 = arith.constant 0 : index
    %c0_380 = arith.constant 0 : index
    %452 = vector.load %arg9[%c6_377, %c0_378, %c0_379, %c0_380] : memref<8x9x32x32xbf16, #tpu.memory_space<vmem>>, vector<1x1x32x32xbf16>
    %453 = vector.shape_cast %452 : vector<1x1x32x32xbf16> to vector<32x32xbf16>
    %cst_381 = arith.constant dense<0.000000e+00> : vector<49x32xf32>
    %454 = tpu.matmul %451, %453, %cst_381 {dimension_numbers = #tpu.dot_dimension_numbers<[1], [0], [0], [1], [0, 0, 1, 1], [], []>} : vector<49x32xbf16>, vector<32x32xbf16>, vector<49x32xf32> -> vector<49x32xf32>
    %455 = vector.extract_strided_slice %449 {offsets = [1, 0], sizes = [49, 32], strides = [1, 1]} : vector<65x32xf32> to vector<49x32xf32>
    %456 = arith.truncf %455 : vector<49x32xf32> to vector<49x32xbf16>
    %c6_382 = arith.constant 6 : index
    %c1_383 = arith.constant 1 : index
    %c0_384 = arith.constant 0 : index
    %c0_385 = arith.constant 0 : index
    %457 = vector.load %arg9[%c6_382, %c1_383, %c0_384, %c0_385] : memref<8x9x32x32xbf16, #tpu.memory_space<vmem>>, vector<1x1x32x32xbf16>
    %458 = vector.shape_cast %457 : vector<1x1x32x32xbf16> to vector<32x32xbf16>
    %cst_386 = arith.constant dense<0.000000e+00> : vector<49x32xf32>
    %459 = tpu.matmul %456, %458, %cst_386 {dimension_numbers = #tpu.dot_dimension_numbers<[1], [0], [0], [1], [0, 0, 1, 1], [], []>} : vector<49x32xbf16>, vector<32x32xbf16>, vector<49x32xf32> -> vector<49x32xf32>
    %460 = arith.addf %454, %459 : vector<49x32xf32>
    %461 = vector.extract_strided_slice %449 {offsets = [2, 0], sizes = [49, 32], strides = [1, 1]} : vector<65x32xf32> to vector<49x32xf32>
    %462 = arith.truncf %461 : vector<49x32xf32> to vector<49x32xbf16>
    %c6_387 = arith.constant 6 : index
    %c2_388 = arith.constant 2 : index
    %c0_389 = arith.constant 0 : index
    %c0_390 = arith.constant 0 : index
    %463 = vector.load %arg9[%c6_387, %c2_388, %c0_389, %c0_390] : memref<8x9x32x32xbf16, #tpu.memory_space<vmem>>, vector<1x1x32x32xbf16>
    %464 = vector.shape_cast %463 : vector<1x1x32x32xbf16> to vector<32x32xbf16>
    %cst_391 = arith.constant dense<0.000000e+00> : vector<49x32xf32>
    %465 = tpu.matmul %462, %464, %cst_391 {dimension_numbers = #tpu.dot_dimension_numbers<[1], [0], [0], [1], [0, 0, 1, 1], [], []>} : vector<49x32xbf16>, vector<32x32xbf16>, vector<49x32xf32> -> vector<49x32xf32>
    %466 = arith.addf %460, %465 : vector<49x32xf32>
    %467 = vector.extract_strided_slice %449 {offsets = [7, 0], sizes = [49, 32], strides = [1, 1]} : vector<65x32xf32> to vector<49x32xf32>
    %468 = arith.truncf %467 : vector<49x32xf32> to vector<49x32xbf16>
    %c6_392 = arith.constant 6 : index
    %c3_393 = arith.constant 3 : index
    %c0_394 = arith.constant 0 : index
    %c0_395 = arith.constant 0 : index
    %469 = vector.load %arg9[%c6_392, %c3_393, %c0_394, %c0_395] : memref<8x9x32x32xbf16, #tpu.memory_space<vmem>>, vector<1x1x32x32xbf16>
    %470 = vector.shape_cast %469 : vector<1x1x32x32xbf16> to vector<32x32xbf16>
    %cst_396 = arith.constant dense<0.000000e+00> : vector<49x32xf32>
    %471 = tpu.matmul %468, %470, %cst_396 {dimension_numbers = #tpu.dot_dimension_numbers<[1], [0], [0], [1], [0, 0, 1, 1], [], []>} : vector<49x32xbf16>, vector<32x32xbf16>, vector<49x32xf32> -> vector<49x32xf32>
    %472 = arith.addf %466, %471 : vector<49x32xf32>
    %473 = vector.extract_strided_slice %449 {offsets = [8, 0], sizes = [49, 32], strides = [1, 1]} : vector<65x32xf32> to vector<49x32xf32>
    %474 = arith.truncf %473 : vector<49x32xf32> to vector<49x32xbf16>
    %c6_397 = arith.constant 6 : index
    %c4_398 = arith.constant 4 : index
    %c0_399 = arith.constant 0 : index
    %c0_400 = arith.constant 0 : index
    %475 = vector.load %arg9[%c6_397, %c4_398, %c0_399, %c0_400] : memref<8x9x32x32xbf16, #tpu.memory_space<vmem>>, vector<1x1x32x32xbf16>
    %476 = vector.shape_cast %475 : vector<1x1x32x32xbf16> to vector<32x32xbf16>
    %cst_401 = arith.constant dense<0.000000e+00> : vector<49x32xf32>
    %477 = tpu.matmul %474, %476, %cst_401 {dimension_numbers = #tpu.dot_dimension_numbers<[1], [0], [0], [1], [0, 0, 1, 1], [], []>} : vector<49x32xbf16>, vector<32x32xbf16>, vector<49x32xf32> -> vector<49x32xf32>
    %478 = arith.addf %472, %477 : vector<49x32xf32>
    %479 = vector.extract_strided_slice %449 {offsets = [9, 0], sizes = [49, 32], strides = [1, 1]} : vector<65x32xf32> to vector<49x32xf32>
    %480 = arith.truncf %479 : vector<49x32xf32> to vector<49x32xbf16>
    %c6_402 = arith.constant 6 : index
    %c5_403 = arith.constant 5 : index
    %c0_404 = arith.constant 0 : index
    %c0_405 = arith.constant 0 : index
    %481 = vector.load %arg9[%c6_402, %c5_403, %c0_404, %c0_405] : memref<8x9x32x32xbf16, #tpu.memory_space<vmem>>, vector<1x1x32x32xbf16>
    %482 = vector.shape_cast %481 : vector<1x1x32x32xbf16> to vector<32x32xbf16>
    %cst_406 = arith.constant dense<0.000000e+00> : vector<49x32xf32>
    %483 = tpu.matmul %480, %482, %cst_406 {dimension_numbers = #tpu.dot_dimension_numbers<[1], [0], [0], [1], [0, 0, 1, 1], [], []>} : vector<49x32xbf16>, vector<32x32xbf16>, vector<49x32xf32> -> vector<49x32xf32>
    %484 = arith.addf %478, %483 : vector<49x32xf32>
    %485 = vector.extract_strided_slice %449 {offsets = [14, 0], sizes = [49, 32], strides = [1, 1]} : vector<65x32xf32> to vector<49x32xf32>
    %486 = arith.truncf %485 : vector<49x32xf32> to vector<49x32xbf16>
    %c6_407 = arith.constant 6 : index
    %c6_408 = arith.constant 6 : index
    %c0_409 = arith.constant 0 : index
    %c0_410 = arith.constant 0 : index
    %487 = vector.load %arg9[%c6_407, %c6_408, %c0_409, %c0_410] : memref<8x9x32x32xbf16, #tpu.memory_space<vmem>>, vector<1x1x32x32xbf16>
    %488 = vector.shape_cast %487 : vector<1x1x32x32xbf16> to vector<32x32xbf16>
    %cst_411 = arith.constant dense<0.000000e+00> : vector<49x32xf32>
    %489 = tpu.matmul %486, %488, %cst_411 {dimension_numbers = #tpu.dot_dimension_numbers<[1], [0], [0], [1], [0, 0, 1, 1], [], []>} : vector<49x32xbf16>, vector<32x32xbf16>, vector<49x32xf32> -> vector<49x32xf32>
    %490 = arith.addf %484, %489 : vector<49x32xf32>
    %491 = vector.extract_strided_slice %449 {offsets = [15, 0], sizes = [49, 32], strides = [1, 1]} : vector<65x32xf32> to vector<49x32xf32>
    %492 = arith.truncf %491 : vector<49x32xf32> to vector<49x32xbf16>
    %c6_412 = arith.constant 6 : index
    %c7_413 = arith.constant 7 : index
    %c0_414 = arith.constant 0 : index
    %c0_415 = arith.constant 0 : index
    %493 = vector.load %arg9[%c6_412, %c7_413, %c0_414, %c0_415] : memref<8x9x32x32xbf16, #tpu.memory_space<vmem>>, vector<1x1x32x32xbf16>
    %494 = vector.shape_cast %493 : vector<1x1x32x32xbf16> to vector<32x32xbf16>
    %cst_416 = arith.constant dense<0.000000e+00> : vector<49x32xf32>
    %495 = tpu.matmul %492, %494, %cst_416 {dimension_numbers = #tpu.dot_dimension_numbers<[1], [0], [0], [1], [0, 0, 1, 1], [], []>} : vector<49x32xbf16>, vector<32x32xbf16>, vector<49x32xf32> -> vector<49x32xf32>
    %496 = arith.addf %490, %495 : vector<49x32xf32>
    %497 = vector.extract_strided_slice %449 {offsets = [16, 0], sizes = [49, 32], strides = [1, 1]} : vector<65x32xf32> to vector<49x32xf32>
    %498 = arith.truncf %497 : vector<49x32xf32> to vector<49x32xbf16>
    %c6_417 = arith.constant 6 : index
    %c8_418 = arith.constant 8 : index
    %c0_419 = arith.constant 0 : index
    %c0_420 = arith.constant 0 : index
    %499 = vector.load %arg9[%c6_417, %c8_418, %c0_419, %c0_420] : memref<8x9x32x32xbf16, #tpu.memory_space<vmem>>, vector<1x1x32x32xbf16>
    %500 = vector.shape_cast %499 : vector<1x1x32x32xbf16> to vector<32x32xbf16>
    %cst_421 = arith.constant dense<0.000000e+00> : vector<49x32xf32>
    %501 = tpu.matmul %498, %500, %cst_421 {dimension_numbers = #tpu.dot_dimension_numbers<[1], [0], [0], [1], [0, 0, 1, 1], [], []>} : vector<49x32xbf16>, vector<32x32xbf16>, vector<49x32xf32> -> vector<49x32xf32>
    %502 = arith.addf %496, %501 : vector<49x32xf32>
    %c6_422 = arith.constant 6 : index
    %c0_423 = arith.constant 0 : index
    %c0_424 = arith.constant 0 : index
    %503 = vector.load %arg10[%c6_422, %c0_423, %c0_424] : memref<8x1x32xf32, #tpu.memory_space<vmem>>, vector<1x1x32xf32>
    %504 = vector.shape_cast %503 : vector<1x1x32xf32> to vector<1x32xf32>
    %505 = vector.broadcast %504 : vector<1x32xf32> to vector<49x32xf32>
    %506 = arith.mulf %502, %505 : vector<49x32xf32>
    %c6_425 = arith.constant 6 : index
    %c0_426 = arith.constant 0 : index
    %c0_427 = arith.constant 0 : index
    %507 = vector.load %arg11[%c6_425, %c0_426, %c0_427] : memref<8x1x32xf32, #tpu.memory_space<vmem>>, vector<1x1x32xf32>
    %508 = vector.shape_cast %507 : vector<1x1x32xf32> to vector<1x32xf32>
    %509 = vector.broadcast %508 : vector<1x32xf32> to vector<49x32xf32>
    %510 = arith.addf %506, %509 : vector<49x32xf32>
    %cst_428 = arith.constant 0.000000e+00 : f32
    %511 = vector.broadcast %cst_428 : f32 to vector<49x32xf32>
    %512 = arith.maximumf %510, %511 : vector<49x32xf32>
    %513 = vector.broadcast %0 : vector<49x1xf32> to vector<49x32xf32>
    %514 = arith.mulf %512, %513 : vector<49x32xf32>
    %c8_429 = arith.constant 8 : index
    %c0_430 = arith.constant 0 : index
    %515 = vector.load %arg19[%c8_429, %c0_430] : memref<65x32xf32, #tpu.memory_space<vmem>>, vector<49x32xf32>
    tpu.vector_store %arg19[%c8_429, %c0_430], %514 {strides = array<i32>} : memref<65x32xf32, #tpu.memory_space<vmem>>, vector<49x32xf32>,
    %c0_431 = arith.constant 0 : index
    %c0_432 = arith.constant 0 : index
    %516 = vector.load %arg19[%c0_431, %c0_432] : memref<65x32xf32, #tpu.memory_space<vmem>>, vector<65x32xf32>
    %517 = vector.extract_strided_slice %516 {offsets = [0, 0], sizes = [49, 32], strides = [1, 1]} : vector<65x32xf32> to vector<49x32xf32>
    %518 = arith.truncf %517 : vector<49x32xf32> to vector<49x32xbf16>
    %c7_433 = arith.constant 7 : index
    %c0_434 = arith.constant 0 : index
    %c0_435 = arith.constant 0 : index
    %c0_436 = arith.constant 0 : index
    %519 = vector.load %arg9[%c7_433, %c0_434, %c0_435, %c0_436] : memref<8x9x32x32xbf16, #tpu.memory_space<vmem>>, vector<1x1x32x32xbf16>
    %520 = vector.shape_cast %519 : vector<1x1x32x32xbf16> to vector<32x32xbf16>
    %cst_437 = arith.constant dense<0.000000e+00> : vector<49x32xf32>
    %521 = tpu.matmul %518, %520, %cst_437 {dimension_numbers = #tpu.dot_dimension_numbers<[1], [0], [0], [1], [0, 0, 1, 1], [], []>} : vector<49x32xbf16>, vector<32x32xbf16>, vector<49x32xf32> -> vector<49x32xf32>
    %522 = vector.extract_strided_slice %516 {offsets = [1, 0], sizes = [49, 32], strides = [1, 1]} : vector<65x32xf32> to vector<49x32xf32>
    %523 = arith.truncf %522 : vector<49x32xf32> to vector<49x32xbf16>
    %c7_438 = arith.constant 7 : index
    %c1_439 = arith.constant 1 : index
    %c0_440 = arith.constant 0 : index
    %c0_441 = arith.constant 0 : index
    %524 = vector.load %arg9[%c7_438, %c1_439, %c0_440, %c0_441] : memref<8x9x32x32xbf16, #tpu.memory_space<vmem>>, vector<1x1x32x32xbf16>
    %525 = vector.shape_cast %524 : vector<1x1x32x32xbf16> to vector<32x32xbf16>
    %cst_442 = arith.constant dense<0.000000e+00> : vector<49x32xf32>
    %526 = tpu.matmul %523, %525, %cst_442 {dimension_numbers = #tpu.dot_dimension_numbers<[1], [0], [0], [1], [0, 0, 1, 1], [], []>} : vector<49x32xbf16>, vector<32x32xbf16>, vector<49x32xf32> -> vector<49x32xf32>
    %527 = arith.addf %521, %526 : vector<49x32xf32>
    %528 = vector.extract_strided_slice %516 {offsets = [2, 0], sizes = [49, 32], strides = [1, 1]} : vector<65x32xf32> to vector<49x32xf32>
    %529 = arith.truncf %528 : vector<49x32xf32> to vector<49x32xbf16>
    %c7_443 = arith.constant 7 : index
    %c2_444 = arith.constant 2 : index
    %c0_445 = arith.constant 0 : index
    %c0_446 = arith.constant 0 : index
    %530 = vector.load %arg9[%c7_443, %c2_444, %c0_445, %c0_446] : memref<8x9x32x32xbf16, #tpu.memory_space<vmem>>, vector<1x1x32x32xbf16>
    %531 = vector.shape_cast %530 : vector<1x1x32x32xbf16> to vector<32x32xbf16>
    %cst_447 = arith.constant dense<0.000000e+00> : vector<49x32xf32>
    %532 = tpu.matmul %529, %531, %cst_447 {dimension_numbers = #tpu.dot_dimension_numbers<[1], [0], [0], [1], [0, 0, 1, 1], [], []>} : vector<49x32xbf16>, vector<32x32xbf16>, vector<49x32xf32> -> vector<49x32xf32>
    %533 = arith.addf %527, %532 : vector<49x32xf32>
    %534 = vector.extract_strided_slice %516 {offsets = [7, 0], sizes = [49, 32], strides = [1, 1]} : vector<65x32xf32> to vector<49x32xf32>
    %535 = arith.truncf %534 : vector<49x32xf32> to vector<49x32xbf16>
    %c7_448 = arith.constant 7 : index
    %c3_449 = arith.constant 3 : index
    %c0_450 = arith.constant 0 : index
    %c0_451 = arith.constant 0 : index
    %536 = vector.load %arg9[%c7_448, %c3_449, %c0_450, %c0_451] : memref<8x9x32x32xbf16, #tpu.memory_space<vmem>>, vector<1x1x32x32xbf16>
    %537 = vector.shape_cast %536 : vector<1x1x32x32xbf16> to vector<32x32xbf16>
    %cst_452 = arith.constant dense<0.000000e+00> : vector<49x32xf32>
    %538 = tpu.matmul %535, %537, %cst_452 {dimension_numbers = #tpu.dot_dimension_numbers<[1], [0], [0], [1], [0, 0, 1, 1], [], []>} : vector<49x32xbf16>, vector<32x32xbf16>, vector<49x32xf32> -> vector<49x32xf32>
    %539 = arith.addf %533, %538 : vector<49x32xf32>
    %540 = vector.extract_strided_slice %516 {offsets = [8, 0], sizes = [49, 32], strides = [1, 1]} : vector<65x32xf32> to vector<49x32xf32>
    %541 = arith.truncf %540 : vector<49x32xf32> to vector<49x32xbf16>
    %c7_453 = arith.constant 7 : index
    %c4_454 = arith.constant 4 : index
    %c0_455 = arith.constant 0 : index
    %c0_456 = arith.constant 0 : index
    %542 = vector.load %arg9[%c7_453, %c4_454, %c0_455, %c0_456] : memref<8x9x32x32xbf16, #tpu.memory_space<vmem>>, vector<1x1x32x32xbf16>
    %543 = vector.shape_cast %542 : vector<1x1x32x32xbf16> to vector<32x32xbf16>
    %cst_457 = arith.constant dense<0.000000e+00> : vector<49x32xf32>
    %544 = tpu.matmul %541, %543, %cst_457 {dimension_numbers = #tpu.dot_dimension_numbers<[1], [0], [0], [1], [0, 0, 1, 1], [], []>} : vector<49x32xbf16>, vector<32x32xbf16>, vector<49x32xf32> -> vector<49x32xf32>
    %545 = arith.addf %539, %544 : vector<49x32xf32>
    %546 = vector.extract_strided_slice %516 {offsets = [9, 0], sizes = [49, 32], strides = [1, 1]} : vector<65x32xf32> to vector<49x32xf32>
    %547 = arith.truncf %546 : vector<49x32xf32> to vector<49x32xbf16>
    %c7_458 = arith.constant 7 : index
    %c5_459 = arith.constant 5 : index
    %c0_460 = arith.constant 0 : index
    %c0_461 = arith.constant 0 : index
    %548 = vector.load %arg9[%c7_458, %c5_459, %c0_460, %c0_461] : memref<8x9x32x32xbf16, #tpu.memory_space<vmem>>, vector<1x1x32x32xbf16>
    %549 = vector.shape_cast %548 : vector<1x1x32x32xbf16> to vector<32x32xbf16>
    %cst_462 = arith.constant dense<0.000000e+00> : vector<49x32xf32>
    %550 = tpu.matmul %547, %549, %cst_462 {dimension_numbers = #tpu.dot_dimension_numbers<[1], [0], [0], [1], [0, 0, 1, 1], [], []>} : vector<49x32xbf16>, vector<32x32xbf16>, vector<49x32xf32> -> vector<49x32xf32>
    %551 = arith.addf %545, %550 : vector<49x32xf32>
    %552 = vector.extract_strided_slice %516 {offsets = [14, 0], sizes = [49, 32], strides = [1, 1]} : vector<65x32xf32> to vector<49x32xf32>
    %553 = arith.truncf %552 : vector<49x32xf32> to vector<49x32xbf16>
    %c7_463 = arith.constant 7 : index
    %c6_464 = arith.constant 6 : index
    %c0_465 = arith.constant 0 : index
    %c0_466 = arith.constant 0 : index
    %554 = vector.load %arg9[%c7_463, %c6_464, %c0_465, %c0_466] : memref<8x9x32x32xbf16, #tpu.memory_space<vmem>>, vector<1x1x32x32xbf16>
    %555 = vector.shape_cast %554 : vector<1x1x32x32xbf16> to vector<32x32xbf16>
    %cst_467 = arith.constant dense<0.000000e+00> : vector<49x32xf32>
    %556 = tpu.matmul %553, %555, %cst_467 {dimension_numbers = #tpu.dot_dimension_numbers<[1], [0], [0], [1], [0, 0, 1, 1], [], []>} : vector<49x32xbf16>, vector<32x32xbf16>, vector<49x32xf32> -> vector<49x32xf32>
    %557 = arith.addf %551, %556 : vector<49x32xf32>
    %558 = vector.extract_strided_slice %516 {offsets = [15, 0], sizes = [49, 32], strides = [1, 1]} : vector<65x32xf32> to vector<49x32xf32>
    %559 = arith.truncf %558 : vector<49x32xf32> to vector<49x32xbf16>
    %c7_468 = arith.constant 7 : index
    %c7_469 = arith.constant 7 : index
    %c0_470 = arith.constant 0 : index
    %c0_471 = arith.constant 0 : index
    %560 = vector.load %arg9[%c7_468, %c7_469, %c0_470, %c0_471] : memref<8x9x32x32xbf16, #tpu.memory_space<vmem>>, vector<1x1x32x32xbf16>
    %561 = vector.shape_cast %560 : vector<1x1x32x32xbf16> to vector<32x32xbf16>
    %cst_472 = arith.constant dense<0.000000e+00> : vector<49x32xf32>
    %562 = tpu.matmul %559, %561, %cst_472 {dimension_numbers = #tpu.dot_dimension_numbers<[1], [0], [0], [1], [0, 0, 1, 1], [], []>} : vector<49x32xbf16>, vector<32x32xbf16>, vector<49x32xf32> -> vector<49x32xf32>
    %563 = arith.addf %557, %562 : vector<49x32xf32>
    %564 = vector.extract_strided_slice %516 {offsets = [16, 0], sizes = [49, 32], strides = [1, 1]} : vector<65x32xf32> to vector<49x32xf32>
    %565 = arith.truncf %564 : vector<49x32xf32> to vector<49x32xbf16>
    %c7_473 = arith.constant 7 : index
    %c8_474 = arith.constant 8 : index
    %c0_475 = arith.constant 0 : index
    %c0_476 = arith.constant 0 : index
    %566 = vector.load %arg9[%c7_473, %c8_474, %c0_475, %c0_476] : memref<8x9x32x32xbf16, #tpu.memory_space<vmem>>, vector<1x1x32x32xbf16>
    %567 = vector.shape_cast %566 : vector<1x1x32x32xbf16> to vector<32x32xbf16>
    %cst_477 = arith.constant dense<0.000000e+00> : vector<49x32xf32>
    %568 = tpu.matmul %565, %567, %cst_477 {dimension_numbers = #tpu.dot_dimension_numbers<[1], [0], [0], [1], [0, 0, 1, 1], [], []>} : vector<49x32xbf16>, vector<32x32xbf16>, vector<49x32xf32> -> vector<49x32xf32>
    %569 = arith.addf %563, %568 : vector<49x32xf32>
    %c7_478 = arith.constant 7 : index
    %c0_479 = arith.constant 0 : index
    %c0_480 = arith.constant 0 : index
    %570 = vector.load %arg10[%c7_478, %c0_479, %c0_480] : memref<8x1x32xf32, #tpu.memory_space<vmem>>, vector<1x1x32xf32>
    %571 = vector.shape_cast %570 : vector<1x1x32xf32> to vector<1x32xf32>
    %572 = vector.broadcast %571 : vector<1x32xf32> to vector<49x32xf32>
    %573 = arith.mulf %569, %572 : vector<49x32xf32>
    %c7_481 = arith.constant 7 : index
    %c0_482 = arith.constant 0 : index
    %c0_483 = arith.constant 0 : index
    %574 = vector.load %arg11[%c7_481, %c0_482, %c0_483] : memref<8x1x32xf32, #tpu.memory_space<vmem>>, vector<1x1x32xf32>
    %575 = vector.shape_cast %574 : vector<1x1x32xf32> to vector<1x32xf32>
    %576 = vector.broadcast %575 : vector<1x32xf32> to vector<49x32xf32>
    %577 = arith.addf %573, %576 : vector<49x32xf32>
    %578 = arith.addf %577, %448 : vector<49x32xf32>
    %cst_484 = arith.constant 0.000000e+00 : f32
    %579 = vector.broadcast %cst_484 : f32 to vector<49x32xf32>
    %580 = arith.maximumf %578, %579 : vector<49x32xf32>
    %581 = vector.broadcast %0 : vector<49x1xf32> to vector<49x32xf32>
    %582 = arith.mulf %580, %581 : vector<49x32xf32>
    %c0_485 = arith.constant 0 : index
    %c0_486 = arith.constant 0 : index
    %583 = vector.load %arg16[%c0_485, %c0_486] : memref<1x10xf32, #tpu.memory_space<vmem>>, vector<1x10xf32>
    %584 = vector.extract_strided_slice %582 {offsets = [8, 0], sizes = [1, 32], strides = [1, 1]} : vector<49x32xf32> to vector<1x32xf32>
    %585 = arith.truncf %584 : vector<1x32xf32> to vector<1x32xbf16>
    %c0_487 = arith.constant 0 : index
    %c0_488 = arith.constant 0 : index
    %c0_489 = arith.constant 0 : index
    %586 = vector.load %arg15[%c0_487, %c0_488, %c0_489] : memref<25x32x10xbf16, #tpu.memory_space<vmem>>, vector<1x32x10xbf16>
    %587 = vector.shape_cast %586 : vector<1x32x10xbf16> to vector<32x10xbf16>
    %cst_490 = arith.constant dense<0.000000e+00> : vector<1x10xf32>
    %588 = tpu.matmul %585, %587, %cst_490 {dimension_numbers = #tpu.dot_dimension_numbers<[1], [0], [0], [1], [0, 0, 1, 1], [], []>} : vector<1x32xbf16>, vector<32x10xbf16>, vector<1x10xf32> -> vector<1x10xf32>
    %589 = arith.addf %583, %588 : vector<1x10xf32>
    %590 = vector.extract_strided_slice %582 {offsets = [9, 0], sizes = [1, 32], strides = [1, 1]} : vector<49x32xf32> to vector<1x32xf32>
    %591 = arith.truncf %590 : vector<1x32xf32> to vector<1x32xbf16>
    %c1_491 = arith.constant 1 : index
    %c0_492 = arith.constant 0 : index
    %c0_493 = arith.constant 0 : index
    %592 = vector.load %arg15[%c1_491, %c0_492, %c0_493] : memref<25x32x10xbf16, #tpu.memory_space<vmem>>, vector<1x32x10xbf16>
    %593 = vector.shape_cast %592 : vector<1x32x10xbf16> to vector<32x10xbf16>
    %cst_494 = arith.constant dense<0.000000e+00> : vector<1x10xf32>
    %594 = tpu.matmul %591, %593, %cst_494 {dimension_numbers = #tpu.dot_dimension_numbers<[1], [0], [0], [1], [0, 0, 1, 1], [], []>} : vector<1x32xbf16>, vector<32x10xbf16>, vector<1x10xf32> -> vector<1x10xf32>
    %595 = arith.addf %589, %594 : vector<1x10xf32>
    %596 = vector.extract_strided_slice %582 {offsets = [10, 0], sizes = [1, 32], strides = [1, 1]} : vector<49x32xf32> to vector<1x32xf32>
    %597 = arith.truncf %596 : vector<1x32xf32> to vector<1x32xbf16>
    %c2_495 = arith.constant 2 : index
    %c0_496 = arith.constant 0 : index
    %c0_497 = arith.constant 0 : index
    %598 = vector.load %arg15[%c2_495, %c0_496, %c0_497] : memref<25x32x10xbf16, #tpu.memory_space<vmem>>, vector<1x32x10xbf16>
    %599 = vector.shape_cast %598 : vector<1x32x10xbf16> to vector<32x10xbf16>
    %cst_498 = arith.constant dense<0.000000e+00> : vector<1x10xf32>
    %600 = tpu.matmul %597, %599, %cst_498 {dimension_numbers = #tpu.dot_dimension_numbers<[1], [0], [0], [1], [0, 0, 1, 1], [], []>} : vector<1x32xbf16>, vector<32x10xbf16>, vector<1x10xf32> -> vector<1x10xf32>
    %601 = arith.addf %595, %600 : vector<1x10xf32>
    %602 = vector.extract_strided_slice %582 {offsets = [11, 0], sizes = [1, 32], strides = [1, 1]} : vector<49x32xf32> to vector<1x32xf32>
    %603 = arith.truncf %602 : vector<1x32xf32> to vector<1x32xbf16>
    %c3_499 = arith.constant 3 : index
    %c0_500 = arith.constant 0 : index
    %c0_501 = arith.constant 0 : index
    %604 = vector.load %arg15[%c3_499, %c0_500, %c0_501] : memref<25x32x10xbf16, #tpu.memory_space<vmem>>, vector<1x32x10xbf16>
    %605 = vector.shape_cast %604 : vector<1x32x10xbf16> to vector<32x10xbf16>
    %cst_502 = arith.constant dense<0.000000e+00> : vector<1x10xf32>
    %606 = tpu.matmul %603, %605, %cst_502 {dimension_numbers = #tpu.dot_dimension_numbers<[1], [0], [0], [1], [0, 0, 1, 1], [], []>} : vector<1x32xbf16>, vector<32x10xbf16>, vector<1x10xf32> -> vector<1x10xf32>
    %607 = arith.addf %601, %606 : vector<1x10xf32>
    %608 = vector.extract_strided_slice %582 {offsets = [12, 0], sizes = [1, 32], strides = [1, 1]} : vector<49x32xf32> to vector<1x32xf32>
    %609 = arith.truncf %608 : vector<1x32xf32> to vector<1x32xbf16>
    %c4_503 = arith.constant 4 : index
    %c0_504 = arith.constant 0 : index
    %c0_505 = arith.constant 0 : index
    %610 = vector.load %arg15[%c4_503, %c0_504, %c0_505] : memref<25x32x10xbf16, #tpu.memory_space<vmem>>, vector<1x32x10xbf16>
    %611 = vector.shape_cast %610 : vector<1x32x10xbf16> to vector<32x10xbf16>
    %cst_506 = arith.constant dense<0.000000e+00> : vector<1x10xf32>
    %612 = tpu.matmul %609, %611, %cst_506 {dimension_numbers = #tpu.dot_dimension_numbers<[1], [0], [0], [1], [0, 0, 1, 1], [], []>} : vector<1x32xbf16>, vector<32x10xbf16>, vector<1x10xf32> -> vector<1x10xf32>
    %613 = arith.addf %607, %612 : vector<1x10xf32>
    %614 = vector.extract_strided_slice %582 {offsets = [15, 0], sizes = [1, 32], strides = [1, 1]} : vector<49x32xf32> to vector<1x32xf32>
    %615 = arith.truncf %614 : vector<1x32xf32> to vector<1x32xbf16>
    %c5_507 = arith.constant 5 : index
    %c0_508 = arith.constant 0 : index
    %c0_509 = arith.constant 0 : index
    %616 = vector.load %arg15[%c5_507, %c0_508, %c0_509] : memref<25x32x10xbf16, #tpu.memory_space<vmem>>, vector<1x32x10xbf16>
    %617 = vector.shape_cast %616 : vector<1x32x10xbf16> to vector<32x10xbf16>
    %cst_510 = arith.constant dense<0.000000e+00> : vector<1x10xf32>
    %618 = tpu.matmul %615, %617, %cst_510 {dimension_numbers = #tpu.dot_dimension_numbers<[1], [0], [0], [1], [0, 0, 1, 1], [], []>} : vector<1x32xbf16>, vector<32x10xbf16>, vector<1x10xf32> -> vector<1x10xf32>
    %619 = arith.addf %613, %618 : vector<1x10xf32>
    %620 = vector.extract_strided_slice %582 {offsets = [16, 0], sizes = [1, 32], strides = [1, 1]} : vector<49x32xf32> to vector<1x32xf32>
    %621 = arith.truncf %620 : vector<1x32xf32> to vector<1x32xbf16>
    %c6_511 = arith.constant 6 : index
    %c0_512 = arith.constant 0 : index
    %c0_513 = arith.constant 0 : index
    %622 = vector.load %arg15[%c6_511, %c0_512, %c0_513] : memref<25x32x10xbf16, #tpu.memory_space<vmem>>, vector<1x32x10xbf16>
    %623 = vector.shape_cast %622 : vector<1x32x10xbf16> to vector<32x10xbf16>
    %cst_514 = arith.constant dense<0.000000e+00> : vector<1x10xf32>
    %624 = tpu.matmul %621, %623, %cst_514 {dimension_numbers = #tpu.dot_dimension_numbers<[1], [0], [0], [1], [0, 0, 1, 1], [], []>} : vector<1x32xbf16>, vector<32x10xbf16>, vector<1x10xf32> -> vector<1x10xf32>
    %625 = arith.addf %619, %624 : vector<1x10xf32>
    %626 = vector.extract_strided_slice %582 {offsets = [17, 0], sizes = [1, 32], strides = [1, 1]} : vector<49x32xf32> to vector<1x32xf32>
    %627 = arith.truncf %626 : vector<1x32xf32> to vector<1x32xbf16>
    %c7_515 = arith.constant 7 : index
    %c0_516 = arith.constant 0 : index
    %c0_517 = arith.constant 0 : index
    %628 = vector.load %arg15[%c7_515, %c0_516, %c0_517] : memref<25x32x10xbf16, #tpu.memory_space<vmem>>, vector<1x32x10xbf16>
    %629 = vector.shape_cast %628 : vector<1x32x10xbf16> to vector<32x10xbf16>
    %cst_518 = arith.constant dense<0.000000e+00> : vector<1x10xf32>
    %630 = tpu.matmul %627, %629, %cst_518 {dimension_numbers = #tpu.dot_dimension_numbers<[1], [0], [0], [1], [0, 0, 1, 1], [], []>} : vector<1x32xbf16>, vector<32x10xbf16>, vector<1x10xf32> -> vector<1x10xf32>
    %631 = arith.addf %625, %630 : vector<1x10xf32>
    %632 = vector.extract_strided_slice %582 {offsets = [18, 0], sizes = [1, 32], strides = [1, 1]} : vector<49x32xf32> to vector<1x32xf32>
    %633 = arith.truncf %632 : vector<1x32xf32> to vector<1x32xbf16>
    %c8_519 = arith.constant 8 : index
    %c0_520 = arith.constant 0 : index
    %c0_521 = arith.constant 0 : index
    %634 = vector.load %arg15[%c8_519, %c0_520, %c0_521] : memref<25x32x10xbf16, #tpu.memory_space<vmem>>, vector<1x32x10xbf16>
    %635 = vector.shape_cast %634 : vector<1x32x10xbf16> to vector<32x10xbf16>
    %cst_522 = arith.constant dense<0.000000e+00> : vector<1x10xf32>
    %636 = tpu.matmul %633, %635, %cst_522 {dimension_numbers = #tpu.dot_dimension_numbers<[1], [0], [0], [1], [0, 0, 1, 1], [], []>} : vector<1x32xbf16>, vector<32x10xbf16>, vector<1x10xf32> -> vector<1x10xf32>
    %637 = arith.addf %631, %636 : vector<1x10xf32>
    %638 = vector.extract_strided_slice %582 {offsets = [19, 0], sizes = [1, 32], strides = [1, 1]} : vector<49x32xf32> to vector<1x32xf32>
    %639 = arith.truncf %638 : vector<1x32xf32> to vector<1x32xbf16>
    %c9 = arith.constant 9 : index
    %c0_523 = arith.constant 0 : index
    %c0_524 = arith.constant 0 : index
    %640 = vector.load %arg15[%c9, %c0_523, %c0_524] : memref<25x32x10xbf16, #tpu.memory_space<vmem>>, vector<1x32x10xbf16>
    %641 = vector.shape_cast %640 : vector<1x32x10xbf16> to vector<32x10xbf16>
    %cst_525 = arith.constant dense<0.000000e+00> : vector<1x10xf32>
    %642 = tpu.matmul %639, %641, %cst_525 {dimension_numbers = #tpu.dot_dimension_numbers<[1], [0], [0], [1], [0, 0, 1, 1], [], []>} : vector<1x32xbf16>, vector<32x10xbf16>, vector<1x10xf32> -> vector<1x10xf32>
    %643 = arith.addf %637, %642 : vector<1x10xf32>
    %644 = vector.extract_strided_slice %582 {offsets = [22, 0], sizes = [1, 32], strides = [1, 1]} : vector<49x32xf32> to vector<1x32xf32>
    %645 = arith.truncf %644 : vector<1x32xf32> to vector<1x32xbf16>
    %c10 = arith.constant 10 : index
    %c0_526 = arith.constant 0 : index
    %c0_527 = arith.constant 0 : index
    %646 = vector.load %arg15[%c10, %c0_526, %c0_527] : memref<25x32x10xbf16, #tpu.memory_space<vmem>>, vector<1x32x10xbf16>
    %647 = vector.shape_cast %646 : vector<1x32x10xbf16> to vector<32x10xbf16>
    %cst_528 = arith.constant dense<0.000000e+00> : vector<1x10xf32>
    %648 = tpu.matmul %645, %647, %cst_528 {dimension_numbers = #tpu.dot_dimension_numbers<[1], [0], [0], [1], [0, 0, 1, 1], [], []>} : vector<1x32xbf16>, vector<32x10xbf16>, vector<1x10xf32> -> vector<1x10xf32>
    %649 = arith.addf %643, %648 : vector<1x10xf32>
    %650 = vector.extract_strided_slice %582 {offsets = [23, 0], sizes = [1, 32], strides = [1, 1]} : vector<49x32xf32> to vector<1x32xf32>
    %651 = arith.truncf %650 : vector<1x32xf32> to vector<1x32xbf16>
    %c11 = arith.constant 11 : index
    %c0_529 = arith.constant 0 : index
    %c0_530 = arith.constant 0 : index
    %652 = vector.load %arg15[%c11, %c0_529, %c0_530] : memref<25x32x10xbf16, #tpu.memory_space<vmem>>, vector<1x32x10xbf16>
    %653 = vector.shape_cast %652 : vector<1x32x10xbf16> to vector<32x10xbf16>
    %cst_531 = arith.constant dense<0.000000e+00> : vector<1x10xf32>
    %654 = tpu.matmul %651, %653, %cst_531 {dimension_numbers = #tpu.dot_dimension_numbers<[1], [0], [0], [1], [0, 0, 1, 1], [], []>} : vector<1x32xbf16>, vector<32x10xbf16>, vector<1x10xf32> -> vector<1x10xf32>
    %655 = arith.addf %649, %654 : vector<1x10xf32>
    %656 = vector.extract_strided_slice %582 {offsets = [24, 0], sizes = [1, 32], strides = [1, 1]} : vector<49x32xf32> to vector<1x32xf32>
    %657 = arith.truncf %656 : vector<1x32xf32> to vector<1x32xbf16>
    %c12 = arith.constant 12 : index
    %c0_532 = arith.constant 0 : index
    %c0_533 = arith.constant 0 : index
    %658 = vector.load %arg15[%c12, %c0_532, %c0_533] : memref<25x32x10xbf16, #tpu.memory_space<vmem>>, vector<1x32x10xbf16>
    %659 = vector.shape_cast %658 : vector<1x32x10xbf16> to vector<32x10xbf16>
    %cst_534 = arith.constant dense<0.000000e+00> : vector<1x10xf32>
    %660 = tpu.matmul %657, %659, %cst_534 {dimension_numbers = #tpu.dot_dimension_numbers<[1], [0], [0], [1], [0, 0, 1, 1], [], []>} : vector<1x32xbf16>, vector<32x10xbf16>, vector<1x10xf32> -> vector<1x10xf32>
    %661 = arith.addf %655, %660 : vector<1x10xf32>
    %662 = vector.extract_strided_slice %582 {offsets = [25, 0], sizes = [1, 32], strides = [1, 1]} : vector<49x32xf32> to vector<1x32xf32>
    %663 = arith.truncf %662 : vector<1x32xf32> to vector<1x32xbf16>
    %c13 = arith.constant 13 : index
    %c0_535 = arith.constant 0 : index
    %c0_536 = arith.constant 0 : index
    %664 = vector.load %arg15[%c13, %c0_535, %c0_536] : memref<25x32x10xbf16, #tpu.memory_space<vmem>>, vector<1x32x10xbf16>
    %665 = vector.shape_cast %664 : vector<1x32x10xbf16> to vector<32x10xbf16>
    %cst_537 = arith.constant dense<0.000000e+00> : vector<1x10xf32>
    %666 = tpu.matmul %663, %665, %cst_537 {dimension_numbers = #tpu.dot_dimension_numbers<[1], [0], [0], [1], [0, 0, 1, 1], [], []>} : vector<1x32xbf16>, vector<32x10xbf16>, vector<1x10xf32> -> vector<1x10xf32>
    %667 = arith.addf %661, %666 : vector<1x10xf32>
    %668 = vector.extract_strided_slice %582 {offsets = [26, 0], sizes = [1, 32], strides = [1, 1]} : vector<49x32xf32> to vector<1x32xf32>
    %669 = arith.truncf %668 : vector<1x32xf32> to vector<1x32xbf16>
    %c14 = arith.constant 14 : index
    %c0_538 = arith.constant 0 : index
    %c0_539 = arith.constant 0 : index
    %670 = vector.load %arg15[%c14, %c0_538, %c0_539] : memref<25x32x10xbf16, #tpu.memory_space<vmem>>, vector<1x32x10xbf16>
    %671 = vector.shape_cast %670 : vector<1x32x10xbf16> to vector<32x10xbf16>
    %cst_540 = arith.constant dense<0.000000e+00> : vector<1x10xf32>
    %672 = tpu.matmul %669, %671, %cst_540 {dimension_numbers = #tpu.dot_dimension_numbers<[1], [0], [0], [1], [0, 0, 1, 1], [], []>} : vector<1x32xbf16>, vector<32x10xbf16>, vector<1x10xf32> -> vector<1x10xf32>
    %673 = arith.addf %667, %672 : vector<1x10xf32>
    %674 = vector.extract_strided_slice %582 {offsets = [29, 0], sizes = [1, 32], strides = [1, 1]} : vector<49x32xf32> to vector<1x32xf32>
    %675 = arith.truncf %674 : vector<1x32xf32> to vector<1x32xbf16>
    %c15 = arith.constant 15 : index
    %c0_541 = arith.constant 0 : index
    %c0_542 = arith.constant 0 : index
    %676 = vector.load %arg15[%c15, %c0_541, %c0_542] : memref<25x32x10xbf16, #tpu.memory_space<vmem>>, vector<1x32x10xbf16>
    %677 = vector.shape_cast %676 : vector<1x32x10xbf16> to vector<32x10xbf16>
    %cst_543 = arith.constant dense<0.000000e+00> : vector<1x10xf32>
    %678 = tpu.matmul %675, %677, %cst_543 {dimension_numbers = #tpu.dot_dimension_numbers<[1], [0], [0], [1], [0, 0, 1, 1], [], []>} : vector<1x32xbf16>, vector<32x10xbf16>, vector<1x10xf32> -> vector<1x10xf32>
    %679 = arith.addf %673, %678 : vector<1x10xf32>
    %680 = vector.extract_strided_slice %582 {offsets = [30, 0], sizes = [1, 32], strides = [1, 1]} : vector<49x32xf32> to vector<1x32xf32>
    %681 = arith.truncf %680 : vector<1x32xf32> to vector<1x32xbf16>
    %c16 = arith.constant 16 : index
    %c0_544 = arith.constant 0 : index
    %c0_545 = arith.constant 0 : index
    %682 = vector.load %arg15[%c16, %c0_544, %c0_545] : memref<25x32x10xbf16, #tpu.memory_space<vmem>>, vector<1x32x10xbf16>
    %683 = vector.shape_cast %682 : vector<1x32x10xbf16> to vector<32x10xbf16>
    %cst_546 = arith.constant dense<0.000000e+00> : vector<1x10xf32>
    %684 = tpu.matmul %681, %683, %cst_546 {dimension_numbers = #tpu.dot_dimension_numbers<[1], [0], [0], [1], [0, 0, 1, 1], [], []>} : vector<1x32xbf16>, vector<32x10xbf16>, vector<1x10xf32> -> vector<1x10xf32>
    %685 = arith.addf %679, %684 : vector<1x10xf32>
    %686 = vector.extract_strided_slice %582 {offsets = [31, 0], sizes = [1, 32], strides = [1, 1]} : vector<49x32xf32> to vector<1x32xf32>
    %687 = arith.truncf %686 : vector<1x32xf32> to vector<1x32xbf16>
    %c17 = arith.constant 17 : index
    %c0_547 = arith.constant 0 : index
    %c0_548 = arith.constant 0 : index
    %688 = vector.load %arg15[%c17, %c0_547, %c0_548] : memref<25x32x10xbf16, #tpu.memory_space<vmem>>, vector<1x32x10xbf16>
    %689 = vector.shape_cast %688 : vector<1x32x10xbf16> to vector<32x10xbf16>
    %cst_549 = arith.constant dense<0.000000e+00> : vector<1x10xf32>
    %690 = tpu.matmul %687, %689, %cst_549 {dimension_numbers = #tpu.dot_dimension_numbers<[1], [0], [0], [1], [0, 0, 1, 1], [], []>} : vector<1x32xbf16>, vector<32x10xbf16>, vector<1x10xf32> -> vector<1x10xf32>
    %691 = arith.addf %685, %690 : vector<1x10xf32>
    %692 = vector.extract_strided_slice %582 {offsets = [32, 0], sizes = [1, 32], strides = [1, 1]} : vector<49x32xf32> to vector<1x32xf32>
    %693 = arith.truncf %692 : vector<1x32xf32> to vector<1x32xbf16>
    %c18 = arith.constant 18 : index
    %c0_550 = arith.constant 0 : index
    %c0_551 = arith.constant 0 : index
    %694 = vector.load %arg15[%c18, %c0_550, %c0_551] : memref<25x32x10xbf16, #tpu.memory_space<vmem>>, vector<1x32x10xbf16>
    %695 = vector.shape_cast %694 : vector<1x32x10xbf16> to vector<32x10xbf16>
    %cst_552 = arith.constant dense<0.000000e+00> : vector<1x10xf32>
    %696 = tpu.matmul %693, %695, %cst_552 {dimension_numbers = #tpu.dot_dimension_numbers<[1], [0], [0], [1], [0, 0, 1, 1], [], []>} : vector<1x32xbf16>, vector<32x10xbf16>, vector<1x10xf32> -> vector<1x10xf32>
    %697 = arith.addf %691, %696 : vector<1x10xf32>
    %698 = vector.extract_strided_slice %582 {offsets = [33, 0], sizes = [1, 32], strides = [1, 1]} : vector<49x32xf32> to vector<1x32xf32>
    %699 = arith.truncf %698 : vector<1x32xf32> to vector<1x32xbf16>
    %c19 = arith.constant 19 : index
    %c0_553 = arith.constant 0 : index
    %c0_554 = arith.constant 0 : index
    %700 = vector.load %arg15[%c19, %c0_553, %c0_554] : memref<25x32x10xbf16, #tpu.memory_space<vmem>>, vector<1x32x10xbf16>
    %701 = vector.shape_cast %700 : vector<1x32x10xbf16> to vector<32x10xbf16>
    %cst_555 = arith.constant dense<0.000000e+00> : vector<1x10xf32>
    %702 = tpu.matmul %699, %701, %cst_555 {dimension_numbers = #tpu.dot_dimension_numbers<[1], [0], [0], [1], [0, 0, 1, 1], [], []>} : vector<1x32xbf16>, vector<32x10xbf16>, vector<1x10xf32> -> vector<1x10xf32>
    %703 = arith.addf %697, %702 : vector<1x10xf32>
    %704 = vector.extract_strided_slice %582 {offsets = [36, 0], sizes = [1, 32], strides = [1, 1]} : vector<49x32xf32> to vector<1x32xf32>
    %705 = arith.truncf %704 : vector<1x32xf32> to vector<1x32xbf16>
    %c20 = arith.constant 20 : index
    %c0_556 = arith.constant 0 : index
    %c0_557 = arith.constant 0 : index
    %706 = vector.load %arg15[%c20, %c0_556, %c0_557] : memref<25x32x10xbf16, #tpu.memory_space<vmem>>, vector<1x32x10xbf16>
    %707 = vector.shape_cast %706 : vector<1x32x10xbf16> to vector<32x10xbf16>
    %cst_558 = arith.constant dense<0.000000e+00> : vector<1x10xf32>
    %708 = tpu.matmul %705, %707, %cst_558 {dimension_numbers = #tpu.dot_dimension_numbers<[1], [0], [0], [1], [0, 0, 1, 1], [], []>} : vector<1x32xbf16>, vector<32x10xbf16>, vector<1x10xf32> -> vector<1x10xf32>
    %709 = arith.addf %703, %708 : vector<1x10xf32>
    %710 = vector.extract_strided_slice %582 {offsets = [37, 0], sizes = [1, 32], strides = [1, 1]} : vector<49x32xf32> to vector<1x32xf32>
    %711 = arith.truncf %710 : vector<1x32xf32> to vector<1x32xbf16>
    %c21 = arith.constant 21 : index
    %c0_559 = arith.constant 0 : index
    %c0_560 = arith.constant 0 : index
    %712 = vector.load %arg15[%c21, %c0_559, %c0_560] : memref<25x32x10xbf16, #tpu.memory_space<vmem>>, vector<1x32x10xbf16>
    %713 = vector.shape_cast %712 : vector<1x32x10xbf16> to vector<32x10xbf16>
    %cst_561 = arith.constant dense<0.000000e+00> : vector<1x10xf32>
    %714 = tpu.matmul %711, %713, %cst_561 {dimension_numbers = #tpu.dot_dimension_numbers<[1], [0], [0], [1], [0, 0, 1, 1], [], []>} : vector<1x32xbf16>, vector<32x10xbf16>, vector<1x10xf32> -> vector<1x10xf32>
    %715 = arith.addf %709, %714 : vector<1x10xf32>
    %716 = vector.extract_strided_slice %582 {offsets = [38, 0], sizes = [1, 32], strides = [1, 1]} : vector<49x32xf32> to vector<1x32xf32>
    %717 = arith.truncf %716 : vector<1x32xf32> to vector<1x32xbf16>
    %c22 = arith.constant 22 : index
    %c0_562 = arith.constant 0 : index
    %c0_563 = arith.constant 0 : index
    %718 = vector.load %arg15[%c22, %c0_562, %c0_563] : memref<25x32x10xbf16, #tpu.memory_space<vmem>>, vector<1x32x10xbf16>
    %719 = vector.shape_cast %718 : vector<1x32x10xbf16> to vector<32x10xbf16>
    %cst_564 = arith.constant dense<0.000000e+00> : vector<1x10xf32>
    %720 = tpu.matmul %717, %719, %cst_564 {dimension_numbers = #tpu.dot_dimension_numbers<[1], [0], [0], [1], [0, 0, 1, 1], [], []>} : vector<1x32xbf16>, vector<32x10xbf16>, vector<1x10xf32> -> vector<1x10xf32>
    %721 = arith.addf %715, %720 : vector<1x10xf32>
    %722 = vector.extract_strided_slice %582 {offsets = [39, 0], sizes = [1, 32], strides = [1, 1]} : vector<49x32xf32> to vector<1x32xf32>
    %723 = arith.truncf %722 : vector<1x32xf32> to vector<1x32xbf16>
    %c23 = arith.constant 23 : index
    %c0_565 = arith.constant 0 : index
    %c0_566 = arith.constant 0 : index
    %724 = vector.load %arg15[%c23, %c0_565, %c0_566] : memref<25x32x10xbf16, #tpu.memory_space<vmem>>, vector<1x32x10xbf16>
    %725 = vector.shape_cast %724 : vector<1x32x10xbf16> to vector<32x10xbf16>
    %cst_567 = arith.constant dense<0.000000e+00> : vector<1x10xf32>
    %726 = tpu.matmul %723, %725, %cst_567 {dimension_numbers = #tpu.dot_dimension_numbers<[1], [0], [0], [1], [0, 0, 1, 1], [], []>} : vector<1x32xbf16>, vector<32x10xbf16>, vector<1x10xf32> -> vector<1x10xf32>
    %727 = arith.addf %721, %726 : vector<1x10xf32>
    %728 = vector.extract_strided_slice %582 {offsets = [40, 0], sizes = [1, 32], strides = [1, 1]} : vector<49x32xf32> to vector<1x32xf32>
    %729 = arith.truncf %728 : vector<1x32xf32> to vector<1x32xbf16>
    %c24 = arith.constant 24 : index
    %c0_568 = arith.constant 0 : index
    %c0_569 = arith.constant 0 : index
    %730 = vector.load %arg15[%c24, %c0_568, %c0_569] : memref<25x32x10xbf16, #tpu.memory_space<vmem>>, vector<1x32x10xbf16>
    %731 = vector.shape_cast %730 : vector<1x32x10xbf16> to vector<32x10xbf16>
    %cst_570 = arith.constant dense<0.000000e+00> : vector<1x10xf32>
    %732 = tpu.matmul %729, %731, %cst_570 {dimension_numbers = #tpu.dot_dimension_numbers<[1], [0], [0], [1], [0, 0, 1, 1], [], []>} : vector<1x32xbf16>, vector<32x10xbf16>, vector<1x10xf32> -> vector<1x10xf32>
    %733 = arith.addf %727, %732 : vector<1x10xf32>
    %c0_571 = arith.constant 0 : index
    %c0_572 = arith.constant 0 : index
    %c0_573 = arith.constant 0 : index
    %734 = vector.load %arg17[%c0_571, %c0_572, %c0_573] : memref<1x1x10xf32, #tpu.memory_space<vmem>>, vector<1x1x10xf32>
    %735 = vector.shape_cast %734 : vector<1x1x10xf32> to vector<1x10xf32>
    %736 = vector.shape_cast %733 : vector<1x10xf32> to vector<1x1x10xf32>
    tpu.vector_store %arg17[%c0_571, %c0_572, %c0_573], %736 {strides = array<i32>} : memref<1x1x10xf32, #tpu.memory_space<vmem>>, vector<1x1x10xf32>,
    return
  }
  func.func @transform_0(%arg0: i32) -> (i32, i32, i32) {
    %c0_i32 = arith.constant 0 : i32
    %c0_i32_0 = arith.constant 0 : i32
    %c0_i32_1 = arith.constant 0 : i32
    return %arg0, %c0_i32, %c0_i32_0 : i32, i32, i32
  }
  func.func @transform_1(%arg0: i32) -> (i32, i32, i32) {
    %c0_i32 = arith.constant 0 : i32
    %c0_i32_0 = arith.constant 0 : i32
    %c0_i32_1 = arith.constant 0 : i32
    return %arg0, %c0_i32, %c0_i32_0 : i32, i32, i32
  }
  func.func @transform_2(%arg0: i32) -> (i32, i32, i32) {
    %c0_i32 = arith.constant 0 : i32
    %c0_i32_0 = arith.constant 0 : i32
    %c0_i32_1 = arith.constant 0 : i32
    return %arg0, %c0_i32, %c0_i32_0 : i32, i32, i32
  }
  func.func @transform_3(%arg0: i32) -> (i32, i32, i32) {
    %c0_i32 = arith.constant 0 : i32
    %c0_i32_0 = arith.constant 0 : i32
    %c0_i32_1 = arith.constant 0 : i32
    return %arg0, %c0_i32, %c0_i32_0 : i32, i32, i32
  }
  func.func @transform_4(%arg0: i32) -> (i32, i32) {
    %c0_i32 = arith.constant 0 : i32
    %c0_i32_0 = arith.constant 0 : i32
    %c0_i32_1 = arith.constant 0 : i32
    return %c0_i32, %c0_i32_0 : i32, i32
  }
  func.func @transform_5(%arg0: i32) -> (i32, i32) {
    %c0_i32 = arith.constant 0 : i32
    %c0_i32_0 = arith.constant 0 : i32
    %c0_i32_1 = arith.constant 0 : i32
    return %c0_i32, %c0_i32_0 : i32, i32
  }
  func.func @transform_6(%arg0: i32) -> (i32, i32) {
    %c0_i32 = arith.constant 0 : i32
    %c0_i32_0 = arith.constant 0 : i32
    %c0_i32_1 = arith.constant 0 : i32
    return %c0_i32, %c0_i32_0 : i32, i32
  }
  func.func @transform_7(%arg0: i32) -> (i32, i32) {
    %c0_i32 = arith.constant 0 : i32
    %c0_i32_0 = arith.constant 0 : i32
    %c0_i32_1 = arith.constant 0 : i32
    return %c0_i32, %c0_i32_0 : i32, i32
  }
  func.func @transform_8(%arg0: i32) -> (i32, i32, i32, i32) {
    %c0_i32 = arith.constant 0 : i32
    %c0_i32_0 = arith.constant 0 : i32
    %c0_i32_1 = arith.constant 0 : i32
    %c0_i32_2 = arith.constant 0 : i32
    %c0_i32_3 = arith.constant 0 : i32
    return %c0_i32, %c0_i32_0, %c0_i32_1, %c0_i32_2 : i32, i32, i32, i32
  }
  func.func @transform_9(%arg0: i32) -> (i32, i32, i32) {
    %c0_i32 = arith.constant 0 : i32
    %c0_i32_0 = arith.constant 0 : i32
    %c0_i32_1 = arith.constant 0 : i32
    %c0_i32_2 = arith.constant 0 : i32
    return %c0_i32, %c0_i32_0, %c0_i32_1 : i32, i32, i32
  }
  func.func @transform_10(%arg0: i32) -> (i32, i32, i32) {
    %c0_i32 = arith.constant 0 : i32
    %c0_i32_0 = arith.constant 0 : i32
    %c0_i32_1 = arith.constant 0 : i32
    %c0_i32_2 = arith.constant 0 : i32
    return %c0_i32, %c0_i32_0, %c0_i32_1 : i32, i32, i32
  }
  func.func @transform_11(%arg0: i32) -> (i32, i32) {
    %c0_i32 = arith.constant 0 : i32
    %c0_i32_0 = arith.constant 0 : i32
    %c0_i32_1 = arith.constant 0 : i32
    return %c0_i32, %c0_i32_0 : i32, i32
  }
  func.func @transform_12(%arg0: i32) -> (i32, i32) {
    %c0_i32 = arith.constant 0 : i32
    %c0_i32_0 = arith.constant 0 : i32
    %c0_i32_1 = arith.constant 0 : i32
    return %c0_i32, %c0_i32_0 : i32, i32
  }
  func.func @transform_13(%arg0: i32) -> (i32, i32) {
    %c0_i32 = arith.constant 0 : i32
    %c0_i32_0 = arith.constant 0 : i32
    %c0_i32_1 = arith.constant 0 : i32
    return %c0_i32, %c0_i32_0 : i32, i32
  }
  func.func @transform_14(%arg0: i32) -> (i32, i32, i32) {
    %c0_i32 = arith.constant 0 : i32
    %c0_i32_0 = arith.constant 0 : i32
    %c0_i32_1 = arith.constant 0 : i32
    %c0_i32_2 = arith.constant 0 : i32
    return %c0_i32, %c0_i32_0, %c0_i32_1 : i32, i32, i32
  }
  func.func @transform_15(%arg0: i32) -> (i32, i32) {
    %c0_i32 = arith.constant 0 : i32
    %c0_i32_0 = arith.constant 0 : i32
    %c0_i32_1 = arith.constant 0 : i32
    return %c0_i32, %c0_i32_0 : i32, i32
  }
  func.func @transform_16(%arg0: i32) -> (i32, i32, i32) {
    %c0_i32 = arith.constant 0 : i32
    %c0_i32_0 = arith.constant 0 : i32
    %c0_i32_1 = arith.constant 0 : i32
    return %arg0, %c0_i32, %c0_i32_0 : i32, i32, i32
  }
}

</mosaic_0001>

<bundles_post_ra>
// kernel: net_forward.2
= control target key start
LH: loop header
LB: loop body
LE: loop exit
PB: predicated region body
PF: predicated region fallthrough
CT: control target
= control target key end

     0   :  { %s1027_s21 = smov 0   ;;  %s1136_s0 = inlined_call_operand.vmem [shape: bf16[2,75,196], index: 0, kind: input, shape index: {}]   ;;  %s1137_s1 = inlined_call_operand.vmem [shape: bf16[2,75,196], index: 1, kind: input, shape index: {}]   ;;  %s1138_s2 = inlined_call_operand.vmem [shape: bf16[2,75,196], index: 2, kind: input, shape index: {}]   ;;  %s1139_s3 = inlined_call_operand.vmem [shape: bf16[2,75,196], index: 3, kind: input, shape index: {}]   ;;  %s1140_s4 = inlined_call_operand.vmem [shape: bf16[6,75], index: 4, kind: input, shape index: {}]   ;;  %s1141_s5 = inlined_call_operand.vmem [shape: f32[6,1], index: 5, kind: input, shape index: {}]   ;;  %s1142_s6 = inlined_call_operand.vmem [shape: f32[2,6,196], index: 6, kind: output, shape index: {}]  }
   0x1 LB: > { %s852_s22 = sadd.s32 4294967295, %s988_s21   ;;  %p856_p0 = scmp.ge.s32.totalorder %s988_s21, 1  ;;  %s988_s21 = sphi %s1027_s21, %s16_s21  }
   0x2   : > { %p242_p1 = scmp.lt.s32.totalorder %s988_s21, 3 }
   0x4   : > { %p243_p2 = pnand %p856_p0, %p242_p1 }
   0x5   : > { %p287_p3 = scmp.lt.s32.totalorder (!%p243_p2), %s852_s22, 1  ;;  %v990_v0 = vmov (!%p243_p2), 0   ;;  %v748_v1 = vld [vmem:[%s1141_s5] sm:$0x3f] (!%p243_p2)  ;;  %vm376_vm0 = vcmask (!%p243_p2), 1044480   ;;  %vm377_vm1 = vcmask (!%p243_p2), 1045504  }
   0x6   : > { %246 = sbr.rel (%p243_p2) target bundleno = 281 (0x119), region = 44  ;;  %418 = vmatprep.mubr.bf16.mxu0 (!%p243_p2), %v990_v0  ;;  %523 = vmatprep.mubr.bf16.mxu1 (!%p243_p2), %v990_v0  ;;  %v991_v11 = vmov (!%p243_p2), 65535   ;;  %v313_v31 = vld [vmem:[%s1140_s4] sm:$0x7] (!%p243_p2)  ;;  %vm372_vm2 = vcmask (!%p243_p2), 613376   ;;  %vm759_vm3 = vcmask (!%p243_p2), 553984  }
   0x7   : > { %921 = vset.pattern.permute.xlu0 (!%p243_p2), %v990_v0  ;;  %v378_v12 = vsel (!%p243_p2), %vm376_vm0, 4294967295, %v991_v11 }
   0x8   : > { %751 = vperm.xlu0 (!%p243_p2), %921, %v748_v1   ;;  %v1074_v20 = vsel (!%p243_p2), %vm377_vm1, %v378_v12, 0 }
   0xd   : > { %s1144_s22 = smov (!%p287_p3, %s852_s22), 1 }
   0xe   : > { %s1044_s25 = smul.u32 80, %s1144_s22  ;;  %s909_s16 = sshll.u32 %s1144_s22, 4 }
   0xf   : > { %s311_s19 = scalar_lea.vmem %s1142_s6, %s909_s16 }
  0x10   : > { %s1050_s28 = scalar_lea.vmem %s1136_s0, %s1044_s25  ;;  %s1056_s7 = scalar_lea.vmem %s1137_s1, %s1044_s25 }
  0x11   : > { %v922_v2 = vld [vmem:[%s1050_s28 + $0x4] ss:$8 sps:$4 sm:$0xff]   ;;  %v926_v4 = vld [vmem:[%s1050_s28] ss:$8 sps:$4 sm:$0xff]   ;;  %v928_v6 = vld [vmem:[%s1050_s28 + $0x14] ss:$8 sps:$4 sm:$0xff]   ;;  %s1081_s10 = scalar_lea.vmem %s1138_s2, %s1044_s25  ;;  %s1092_s13 = scalar_lea.vmem %s1139_s3, %s1044_s25 }
  0x12   : > { %v924_v3 = vld [vmem:[%s1056_s7 + $0x4] ss:$8 sps:$4 sm:$0xff]   ;;  %386 = vmatprep.subr.bf16.mxu0 %v922_v2  ;;  %v927_v5 = vld [vmem:[%s1056_s7] ss:$8 sps:$4 sm:$0xff]   ;;  %v930_v7 = vld [vmem:[%s1056_s7 + $0x14] ss:$8 sps:$4 sm:$0xff]  }
  0x13   : > { %491 = vmatprep.subr.bf16.mxu1 %v924_v3  ;;  %387 = vmatpush1.bf16.msra.mxu0 %v926_v4  ;;  %v932_v8 = vld [vmem:[%s1050_s28 + $0x10] ss:$8 sps:$4 sm:$0xff]   ;;  %v934_v10 = vld [vmem:[%s1050_s28 + $0x24] ss:$8 sps:$4 sm:$0xff]   ;;  %v938_v14 = vld [vmem:[%s1050_s28 + $0x20] ss:$8 sps:$4 sm:$0xff]  }
  0x14   : > { %492 = vmatpush1.bf16.msra.mxu1 %v927_v5  ;;  %388 = vmatprep.subr.bf16.mxu0 %v928_v6  ;;  %v933_v9 = vld [vmem:[%s1056_s7 + $0x10] ss:$8 sps:$4 sm:$0xff]   ;;  %v936_v13 = vld [vmem:[%s1056_s7 + $0x24] ss:$8 sps:$4 sm:$0xff]   ;;  %v939_v15 = vld [vmem:[%s1056_s7 + $0x20] ss:$8 sps:$4 sm:$0xff]  }
  0x15   : > { %493 = vmatprep.subr.bf16.mxu1 %v930_v7  ;;  %v940_v16 = vld [vmem:[%s1050_s28 + $0x34] ss:$8 sps:$4 sm:$0xff]   ;;  %v944_v18 = vld [vmem:[%s1050_s28 + $0x30] ss:$8 sps:$4 sm:$0xff]   ;;  %v954_v29 = vld [vmem:[%s1081_s10 + $0x4] ss:$8 sps:$4 sm:$0xff]  }
  0x16   : > { %v942_v17 = vld [vmem:[%s1056_s7 + $0x34] ss:$8 sps:$4 sm:$0xff]   ;;  %v945_v19 = vld [vmem:[%s1056_s7 + $0x30] ss:$8 sps:$4 sm:$0xff]   ;;  %v957_v30 = vld [vmem:[%s1092_s13 + $0x4] ss:$8 sps:$4 sm:$0xff]  }
  0x17   : > { %389 = vmatpush1.bf16.msra.mxu0 %v932_v8  ;;  %v946_v21 = vld [vmem:[%s1050_s28 + $0x44] ss:$8 sps:$4 sm:$0x3f]   ;;  %v950_v24 = vld [vmem:[%s1050_s28 + $0x40] ss:$8 sps:$4 sm:$0x3f]  }
  0x18   : > { %494 = vmatpush1.bf16.msra.mxu1 %v933_v9  ;;  %390 = vmatprep.subr.bf16.mxu0 %v934_v10  ;;  %v948_v22 = vld [vmem:[%s1056_s7 + $0x44] ss:$8 sps:$4 sm:$0x3f]   ;;  %v384_v23 = vand.u32 %v946_v21, %v1074_v20  ;;  %v951_v25 = vld [vmem:[%s1056_s7 + $0x40] ss:$8 sps:$4 sm:$0x3f]   ;;  %v381_v27 = vand.u32 %v950_v24, %v1074_v20 }
  0x19   : > { %495 = vmatprep.subr.bf16.mxu1 %v936_v13  ;;  %v489_v26 = vand.u32 %v948_v22, %v1074_v20  ;;  %v486_v28 = vand.u32 %v951_v25, %v1074_v20  ;;  %v952_v32 = vld [vmem:[%s1081_s10] ss:$8 sps:$4 sm:$0xff]   ;;  %v960_v34 = vld [vmem:[%s1081_s10 + $0x14] ss:$8 sps:$4 sm:$0xff]   ;;  %v958_v36 = vld [vmem:[%s1081_s10 + $0x10] ss:$8 sps:$4 sm:$0xff]  }
  0x1a   : > { %v955_v33 = vld [vmem:[%s1092_s13] ss:$8 sps:$4 sm:$0xff]   ;;  %v963_v35 = vld [vmem:[%s1092_s13 + $0x14] ss:$8 sps:$4 sm:$0xff]   ;;  %v961_v37 = vld [vmem:[%s1092_s13 + $0x10] ss:$8 sps:$4 sm:$0xff]  }
  0x1b   : > { %391 = vmatpush1.bf16.msra.mxu0 %v938_v14  ;;  %v966_v38 = vld [vmem:[%s1081_s10 + $0x24] ss:$8 sps:$4 sm:$0xff]   ;;  %v964_v40 = vld [vmem:[%s1081_s10 + $0x20] ss:$8 sps:$4 sm:$0xff]   ;;  %v972_v42 = vld [vmem:[%s1081_s10 + $0x34] ss:$8 sps:$4 sm:$0xff]  }
  0x1c   : > { %496 = vmatpush1.bf16.msra.mxu1 %v939_v15  ;;  %392 = vmatprep.subr.bf16.mxu0 %v940_v16  ;;  %v969_v39 = vld [vmem:[%s1092_s13 + $0x24] ss:$8 sps:$4 sm:$0xff]   ;;  %v967_v41 = vld [vmem:[%s1092_s13 + $0x20] ss:$8 sps:$4 sm:$0xff]   ;;  %v975_v43 = vld [vmem:[%s1092_s13 + $0x34] ss:$8 sps:$4 sm:$0xff]  }
  0x1d   : > { %497 = vmatprep.subr.bf16.mxu1 %v942_v17  ;;  %v978_v44 = vld [vmem:[%s1081_s10 + $0x44] ss:$8 sps:$4 sm:$0x3f]   ;;  %v970_v46 = vld [vmem:[%s1081_s10 + $0x30] ss:$8 sps:$4 sm:$0xff]  }
  0x1e   : > { %v981_v45 = vld [vmem:[%s1092_s13 + $0x44] ss:$8 sps:$4 sm:$0x3f]   ;;  %v973_v47 = vld [vmem:[%s1092_s13 + $0x30] ss:$8 sps:$4 sm:$0xff]   ;;  %v596_v50 = vand.u32 %v978_v44, %v1074_v20 }
  0x1f   : > { %393 = vmatpush1.bf16.msra.mxu0 %v944_v18  ;;  %v976_v48 = vld [vmem:[%s1081_s10 + $0x40] ss:$8 sps:$4 sm:$0x3f]   ;;  %v701_v51 = vand.u32 %v981_v45, %v1074_v20 }
  0x20   : > { %498 = vmatpush1.bf16.msra.mxu1 %v945_v19  ;;  %394 = vmatprep.subr.bf16.mxu0 %v384_v23  ;;  %v979_v49 = vld [vmem:[%s1092_s13 + $0x40] ss:$8 sps:$4 sm:$0x3f]   ;;  %v593_v52 = vand.u32 %v976_v48, %v1074_v20 }
  0x21   : > { %499 = vmatprep.subr.bf16.mxu1 %v489_v26  ;;  %v698_v53 = vand.u32 %v979_v49, %v1074_v20 }
  0x23   : > { %395 = vmatpush1.bf16.msra.mxu0 %v381_v27 }
  0x24   : > { %500 = vmatpush1.bf16.msra.mxu1 %v486_v28  ;;  %598 = vmatprep.subr.bf16.mxu0 %v954_v29 }
  0x25   : > { %703 = vmatprep.subr.bf16.mxu1 %v957_v30 }
  0x26   : > { %873 = vmatmul.mubr.msk.bf16.vlgmr.msra.gmra.mrb[0].mxu0 %vm372_vm2, %v313_v31 }
  0x27   : > { %884 = vmatmul.mubr.msk.bf16.vlgmr.msra.gmra.mrb[0].mxu1 %vm372_vm2, %v313_v31  ;;  %599 = vmatpush1.bf16.msra.mxu0 %v952_v32 }
  0x28   : > { %704 = vmatpush1.bf16.msra.mxu1 %v955_v33  ;;  %600 = vmatprep.subr.bf16.mxu0 %v960_v34 }
  0x29   : > { %705 = vmatprep.subr.bf16.mxu1 %v963_v35  ;;  %630 = vmatprep.mubr.bf16.mxu0 %v990_v0 }
  0x2a   : > { %735 = vmatprep.mubr.bf16.mxu1 %v990_v0 }
  0x2b   : > { %601 = vmatpush1.bf16.msra.mxu0 %v958_v36 }
  0x2c   : > { %706 = vmatpush1.bf16.msra.mxu1 %v961_v37  ;;  %602 = vmatprep.subr.bf16.mxu0 %v966_v38 }
  0x2d   : > { %707 = vmatprep.subr.bf16.mxu1 %v969_v39 }
  0x2f   : > { %603 = vmatpush1.bf16.msra.mxu0 %v964_v40 }
  0x30   : > { %708 = vmatpush1.bf16.msra.mxu1 %v967_v41  ;;  %604 = vmatprep.subr.bf16.mxu0 %v972_v42 }
  0x31   : > { %709 = vmatprep.subr.bf16.mxu1 %v975_v43 }
  0x33   : > { %605 = vmatpush1.bf16.msra.mxu0 %v970_v46 }
  0x34   : > { %710 = vmatpush1.bf16.msra.mxu1 %v973_v47  ;;  %606 = vmatprep.subr.bf16.mxu0 %v596_v50 }
  0x35   : > { %711 = vmatprep.subr.bf16.mxu1 %v701_v51 }
  0x37   : > { %607 = vmatpush1.bf16.msra.mxu0 %v593_v52 }
  0x38   : > { %712 = vmatpush1.bf16.msra.mxu1 %v698_v53 }
  0x3a   : > { %895 = vmatmul.mubr.msk.bf16.vlgmr.msra.gmra.mrb[4].mxu0 %vm372_vm2, %v313_v31 }
  0x3b   : > { %906 = vmatmul.mubr.msk.bf16.vlgmr.msra.gmra.mrb[4].mxu1 %vm372_vm2, %v313_v31 }
  0x87   : > { %v752_v0 = vpop.permute.xlu0 %751 }
  0xf9   : > { %v420_v54 = vpop.f32.mrb[0].mxu0 }
  0xfa   : > { %v525_v55 = vpop.f32.mrb[0].mxu1  ;;  %v422_v57 = vpop.f32.mrb[1].mxu0 }
  0xfb   : > { %v532_v56 = vmax.f32 %v420_v54, %v525_v55  ;;  %v527_v58 = vpop.f32.mrb[1].mxu1  ;;  %v424_v60 = vpop.f32.mrb[2].mxu0 }
  0xfc   : > { %v533_v59 = vmax.f32 %v422_v57, %v527_v58  ;;  %v529_v61 = vpop.f32.mrb[2].mxu1  ;;  %v425_v62 = vpop.f32.mrb[3].mxu0 }
  0xfd   : > { %v530_v63 = vpop.f32.mrb[3].mxu1 }
 0x10d   : > { %v632_v1 = vpop.f32.mrb[4].mxu0 }
 0x10e   : > { %v737_v2 = vpop.f32.mrb[4].mxu1  ;;  %v634_v4 = vpop.f32.mrb[5].mxu0 }
 0x10f   : > { %v744_v3 = vmax.f32 %v632_v1, %v737_v2  ;;  %v739_v5 = vpop.f32.mrb[5].mxu1  ;;  %v636_v7 = vpop.f32.mrb[6].mxu0 }
 0x110   : > { %v745_v6 = vmax.f32 %v634_v4, %v739_v5  ;;  %v741_v8 = vpop.f32.mrb[6].mxu1  ;;  %v637_v9 = vpop.f32.mrb[7].mxu0 }
 0x111   : > { %v742_v10 = vpop.f32.mrb[7].mxu1  ;;  %v746_v11 = vmax.f32 %v532_v56, %v744_v3 }
 0x112   : > { %v747_v12 = vmax.f32 %v533_v59, %v745_v6 }
 0x113   : > { %v754_v13 = vadd.f32 %v752_v0, %v746_v11 }
 0x114   : > { %v755_v14 = vadd.f32 %v752_v0, %v747_v12 }
 0x115   : > { %v756_v15 = vmax.f32 %v754_v13, 0.0 }
 0x116   : > { %v757_v16 = vmax.f32 %v755_v14, 0.0 }
 0x117   : > { %758 = vst [vmem:[%s311_s19] sm:$0x3f] %v756_v15 }
 0x118   : > { %760 = vst.msk [vmem:[%s311_s19 + $0x8] sm:$0x3f] %vm759_vm3, %v757_v16 }
 0x119 PF: > { %s16_s21 = sadd.s32 1, %s988_s21  }
 0x11a   : > { %p13_p4 = scmp.ge.s32.totalorder %s16_s21, 4  }
 0x11c   :  { %15 = sbr.rel (!%p13_p4) target bundleno = 1 (0x1), region = 83 }

// kernel: net_forward.3
= control target key start
LH: loop header
LB: loop body
LE: loop exit
PB: predicated region body
PF: predicated region fallthrough
CT: control target
= control target key end

     0   :  { %s17389_s0 = inlined_call_operand.vmem [shape: bf16[2,25,150], index: 0, kind: input, shape index: {}]   ;;  %s17390_s1 = inlined_call_operand.vmem [shape: bf16[2,25,150], index: 1, kind: input, shape index: {}]   ;;  %s17391_s2 = inlined_call_operand.vmem [shape: bf16[2,25,150], index: 2, kind: input, shape index: {}]   ;;  %s17392_s3 = inlined_call_operand.vmem [shape: bf16[2,25,150], index: 3, kind: input, shape index: {}]   ;;  %s17393_s4 = inlined_call_operand.vmem [shape: bf16[150,32], index: 4, kind: input, shape index: {}]   ;;  %s17394_s5 = inlined_call_operand.vmem [shape: f32[1,32], index: 5, kind: input, shape index: {}]   ;;  %s17395_s6 = inlined_call_operand.vmem [shape: f32[49,25], index: 6, kind: input, shape index: {}]   ;;  %s17396_s7 = inlined_call_operand.vmem [shape: f32[49,1], index: 7, kind: input, shape index: {}]   ;;  %s17397_s8 = inlined_call_operand.vmem [shape: bf16[8,9,32,32], index: 8, kind: input, shape index: {}]   ;;  %s17398_s9 = inlined_call_operand.vmem [shape: f32[8,1,32], index: 9, kind: input, shape index: {}]   ;;  %s17399_s10 = inlined_call_operand.vmem [shape: f32[8,1,32], index: 10, kind: input, shape index: {}]   ;;  %s17400_s11 = inlined_call_operand.vmem [shape: bf16[32,32], index: 11, kind: input, shape index: {}]   ;;  %s17401_s12 = inlined_call_operand.vmem [shape: f32[1,32], index: 12, kind: input, shape index: {}]   ;;  %s17402_s13 = inlined_call_operand.vmem [shape: f32[1,32], index: 13, kind: input, shape index: {}]   ;;  %s17403_s14 = inlined_call_operand.vmem [shape: bf16[25,32,10], index: 14, kind: input, shape index: {}]   ;;  %s17404_s15 = inlined_call_operand.vmem [shape: f32[1,10], index: 15, kind: input, shape index: {}]   ;;  %s17405_s16 = inlined_call_operand.hbm [shape: f32[2,1,10], index: 16, kind: output, shape index: {}]  }
   0x1   :  { %17410 = sst [smem:[#allocation11_spill]] %s17389_s0 }
   0x2   :  { %17411 = sst [smem:[#allocation12_spill]] %s17390_s1 }
   0x3   :  { %21 = vsyncpa [#allocation5], 0 }
   0x4   :  { %23 = vsyncpa [#allocation5 + $0x1], 0  ;;  %s15084_s21 = smov 0   ;;  %s15086_s22 = smov 0  }
   0x5   :  { %s15088_s23 = smov 0   ;;  %s15090_s24 = smov 0  }
   0x6 LB: > { %17412 = sst [smem:[#allocation7_spill]] %s14987_s23  ;;  %s15105_s25 = sadd.s32 4294967295, %s14991_s24   ;;  %s14991_s24 = sphi %s15090_s24, %s17421_s24   ;;  %s14987_s23 = sphi %s15088_s23, %s17423_s23   ;;  %s14983_s22 = sphi %s15086_s22, %s17425_s22   ;;  %s14979_s21 = sphi %s15084_s21, %s17424_s21  }
   0x7   : > { %s11414_s26 = sadd.s32 4294967294, %s14991_s24   ;;  %s15109_s27 = sadd.s32 1, %s14991_s24  }
   0x8   : > { %17413 = sst [smem:[#allocation8_spill]] %s15109_s27  ;;  %s392_s28 = sadd.s32 1, %s14987_s23 }
   0x9   : > { %s389_s29 = ssub.s32 %s14991_s24, %s15109_s27  ;;  %p402_p0 = scmp.ne.s32.totalorder %s14987_s23, %s14983_s22 }
   0xa   : > { %p390_p1 = scmp.eq.s32.totalorder %s389_s29, 0  ;;  %p403_p2 = scmp.eq.s32.totalorder %s15105_s25, 1 }
   0xb   : > { %p408_p3 = scmp.ne.s32.totalorder %s14983_s22, %s14979_s21  ;;  %p409_p4 = scmp.eq.s32.totalorder %s11414_s26, 1 }
   0xc   : > { %s15120_s30 = scalar_select %p390_p1, %s14987_s23, %s392_s28  }
   0xd   : > { %p15122_p5 = por %p403_p2, %p402_p0  ;;  %p15126_p6 = por %p409_p4, %p408_p3 }
   0xe   : > { %17414 = sst [smem:[#allocation9_spill]] %s15120_s30  ;;  %p11417_p7 = scmp.ge.s32.totalorder %s14991_s24, 1 }
   0xf   : > { %s17416_s17 = scalar_select %p15126_p6, 1, 0 }
  0x10   : > { %p495_p8 = scmp.lt.s32.totalorder %s14991_s24, 3 }
  0x11   : > { %17417 = sst [smem:[#allocation10_spill]] %s17416_s17 }
  0x12   : > { %p496_p9 = pnand %p11417_p7, %p495_p8 }
  0x13   : > { %v15135_v0 = vld [vmem:[%s17393_s4] sm:$0xff] (!%p496_p9)   ;;  %v14993_v1 = vmov (!%p496_p9), 0   ;;  %v15143_v2 = vld [vmem:[%s17393_s4 + $0x8] sm:$0xff] (!%p496_p9)   ;;  %p559_p10 = scmp.lt.s32.totalorder (!%p496_p9), %s15105_s25, 1  ;;  %v15153_v3 = vld [vmem:[%s17393_s4 + $0x10] sm:$0xff] (!%p496_p9)   ;;  %s17418_s26 = sld [smem:[#allocation11_spill]] (!%p496_p9) }
  0x14   : > { %499 = sbr.rel (%p496_p9) target bundleno = 4142 (0x102e), region = 84  ;;  %696 = vmatprep.subr.bf16.mxu0 (!%p496_p9), %v14993_v1  ;;  %14694 = vset.pattern.permute.xlu0 (!%p496_p9), %v14993_v1  ;;  %vm685_vm0 = vcmask (!%p496_p9), 179200   ;;  %v15165_v4 = vld [vmem:[%s17393_s4 + $0x18] sm:$0xff] (!%p496_p9)   ;;  %s17419_s1 = sld [smem:[#allocation12_spill]] (!%p496_p9)  ;;  %v15179_v6 = vld [vmem:[%s17393_s4 + $0x20] sm:$0xff] (!%p496_p9)   ;;  %v15191_v7 = vld [vmem:[%s17393_s4 + $0x28] sm:$0xff] (!%p496_p9)  }
  0x15   : > { %697 = vmatpush1.bf16.msra.mxu0 (!%p496_p9), %v15135_v0  ;;  %14695 = vset.pattern.permute.xlu1 (!%p496_p9), %v14993_v1  ;;  %v15197_v8 = vld [vmem:[%s17393_s4 + $0x30] sm:$0xff] (!%p496_p9)   ;;  %v15204_v9 = vld [vmem:[%s17393_s4 + $0x38] sm:$0xff] (!%p496_p9)   ;;  %v15211_v10 = vld [vmem:[%s17393_s4 + $0x40] sm:$0xff] (!%p496_p9)   ;;  %vm692_vm1 = vcmask (!%p496_p9), 1042432   ;;  %v14994_v32 = vmov (!%p496_p9), 0.0|0.0   ;;  %vm14995_vm2 = vmmov (!%p496_p9), 0  }
  0x16   : > { %698 = vmatprep.subr.bf16.mxu0 (!%p496_p9), %v14993_v1  ;;  %v14705_v11 = vld [vmem:[%s17393_s4 + $0x48] ss:$0 sps:$4 sm:$0x77] (!%p496_p9)   ;;  %v14996_v37 = vmov (!%p496_p9), 0.0   ;;  %vm1003_vm3 = vcmask (!%p496_p9), 261120   ;;  %vm1052_vm4 = vcmask (!%p496_p9), 1040384  }
  0x17   : > { %v15224_v12 = vsel (!%p496_p9), %vm692_vm1, %v14705_v11, 0  ;;  %1005 = vst.msk [vmem:[#allocation2 + $0x8] sm:$0xff] (!%p496_p9), %vm1003_vm3, %v14996_v37  ;;  %1004 = vst.msk [vmem:[#allocation2] sm:$0xff] (!%p496_p9), %vm1003_vm3, %v14996_v37  ;;  %v11460_v61 = vld [vmem:[%s17394_s5] ss:$0 sm:$0xff] (!%p496_p9)  ;;  %vm14997_vm5 = vmmov (!%p496_p9), 1  }
  0x18   : > { %1006 = vst.msk [vmem:[#allocation2 + $0x10] sm:$0xff] (!%p496_p9), %vm1003_vm3, %v14996_v37  ;;  %1007 = vst.msk [vmem:[#allocation2 + $0x18] sm:$0xff] (!%p496_p9), %vm1003_vm3, %v14996_v37  ;;  %vm1030_vm7 = vcmask (!%p496_p9), 203776   ;;  %vm1012_vm8 = vcmask (!%p496_p9), 253952   ;;  %vm1186_vm9 = vsmask.f32 (!%p496_p9), 7424 }
  0x19   : > { %699 = vmatpush1.bf16.msra.mxu0 (!%p496_p9), %v15143_v2  ;;  %1008 = vst.msk [vmem:[#allocation2 + $0x20] sm:$0xff] (!%p496_p9), %vm1003_vm3, %v14996_v37  ;;  %1009 = vst.msk [vmem:[#allocation2 + $0x28] sm:$0xff] (!%p496_p9), %vm1003_vm3, %v14996_v37  ;;  %vm1398_vm10 = vcmask (!%p496_p9), 1046528   ;;  %vm1506_vm11 = vsmask.f32 (!%p496_p9), 4352  ;;  %vm1856_vm12 = vcmask (!%p496_p9), 1044480  }
  0x1a   : > { %700 = vmatprep.subr.bf16.mxu0 (!%p496_p9), %v14993_v1  ;;  %1010 = vst.msk [vmem:[#allocation2 + $0x30] sm:$0xff] (!%p496_p9), %vm1003_vm3, %v14996_v37  ;;  %1011 = vst.msk [vmem:[#allocation2 + $0x38] sm:$0xff] (!%p496_p9), %vm1003_vm3, %v14996_v37  ;;  %s557_s18 = sand.u32 (!%p496_p9), 1, %s14983_s22   ;;  %s12394_s27 = sshll.u32 (!%p496_p9), %s15105_s25, 4  ;;  %vm11308_vm13 = vcmask (!%p496_p9), 73728  }
  0x1b   : > { %s560_s28 = scalar_select %p559_p10, %s15105_s25, 1  ;;  %1014 = vst.msk [vmem:[#allocation3] sm:$0xff] %vm1003_vm3, %v14996_v37  ;;  %1015 = vst.msk [vmem:[#allocation3 + $0x8] sm:$0xff] %vm1003_vm3, %v14996_v37 }
  0x1c   : > { %1016 = vst.msk [vmem:[#allocation3 + $0x10] sm:$0xff] %vm1003_vm3, %v14996_v37  ;;  %1017 = vst.msk [vmem:[#allocation3 + $0x18] sm:$0xff] %vm1003_vm3, %v14996_v37  ;;  %s17347_s17 = scalar_lea.hbm %s17405_s16, %s12394_s27  ;;  %s11311_s25 = scalar_lea.sflag [#allocation5], %s557_s18 }
  0x1d   : > { %s12397_s19 = sshll.u32 %s560_s28, 5  ;;  %701 = vmatpush1.bf16.msra.mxu0 %v15153_v3  ;;  %1018 = vst.msk [vmem:[#allocation3 + $0x20] sm:$0xff] %vm1003_vm3, %v14996_v37  ;;  %1019 = vst.msk [vmem:[#allocation3 + $0x28] sm:$0xff] %vm1003_vm3, %v14996_v37 }
  0x1e   : > { %s15159_s23 = scalar_lea.vmem %s17418_s26, %s12397_s19  ;;  %s15171_s28 = scalar_lea.vmem %s17419_s1, %s12397_s19  ;;  %702 = vmatprep.subr.bf16.mxu0 %v14993_v1  ;;  %1020 = vst.msk [vmem:[#allocation3 + $0x30] sm:$0xff] %vm1003_vm3, %v14996_v37  ;;  %1021 = vst.msk [vmem:[#allocation3 + $0x38] sm:$0xff] %vm1003_vm3, %v14996_v37 }
  0x1f   : > { %v14708_v5 = vld [vmem:[%s15159_s23 + $0x4] ss:$8 sps:$4 sm:$0xff]   ;;  %s15184_s26 = scalar_lea.vmem %s17391_s2, %s12397_s19  ;;  %s15216_s30 = scalar_lea.vmem %s17392_s3, %s12397_s19  ;;  %v14706_v13 = vld [vmem:[%s15159_s23] ss:$8 sps:$4 sm:$0xff]   ;;  %vm14035_vm6 = vmpackc.low %vm1052_vm4, %vm14997_vm5  ;;  %1013 = vst.msk [vmem:[#allocation2 + $0x40] sm:$0x1] %vm1012_vm8, %v14996_v37 }
  0x20   : > { %11440 = vmatprep.mubr.msk.bf16.mxu0 %vm685_vm0, %v14708_v5  ;;  %v14709_v14 = vld [vmem:[%s15159_s23 + $0x14] ss:$8 sps:$4 sm:$0x1f]   ;;  %v14711_v15 = vld [vmem:[%s15159_s23 + $0x10] ss:$8 sps:$4 sm:$0x1f]  }
  0x21   : > { %703 = vmatpush1.bf16.msra.mxu0 %v15165_v4  ;;  %v14714_v16 = vld [vmem:[%s15171_s28 + $0x4] ss:$8 sps:$4 sm:$0xff]   ;;  %v14712_v17 = vld [vmem:[%s15171_s28] ss:$8 sps:$4 sm:$0xff]   ;;  %1022 = vst.msk [vmem:[#allocation3 + $0x40] sm:$0x1] %vm1012_vm8, %v14996_v37 }
  0x22   : > { %704 = vmatprep.subr.bf16.mxu0 %v14993_v1  ;;  %v14715_v18 = vld [vmem:[%s15171_s28 + $0x14] ss:$8 sps:$4 sm:$0x1f]   ;;  %v14717_v19 = vld [vmem:[%s15171_s28 + $0x10] ss:$8 sps:$4 sm:$0x1f]  }
  0x23   : > { %v14720_v20 = vld [vmem:[%s15184_s26 + $0x4] ss:$8 sps:$4 sm:$0xff]   ;;  %v14718_v21 = vld [vmem:[%s15184_s26] ss:$8 sps:$4 sm:$0xff]   ;;  %s558_s23 = scalar_lea.vmem [#allocation4], %s557_s18  ;;  %s14998_s1 = smov [#allocation4]  }
  0x24   : > { %v14721_v22 = vld [vmem:[%s15184_s26 + $0x14] ss:$8 sps:$4 sm:$0x1f]   ;;  %v14723_v23 = vld [vmem:[%s15184_s26 + $0x10] ss:$8 sps:$4 sm:$0x1f]  }
  0x25   : > { %705 = vmatpush1.bf16.msra.mxu0 %v15179_v6  ;;  %v14726_v24 = vld [vmem:[%s15216_s30 + $0x4] ss:$8 sps:$4 sm:$0xff]   ;;  %v14724_v25 = vld [vmem:[%s15216_s30] ss:$8 sps:$4 sm:$0xff]   ;;  %s11323_s19 = sshll.u32 %s558_s23, 4  ;;  %s17349_s19 = int_to_ptr.vmem [resolvable:$true] %s11323_s19 }
  0x26   : > { %706 = vmatprep.subr.bf16.mxu0 %v14993_v1  ;;  %v14727_v26 = vld [vmem:[%s15216_s30 + $0x14] ss:$8 sps:$4 sm:$0x1f]   ;;  %v14729_v27 = vld [vmem:[%s15216_s30 + $0x10] ss:$8 sps:$4 sm:$0x1f]  }
  0x27   : > { %s14929_s29 = scalar_lea.vmem %s17349_s19, 16  ;;  %s14933_s30 = sshll.u32 %s14998_s1, 4  ;;  %s14934_s30 = int_to_ptr.vmem [resolvable:$false] %s14933_s30 }
  0x28   : > { %p14930_p11 = scmp.ne.s32.totalorder %s17349_s19, %s14929_s29  ;;  %s14935_s20 = scalar_lea.vmem %s14934_s30, 32 }
  0x29   : > { %707 = vmatpush1.bf16.msra.mxu0 %v15191_v7  ;;  %p14936_p0 = scmp.lt.s32.totalorder %s17349_s19, %s14934_s30  ;;  %p14937_p1 = scmp.lt.s32.totalorder %s14935_s20, %s14929_s29 }
  0x2a   : > { %708 = vmatprep.subr.bf16.mxu0 %v14993_v1  ;;  %p14931_p12 = pnand %p14930_p11, %p15122_p5 }
  0x2b   : > { %p14938_p2 = por %p14937_p1, %p14936_p0 }
  0x2c   : > { %p14932_p13 = pneg %p14931_p12 }
  0x2d   : > { %709 = vmatpush1.bf16.msra.mxu0 %v15197_v8 }
  0x2e   : > { %710 = vmatprep.subr.bf16.mxu0 %v14993_v1  ;;  %p14939_p3 = pnand %p14938_p2, %p14932_p13 }
  0x31   : > { %711 = vmatpush1.bf16.msra.mxu0 %v15204_v9 }
  0x32   : > { %712 = vmatprep.subr.bf16.mxu0 %v14993_v1 }
  0x35   : > { %713 = vmatpush1.bf16.msra.mxu0 %v15211_v10 }
  0x36   : > { %714 = vmatprep.subr.bf16.mxu0 %v14993_v1 }
  0x39   : > { %715 = vmatpush1.bf16.msra.mxu0 %v15224_v12 }
  0x3a   : > { %773 = vmatprep.subr.bf16.mxu0 %v14993_v1 }
  0x3c   : > { %729 = vmatmul.mubr.bf16.vlgmr.msra.gmra.mrb[0].mxu0 %v14706_v13 }
  0x3d   : > { %774 = vmatpush1.bf16.msra.mxu0 %v15135_v0  ;;  %11441 = vmatprep.mubr.msk.bf16.mxu0 %vm685_vm0, %v14709_v14 }
  0x3e   : > { %775 = vmatprep.subr.bf16.mxu0 %v14993_v1 }
  0x41   : > { %776 = vmatpush1.bf16.msra.mxu0 %v15143_v2 }
  0x42   : > { %777 = vmatprep.subr.bf16.mxu0 %v14993_v1 }
  0x44   : > { %737 = vmatmul.mubr.bf16.gmra.mrb[4].mxu0 %v14711_v15 }
  0x45   : > { %778 = vmatpush1.bf16.msra.mxu0 %v15153_v3  ;;  %11446 = vmatprep.mubr.msk.bf16.mxu0 %vm685_vm0, %v14714_v16 }
  0x46   : > { %779 = vmatprep.subr.bf16.mxu0 %v14993_v1 }
  0x49   : > { %780 = vmatpush1.bf16.msra.mxu0 %v15165_v4 }
  0x4a   : > { %781 = vmatprep.subr.bf16.mxu0 %v14993_v1 }
  0x4d   : > { %782 = vmatpush1.bf16.msra.mxu0 %v15179_v6 }
  0x4e   : > { %783 = vmatprep.subr.bf16.mxu0 %v14993_v1 }
  0x51   : > { %784 = vmatpush1.bf16.msra.mxu0 %v15191_v7 }
  0x52   : > { %785 = vmatprep.subr.bf16.mxu0 %v14993_v1 }
  0x55   : > { %786 = vmatpush1.bf16.msra.mxu0 %v15197_v8 }
  0x56   : > { %787 = vmatprep.subr.bf16.mxu0 %v14993_v1 }
  0x59   : > { %788 = vmatpush1.bf16.msra.mxu0 %v15204_v9 }
  0x5a   : > { %789 = vmatprep.subr.bf16.mxu0 %v14993_v1 }
  0x5d   : > { %790 = vmatpush1.bf16.msra.mxu0 %v15211_v10 }
  0x5e   : > { %791 = vmatprep.subr.bf16.mxu0 %v14993_v1 }
  0x61   : > { %792 = vmatpush1.bf16.msra.mxu0 %v15224_v12 }
  0x62   : > { %854 = vmatprep.subr.bf16.mxu0 %v14993_v1 }
  0x64   : > { %806 = vmatmul.mubr.bf16.vlgmr.msra.gmra.mrb[8].mxu0 %v14712_v17 }
  0x65   : > { %855 = vmatpush1.bf16.msra.mxu0 %v15135_v0  ;;  %11447 = vmatprep.mubr.msk.bf16.mxu0 %vm685_vm0, %v14715_v18 }
  0x66   : > { %856 = vmatprep.subr.bf16.mxu0 %v14993_v1 }
  0x69   : > { %857 = vmatpush1.bf16.msra.mxu0 %v15143_v2 }
  0x6a   : > { %858 = vmatprep.subr.bf16.mxu0 %v14993_v1 }
  0x6c   : > { %814 = vmatmul.mubr.bf16.gmra.mrb[12].mxu0 %v14717_v19 }
  0x6d   : > { %859 = vmatpush1.bf16.msra.mxu0 %v15153_v3  ;;  %11452 = vmatprep.mubr.msk.bf16.mxu0 %vm685_vm0, %v14720_v20 }
  0x6e   : > { %860 = vmatprep.subr.bf16.mxu0 %v14993_v1 }
  0x71   : > { %861 = vmatpush1.bf16.msra.mxu0 %v15165_v4 }
  0x72   : > { %862 = vmatprep.subr.bf16.mxu0 %v14993_v1 }
  0x75   : > { %863 = vmatpush1.bf16.msra.mxu0 %v15179_v6 }
  0x76   : > { %864 = vmatprep.subr.bf16.mxu0 %v14993_v1 }
  0x79   : > { %865 = vmatpush1.bf16.msra.mxu0 %v15191_v7 }
  0x7a   : > { %866 = vmatprep.subr.bf16.mxu0 %v14993_v1 }
  0x7d   : > { %867 = vmatpush1.bf16.msra.mxu0 %v15197_v8 }
  0x7e   : > { %868 = vmatprep.subr.bf16.mxu0 %v14993_v1 }
  0x81   : > { %869 = vmatpush1.bf16.msra.mxu0 %v15204_v9 }
  0x82   : > { %870 = vmatprep.subr.bf16.mxu0 %v14993_v1 }
  0x85   : > { %871 = vmatpush1.bf16.msra.mxu0 %v15211_v10 }
  0x86   : > { %872 = vmatprep.subr.bf16.mxu0 %v14993_v1 }
  0x89   : > { %873 = vmatpush1.bf16.msra.mxu0 %v15224_v12 }
  0x8a   : > { %931 = vmatprep.subr.bf16.mxu0 %v14993_v1 }
  0x8c   : > { %887 = vmatmul.mubr.bf16.vlgmr.msra.gmra.mrb[16].mxu0 %v14718_v21  ;;  %v1023_v21 = vld [vmem:[%s17395_s6] sm:$0xff] }
  0x8d   : > { %932 = vmatpush1.bf16.msra.mxu0 %v15135_v0  ;;  %11453 = vmatprep.mubr.msk.bf16.mxu0 %vm685_vm0, %v14721_v22  ;;  %v1024_v22 = vld [vmem:[%s17395_s6 + $0x8] sm:$0xff] }
  0x8e   : > { %933 = vmatprep.subr.bf16.mxu0 %v14993_v1 }
  0x91   : > { %934 = vmatpush1.bf16.msra.mxu0 %v15143_v2 }
  0x92   : > { %935 = vmatprep.subr.bf16.mxu0 %v14993_v1 }
  0x94   : > { %895 = vmatmul.mubr.bf16.gmra.mrb[20].mxu0 %v14723_v23  ;;  %v1025_v23 = vld [vmem:[%s17395_s6 + $0x10] sm:$0xff] }
  0x95   : > { %936 = vmatpush1.bf16.msra.mxu0 %v15153_v3  ;;  %11458 = vmatprep.mubr.msk.bf16.mxu0 %vm685_vm0, %v14726_v24  ;;  %v1026_v24 = vld [vmem:[%s17395_s6 + $0x18] sm:$0xff] }
  0x96   : > { %937 = vmatprep.subr.bf16.mxu0 %v14993_v1 }
  0x99   : > { %938 = vmatpush1.bf16.msra.mxu0 %v15165_v4 }
  0x9a   : > { %939 = vmatprep.subr.bf16.mxu0 %v14993_v1 }
  0x9d   : > { %940 = vmatpush1.bf16.msra.mxu0 %v15179_v6 }
  0x9e   : > { %941 = vmatprep.subr.bf16.mxu0 %v14993_v1 }
  0xa1   : > { %942 = vmatpush1.bf16.msra.mxu0 %v15191_v7 }
  0xa2   : > { %943 = vmatprep.subr.bf16.mxu0 %v14993_v1 }
  0xa5   : > { %944 = vmatpush1.bf16.msra.mxu0 %v15197_v8 }
  0xa6   : > { %945 = vmatprep.subr.bf16.mxu0 %v14993_v1 }
  0xa9   : > { %946 = vmatpush1.bf16.msra.mxu0 %v15204_v9 }
  0xaa   : > { %947 = vmatprep.subr.bf16.mxu0 %v14993_v1 }
  0xad   : > { %948 = vmatpush1.bf16.msra.mxu0 %v15211_v10 }
  0xae   : > { %949 = vmatprep.subr.bf16.mxu0 %v14993_v1 }
  0xb1   : > { %950 = vmatpush1.bf16.msra.mxu0 %v15224_v12 }
  0xb2   : > { %14030 = vmatprep.subr.bf16.mxu0 %v14994_v32 }
  0xb4   : > { %964 = vmatmul.mubr.bf16.vlgmr.msra.gmra.mrb[24].mxu0 %v14724_v25  ;;  %v1027_v25 = vld [vmem:[%s17395_s6 + $0x20] sm:$0xff] }
  0xb5   : > { %11459 = vmatprep.mubr.msk.bf16.mxu0 %vm685_vm0, %v14727_v26  ;;  %v1028_v26 = vld [vmem:[%s17395_s6 + $0x28] sm:$0xff] }
  0xbc   : > { %972 = vmatmul.mubr.bf16.gmra.mrb[28].mxu0 %v14729_v27  ;;  %v1029_v27 = vld [vmem:[%s17395_s6 + $0x30] sm:$0x1] }
  0xbd   : > { %12933 = vmatprep.mubr.msk.f32.mxu0 %vm14995_vm2, %v14996_v37 }
 0x10f   : > { %v730_v28 = vpop.f32.mrb[0].mxu0 }
 0x110   : > { %v732_v29 = vpop.f32.mrb[1].mxu0 }
 0x111   : > { %v733_v30 = vpop.f32.mrb[2].mxu0  ;;  %v14731_v29 = vld [vmem:[%s17397_s8 + $0x18] sm:$0xff]  }
 0x112   : > { %v735_v31 = vpop.f32.mrb[3].mxu0 }
 0x117   : > { %v15311_v33 = vpop.f32.mrb[4].mxu0 }
 0x118   : > { %v740_v34 = vpop.f32.mrb[5].mxu0 }
 0x119   : > { %v15313_v35 = vpop.f32.mrb[6].mxu0 }
 0x11a   : > { %v743_v36 = vpop.f32.mrb[7].mxu0 }
 0x137   : > { %v807_v38 = vpop.f32.mrb[8].mxu0 }
 0x138   : > { %v822_v39 = vmax.f32 %v730_v28, %v807_v38  ;;  %v809_v40 = vpop.f32.mrb[9].mxu0  ;;  %v14730_v28 = vld [vmem:[%s17397_s8 + $0x10] sm:$0xff]  }
 0x139   : > { %v810_v41 = vpop.f32.mrb[10].mxu0  ;;  %14037 = vmatprep.subr.bf16.mxu1 %v14730_v28 }
 0x13a   : > { %v823_v42 = vmax.f32 %v733_v30, %v810_v41  ;;  %v812_v43 = vpop.f32.mrb[11].mxu0  ;;  %14039 = vmatpush3.bf16.msra.mxu1 %v14730_v28  ;;  %v14732_v30 = vld [vmem:[%s17397_s8] sm:$0xff]  }
 0x13b   : > { %14038 = vmatprep.subr.bf16.mxu1 %v14731_v29 }
 0x13e   : > { %14040 = vmatpush3.bf16.msra.mxu1 %v14731_v29 }
 0x13f   : > { %v815_v44 = vpop.f32.mrb[12].mxu0  ;;  %12966 = vmatprep.subr.bf16.mxu1 %v14732_v30 }
 0x140   : > { %v824_v45 = vmax.f32 %v15311_v33, %v815_v44  ;;  %v817_v46 = vpop.f32.mrb[13].mxu0 }
 0x141   : > { %v818_v47 = vpop.f32.mrb[14].mxu0 }
 0x142   : > { %v825_v48 = vmax.f32 %v15313_v35, %v818_v47  ;;  %v820_v49 = vpop.f32.mrb[15].mxu0  ;;  %v1170_v35 = vld [vmem:[#allocation2] sm:$0xff] }
 0x15f   : > { %v888_v50 = vpop.f32.mrb[16].mxu0 }
 0x160   : > { %v890_v51 = vpop.f32.mrb[17].mxu0 }
 0x161   : > { %v891_v52 = vpop.f32.mrb[18].mxu0 }
 0x162   : > { %v893_v53 = vpop.f32.mrb[19].mxu0 }
 0x167   : > { %v896_v54 = vpop.f32.mrb[20].mxu0 }
 0x168   : > { %v898_v55 = vpop.f32.mrb[21].mxu0 }
 0x169   : > { %v899_v56 = vpop.f32.mrb[22].mxu0 }
 0x16a   : > { %v901_v57 = vpop.f32.mrb[23].mxu0 }
 0x187   : > { %v965_v58 = vpop.f32.mrb[24].mxu0 }
 0x188   : > { %v980_v59 = vmax.f32 %v888_v50, %v965_v58  ;;  %v967_v60 = vpop.f32.mrb[25].mxu0 }
 0x189   : > { %v968_v62 = vpop.f32.mrb[26].mxu0 }
 0x18a   : > { %v984_v63 = vmax.f32 %v822_v39, %v980_v59  ;;  %v981_v0 = vmax.f32 %v891_v52, %v968_v62  ;;  %v970_v1 = vpop.f32.mrb[27].mxu0 }
 0x18c   : > { %v995_v2 = vadd.f32 %v11460_v61, %v984_v63  ;;  %v985_v3 = vmax.f32 %v823_v42, %v981_v0 }
 0x18e   : > { %v996_v4 = vadd.f32 %v11460_v61, %v985_v3  ;;  %v999_v6 = vmax.f32 %v995_v2, 0.0 }
 0x18f   : > { %v973_v5 = vpop.f32.mrb[28].mxu0 }
 0x190   : > { %v1000_v7 = vmax.f32 %v996_v4, 0.0  ;;  %v982_v8 = vmax.f32 %v896_v54, %v973_v5  ;;  %v975_v9 = vpop.f32.mrb[29].mxu0 }
 0x191   : > { %v976_v10 = vpop.f32.mrb[30].mxu0 }
 0x192   : > { %v14031_v11 = vpack.c.bf16 %v1000_v7, %v999_v6  ;;  %v986_v12 = vmax.f32 %v824_v45, %v982_v8  ;;  %v983_v13 = vmax.f32 %v899_v56, %v976_v10  ;;  %v978_v14 = vpop.f32.mrb[31].mxu0 }
 0x193   : > { %v14735_v14 = vld [vmem:[%s17397_s8 + $0x28] sm:$0xff]  }
 0x194   : > { %v997_v15 = vadd.f32 %v11460_v61, %v986_v12  ;;  %v987_v16 = vmax.f32 %v825_v48, %v983_v13  ;;  %14032 = vmatpush3.bf16.msra.mxu0 %v14031_v11  ;;  %v14733_v11 = vld [vmem:[%s17397_s8 + $0x8] sm:$0xff]   ;;  %v580_v12 = vld [vmem:[%s17396_s7] sm:$0xff] }
 0x195   : > { %14033 = vmatprep.subr.bf16.mxu0 %v14994_v32  ;;  %v14734_v13 = vld [vmem:[%s17397_s8 + $0x20] sm:$0xff]   ;;  %2207 = vperm.xlu0 %14694, %v580_v12   ;;  %v14744_v12 = vld [vmem:[%s17397_s8 + $0x70] sm:$0xff]  }
 0x196   : > { %v998_v17 = vadd.f32 %v11460_v61, %v987_v16  ;;  %v1001_v18 = vmax.f32 %v997_v15, 0.0  ;;  %v14736_v15 = vld [vmem:[%s17397_s8 + $0x30] sm:$0xff]  }
 0x198   : > { %v1002_v19 = vmax.f32 %v998_v17, 0.0 }
 0x19a   : > { %v14034_v20 = vpack.c.bf16 %v1002_v19, %v1001_v18 }
 0x19c   : > { %14036 = vmatpush3.bf16.msk.msra.mxu0 %vm14035_vm6, %v14034_v20 }
 0x19d   : > { %12954 = vmatprep.subr.bf16.mxu0 %v14730_v28 }
 0x19f   : > { %12934 = vmatmul.mubr.msk.f32.vlgmr.msra.gmra.mrb[32].mxu0 %vm1030_vm7, %v1023_v21  ;;  %v14737_v21 = vld [vmem:[%s17397_s8 + $0x38] sm:$0xff]  }
 0x1a0   : > { %12936 = vmatprep.mubr.msk.f32.mxu0 %vm14995_vm2, %v14996_v37  ;;  %12955 = vmatpush3.bf16.msra.mxu0 %v14730_v28  ;;  %v14738_v28 = vld [vmem:[%s17397_s8 + $0x40] sm:$0xff]  }
 0x1a1   : > { %12956 = vmatprep.subr.bf16.mxu0 %v14731_v29 }
 0x1a3   : > { %12937 = vmatmul.mubr.msk.f32.gmra.mrb[34].mxu0 %vm1030_vm7, %v1024_v22 }
 0x1a4   : > { %12939 = vmatprep.mubr.msk.f32.mxu0 %vm14995_vm2, %v14996_v37  ;;  %12957 = vmatpush3.bf16.msra.mxu0 %v14731_v29 }
 0x1a7   : > { %12940 = vmatmul.mubr.msk.f32.gmra.mrb[36].mxu0 %vm1030_vm7, %v1025_v23 }
 0x1a8   : > { %12942 = vmatprep.mubr.msk.f32.mxu0 %vm14995_vm2, %v14996_v37 }
 0x1ab   : > { %12943 = vmatmul.mubr.msk.f32.gmra.mrb[38].mxu0 %vm1030_vm7, %v1026_v24 }
 0x1ac   : > { %12945 = vmatprep.mubr.msk.f32.mxu0 %vm14995_vm2, %v14996_v37 }
 0x1af   : > { %12946 = vmatmul.mubr.msk.f32.gmra.mrb[40].mxu0 %vm1030_vm7, %v1027_v25 }
 0x1b0   : > { %12948 = vmatprep.mubr.msk.f32.mxu0 %vm14995_vm2, %v14996_v37 }
 0x1b3   : > { %12949 = vmatmul.mubr.msk.f32.gmra.mrb[42].mxu0 %vm1030_vm7, %v1028_v26 }
 0x1b4   : > { %12951 = vmatprep.mubr.msk.f32.mxu0 %vm14995_vm2, %v14996_v37 }
 0x1b7   : > { %12952 = vmatmul.mubr.msk.f32.gmra.mrb[44].mxu0 %vm1030_vm7, %v1029_v27 }
 0x272   : > { %v1122_v31 = vpop.f32.mrb[32].mxu0 }
 0x273   : > { %1156 = vst.msk [vmem:[#allocation2 + $0x8] sm:$0xff] %vm1003_vm3, %v1122_v31  ;;  %v12935_v32 = vpop.f32.mrb[33].mxu0 }
 0x276   : > { %v1127_v33 = vpop.f32.mrb[34].mxu0 }
 0x277   : > { %1157 = vst.msk [vmem:[#allocation2 + $0x10] sm:$0xff] %vm1003_vm3, %v1127_v33  ;;  %v12938_v34 = vpop.f32.mrb[35].mxu0 }
 0x27a   : > { %v1132_v36 = vpop.f32.mrb[36].mxu0  ;;  %v15410_v38 = vld [vmem:[#allocation2 + $0x8] sm:$0xff] }
 0x27b   : > { %1158 = vst.msk [vmem:[#allocation2 + $0x18] sm:$0xff] %vm1003_vm3, %v1132_v36  ;;  %v12941_v39 = vpop.f32.mrb[37].mxu0  ;;  %v15414_v40 = vpack.c.bf16 %v15410_v38, %v1170_v35 }
 0x27d   : > { %v1190_v43 = vshll.u32 %v15414_v40, 16  ;;  %v1188_v50 = vshrl.u32 %v15414_v40, 16  ;;  %v1399_v17 = vrot.slane %v15414_v40, 1 }
 0x27e   : > { %v1137_v41 = vpop.f32.mrb[38].mxu0  ;;  %v15418_v45 = vld [vmem:[#allocation2 + $0x10] sm:$0xff] }
 0x27f   : > { %1159 = vst.msk [vmem:[#allocation2 + $0x20] sm:$0xff] %vm1003_vm3, %v1137_v41  ;;  %v12944_v42 = vpop.f32.mrb[39].mxu0  ;;  %v1192_v49 = vrot.slane %v1190_v43, 1  ;;  %v1507_v26 = vrot.slane %v1188_v50, 3  ;;  %v1508_v27 = vrot.slane %v1190_v43, 4  ;;  %v14740_v43 = vld [vmem:[%s17397_s8 + $0x50] sm:$0xff]  }
 0x281   : > { %v1193_v54 = vor.u32 %v1192_v49, %v1188_v50  ;;  %v14741_v50 = vld [vmem:[%s17397_s8 + $0x58] sm:$0xff]  }
 0x282   : > { %v1142_v44 = vpop.f32.mrb[40].mxu0  ;;  %v15420_v46 = vld [vmem:[#allocation2 + $0x18] sm:$0xff] }
 0x283   : > { %1160 = vst.msk [vmem:[#allocation2 + $0x28] sm:$0xff] %vm1003_vm3, %v1142_v44  ;;  %v12947_v47 = vpop.f32.mrb[41].mxu0  ;;  %v15425_v48 = vpack.c.bf16 %v15420_v46, %v15418_v45  ;;  %v15513_v44 = vpack.c.bf16 %v15418_v45, %v15410_v38 }
 0x285   : > { %v1195_v51 = vshll.u32 %v15425_v48, 16  ;;  %v1199_v62 = vshrl.u32 %v15425_v48, 16  ;;  %v1400_v16 = vrot.slane %v15425_v48, 1  ;;  %v1728_v49 = vshll.u32 %v15513_v44, 16 }
 0x286   : > { %v1147_v52 = vpop.f32.mrb[42].mxu0  ;;  %v15436_v58 = vld [vmem:[#allocation2 + $0x20] sm:$0xff] }
 0x287   : > { %1161 = vst.msk [vmem:[#allocation2 + $0x30] sm:$0xff] %vm1003_vm3, %v1147_v52  ;;  %v12950_v53 = vpop.f32.mrb[43].mxu0  ;;  %v1197_v55 = vrot.slane %v1195_v51, 1  ;;  %v1401_v18 = vsel %vm1398_vm10, %v1399_v17, %v1400_v16  ;;  %v1510_v24 = vrot.slane %v1199_v62, 3  ;;  %v1511_v25 = vrot.slane %v1195_v51, 4 }
 0x288   : > { %v15520_v47 = vpack.c.bf16 %v15436_v58, %v15420_v46 }
 0x289   : > { %v1198_v56 = vsel %vm1186_vm9, %v1193_v54, %v1197_v55  ;;  %v1201_v1 = vor.u32 %v1199_v62, %v1197_v55  ;;  %v1512_v29 = vor.u32 %v1511_v25, %v1510_v24  ;;  %v1730_v54 = vrot.slane %v1728_v49, 1  ;;  %v14742_v55 = vld [vmem:[%s17397_s8 + $0x60] sm:$0xff]   ;;  %v14745_v24 = vld [vmem:[%s17397_s8 + $0x78] sm:$0xff]  }
 0x28a   : > { %v1152_v57 = vpop.f32.mrb[44].mxu0  ;;  %12958 = vmatprep.mubr.msk.bf16.mxu0 %vm1003_vm3, %v1198_v56  ;;  %v15438_v59 = vld [vmem:[#allocation2 + $0x28] sm:$0xff]  ;;  %v1732_v52 = vshll.u32 %v15520_v47, 16 }
 0x28b   : > { %1162 = vst.msk [vmem:[#allocation2 + $0x38] sm:$0x1] %vm1012_vm8, %v1152_v57  ;;  %v15443_v60 = vpack.c.bf16 %v15438_v59, %v15436_v58  ;;  %v12953_v61 = vpop.f32.mrb[45].mxu0  ;;  %v1726_v57 = vshrl.u32 %v15513_v44, 16 }
 0x28c   : > { %v1734_v61 = vrot.slane %v1732_v52, 1 }
 0x28d   : > { %v1203_v63 = vshll.u32 %v15443_v60, 16  ;;  %v1207_v5 = vshrl.u32 %v15443_v60, 16  ;;  %v1402_v19 = vrot.slane %v15443_v60, 1  ;;  %v1731_v62 = vor.u32 %v1730_v54, %v1726_v57 }
 0x28e   : > { %v15447_v0 = vld [vmem:[#allocation2 + $0x30] sm:$0xff] }
 0x28f   : > { %v1205_v2 = vrot.slane %v1203_v63, 1  ;;  %v1176_v3 = vpack.c.bf16 %v15447_v0, %v15447_v0  ;;  %v1403_v22 = vsel %vm1398_vm10, %v1400_v16, %v1402_v19  ;;  %v1514_v31 = vrot.slane %v1207_v5, 3  ;;  %v581_v16 = vld [vmem:[%s17396_s7 + $0x8] sm:$0xff] }
 0x290   : > { %v1515_v32 = vrot.slane %v1203_v63, 4  ;;  %v15528_v51 = vpack.c.bf16 %v15447_v0, %v15438_v59  ;;  %2212 = vperm.xlu0 %14694, %v581_v16  }
 0x291   : > { %v1206_v4 = vsel %vm1186_vm9, %v1201_v1, %v1205_v2  ;;  %v1211_v6 = vshll.u32 %v1176_v3, 16  ;;  %v1209_v7 = vor.u32 %v1207_v5, %v1205_v2  ;;  %v1215_v10 = vshrl.u32 %v1176_v3, 16 }
 0x292   : > { %12959 = vmatmul.mubr.msk.bf16.vlgmr.msra.gmra.mrb[48].mxu0 %vm1003_vm3, %v1206_v4  ;;  %v1404_v20 = vrot.slane %v1176_v3, 1  ;;  %v1516_v36 = vor.u32 %v1515_v32, %v1514_v31  ;;  %v15535_v53 = vld [vmem:[#allocation2 + $0x38] sm:$0xff]  ;;  %v1739_v63 = vshll.u32 %v15528_v51, 16  ;;  %v1735_v1 = vsel %vm1186_vm9, %v1731_v62, %v1734_v61  ;;  %v14746_v32 = vld [vmem:[%s17397_s8 + $0x80] sm:$0xff]  }
 0x293   : > { %v1213_v8 = vrot.slane %v1211_v6, 1  ;;  %v1519_v33 = vrot.slane %v1211_v6, 4  ;;  %v1518_v34 = vrot.slane %v1215_v10, 3  ;;  %v15544_v56 = vpack.c.bf16 %v15535_v53, %v15535_v53 }
 0x294   : > { %v1405_v23 = vsel %vm1398_vm10, %v1402_v19, %v1404_v20  ;;  %v1517_v41 = vsel %vm1506_vm11, %v1512_v29, %v1516_v36  ;;  %v1736_v4 = vshrl.u32 %v15520_v47, 16  ;;  %v1743_v5 = vshrl.u32 %v15528_v51, 16  ;;  %v584_v19 = vld [vmem:[%s17396_s7 + $0x20] sm:$0xff] }
 0x295   : > { %v1214_v9 = vsel %vm1186_vm9, %v1209_v7, %v1213_v8  ;;  %v1520_v39 = vor.u32 %v1519_v33, %v1518_v34  ;;  %v1746_v2 = vshll.u32 %v15544_v56, 16  ;;  %2227 = vperm.xlu0 %14694, %v584_v19   ;;  %v1965_v31 = vrot.slane %v1728_v49, 4 }
 0x296   : > { %12962 = vmatprep.mubr.msk.bf16.mxu1 %vm1003_vm3, %v1214_v9  ;;  %v1738_v7 = vor.u32 %v1736_v4, %v1734_v61  ;;  %v14743_v9 = vld [vmem:[%s17397_s8 + $0x68] sm:$0xff]   ;;  %v15634_v61 = vpop.permute.xlu0 %2207 }
 0x297   : > { %12963 = vmatmul.mubr.msk.bf16.vlgmr.msra.gmra.mrb[0].mxu1 %vm1003_vm3, %v1215_v10  ;;  %v1521_v42 = vsel %vm1506_vm11, %v1516_v36, %v1520_v39  ;;  %v1748_v6 = vrot.slane %v1746_v2, 1  ;;  %v1972_v36 = vrot.slane %v1739_v63, 4 }
 0x298   : > { %12967 = vmatpush3.bf16.msra.mxu1 %v14732_v30  ;;  %12970 = vmatprep.mubr.msk.bf16.mxu1 %vm1003_vm3, %v15414_v40  ;;  %v1509_v30 = vor.u32 %v1508_v27, %v1507_v26  ;;  %v14739_v40 = vld [vmem:[%s17397_s8 + $0x48] sm:$0xff]  }
 0x299   : > { %12968 = vmatprep.subr.bf16.mxu1 %v14733_v11  ;;  %v585_v26 = vld [vmem:[%s17396_s7 + $0x28] sm:$0xff] }
 0x29a   : > { %v1513_v35 = vsel %vm1506_vm11, %v1509_v30, %v1512_v29  ;;  %v1968_v29 = vrot.slane %v1732_v52, 4  ;;  %v1964_v30 = vrot.slane %v1726_v57, 3 }
 0x29c   : > { %12969 = vmatpush3.bf16.msra.mxu1 %v14733_v11 }
 0x29d   : > { %12978 = vmatprep.subr.bf16.mxu1 %v14734_v13 }
 0x29f   : > { %12971 = vmatmul.mubr.msk.bf16.vlgmr.msra.gmra.mrb[4].mxu1 %vm1003_vm3, %v15425_v48 }
 0x2a0   : > { %12974 = vmatprep.mubr.msk.bf16.mxu1 %vm1003_vm3, %v15443_v60  ;;  %12979 = vmatpush3.bf16.msra.mxu1 %v14734_v13  ;;  %v1858_v13 = vrot.slane %v15520_v47, 3 }
 0x2a1   : > { %12980 = vmatprep.subr.bf16.mxu1 %v14735_v14 }
 0x2a4   : > { %12981 = vmatpush3.bf16.msra.mxu1 %v14735_v14  ;;  %v1750_v14 = vshrl.u32 %v15544_v56, 16 }
 0x2a5   : > { %12990 = vmatprep.subr.bf16.mxu1 %v14736_v15 }
 0x2a6   : > { %v1975_v39 = vrot.slane %v1750_v14, 3 }
 0x2a7   : > { %12975 = vmatmul.mubr.msk.bf16.gmra.mrb[0].mxu1 %vm1003_vm3, %v1176_v3  ;;  %v1741_v3 = vrot.slane %v1739_v63, 1  ;;  %v11555_v63 = vld [vmem:[%s17398_s9] ss:$0 sm:$0xff] }
 0x2a8   : > { %12982 = vmatprep.mubr.msk.bf16.mxu1 %vm1003_vm3, %v1401_v18  ;;  %v582_v18 = vld [vmem:[%s17396_s7 + $0x10] sm:$0xff] }
 0x2a9   : > { %v1745_v8 = vor.u32 %v1743_v5, %v1741_v3  ;;  %v1742_v10 = vsel %vm1186_vm9, %v1738_v7, %v1741_v3  ;;  %2217 = vperm.xlu1 %14695, %v582_v18   ;;  %v11556_v3 = vld [vmem:[%s17399_s10] ss:$0 sm:$0xff] }
 0x2ab   : > { %v1749_v11 = vsel %vm1186_vm9, %v1745_v8, %v1748_v6 }
 0x2af   : > { %12983 = vmatmul.mubr.msk.bf16.vlgmr.msra.gmra.mrb[4].mxu1 %vm1003_vm3, %v1403_v22  ;;  %v1862_v22 = vrot.slane %v15544_v56, 3 }
 0x2b0   : > { %12986 = vmatprep.mubr.msk.bf16.mxu1 %vm1003_vm3, %v1405_v23  ;;  %12991 = vmatpush3.bf16.msra.mxu1 %v14736_v15  ;;  %v1857_v15 = vrot.slane %v15513_v44, 3  ;;  %v586_v23 = vld [vmem:[%s17396_s7 + $0x30] sm:$0x1] }
 0x2b1   : > { %12992 = vmatprep.subr.bf16.mxu1 %v14737_v21  ;;  %2237 = vperm.xlu0 %14694, %v586_v23  }
 0x2b2   : > { %v1859_v17 = vsel %vm1856_vm12, %v1857_v15, %v1858_v13 }
 0x2b4   : > { %12993 = vmatpush3.bf16.msra.mxu1 %v14737_v21  ;;  %v583_v21 = vld [vmem:[%s17396_s7 + $0x18] sm:$0xff] }
 0x2b5   : > { %13002 = vmatprep.subr.bf16.mxu1 %v14738_v28  ;;  %2222 = vperm.xlu1 %14695, %v583_v21  }
 0x2b7   : > { %12987 = vmatmul.mubr.msk.bf16.gmra.mrb[0].mxu1 %vm1003_vm3, %v1404_v20  ;;  %v1860_v20 = vrot.slane %v15528_v51, 3 }
 0x2b8   : > { %12994 = vmatprep.mubr.msk.bf16.mxu1 %vm1003_vm3, %v1513_v35  ;;  %v1971_v35 = vrot.slane %v1743_v5, 3 }
 0x2b9   : > { %v1861_v25 = vsel %vm1856_vm12, %v1858_v13, %v1860_v20  ;;  %v1863_v27 = vsel %vm1856_vm12, %v1860_v20, %v1862_v22  ;;  %2232 = vperm.xlu1 %14695, %v585_v26  }
 0x2bf   : > { %12995 = vmatmul.mubr.msk.bf16.vlgmr.msra.gmra.mrb[4].mxu1 %vm1003_vm3, %v1517_v41  ;;  %v1976_v41 = vrot.slane %v1746_v2, 4 }
 0x2c0   : > { %12998 = vmatprep.mubr.msk.bf16.mxu1 %vm1003_vm3, %v1521_v42  ;;  %13003 = vmatpush3.bf16.msra.mxu1 %v14738_v28  ;;  %v1967_v28 = vrot.slane %v1736_v4, 3  ;;  %v1973_v42 = vor.u32 %v1972_v36, %v1971_v35 }
 0x2c1   : > { %13004 = vmatprep.subr.bf16.mxu1 %v14739_v40 }
 0x2c2   : > { %v1969_v33 = vor.u32 %v1968_v29, %v1967_v28 }
 0x2c4   : > { %13005 = vmatpush3.bf16.msra.mxu1 %v14739_v40 }
 0x2c5   : > { %13014 = vmatprep.subr.bf16.mxu1 %v14740_v43 }
 0x2c7   : > { %12999 = vmatmul.mubr.msk.bf16.gmra.mrb[0].mxu1 %vm1003_vm3, %v1518_v34  ;;  %v1966_v34 = vor.u32 %v1965_v31, %v1964_v30 }
 0x2c8   : > { %13006 = vmatprep.mubr.msk.bf16.mxu1 %vm1003_vm3, %v15513_v44  ;;  %v14747_v44 = vld [vmem:[%s17397_s8 + $0x88] sm:$0xff]  }
 0x2c9   : > { %v1970_v40 = vsel %vm1506_vm11, %v1966_v34, %v1969_v33 }
 0x2cf   : > { %13007 = vmatmul.mubr.msk.bf16.vlgmr.msra.gmra.mrb[4].mxu1 %vm1003_vm3, %v15520_v47  ;;  %v1974_v47 = vsel %vm1506_vm11, %v1969_v33, %v1973_v42 }
 0x2d0   : > { %13010 = vmatprep.mubr.msk.bf16.mxu1 %vm1003_vm3, %v15528_v51  ;;  %13015 = vmatpush3.bf16.msra.mxu1 %v14740_v43  ;;  %v1977_v43 = vor.u32 %v1976_v41, %v1975_v39  ;;  %v1172_v51 = vld [vmem:[#allocation2 + $0x40] sm:$0x1] }
 0x2d1   : > { %13016 = vmatprep.subr.bf16.mxu1 %v14741_v50  ;;  %v2075_v52 = vpack.c.bf16 %v1172_v51, %v1172_v51  ;;  %v2254_v51 = vld [vmem:[#allocation3] sm:$0xff] }
 0x2d2   : > { %v1978_v49 = vsel %vm1506_vm11, %v1973_v42, %v1977_v43 }
 0x2d4   : > { %13017 = vmatpush3.bf16.msra.mxu1 %v14741_v50  ;;  %v2074_v50 = vpack.c.bf16 %v15535_v53, %v15447_v0  ;;  %v14749_v53 = vld [vmem:[%s17397_s8 + $0xa8] sm:$0xff]  }
 0x2d5   : > { %13026 = vmatprep.subr.bf16.mxu1 %v14742_v55 }
 0x2d7   : > { %13011 = vmatmul.mubr.msk.bf16.gmra.mrb[0].mxu1 %vm1003_vm3, %v15544_v56 }
 0x2d8   : > { %13018 = vmatprep.mubr.msk.bf16.mxu1 %vm1003_vm3, %v1735_v1 }
 0x2df   : > { %13019 = vmatmul.mubr.msk.bf16.vlgmr.msra.gmra.mrb[4].mxu1 %vm1003_vm3, %v1742_v10 }
 0x2e0   : > { %13022 = vmatprep.mubr.msk.bf16.mxu1 %vm1003_vm3, %v1749_v11  ;;  %13027 = vmatpush3.bf16.msra.mxu1 %v14742_v55 }
 0x2e1   : > { %13028 = vmatprep.subr.bf16.mxu1 %v14743_v9 }
 0x2e4   : > { %13029 = vmatpush3.bf16.msra.mxu1 %v14743_v9 }
 0x2e5   : > { %13038 = vmatprep.subr.bf16.mxu1 %v14744_v12 }
 0x2e7   : > { %13023 = vmatmul.mubr.msk.bf16.gmra.mrb[0].mxu1 %vm1003_vm3, %v1750_v14 }
 0x2e8   : > { %13030 = vmatprep.mubr.msk.bf16.mxu1 %vm1003_vm3, %v1859_v17 }
 0x2ef   : > { %13031 = vmatmul.mubr.msk.bf16.vlgmr.msra.gmra.mrb[4].mxu1 %vm1003_vm3, %v1861_v25 }
 0x2f0   : > { %13034 = vmatprep.mubr.msk.bf16.mxu1 %vm1003_vm3, %v1863_v27  ;;  %13039 = vmatpush3.bf16.msra.mxu1 %v14744_v12 }
 0x2f1   : > { %13040 = vmatprep.subr.bf16.mxu1 %v14745_v24 }
 0x2f4   : > { %13041 = vmatpush3.bf16.msra.mxu1 %v14745_v24 }
 0x2f5   : > { %13050 = vmatprep.subr.bf16.mxu1 %v14746_v32 }
 0x2f7   : > { %13035 = vmatmul.mubr.msk.bf16.gmra.mrb[0].mxu1 %vm1003_vm3, %v1862_v22 }
 0x2f8   : > { %13042 = vmatprep.mubr.msk.bf16.mxu1 %vm1003_vm3, %v1970_v40 }
 0x2ff   : > { %13043 = vmatmul.mubr.msk.bf16.vlgmr.msra.gmra.mrb[4].mxu1 %vm1003_vm3, %v1974_v47 }
 0x300   : > { %13046 = vmatprep.mubr.msk.bf16.mxu1 %vm1003_vm3, %v1978_v49  ;;  %13051 = vmatpush3.bf16.msra.mxu1 %v14746_v32 }
 0x301   : > { %13052 = vmatprep.subr.bf16.mxu1 %v14747_v44 }
 0x304   : > { %13053 = vmatpush3.bf16.msra.mxu1 %v14747_v44 }
 0x307   : > { %13047 = vmatmul.mubr.msk.bf16.gmra.mrb[0].mxu1 %vm1003_vm3, %v1975_v39 }
 0x308   : > { %13054 = vmatprep.mubr.msk.bf16.mxu1 %vm1003_vm3, %v15425_v48  ;;  %v14748_v48 = vld [vmem:[%s17397_s8 + $0xa0] sm:$0xff]  }
 0x309   : > { %13062 = vmatprep.subr.bf16.mxu0 %v14748_v48 }
 0x30a   : > { %13063 = vmatpush3.bf16.msra.mxu0 %v14748_v48 }
 0x30b   : > { %13064 = vmatprep.subr.bf16.mxu0 %v14749_v53 }
 0x30e   : > { %13065 = vmatpush3.bf16.msra.mxu0 %v14749_v53 }
 0x30f   : > { %13055 = vmatmul.mubr.msk.bf16.vlgmr.msra.gmra.mrb[4].mxu1 %vm1003_vm3, %v15443_v60  ;;  %v15631_v60 = vld [vmem:[%s17397_s8 + $0x90] sm:$0xff]   ;;  %v15642_v6 = vpop.permute.xlu0 %2212 }
 0x310   : > { %13058 = vmatprep.mubr.msk.bf16.mxu1 %vm1003_vm3, %v2074_v50  ;;  %13074 = vmatprep.subr.bf16.mxu0 %v15631_v60 }
 0x314   : > { %v15646_v21 = vpop.permute.xlu0 %2227 }
 0x317   : > { %13059 = vmatmul.mubr.msk.bf16.gmra.mrb[0].mxu1 %vm1003_vm3, %v2075_v52 }
 0x328   : > { %v15644_v12 = vpop.permute.xlu1 %2217 }
 0x330   : > { %v15658_v43 = vpop.permute.xlu0 %2237 }
 0x334   : > { %v15650_v30 = vpop.permute.xlu1 %2222 }
 0x338   : > { %v15663_v50 = vpop.permute.xlu1 %2232 }
 0x365   : > { %v12960_v54 = vpop.f32.mrb[48].mxu0 }
 0x366   : > { %v1275_v55 = vpop.f32.mrb[49].mxu0 }
 0x367   : > { %v12961_v56 = vpop.f32.mrb[50].mxu0 }
 0x368   : > { %v1278_v57 = vpop.f32.mrb[51].mxu0 }
 0x3e2   : > { %v13056_v62 = vpop.f32.mrb[4].mxu1 }
 0x3e3   : > { %v14041_v1 = vadd.f32 %v13056_v62, %v12960_v54  ;;  %v2133_v2 = vpop.f32.mrb[5].mxu1 }
 0x3e4   : > { %v14042_v4 = vadd.f32 %v2133_v2, %v1275_v55  ;;  %v13057_v5 = vpop.f32.mrb[6].mxu1 }
 0x3e5   : > { %v2179_v7 = vmul.f32 %v14041_v1, %v11555_v63  ;;  %v14043_v8 = vadd.f32 %v13057_v5, %v12961_v56  ;;  %v2136_v9 = vpop.f32.mrb[7].mxu1 }
 0x3e6   : > { %v2177_v10 = vmul.f32 %v14042_v4, %v11555_v63  ;;  %v14044_v11 = vadd.f32 %v2136_v9, %v1278_v57 }
 0x3e7   : > { %v2193_v13 = vadd.f32 %v11556_v3, %v2179_v7  ;;  %v2180_v14 = vmul.f32 %v14043_v8, %v11555_v63 }
 0x3e8   : > { %v2191_v15 = vadd.f32 %v11556_v3, %v2177_v10  ;;  %v2178_v16 = vmul.f32 %v14044_v11, %v11555_v63 }
 0x3e9   : > { %v2200_v17 = vmax.f32 %v2193_v13, 0.0  ;;  %v2194_v18 = vadd.f32 %v11556_v3, %v2180_v14 }
 0x3ea   : > { %v2198_v19 = vmax.f32 %v2191_v15, 0.0  ;;  %v2192_v20 = vadd.f32 %v11556_v3, %v2178_v16  ;;  %v13060_v22 = vpop.f32.mrb[0].mxu1 }
 0x3eb   : > { %v2201_v23 = vmax.f32 %v2194_v18, 0.0  ;;  %v2242_v24 = vmul.f32 %v15644_v12, %v2200_v17  ;;  %v2183_v25 = vmul.f32 %v13060_v22, %v11555_v63  ;;  %v2149_v26 = vpop.f32.mrb[1].mxu1  ;;  %v14751_v18 = vld [vmem:[%s17397_s8 + $0x98] sm:$0xff]  }
 0x3ec   : > { %v2240_v27 = vmul.f32 %v15634_v61, %v2198_v19  ;;  %v2199_v28 = vmax.f32 %v2192_v20, 0.0  ;;  %v2181_v29 = vmul.f32 %v11555_v63, %v2149_v26  ;;  %v13061_v31 = vpop.f32.mrb[2].mxu1  ;;  %v14753_v26 = vld [vmem:[%s17397_s8 + $0xb8] sm:$0xff]  }
 0x3ed   : > { %2249 = vst.msk [vmem:[#allocation3 + $0x18] sm:$0xff] %vm1003_vm3, %v2242_v24  ;;  %v2197_v32 = vadd.f32 %v11556_v3, %v2183_v25  ;;  %v2243_v33 = vmul.f32 %v15650_v30, %v2201_v23  ;;  %v2152_v34 = vpop.f32.mrb[3].mxu1  ;;  %v14752_v24 = vld [vmem:[%s17397_s8 + $0xb0] sm:$0xff]  }
 0x3ee   : > { %2247 = vst.msk [vmem:[#allocation3 + $0x8] sm:$0xff] %vm1003_vm3, %v2240_v27  ;;  %v2241_v35 = vmul.f32 %v15642_v6, %v2199_v28  ;;  %v2195_v36 = vadd.f32 %v11556_v3, %v2181_v29  ;;  %v2182_v39 = vmul.f32 %v11555_v63, %v2152_v34 }
 0x3ef   : > { %v2204_v40 = vmax.f32 %v2197_v32, 0.0  ;;  %2250 = vst.msk [vmem:[#allocation3 + $0x20] sm:$0xff] %vm1003_vm3, %v2243_v33  ;;  %v14755_v33 = vld [vmem:[%s17397_s8 + $0xc8] sm:$0xff]  }
 0x3f0   : > { %2248 = vst.msk [vmem:[#allocation3 + $0x10] sm:$0xff] %vm1003_vm3, %v2241_v35  ;;  %v2202_v41 = vmax.f32 %v2195_v36, 0.0  ;;  %v2196_v42 = vadd.f32 %v11556_v3, %v2182_v39 }
 0x3f1   : > { %v2246_v44 = vmul.f32 %v15658_v43, %v2204_v40 }
 0x3f2   : > { %v2244_v47 = vmul.f32 %v15646_v21, %v2202_v41  ;;  %v2203_v49 = vmax.f32 %v2196_v42, 0.0  ;;  %v14756_v42 = vld [vmem:[%s17397_s8 + $0xd0] sm:$0xff]  }
 0x3f3   : > { %2253 = vst.msk [vmem:[#allocation3 + $0x38] sm:$0x1] %vm1012_vm8, %v2246_v44 }
 0x3f4   : > { %2251 = vst.msk [vmem:[#allocation3 + $0x28] sm:$0xff] %vm1003_vm3, %v2244_v47  ;;  %v2245_v52 = vmul.f32 %v15663_v50, %v2203_v49  ;;  %v15673_v57 = vld [vmem:[#allocation3 + $0x18] sm:$0xff] }
 0x3f5   : > { %v15667_v54 = vld [vmem:[#allocation3 + $0x8] sm:$0xff] }
 0x3f6   : > { %2252 = vst.msk [vmem:[#allocation3 + $0x30] sm:$0xff] %vm1003_vm3, %v2245_v52  ;;  %v2263_v55 = vpack.c.bf16 %v15667_v54, %v2254_v51  ;;  %v15680_v2 = vld [vmem:[#allocation3 + $0x20] sm:$0xff] }
 0x3f7   : > { %v15671_v56 = vld [vmem:[#allocation3 + $0x10] sm:$0xff] }
 0x3f8   : > { %v15677_v48 = vpack.c.bf16 %v15673_v57, %v15671_v56  ;;  %v2280_v53 = vshll.u32 %v2263_v55, 16  ;;  %v2278_v62 = vshrl.u32 %v2263_v55, 16  ;;  %v2488_v28 = vrot.slane %v2263_v55, 1 }
 0x3fa   : > { %v2282_v63 = vrot.slane %v2280_v53, 1  ;;  %v2285_v1 = vshll.u32 %v15677_v48, 16  ;;  %v2289_v10 = vshrl.u32 %v15677_v48, 16  ;;  %v2489_v27 = vrot.slane %v15677_v48, 1 }
 0x3fb   : > { %v15682_v3 = vld [vmem:[#allocation3 + $0x28] sm:$0xff]  ;;  %v2595_v40 = vrot.slane %v2278_v62, 3  ;;  %v2596_v41 = vrot.slane %v2280_v53, 4 }
 0x3fc   : > { %v2283_v4 = vor.u32 %v2282_v63, %v2278_v62  ;;  %v2287_v5 = vrot.slane %v2285_v1, 1  ;;  %v15686_v7 = vpack.c.bf16 %v15682_v3, %v15680_v2  ;;  %v2490_v29 = vsel %vm1398_vm10, %v2488_v28, %v2489_v27  ;;  %v14761_v28 = vld [vmem:[%s17397_s8 + $0xf8] sm:$0xff]  }
 0x3fd   : > { %v15688_v8 = vld [vmem:[#allocation3 + $0x30] sm:$0xff]  ;;  %v2598_v36 = vrot.slane %v2289_v10, 3  ;;  %v2599_v39 = vrot.slane %v2285_v1, 4  ;;  %v2597_v47 = vor.u32 %v2596_v41, %v2595_v40  ;;  %v14763_v41 = vld [vmem:[%s17397_s8 + $0x108] sm:$0xff]  }
 0x3fe   : > { %v2288_v9 = vsel %vm1186_vm9, %v2283_v4, %v2287_v5  ;;  %v2293_v11 = vshll.u32 %v15686_v7, 16  ;;  %v2266_v13 = vpack.c.bf16 %v15688_v8, %v15688_v8  ;;  %v2291_v14 = vor.u32 %v2289_v10, %v2287_v5  ;;  %v14757_v1 = vld [vmem:[%s17397_s8 + $0xd8] sm:$0xff]  }
 0x3ff   : > { %13066 = vmatprep.mubr.msk.bf16.mxu0 %vm1003_vm3, %v2288_v9  ;;  %v2297_v16 = vshrl.u32 %v15686_v7, 16  ;;  %v2491_v31 = vrot.slane %v15686_v7, 1  ;;  %v2600_v44 = vor.u32 %v2599_v39, %v2598_v36  ;;  %v14758_v9 = vld [vmem:[%s17397_s8 + $0xe0] sm:$0xff]   ;;  %v2705_v10 = vpack.c.bf16 %v15671_v56, %v15667_v54 }
 0x400   : > { %v2295_v15 = vrot.slane %v2293_v11, 1  ;;  %v2301_v17 = vshll.u32 %v2266_v13, 16  ;;  %v2305_v25 = vshrl.u32 %v2266_v13, 16  ;;  %v2493_v32 = vrot.slane %v2266_v13, 1 }
 0x401   : > { %v2492_v34 = vsel %vm1398_vm10, %v2489_v27, %v2491_v31  ;;  %v2603_v49 = vrot.slane %v2293_v11, 4  ;;  %v2602_v51 = vrot.slane %v2297_v16, 3  ;;  %v2816_v11 = vshll.u32 %v2705_v10, 16 }
 0x402   : > { %v2296_v19 = vsel %vm1186_vm9, %v2291_v14, %v2295_v15  ;;  %v2299_v20 = vor.u32 %v2297_v16, %v2295_v15  ;;  %v2303_v22 = vrot.slane %v2301_v17, 1  ;;  %v2494_v35 = vsel %vm1398_vm10, %v2491_v31, %v2493_v32  ;;  %v14759_v14 = vld [vmem:[%s17397_s8 + $0xe8] sm:$0xff]  }
 0x403   : > { %13067 = vmatmul.mubr.msk.bf16.vlgmr.msra.gmra.mrb[52].mxu0 %vm1003_vm3, %v2296_v19  ;;  %v2606_v52 = vrot.slane %v2305_v25, 3  ;;  %v2607_v63 = vrot.slane %v2301_v17, 4  ;;  %v2604_v53 = vor.u32 %v2603_v49, %v2602_v51  ;;  %v2707_v15 = vpack.c.bf16 %v15688_v8, %v15682_v3 }
 0x404   : > { %v2304_v23 = vsel %vm1186_vm9, %v2299_v20, %v2303_v22  ;;  %13075 = vmatpush3.bf16.msra.mxu0 %v15631_v60  ;;  %v14754_v60 = vld [vmem:[%s17397_s8 + $0xc0] sm:$0xff]   ;;  %v2818_v16 = vrot.slane %v2816_v11, 1  ;;  %v2814_v54 = vshrl.u32 %v2705_v10, 16  ;;  %v3052_v49 = vrot.slane %v2816_v11, 4 }
 0x405   : > { %13070 = vmatprep.mubr.msk.bf16.mxu0 %vm1003_vm3, %v2304_v23  ;;  %13076 = vmatprep.subr.bf16.mxu0 %v14751_v18  ;;  %v2608_v62 = vor.u32 %v2607_v63, %v2606_v52  ;;  %v2605_v4 = vsel %vm1506_vm11, %v2600_v44, %v2604_v53  ;;  %v2831_v23 = vshrl.u32 %v2707_v15, 16  ;;  %v2947_v39 = vrot.slane %v2707_v15, 3 }
 0x406   : > { %v2819_v17 = vor.u32 %v2818_v16, %v2814_v54 }
 0x407   : > { %v2609_v5 = vsel %vm1506_vm11, %v2604_v53, %v2608_v62  ;;  %v3058_v62 = vrot.slane %v2831_v23, 3 }
 0x408   : > { %13077 = vmatpush3.bf16.msra.mxu0 %v14751_v18  ;;  %v2827_v18 = vshll.u32 %v2707_v15, 16 }
 0x409   : > { %13086 = vmatprep.subr.bf16.mxu0 %v14752_v24 }
 0x40a   : > { %v2829_v22 = vrot.slane %v2827_v18, 1 }
 0x40b   : > { %13071 = vmatmul.mubr.msk.bf16.gmra.mrb[56].mxu0 %vm1003_vm3, %v2305_v25 }
 0x40c   : > { %13078 = vmatprep.mubr.msk.bf16.mxu0 %vm1003_vm3, %v2263_v55  ;;  %v2601_v55 = vsel %vm1506_vm11, %v2597_v47, %v2600_v44  ;;  %v3051_v44 = vrot.slane %v2814_v54, 3  ;;  %v2262_v54 = vld [vmem:[#allocation3 + $0x40] sm:$0x1] }
 0x40e   : > { %v3053_v63 = vor.u32 %v3052_v49, %v3051_v44 }
 0x413   : > { %13079 = vmatmul.mubr.msk.bf16.vlgmr.msra.gmra.mrb[52].mxu0 %vm1003_vm3, %v15677_v48 }
 0x414   : > { %13082 = vmatprep.mubr.msk.bf16.mxu0 %vm1003_vm3, %v15686_v7  ;;  %13087 = vmatpush3.bf16.msra.mxu0 %v14752_v24 }
 0x415   : > { %13088 = vmatprep.subr.bf16.mxu0 %v14753_v26 }
 0x418   : > { %13089 = vmatpush3.bf16.msra.mxu0 %v14753_v26  ;;  %v2833_v26 = vor.u32 %v2831_v23, %v2829_v22 }
 0x419   : > { %13098 = vmatprep.subr.bf16.mxu0 %v14754_v60 }
 0x41b   : > { %13083 = vmatmul.mubr.msk.bf16.gmra.mrb[56].mxu0 %vm1003_vm3, %v2266_v13  ;;  %v2706_v13 = vpack.c.bf16 %v15680_v2, %v15673_v57  ;;  %v14760_v57 = vld [vmem:[%s17397_s8 + $0xf0] sm:$0xff]   ;;  %v15764_v2 = vld [vmem:[#allocation3 + $0x38] sm:$0xff] }
 0x41c   : > { %13090 = vmatprep.mubr.msk.bf16.mxu0 %vm1003_vm3, %v2490_v29  ;;  %v2708_v3 = vpack.c.bf16 %v15764_v2, %v15764_v2  ;;  %v3161_v16 = vpack.c.bf16 %v15764_v2, %v15688_v8  ;;  %v11648_v8 = vld [vmem:[%s17398_s9 + $0x1] ss:$0 sm:$0xff] }
 0x41d   : > { %v2820_v56 = vshll.u32 %v2706_v13, 16  ;;  %v2824_v25 = vshrl.u32 %v2706_v13, 16 }
 0x41e   : > { %v2834_v24 = vshll.u32 %v2708_v3, 16  ;;  %v2949_v40 = vrot.slane %v2708_v3, 3 }
 0x41f   : > { %v2822_v19 = vrot.slane %v2820_v56, 1  ;;  %v3054_v51 = vrot.slane %v2824_v25, 3 }
 0x420   : > { %v2836_v27 = vrot.slane %v2834_v24, 1  ;;  %v2950_v47 = vsel %vm1856_vm12, %v2947_v39, %v2949_v40 }
 0x421   : > { %v2823_v20 = vsel %vm1186_vm9, %v2819_v17, %v2822_v19  ;;  %v11650_v17 = vld [vmem:[%s17399_s10 + $0x1] ss:$0 sm:$0xff] }
 0x422   : > { %v2837_v31 = vsel %vm1186_vm9, %v2833_v26, %v2836_v27 }
 0x423   : > { %13091 = vmatmul.mubr.msk.bf16.vlgmr.msra.gmra.mrb[52].mxu0 %vm1003_vm3, %v2492_v34  ;;  %v2945_v34 = vrot.slane %v2706_v13, 3 }
 0x424   : > { %13094 = vmatprep.mubr.msk.bf16.mxu0 %vm1003_vm3, %v2494_v35  ;;  %13099 = vmatpush3.bf16.msra.mxu0 %v14754_v60  ;;  %v2826_v60 = vor.u32 %v2824_v25, %v2822_v19  ;;  %v2838_v35 = vshrl.u32 %v2708_v3, 16 }
 0x425   : > { %13100 = vmatprep.subr.bf16.mxu0 %v14755_v33 }
 0x426   : > { %v2830_v29 = vsel %vm1186_vm9, %v2826_v60, %v2829_v22 }
 0x428   : > { %13101 = vmatpush3.bf16.msra.mxu0 %v14755_v33  ;;  %v2944_v33 = vrot.slane %v2705_v10, 3 }
 0x429   : > { %13110 = vmatprep.subr.bf16.mxu0 %v14756_v42 }
 0x42a   : > { %v2946_v36 = vsel %vm1856_vm12, %v2944_v33, %v2945_v34 }
 0x42b   : > { %13095 = vmatmul.mubr.msk.bf16.gmra.mrb[56].mxu0 %vm1003_vm3, %v2493_v32  ;;  %v14762_v32 = vld [vmem:[%s17397_s8 + $0x100] sm:$0xff]  }
 0x42c   : > { %13102 = vmatprep.mubr.msk.bf16.mxu0 %vm1003_vm3, %v2601_v55  ;;  %v14764_v55 = vld [vmem:[%s17397_s8 + $0x110] sm:$0xff]  }
 0x433   : > { %13103 = vmatmul.mubr.msk.bf16.vlgmr.msra.gmra.mrb[52].mxu0 %vm1003_vm3, %v2605_v4 }
 0x434   : > { %13106 = vmatprep.mubr.msk.bf16.mxu0 %vm1003_vm3, %v2609_v5  ;;  %13111 = vmatpush3.bf16.msra.mxu0 %v14756_v42  ;;  %v2948_v42 = vsel %vm1856_vm12, %v2945_v34, %v2947_v39  ;;  %v3062_v5 = vrot.slane %v2838_v35, 3 }
 0x435   : > { %13112 = vmatprep.subr.bf16.mxu0 %v14757_v1 }
 0x438   : > { %13113 = vmatpush3.bf16.msra.mxu0 %v14757_v1  ;;  %v3059_v1 = vrot.slane %v2827_v18, 4 }
 0x439   : > { %13122 = vmatprep.subr.bf16.mxu0 %v14758_v9 }
 0x43b   : > { %13107 = vmatmul.mubr.msk.bf16.gmra.mrb[56].mxu0 %vm1003_vm3, %v2606_v52  ;;  %v3055_v52 = vrot.slane %v2820_v56, 4  ;;  %v3162_v56 = vpack.c.bf16 %v2262_v54, %v2262_v54 }
 0x43c   : > { %13114 = vmatprep.mubr.msk.bf16.mxu0 %vm1003_vm3, %v2705_v10  ;;  %v3060_v10 = vor.u32 %v3059_v1, %v3058_v62 }
 0x43d   : > { %v3056_v53 = vor.u32 %v3055_v52, %v3054_v51  ;;  %v1169_v51 = vld [vmem:[#allocation2 + $0x38] sm:$0x1] }
 0x43f   : > { %v3057_v4 = vsel %vm1506_vm11, %v3053_v63, %v3056_v53 }
 0x443   : > { %13115 = vmatmul.mubr.msk.bf16.vlgmr.msra.gmra.mrb[52].mxu0 %vm1003_vm3, %v2706_v13  ;;  %v14765_v13 = vld [vmem:[%s17397_s8 + $0x118] sm:$0xff]  }
 0x444   : > { %13118 = vmatprep.mubr.msk.bf16.mxu0 %vm1003_vm3, %v2707_v15  ;;  %13123 = vmatpush3.bf16.msra.mxu0 %v14758_v9  ;;  %v3063_v9 = vrot.slane %v2834_v24, 4 }
 0x445   : > { %13124 = vmatprep.subr.bf16.mxu0 %v14759_v14 }
 0x446   : > { %v3064_v11 = vor.u32 %v3063_v9, %v3062_v5 }
 0x448   : > { %13125 = vmatpush3.bf16.msra.mxu0 %v14759_v14  ;;  %v3061_v14 = vsel %vm1506_vm11, %v3056_v53, %v3060_v10  ;;  %v3065_v15 = vsel %vm1506_vm11, %v3060_v10, %v3064_v11  ;;  %v3322_v10 = vld [vmem:[#allocation2] sm:$0xff] }
 0x449   : > { %13134 = vmatprep.subr.bf16.mxu0 %v14760_v57 }
 0x44b   : > { %13119 = vmatmul.mubr.msk.bf16.gmra.mrb[56].mxu0 %vm1003_vm3, %v2708_v3 }
 0x44c   : > { %13126 = vmatprep.mubr.msk.bf16.mxu0 %vm1003_vm3, %v2823_v20 }
 0x453   : > { %13127 = vmatmul.mubr.msk.bf16.vlgmr.msra.gmra.mrb[52].mxu0 %vm1003_vm3, %v2830_v29 }
 0x454   : > { %13130 = vmatprep.mubr.msk.bf16.mxu0 %vm1003_vm3, %v2837_v31  ;;  %13135 = vmatpush3.bf16.msra.mxu0 %v14760_v57  ;;  %v14766_v57 = vld [vmem:[%s17397_s8 + $0x130] sm:$0xff]  }
 0x455   : > { %13136 = vmatprep.subr.bf16.mxu0 %v14761_v28  ;;  %13170 = vmatprep.subr.bf16.mxu1 %v14766_v57 }
 0x456   : > { %13171 = vmatpush3.bf16.msra.mxu1 %v14766_v57 }
 0x458   : > { %13137 = vmatpush3.bf16.msra.mxu0 %v14761_v28 }
 0x459   : > { %13146 = vmatprep.subr.bf16.mxu0 %v14762_v32 }
 0x45b   : > { %13131 = vmatmul.mubr.msk.bf16.gmra.mrb[56].mxu0 %vm1003_vm3, %v2838_v35 }
 0x45c   : > { %13138 = vmatprep.mubr.msk.bf16.mxu0 %vm1003_vm3, %v2946_v36 }
 0x463   : > { %13139 = vmatmul.mubr.msk.bf16.vlgmr.msra.gmra.mrb[52].mxu0 %vm1003_vm3, %v2948_v42 }
 0x464   : > { %13142 = vmatprep.mubr.msk.bf16.mxu0 %vm1003_vm3, %v2950_v47  ;;  %13147 = vmatpush3.bf16.msra.mxu0 %v14762_v32 }
 0x465   : > { %13148 = vmatprep.subr.bf16.mxu0 %v14763_v41 }
 0x468   : > { %13149 = vmatpush3.bf16.msra.mxu0 %v14763_v41 }
 0x469   : > { %13158 = vmatprep.subr.bf16.mxu0 %v14764_v55 }
 0x46b   : > { %13143 = vmatmul.mubr.msk.bf16.gmra.mrb[56].mxu0 %vm1003_vm3, %v2949_v40 }
 0x46c   : > { %13150 = vmatprep.mubr.msk.bf16.mxu0 %vm1003_vm3, %v3057_v4 }
 0x473   : > { %13151 = vmatmul.mubr.msk.bf16.vlgmr.msra.gmra.mrb[52].mxu0 %vm1003_vm3, %v3061_v14 }
 0x474   : > { %13154 = vmatprep.mubr.msk.bf16.mxu0 %vm1003_vm3, %v3065_v15  ;;  %13159 = vmatpush3.bf16.msra.mxu0 %v14764_v55 }
 0x475   : > { %13160 = vmatprep.subr.bf16.mxu0 %v14765_v13 }
 0x478   : > { %13161 = vmatpush3.bf16.msra.mxu0 %v14765_v13 }
 0x47b   : > { %13155 = vmatmul.mubr.msk.bf16.gmra.mrb[56].mxu0 %vm1003_vm3, %v3062_v5 }
 0x47c   : > { %13162 = vmatprep.mubr.msk.bf16.mxu0 %vm1003_vm3, %v15677_v48  ;;  %v14767_v48 = vld [vmem:[%s17397_s8 + $0x138] sm:$0xff]  }
 0x47d   : > { %13172 = vmatprep.subr.bf16.mxu1 %v14767_v48 }
 0x47e   : > { %13173 = vmatpush3.bf16.msra.mxu1 %v14767_v48 }
 0x483   : > { %13163 = vmatmul.mubr.msk.bf16.vlgmr.msra.gmra.mrb[52].mxu0 %vm1003_vm3, %v15686_v7  ;;  %v15822_v7 = vld [vmem:[%s17397_s8 + $0x120] sm:$0xff]  }
 0x484   : > { %13166 = vmatprep.mubr.msk.bf16.mxu0 %vm1003_vm3, %v3161_v16  ;;  %13182 = vmatprep.subr.bf16.mxu1 %v15822_v7 }
 0x48b   : > { %13167 = vmatmul.mubr.msk.bf16.gmra.mrb[56].mxu0 %vm1003_vm3, %v3162_v56 }
 0x556   : > { %v13164_v2 = vpop.f32.mrb[52].mxu0 }
 0x557   : > { %v3267_v18 = vmul.f32 %v13164_v2, %v11648_v8  ;;  %v3220_v3 = vpop.f32.mrb[53].mxu0 }
 0x558   : > { %v3265_v19 = vmul.f32 %v11648_v8, %v3220_v3  ;;  %v13165_v20 = vpop.f32.mrb[54].mxu0 }
 0x559   : > { %v3282_v22 = vadd.f32 %v11650_v17, %v3267_v18  ;;  %v3268_v23 = vmul.f32 %v13165_v20, %v11648_v8  ;;  %v3223_v24 = vpop.f32.mrb[55].mxu0 }
 0x55a   : > { %v3280_v25 = vadd.f32 %v11650_v17, %v3265_v19  ;;  %v3266_v26 = vmul.f32 %v11648_v8, %v3223_v24 }
 0x55b   : > { %v3289_v60 = vadd.f32 %v3282_v22, %v15420_v46  ;;  %v3283_v27 = vadd.f32 %v11650_v17, %v3268_v23 }
 0x55c   : > { %v3287_v28 = vadd.f32 %v3280_v25, %v15410_v38  ;;  %v3281_v29 = vadd.f32 %v11650_v17, %v3266_v26 }
 0x55d   : > { %v3296_v31 = vmax.f32 %v3289_v60, 0.0  ;;  %v3290_v32 = vadd.f32 %v3283_v27, %v15436_v58 }
 0x55e   : > { %v3294_v33 = vmax.f32 %v3287_v28, 0.0  ;;  %v3288_v34 = vadd.f32 %v3281_v29, %v15418_v45  ;;  %v13168_v35 = vpop.f32.mrb[56].mxu0  ;;  %v14769_v29 = vld [vmem:[%s17397_s8 + $0x128] sm:$0xff]  }
 0x55f   : > { %v3303_v36 = vmul.f32 %v3296_v31, %v15644_v12  ;;  %v3297_v39 = vmax.f32 %v3290_v32, 0.0  ;;  %v3271_v40 = vmul.f32 %v13168_v35, %v11648_v8  ;;  %v3236_v41 = vpop.f32.mrb[57].mxu0  ;;  %v14770_v35 = vld [vmem:[%s17397_s8 + $0x140] sm:$0xff]  }
 0x560   : > { %v3301_v42 = vmul.f32 %v3294_v33, %v15634_v61  ;;  %v3295_v44 = vmax.f32 %v3288_v34, 0.0  ;;  %v3269_v46 = vmul.f32 %v11648_v8, %v3236_v41  ;;  %v13169_v47 = vpop.f32.mrb[58].mxu0 }
 0x561   : > { %3310 = vst.msk [vmem:[#allocation2 + $0x18] sm:$0xff] %vm1003_vm3, %v3303_v36  ;;  %v3304_v38 = vmul.f32 %v3297_v39, %v15650_v30  ;;  %v3286_v49 = vadd.f32 %v11650_v17, %v3271_v40  ;;  %v3239_v58 = vpop.f32.mrb[59].mxu0  ;;  %v14771_v39 = vld [vmem:[%s17397_s8 + $0x148] sm:$0xff]   ;;  %v14773_v47 = vld [vmem:[%s17397_s8 + $0x158] sm:$0xff]  }
 0x562   : > { %3308 = vst.msk [vmem:[#allocation2 + $0x8] sm:$0xff] %vm1003_vm3, %v3301_v42  ;;  %v3302_v45 = vmul.f32 %v3295_v44, %v15642_v6  ;;  %v3284_v52 = vadd.f32 %v11650_v17, %v3269_v46  ;;  %v3270_v55 = vmul.f32 %v11648_v8, %v3239_v58 }
 0x563   : > { %3311 = vst.msk [vmem:[#allocation2 + $0x20] sm:$0xff] %vm1003_vm3, %v3304_v38  ;;  %v3293_v63 = vadd.f32 %v3286_v49, %v1169_v51 }
 0x564   : > { %3309 = vst.msk [vmem:[#allocation2 + $0x10] sm:$0xff] %vm1003_vm3, %v3302_v45  ;;  %v3291_v53 = vadd.f32 %v3284_v52, %v15438_v59  ;;  %v3285_v62 = vadd.f32 %v11650_v17, %v3270_v55  ;;  %v14774_v55 = vld [vmem:[%s17397_s8 + $0x160] sm:$0xff]  }
 0x565   : > { %v3300_v1 = vmax.f32 %v3293_v63, 0.0 }
 0x566   : > { %v3298_v4 = vmax.f32 %v3291_v53, 0.0  ;;  %v3292_v5 = vadd.f32 %v3285_v62, %v15447_v0 }
 0x567   : > { %v3307_v9 = vmul.f32 %v3300_v1, %v15658_v43 }
 0x568   : > { %v3305_v11 = vmul.f32 %v3298_v4, %v15646_v21  ;;  %v3299_v13 = vmax.f32 %v3292_v5, 0.0  ;;  %v15857_v0 = vld [vmem:[#allocation2 + $0x18] sm:$0xff] }
 0x569   : > { %3314 = vst.msk [vmem:[#allocation2 + $0x38] sm:$0x1] %vm1012_vm8, %v3307_v9  ;;  %v15848_v14 = vld [vmem:[#allocation2 + $0x8] sm:$0xff] }
 0x56a   : > { %3312 = vst.msk [vmem:[#allocation2 + $0x28] sm:$0xff] %vm1003_vm3, %v3305_v11  ;;  %v3306_v15 = vmul.f32 %v3299_v13, %v15663_v50  ;;  %v15853_v59 = vpack.c.bf16 %v15848_v14, %v3322_v10  ;;  %v15867_v18 = vld [vmem:[#allocation2 + $0x20] sm:$0xff]  ;;  %v14775_v13 = vld [vmem:[%s17397_s8 + $0x168] sm:$0xff]  }
 0x56b   : > { %v15855_v16 = vld [vmem:[#allocation2 + $0x10] sm:$0xff] }
 0x56c   : > { %3313 = vst.msk [vmem:[#allocation2 + $0x30] sm:$0xff] %vm1003_vm3, %v3306_v15  ;;  %v15862_v54 = vpack.c.bf16 %v15857_v0, %v15855_v16  ;;  %v3342_v56 = vshll.u32 %v15853_v59, 16  ;;  %v3340_v57 = vshrl.u32 %v15853_v59, 16  ;;  %v3550_v41 = vrot.slane %v15853_v59, 1 }
 0x56e   : > { %v3344_v48 = vrot.slane %v3342_v56, 1  ;;  %v3347_v8 = vshll.u32 %v15862_v54, 16  ;;  %v3351_v23 = vshrl.u32 %v15862_v54, 16  ;;  %v3551_v40 = vrot.slane %v15862_v54, 1 }
 0x56f   : > { %v3657_v51 = vrot.slane %v3340_v57, 3  ;;  %v3658_v52 = vrot.slane %v3342_v56, 4  ;;  %v14776_v56 = vld [vmem:[%s17397_s8 + $0x170] sm:$0xff]  }
 0x570   : > { %v3345_v2 = vor.u32 %v3344_v48, %v3340_v57  ;;  %v3349_v17 = vrot.slane %v3347_v8, 1  ;;  %v3552_v42 = vsel %vm1398_vm10, %v3550_v41, %v3551_v40  ;;  %v3660_v58 = vrot.slane %v3351_v23, 3 }
 0x571   : > { %v15869_v3 = vld [vmem:[#allocation2 + $0x28] sm:$0xff]  ;;  %v3661_v45 = vrot.slane %v3347_v8, 4  ;;  %v3659_v53 = vor.u32 %v3658_v52, %v3657_v51  ;;  %v3767_v57 = vpack.c.bf16 %v15855_v16, %v15848_v14  ;;  %v3768_v8 = vpack.c.bf16 %v15867_v18, %v15857_v0  ;;  %v14781_v51 = vld [vmem:[%s17397_s8 + $0x198] sm:$0xff]  }
 0x572   : > { %v3350_v19 = vsel %vm1186_vm9, %v3345_v2, %v3349_v17  ;;  %v15874_v20 = vpack.c.bf16 %v15869_v3, %v15867_v18  ;;  %v3353_v26 = vor.u32 %v3351_v23, %v3349_v17  ;;  %v14777_v2 = vld [vmem:[%s17397_s8 + $0x178] sm:$0xff]  }
 0x573   : > { %13174 = vmatprep.mubr.msk.bf16.mxu1 %vm1003_vm3, %v3350_v19  ;;  %v15877_v22 = vld [vmem:[#allocation2 + $0x30] sm:$0xff]  ;;  %v3662_v63 = vor.u32 %v3661_v45, %v3660_v58  ;;  %v3878_v48 = vshll.u32 %v3767_v57, 16  ;;  %v3876_v23 = vshrl.u32 %v3767_v57, 16 }
 0x574   : > { %v3355_v24 = vshll.u32 %v15874_v20, 16  ;;  %v3328_v25 = vpack.c.bf16 %v15877_v22, %v15877_v22  ;;  %v3359_v27 = vshrl.u32 %v15874_v20, 16  ;;  %v3553_v44 = vrot.slane %v15874_v20, 1 }
 0x575   : > { %v3663_v5 = vsel %vm1506_vm11, %v3659_v53, %v3662_v63  ;;  %v3769_v17 = vpack.c.bf16 %v15877_v22, %v15869_v3  ;;  %v3880_v19 = vrot.slane %v3878_v48, 1  ;;  %v4114_v53 = vrot.slane %v3878_v48, 4  ;;  %v14783_v48 = vld [vmem:[%s17397_s8 + $0x1a8] sm:$0xff]  }
 0x576   : > { %v3357_v60 = vrot.slane %v3355_v24, 1  ;;  %v3363_v28 = vshll.u32 %v3328_v25, 16  ;;  %v3367_v36 = vshrl.u32 %v3328_v25, 16  ;;  %v3555_v46 = vrot.slane %v3328_v25, 1 }
 0x577   : > { %v3554_v38 = vsel %vm1398_vm10, %v3551_v40, %v3553_v44  ;;  %v3664_v62 = vrot.slane %v3359_v27, 3  ;;  %v3665_v1 = vrot.slane %v3355_v24, 4  ;;  %v3882_v24 = vshll.u32 %v3768_v8, 16  ;;  %v14779_v40 = vld [vmem:[%s17397_s8 + $0x188] sm:$0xff]  }
 0x578   : > { %v3358_v31 = vsel %vm1186_vm9, %v3353_v26, %v3357_v60  ;;  %v3361_v32 = vor.u32 %v3359_v27, %v3357_v60  ;;  %v3365_v33 = vrot.slane %v3363_v28, 1  ;;  %v3556_v49 = vsel %vm1398_vm10, %v3553_v44, %v3555_v46  ;;  %v15953_v26 = vld [vmem:[#allocation2 + $0x38] sm:$0xff]  ;;  %v14780_v44 = vld [vmem:[%s17397_s8 + $0x190] sm:$0xff]  }
 0x579   : > { %13175 = vmatmul.mubr.msk.bf16.vlgmr.msra.gmra.mrb[8].mxu1 %vm1003_vm3, %v3358_v31  ;;  %v3668_v4 = vrot.slane %v3367_v36, 3  ;;  %v3669_v9 = vrot.slane %v3363_v28, 4  ;;  %v3666_v10 = vor.u32 %v3665_v1, %v3664_v62  ;;  %v3881_v60 = vor.u32 %v3880_v19, %v3876_v23  ;;  %v3324_v19 = vld [vmem:[#allocation2 + $0x40] sm:$0x1] }
 0x57a   : > { %v3366_v34 = vsel %vm1186_vm9, %v3361_v32, %v3365_v33  ;;  %13183 = vmatpush3.bf16.msra.mxu1 %v15822_v7  ;;  %v14772_v7 = vld [vmem:[%s17397_s8 + $0x150] sm:$0xff]   ;;  %v3889_v27 = vshll.u32 %v3769_v17, 16  ;;  %v3770_v28 = vpack.c.bf16 %v15953_v26, %v15953_v26  ;;  %v3893_v33 = vshrl.u32 %v3769_v17, 16 }
 0x57b   : > { %13178 = vmatprep.mubr.msk.bf16.mxu1 %vm1003_vm3, %v3366_v34  ;;  %13184 = vmatprep.subr.bf16.mxu1 %v14769_v29  ;;  %v3670_v11 = vor.u32 %v3669_v9, %v3668_v4  ;;  %v3667_v15 = vsel %vm1506_vm11, %v3662_v63, %v3666_v10  ;;  %v4009_v58 = vrot.slane %v3769_v17, 3  ;;  %v4117_v1 = vrot.slane %v3882_v24, 4 }
 0x57c   : > { %v3891_v32 = vrot.slane %v3889_v27, 1  ;;  %v3896_v34 = vshll.u32 %v3770_v28, 16  ;;  %v4011_v45 = vrot.slane %v3770_v28, 3 }
 0x57e   : > { %13185 = vmatpush3.bf16.msra.mxu1 %v14769_v29  ;;  %v3884_v29 = vrot.slane %v3882_v24, 1  ;;  %v4012_v63 = vsel %vm1856_vm12, %v4009_v58, %v4011_v45  ;;  %v14784_v24 = vld [vmem:[%s17397_s8 + $0x1c0] sm:$0xff]  }
 0x57f   : > { %13194 = vmatprep.subr.bf16.mxu1 %v14770_v35  ;;  %13278 = vmatprep.subr.bf16.mxu0 %v14784_v24 }
 0x580   : > { %v3885_v31 = vsel %vm1186_vm9, %v3881_v60, %v3884_v29  ;;  %13279 = vmatpush3.bf16.msra.mxu0 %v14784_v24  ;;  %v11744_v60 = vld [vmem:[%s17399_s10 + $0x2] ss:$0 sm:$0xff] }
 0x581   : > { %13179 = vmatmul.mubr.msk.bf16.gmra.mrb[12].mxu1 %vm1003_vm3, %v3367_v36  ;;  %v3895_v36 = vor.u32 %v3893_v33, %v3891_v32 }
 0x582   : > { %13186 = vmatprep.mubr.msk.bf16.mxu1 %vm1003_vm3, %v15853_v59  ;;  %v3671_v59 = vsel %vm1506_vm11, %v3666_v10, %v3670_v11  ;;  %v4120_v10 = vrot.slane %v3893_v33, 3  ;;  %v4121_v11 = vrot.slane %v3889_v27, 4 }
 0x589   : > { %13187 = vmatmul.mubr.msk.bf16.vlgmr.msra.gmra.mrb[8].mxu1 %vm1003_vm3, %v15862_v54 }
 0x58a   : > { %13190 = vmatprep.mubr.msk.bf16.mxu1 %vm1003_vm3, %v15874_v20  ;;  %13195 = vmatpush3.bf16.msra.mxu1 %v14770_v35  ;;  %v3886_v35 = vshrl.u32 %v3768_v8, 16 }
 0x58b   : > { %13196 = vmatprep.subr.bf16.mxu1 %v14771_v39 }
 0x58c   : > { %v4116_v62 = vrot.slane %v3886_v35, 3 }
 0x58e   : > { %13197 = vmatpush3.bf16.msra.mxu1 %v14771_v39  ;;  %v3888_v39 = vor.u32 %v3886_v35, %v3884_v29  ;;  %v4118_v9 = vor.u32 %v4117_v1, %v4116_v62 }
 0x58f   : > { %13206 = vmatprep.subr.bf16.mxu1 %v14772_v7 }
 0x590   : > { %v3892_v41 = vsel %vm1186_vm9, %v3888_v39, %v3891_v32 }
 0x591   : > { %13191 = vmatmul.mubr.msk.bf16.gmra.mrb[12].mxu1 %vm1003_vm3, %v3328_v25  ;;  %v14778_v25 = vld [vmem:[%s17397_s8 + $0x180] sm:$0xff]  }
 0x592   : > { %13198 = vmatprep.mubr.msk.bf16.mxu1 %vm1003_vm3, %v3552_v42 }
 0x599   : > { %13199 = vmatmul.mubr.msk.bf16.vlgmr.msra.gmra.mrb[8].mxu1 %vm1003_vm3, %v3554_v38  ;;  %v3900_v38 = vshrl.u32 %v3770_v28, 16 }
 0x59a   : > { %13202 = vmatprep.mubr.msk.bf16.mxu1 %vm1003_vm3, %v3556_v49  ;;  %13207 = vmatpush3.bf16.msra.mxu1 %v14772_v7  ;;  %v3898_v7 = vrot.slane %v3896_v34, 1 }
 0x59b   : > { %13208 = vmatprep.subr.bf16.mxu1 %v14773_v47 }
 0x59c   : > { %v3899_v42 = vsel %vm1186_vm9, %v3895_v36, %v3898_v7 }
 0x59e   : > { %13209 = vmatpush3.bf16.msra.mxu1 %v14773_v47  ;;  %v4007_v47 = vrot.slane %v3768_v8, 3 }
 0x59f   : > { %13218 = vmatprep.subr.bf16.mxu1 %v14774_v55 }
 0x5a0   : > { %v4010_v52 = vsel %vm1856_vm12, %v4007_v47, %v4009_v58 }
 0x5a1   : > { %13203 = vmatmul.mubr.msk.bf16.gmra.mrb[12].mxu1 %vm1003_vm3, %v3555_v46  ;;  %v4006_v46 = vrot.slane %v3767_v57, 3 }
 0x5a2   : > { %13210 = vmatprep.mubr.msk.bf16.mxu1 %vm1003_vm3, %v3663_v5 }
 0x5a3   : > { %v4008_v49 = vsel %vm1856_vm12, %v4006_v46, %v4007_v47 }
 0x5a9   : > { %13211 = vmatmul.mubr.msk.bf16.vlgmr.msra.gmra.mrb[8].mxu1 %vm1003_vm3, %v3667_v15  ;;  %v4124_v15 = vrot.slane %v3900_v38, 3 }
 0x5aa   : > { %13214 = vmatprep.mubr.msk.bf16.mxu1 %vm1003_vm3, %v3671_v59  ;;  %13219 = vmatpush3.bf16.msra.mxu1 %v14774_v55  ;;  %v4113_v55 = vrot.slane %v3876_v23, 3  ;;  %v4125_v59 = vrot.slane %v3896_v34, 4  ;;  %v4224_v23 = vpack.c.bf16 %v3324_v19, %v3324_v19 }
 0x5ab   : > { %13220 = vmatprep.subr.bf16.mxu1 %v14775_v13 }
 0x5ac   : > { %v4115_v5 = vor.u32 %v4114_v53, %v4113_v55 }
 0x5ae   : > { %13221 = vmatpush3.bf16.msra.mxu1 %v14775_v13  ;;  %v4119_v13 = vsel %vm1506_vm11, %v4115_v5, %v4118_v9 }
 0x5af   : > { %13230 = vmatprep.subr.bf16.mxu1 %v14776_v56 }
 0x5b1   : > { %13215 = vmatmul.mubr.msk.bf16.gmra.mrb[12].mxu1 %vm1003_vm3, %v3668_v4  ;;  %v14782_v4 = vld [vmem:[%s17397_s8 + $0x1a0] sm:$0xff]  }
 0x5b2   : > { %13222 = vmatprep.mubr.msk.bf16.mxu1 %vm1003_vm3, %v3767_v57  ;;  %v4126_v57 = vor.u32 %v4125_v59, %v4124_v15 }
 0x5b9   : > { %13223 = vmatmul.mubr.msk.bf16.vlgmr.msra.gmra.mrb[8].mxu1 %vm1003_vm3, %v3768_v8 }
 0x5ba   : > { %13226 = vmatprep.mubr.msk.bf16.mxu1 %vm1003_vm3, %v3769_v17  ;;  %13231 = vmatpush3.bf16.msra.mxu1 %v14776_v56  ;;  %v4122_v56 = vor.u32 %v4121_v11, %v4120_v10  ;;  %v4223_v17 = vpack.c.bf16 %v15953_v26, %v15877_v22  ;;  %v4370_v11 = vld [vmem:[#allocation3] sm:$0xff] }
 0x5bb   : > { %13232 = vmatprep.subr.bf16.mxu1 %v14777_v2 }
 0x5bc   : > { %v4123_v8 = vsel %vm1506_vm11, %v4118_v9, %v4122_v56 }
 0x5be   : > { %13233 = vmatpush3.bf16.msra.mxu1 %v14777_v2  ;;  %v4127_v2 = vsel %vm1506_vm11, %v4122_v56, %v4126_v57 }
 0x5bf   : > { %13242 = vmatprep.subr.bf16.mxu1 %v14778_v25 }
 0x5c1   : > { %13227 = vmatmul.mubr.msk.bf16.gmra.mrb[12].mxu1 %vm1003_vm3, %v3770_v28 }
 0x5c2   : > { %13234 = vmatprep.mubr.msk.bf16.mxu1 %vm1003_vm3, %v3885_v31 }
 0x5c9   : > { %13235 = vmatmul.mubr.msk.bf16.vlgmr.msra.gmra.mrb[8].mxu1 %vm1003_vm3, %v3892_v41 }
 0x5ca   : > { %13238 = vmatprep.mubr.msk.bf16.mxu1 %vm1003_vm3, %v3899_v42  ;;  %13243 = vmatpush3.bf16.msra.mxu1 %v14778_v25  ;;  %v11742_v25 = vld [vmem:[%s17398_s9 + $0x2] ss:$0 sm:$0xff] }
 0x5cb   : > { %13244 = vmatprep.subr.bf16.mxu1 %v14779_v40 }
 0x5ce   : > { %13245 = vmatpush3.bf16.msra.mxu1 %v14779_v40 }
 0x5cf   : > { %13254 = vmatprep.subr.bf16.mxu1 %v14780_v44 }
 0x5d1   : > { %13239 = vmatmul.mubr.msk.bf16.gmra.mrb[12].mxu1 %vm1003_vm3, %v3900_v38 }
 0x5d2   : > { %13246 = vmatprep.mubr.msk.bf16.mxu1 %vm1003_vm3, %v4008_v49 }
 0x5d9   : > { %13247 = vmatmul.mubr.msk.bf16.vlgmr.msra.gmra.mrb[8].mxu1 %vm1003_vm3, %v4010_v52 }
 0x5da   : > { %13250 = vmatprep.mubr.msk.bf16.mxu1 %vm1003_vm3, %v4012_v63  ;;  %13255 = vmatpush3.bf16.msra.mxu1 %v14780_v44 }
 0x5db   : > { %13256 = vmatprep.subr.bf16.mxu1 %v14781_v51 }
 0x5de   : > { %13257 = vmatpush3.bf16.msra.mxu1 %v14781_v51 }
 0x5df   : > { %13266 = vmatprep.subr.bf16.mxu1 %v14782_v4 }
 0x5e1   : > { %13251 = vmatmul.mubr.msk.bf16.gmra.mrb[12].mxu1 %vm1003_vm3, %v4011_v45 }
 0x5e2   : > { %13258 = vmatprep.mubr.msk.bf16.mxu1 %vm1003_vm3, %v4119_v13 }
 0x5e9   : > { %13259 = vmatmul.mubr.msk.bf16.vlgmr.msra.gmra.mrb[8].mxu1 %vm1003_vm3, %v4123_v8 }
 0x5ea   : > { %13262 = vmatprep.mubr.msk.bf16.mxu1 %vm1003_vm3, %v4127_v2  ;;  %13267 = vmatpush3.bf16.msra.mxu1 %v14782_v4 }
 0x5eb   : > { %13268 = vmatprep.subr.bf16.mxu1 %v14783_v48 }
 0x5ee   : > { %13269 = vmatpush3.bf16.msra.mxu1 %v14783_v48 }
 0x5f1   : > { %13263 = vmatmul.mubr.msk.bf16.gmra.mrb[12].mxu1 %vm1003_vm3, %v4124_v15 }
 0x5f2   : > { %13270 = vmatprep.mubr.msk.bf16.mxu1 %vm1003_vm3, %v15862_v54  ;;  %v14785_v54 = vld [vmem:[%s17397_s8 + $0x1c8] sm:$0xff]  }
 0x5f3   : > { %13280 = vmatprep.subr.bf16.mxu0 %v14785_v54 }
 0x5f4   : > { %13281 = vmatpush3.bf16.msra.mxu0 %v14785_v54 }
 0x5f9   : > { %13271 = vmatmul.mubr.msk.bf16.vlgmr.msra.gmra.mrb[8].mxu1 %vm1003_vm3, %v15874_v20  ;;  %v16011_v20 = vld [vmem:[%s17397_s8 + $0x1b0] sm:$0xff]  }
 0x5fa   : > { %13274 = vmatprep.mubr.msk.bf16.mxu1 %vm1003_vm3, %v4223_v17  ;;  %13290 = vmatprep.subr.bf16.mxu0 %v16011_v20 }
 0x601   : > { %13275 = vmatmul.mubr.msk.bf16.gmra.mrb[12].mxu1 %vm1003_vm3, %v4224_v23 }
 0x6cc   : > { %v13272_v26 = vpop.f32.mrb[8].mxu1 }
 0x6cd   : > { %v4329_v27 = vmul.f32 %v13272_v26, %v11742_v25  ;;  %v4282_v28 = vpop.f32.mrb[9].mxu1 }
 0x6ce   : > { %v4327_v29 = vmul.f32 %v11742_v25, %v4282_v28  ;;  %v13273_v31 = vpop.f32.mrb[10].mxu1 }
 0x6cf   : > { %v4344_v32 = vadd.f32 %v11744_v60, %v4329_v27  ;;  %v4330_v33 = vmul.f32 %v13273_v31, %v11742_v25  ;;  %v4285_v34 = vpop.f32.mrb[11].mxu1 }
 0x6d0   : > { %v4342_v35 = vadd.f32 %v11744_v60, %v4327_v29  ;;  %v4328_v36 = vmul.f32 %v11742_v25, %v4285_v34 }
 0x6d1   : > { %v4351_v39 = vmax.f32 %v4344_v32, 0.0  ;;  %v4345_v7 = vadd.f32 %v11744_v60, %v4330_v33 }
 0x6d2   : > { %v4349_v40 = vmax.f32 %v4342_v35, 0.0  ;;  %v4343_v41 = vadd.f32 %v11744_v60, %v4328_v36 }
 0x6d3   : > { %v4358_v42 = vmul.f32 %v4351_v39, %v15644_v12  ;;  %v4352_v44 = vmax.f32 %v4345_v7, 0.0  ;;  %v14787_v7 = vld [vmem:[%s17397_s8 + $0x1b8] sm:$0xff]  }
 0x6d4   : > { %v4356_v46 = vmul.f32 %v4349_v40, %v15634_v61  ;;  %v4350_v47 = vmax.f32 %v4343_v41, 0.0  ;;  %v13276_v38 = vpop.f32.mrb[12].mxu1 }
 0x6d5   : > { %4365 = vst.msk [vmem:[#allocation3 + $0x18] sm:$0xff] %vm1003_vm3, %v4358_v42  ;;  %v4359_v49 = vmul.f32 %v4352_v44, %v15650_v30  ;;  %v4333_v58 = vmul.f32 %v13276_v38, %v11742_v25  ;;  %v4298_v45 = vpop.f32.mrb[13].mxu1  ;;  %v14789_v38 = vld [vmem:[%s17397_s8 + $0x1d8] sm:$0xff]  }
 0x6d6   : > { %4363 = vst.msk [vmem:[#allocation3 + $0x8] sm:$0xff] %vm1003_vm3, %v4356_v46  ;;  %v4357_v51 = vmul.f32 %v4350_v47, %v15642_v6  ;;  %v4331_v52 = vmul.f32 %v11742_v25, %v4298_v45  ;;  %v13277_v55 = vpop.f32.mrb[14].mxu1  ;;  %v14788_v46 = vld [vmem:[%s17397_s8 + $0x1d0] sm:$0xff]  }
 0x6d7   : > { %4366 = vst.msk [vmem:[#allocation3 + $0x20] sm:$0xff] %vm1003_vm3, %v4359_v49  ;;  %v4348_v63 = vadd.f32 %v11744_v60, %v4333_v58  ;;  %v4301_v53 = vpop.f32.mrb[15].mxu1  ;;  %v14791_v55 = vld [vmem:[%s17397_s8 + $0x1e8] sm:$0xff]  }
 0x6d8   : > { %4364 = vst.msk [vmem:[#allocation3 + $0x10] sm:$0xff] %vm1003_vm3, %v4357_v51  ;;  %v4346_v62 = vadd.f32 %v11744_v60, %v4331_v52  ;;  %v4332_v1 = vmul.f32 %v11742_v25, %v4301_v53 }
 0x6d9   : > { %v4355_v4 = vmax.f32 %v4348_v63, 0.0 }
 0x6da   : > { %v4353_v5 = vmax.f32 %v4346_v62, 0.0  ;;  %v4347_v9 = vadd.f32 %v11744_v60, %v4332_v1 }
 0x6db   : > { %v4362_v10 = vmul.f32 %v4355_v4, %v15658_v43 }
 0x6dc   : > { %v4360_v13 = vmul.f32 %v4353_v5, %v15646_v21  ;;  %v4354_v15 = vmax.f32 %v4347_v9, 0.0  ;;  %v16040_v8 = vld [vmem:[#allocation3 + $0x18] sm:$0xff]  ;;  %v14792_v9 = vld [vmem:[%s17397_s8 + $0x1f0] sm:$0xff]  }
 0x6dd   : > { %4369 = vst.msk [vmem:[#allocation3 + $0x38] sm:$0x1] %vm1012_vm8, %v4362_v10  ;;  %v16031_v59 = vld [vmem:[#allocation3 + $0x8] sm:$0xff] }
 0x6de   : > { %4367 = vst.msk [vmem:[#allocation3 + $0x28] sm:$0xff] %vm1003_vm3, %v4360_v13  ;;  %v4361_v56 = vmul.f32 %v4354_v15, %v15663_v50  ;;  %v16036_v57 = vpack.c.bf16 %v16031_v59, %v4370_v11  ;;  %v16050_v26 = vld [vmem:[#allocation3 + $0x20] sm:$0xff] }
 0x6df   : > { %v16038_v48 = vld [vmem:[#allocation3 + $0x10] sm:$0xff] }
 0x6e0   : > { %4368 = vst.msk [vmem:[#allocation3 + $0x30] sm:$0xff] %vm1003_vm3, %v4361_v56  ;;  %v16045_v2 = vpack.c.bf16 %v16040_v8, %v16038_v48  ;;  %v4396_v17 = vshll.u32 %v16036_v57, 16  ;;  %v4394_v19 = vshrl.u32 %v16036_v57, 16  ;;  %v4604_v58 = vrot.slane %v16036_v57, 1 }
 0x6e2   : > { %v4398_v23 = vrot.slane %v4396_v17, 1  ;;  %v4401_v24 = vshll.u32 %v16045_v2, 16  ;;  %v4405_v31 = vshrl.u32 %v16045_v2, 16  ;;  %v4605_v49 = vrot.slane %v16045_v2, 1 }
 0x6e3   : > { %v4711_v4 = vrot.slane %v4394_v19, 3  ;;  %v4712_v5 = vrot.slane %v4396_v17, 4 }
 0x6e4   : > { %v4399_v54 = vor.u32 %v4398_v23, %v4394_v19  ;;  %v4403_v25 = vrot.slane %v4401_v24, 1  ;;  %v4606_v45 = vsel %vm1398_vm10, %v4604_v58, %v4605_v49  ;;  %v4714_v62 = vrot.slane %v4405_v31, 3  ;;  %v14797_v58 = vld [vmem:[%s17397_s8 + $0x218] sm:$0xff]  }
 0x6e5   : > { %v16052_v60 = vld [vmem:[#allocation3 + $0x28] sm:$0xff]  ;;  %v4715_v1 = vrot.slane %v4401_v24, 4  ;;  %v4713_v11 = vor.u32 %v4712_v5, %v4711_v4  ;;  %v14793_v24 = vld [vmem:[%s17397_s8 + $0x1f8] sm:$0xff]   ;;  %v14799_v5 = vld [vmem:[%s17397_s8 + $0x228] sm:$0xff]  }
 0x6e6   : > { %v4404_v27 = vsel %vm1186_vm9, %v4399_v54, %v4403_v25  ;;  %v16057_v28 = vpack.c.bf16 %v16052_v60, %v16050_v26  ;;  %v4407_v34 = vor.u32 %v4405_v31, %v4403_v25  ;;  %v4821_v31 = vpack.c.bf16 %v16038_v48, %v16031_v59 }
 0x6e7   : > { %13282 = vmatprep.mubr.msk.bf16.mxu0 %vm1003_vm3, %v4404_v27  ;;  %v16060_v29 = vld [vmem:[#allocation3 + $0x30] sm:$0xff]  ;;  %v4716_v10 = vor.u32 %v4715_v1, %v4714_v62  ;;  %v14794_v27 = vld [vmem:[%s17397_s8 + $0x200] sm:$0xff]  }
 0x6e8   : > { %v4409_v32 = vshll.u32 %v16057_v28, 16  ;;  %v4382_v33 = vpack.c.bf16 %v16060_v29, %v16060_v29  ;;  %v4413_v36 = vshrl.u32 %v16057_v28, 16  ;;  %v4607_v51 = vrot.slane %v16057_v28, 1 }
 0x6e9   : > { %v4930_v59 = vshrl.u32 %v4821_v31, 16 }
 0x6ea   : > { %v4411_v35 = vrot.slane %v4409_v32, 1  ;;  %v4417_v39 = vshll.u32 %v4382_v33, 16  ;;  %v4421_v47 = vshrl.u32 %v4382_v33, 16  ;;  %v4609_v52 = vrot.slane %v4382_v33, 1 }
 0x6eb   : > { %v4608_v63 = vsel %vm1398_vm10, %v4605_v49, %v4607_v51  ;;  %v4718_v13 = vrot.slane %v4413_v36, 3  ;;  %v4719_v15 = vrot.slane %v4409_v32, 4  ;;  %v4932_v32 = vshll.u32 %v4821_v31, 16 }
 0x6ec   : > { %v4412_v40 = vsel %vm1186_vm9, %v4407_v34, %v4411_v35  ;;  %v4415_v41 = vor.u32 %v4413_v36, %v4411_v35  ;;  %v4419_v42 = vrot.slane %v4417_v39, 1  ;;  %v4610_v53 = vsel %vm1398_vm10, %v4607_v51, %v4609_v52  ;;  %v14795_v34 = vld [vmem:[%s17397_s8 + $0x208] sm:$0xff]  }
 0x6ed   : > { %13283 = vmatmul.mubr.msk.bf16.vlgmr.msra.gmra.mrb[60].mxu0 %vm1003_vm3, %v4412_v40  ;;  %v4722_v56 = vrot.slane %v4421_v47, 3  ;;  %v4723_v23 = vrot.slane %v4417_v39, 4  ;;  %v4720_v17 = vor.u32 %v4719_v15, %v4718_v13  ;;  %v4823_v35 = vpack.c.bf16 %v16060_v29, %v16052_v60 }
 0x6ee   : > { %v4420_v44 = vsel %vm1186_vm9, %v4415_v41, %v4419_v42  ;;  %13291 = vmatpush3.bf16.msra.mxu0 %v16011_v20  ;;  %v14790_v20 = vld [vmem:[%s17397_s8 + $0x1e0] sm:$0xff]   ;;  %v4934_v36 = vrot.slane %v4932_v32, 1  ;;  %v5168_v13 = vrot.slane %v4932_v32, 4 }
 0x6ef   : > { %13286 = vmatprep.mubr.msk.bf16.mxu0 %vm1003_vm3, %v4420_v44  ;;  %13292 = vmatprep.subr.bf16.mxu0 %v14787_v7  ;;  %v4724_v19 = vor.u32 %v4723_v23, %v4722_v56  ;;  %v4721_v54 = vsel %vm1506_vm11, %v4716_v10, %v4720_v17  ;;  %v4947_v44 = vshrl.u32 %v4823_v35, 16  ;;  %v5063_v1 = vrot.slane %v4823_v35, 3 }
 0x6f0   : > { %v4935_v39 = vor.u32 %v4934_v36, %v4930_v59 }
 0x6f1   : > { %v4725_v25 = vsel %vm1506_vm11, %v4720_v17, %v4724_v19  ;;  %v5174_v19 = vrot.slane %v4947_v44, 3 }
 0x6f2   : > { %13293 = vmatpush3.bf16.msra.mxu0 %v14787_v7  ;;  %v4943_v7 = vshll.u32 %v4823_v35, 16 }
 0x6f3   : > { %13302 = vmatprep.subr.bf16.mxu0 %v14788_v46 }
 0x6f4   : > { %v4945_v42 = vrot.slane %v4943_v7, 1 }
 0x6f5   : > { %13287 = vmatmul.mubr.msk.bf16.gmra.mrb[64].mxu0 %vm1003_vm3, %v4421_v47 }
 0x6f6   : > { %13294 = vmatprep.mubr.msk.bf16.mxu0 %vm1003_vm3, %v16036_v57  ;;  %v4717_v57 = vsel %vm1506_vm11, %v4713_v11, %v4716_v10  ;;  %v5167_v10 = vrot.slane %v4930_v59, 3  ;;  %v4378_v59 = vld [vmem:[#allocation3 + $0x40] sm:$0x1] }
 0x6f8   : > { %v5169_v23 = vor.u32 %v5168_v13, %v5167_v10 }
 0x6fd   : > { %13295 = vmatmul.mubr.msk.bf16.vlgmr.msra.gmra.mrb[60].mxu0 %vm1003_vm3, %v16045_v2 }
 0x6fe   : > { %13298 = vmatprep.mubr.msk.bf16.mxu0 %vm1003_vm3, %v16057_v28  ;;  %13303 = vmatpush3.bf16.msra.mxu0 %v14788_v46 }
 0x6ff   : > { %13304 = vmatprep.subr.bf16.mxu0 %v14789_v38 }
 0x702   : > { %13305 = vmatpush3.bf16.msra.mxu0 %v14789_v38  ;;  %v4949_v38 = vor.u32 %v4947_v44, %v4945_v42 }
 0x703   : > { %13314 = vmatprep.subr.bf16.mxu0 %v14790_v20 }
 0x705   : > { %13299 = vmatmul.mubr.msk.bf16.gmra.mrb[64].mxu0 %vm1003_vm3, %v4382_v33  ;;  %v4822_v33 = vpack.c.bf16 %v16050_v26, %v16040_v8  ;;  %v14796_v8 = vld [vmem:[%s17397_s8 + $0x210] sm:$0xff]   ;;  %v16136_v26 = vld [vmem:[#allocation3 + $0x38] sm:$0xff] }
 0x706   : > { %13306 = vmatprep.mubr.msk.bf16.mxu0 %vm1003_vm3, %v4606_v45  ;;  %v4824_v60 = vpack.c.bf16 %v16136_v26, %v16136_v26  ;;  %v5277_v36 = vpack.c.bf16 %v16136_v26, %v16060_v29  ;;  %v11836_v29 = vld [vmem:[%s17398_s9 + $0x3] ss:$0 sm:$0xff] }
 0x707   : > { %v4936_v48 = vshll.u32 %v4822_v33, 16  ;;  %v4940_v47 = vshrl.u32 %v4822_v33, 16 }
 0x708   : > { %v4950_v46 = vshll.u32 %v4824_v60, 16  ;;  %v5065_v4 = vrot.slane %v4824_v60, 3 }
 0x709   : > { %v4938_v40 = vrot.slane %v4936_v48, 1  ;;  %v5170_v15 = vrot.slane %v4940_v47, 3 }
 0x70a   : > { %v4952_v49 = vrot.slane %v4950_v46, 1  ;;  %v5066_v11 = vsel %vm1856_vm12, %v5063_v1, %v5065_v4 }
 0x70b   : > { %v4939_v41 = vsel %vm1186_vm9, %v4935_v39, %v4938_v40  ;;  %v11838_v39 = vld [vmem:[%s17399_s10 + $0x3] ss:$0 sm:$0xff] }
 0x70c   : > { %v4953_v51 = vsel %vm1186_vm9, %v4949_v38, %v4952_v49 }
 0x70d   : > { %13307 = vmatmul.mubr.msk.bf16.vlgmr.msra.gmra.mrb[60].mxu0 %vm1003_vm3, %v4608_v63  ;;  %v5061_v63 = vrot.slane %v4822_v33, 3 }
 0x70e   : > { %13310 = vmatprep.mubr.msk.bf16.mxu0 %vm1003_vm3, %v4610_v53  ;;  %13315 = vmatpush3.bf16.msra.mxu0 %v14790_v20  ;;  %v4942_v20 = vor.u32 %v4940_v47, %v4938_v40  ;;  %v4954_v53 = vshrl.u32 %v4824_v60, 16 }
 0x70f   : > { %13316 = vmatprep.subr.bf16.mxu0 %v14791_v55 }
 0x710   : > { %v4946_v45 = vsel %vm1186_vm9, %v4942_v20, %v4945_v42 }
 0x712   : > { %13317 = vmatpush3.bf16.msra.mxu0 %v14791_v55  ;;  %v5060_v55 = vrot.slane %v4821_v31, 3 }
 0x713   : > { %13326 = vmatprep.subr.bf16.mxu0 %v14792_v9 }
 0x714   : > { %v5062_v62 = vsel %vm1856_vm12, %v5060_v55, %v5061_v63 }
 0x715   : > { %13311 = vmatmul.mubr.msk.bf16.gmra.mrb[64].mxu0 %vm1003_vm3, %v4609_v52  ;;  %v14798_v52 = vld [vmem:[%s17397_s8 + $0x220] sm:$0xff]  }
 0x716   : > { %13318 = vmatprep.mubr.msk.bf16.mxu0 %vm1003_vm3, %v4717_v57  ;;  %v14800_v57 = vld [vmem:[%s17397_s8 + $0x230] sm:$0xff]  }
 0x71d   : > { %13319 = vmatmul.mubr.msk.bf16.vlgmr.msra.gmra.mrb[60].mxu0 %vm1003_vm3, %v4721_v54 }
 0x71e   : > { %13322 = vmatprep.mubr.msk.bf16.mxu0 %vm1003_vm3, %v4725_v25  ;;  %13327 = vmatpush3.bf16.msra.mxu0 %v14792_v9  ;;  %v5064_v9 = vsel %vm1856_vm12, %v5061_v63, %v5063_v1  ;;  %v5178_v25 = vrot.slane %v4954_v53, 3 }
 0x71f   : > { %13328 = vmatprep.subr.bf16.mxu0 %v14793_v24 }
 0x722   : > { %13329 = vmatpush3.bf16.msra.mxu0 %v14793_v24  ;;  %v5175_v24 = vrot.slane %v4943_v7, 4 }
 0x723   : > { %13338 = vmatprep.subr.bf16.mxu0 %v14794_v27 }
 0x725   : > { %13323 = vmatmul.mubr.msk.bf16.gmra.mrb[64].mxu0 %vm1003_vm3, %v4722_v56  ;;  %v5171_v56 = vrot.slane %v4936_v48, 4  ;;  %v5278_v48 = vpack.c.bf16 %v4378_v59, %v4378_v59 }
 0x726   : > { %13330 = vmatprep.mubr.msk.bf16.mxu0 %vm1003_vm3, %v4821_v31  ;;  %v5176_v31 = vor.u32 %v5175_v24, %v5174_v19 }
 0x727   : > { %v5172_v17 = vor.u32 %v5171_v56, %v5170_v15  ;;  %v3321_v15 = vld [vmem:[#allocation2 + $0x38] sm:$0x1] }
 0x729   : > { %v5173_v54 = vsel %vm1506_vm11, %v5169_v23, %v5172_v17 }
 0x72d   : > { %13331 = vmatmul.mubr.msk.bf16.vlgmr.msra.gmra.mrb[60].mxu0 %vm1003_vm3, %v4822_v33  ;;  %v14801_v33 = vld [vmem:[%s17397_s8 + $0x238] sm:$0xff]  }
 0x72e   : > { %13334 = vmatprep.mubr.msk.bf16.mxu0 %vm1003_vm3, %v4823_v35  ;;  %13339 = vmatpush3.bf16.msra.mxu0 %v14794_v27  ;;  %v5179_v27 = vrot.slane %v4950_v46, 4 }
 0x72f   : > { %13340 = vmatprep.subr.bf16.mxu0 %v14795_v34 }
 0x730   : > { %v5180_v32 = vor.u32 %v5179_v27, %v5178_v25 }
 0x732   : > { %13341 = vmatpush3.bf16.msra.mxu0 %v14795_v34  ;;  %v5177_v34 = vsel %vm1506_vm11, %v5172_v17, %v5176_v31  ;;  %v5181_v35 = vsel %vm1506_vm11, %v5176_v31, %v5180_v32  ;;  %v5569_v31 = vld [vmem:[#allocation2] sm:$0xff] }
 0x733   : > { %13350 = vmatprep.subr.bf16.mxu0 %v14796_v8 }
 0x735   : > { %13335 = vmatmul.mubr.msk.bf16.gmra.mrb[64].mxu0 %vm1003_vm3, %v4824_v60 }
 0x736   : > { %13342 = vmatprep.mubr.msk.bf16.mxu0 %vm1003_vm3, %v4939_v41 }
 0x73d   : > { %13343 = vmatmul.mubr.msk.bf16.vlgmr.msra.gmra.mrb[60].mxu0 %vm1003_vm3, %v4946_v45 }
 0x73e   : > { %13346 = vmatprep.mubr.msk.bf16.mxu0 %vm1003_vm3, %v4953_v51  ;;  %13351 = vmatpush3.bf16.msra.mxu0 %v14796_v8  ;;  %v14802_v8 = vld [vmem:[%s17400_s11] sm:$0xff]  }
 0x73f   : > { %13352 = vmatprep.subr.bf16.mxu0 %v14797_v58  ;;  %13386 = vmatprep.subr.bf16.mxu1 %v14802_v8 }
 0x740   : > { %13387 = vmatpush3.bf16.msra.mxu1 %v14802_v8 }
 0x742   : > { %13353 = vmatpush3.bf16.msra.mxu0 %v14797_v58 }
 0x743   : > { %13362 = vmatprep.subr.bf16.mxu0 %v14798_v52 }
 0x745   : > { %13347 = vmatmul.mubr.msk.bf16.gmra.mrb[64].mxu0 %vm1003_vm3, %v4954_v53 }
 0x746   : > { %13354 = vmatprep.mubr.msk.bf16.mxu0 %vm1003_vm3, %v5062_v62 }
 0x74d   : > { %13355 = vmatmul.mubr.msk.bf16.vlgmr.msra.gmra.mrb[60].mxu0 %vm1003_vm3, %v5064_v9 }
 0x74e   : > { %13358 = vmatprep.mubr.msk.bf16.mxu0 %vm1003_vm3, %v5066_v11  ;;  %13363 = vmatpush3.bf16.msra.mxu0 %v14798_v52 }
 0x74f   : > { %13364 = vmatprep.subr.bf16.mxu0 %v14799_v5 }
 0x752   : > { %13365 = vmatpush3.bf16.msra.mxu0 %v14799_v5 }
 0x753   : > { %13374 = vmatprep.subr.bf16.mxu0 %v14800_v57 }
 0x755   : > { %13359 = vmatmul.mubr.msk.bf16.gmra.mrb[64].mxu0 %vm1003_vm3, %v5065_v4 }
 0x756   : > { %13366 = vmatprep.mubr.msk.bf16.mxu0 %vm1003_vm3, %v5173_v54 }
 0x75d   : > { %13367 = vmatmul.mubr.msk.bf16.vlgmr.msra.gmra.mrb[60].mxu0 %vm1003_vm3, %v5177_v34 }
 0x75e   : > { %13370 = vmatprep.mubr.msk.bf16.mxu0 %vm1003_vm3, %v5181_v35  ;;  %13375 = vmatpush3.bf16.msra.mxu0 %v14800_v57 }
 0x75f   : > { %13376 = vmatprep.subr.bf16.mxu0 %v14801_v33 }
 0x762   : > { %13377 = vmatpush3.bf16.msra.mxu0 %v14801_v33 }
 0x765   : > { %13371 = vmatmul.mubr.msk.bf16.gmra.mrb[64].mxu0 %vm1003_vm3, %v5178_v25 }
 0x766   : > { %13378 = vmatprep.mubr.msk.bf16.mxu0 %vm1003_vm3, %v16045_v2  ;;  %v14803_v2 = vld [vmem:[%s17400_s11 + $0x8] sm:$0xff]  }
 0x767   : > { %13388 = vmatprep.subr.bf16.mxu1 %v14803_v2 }
 0x768   : > { %13389 = vmatpush3.bf16.msra.mxu1 %v14803_v2 }
 0x76d   : > { %13379 = vmatmul.mubr.msk.bf16.vlgmr.msra.gmra.mrb[60].mxu0 %vm1003_vm3, %v16057_v28  ;;  %v16194_v28 = vld [vmem:[%s17397_s8 + $0x250] sm:$0xff]  }
 0x76e   : > { %13382 = vmatprep.mubr.msk.bf16.mxu0 %vm1003_vm3, %v5277_v36  ;;  %13398 = vmatprep.subr.bf16.mxu1 %v16194_v28 }
 0x775   : > { %13383 = vmatmul.mubr.msk.bf16.gmra.mrb[64].mxu0 %vm1003_vm3, %v5278_v48 }
 0x840   : > { %v13380_v26 = vpop.f32.mrb[60].mxu0 }
 0x841   : > { %v5383_v7 = vmul.f32 %v13380_v26, %v11836_v29  ;;  %v5336_v60 = vpop.f32.mrb[61].mxu0  ;;  %v14805_v26 = vld [vmem:[%s17397_s8 + $0x258] sm:$0xff]  }
 0x842   : > { %v5381_v40 = vmul.f32 %v11836_v29, %v5336_v60  ;;  %v13381_v41 = vpop.f32.mrb[62].mxu0 }
 0x843   : > { %v5398_v42 = vadd.f32 %v11838_v39, %v5383_v7  ;;  %v5384_v44 = vmul.f32 %v13381_v41, %v11836_v29  ;;  %v5339_v46 = vpop.f32.mrb[63].mxu0  ;;  %v14806_v41 = vld [vmem:[%s17397_s8 + $0x240] sm:$0xff]  }
 0x844   : > { %v5396_v47 = vadd.f32 %v11838_v39, %v5381_v40  ;;  %v5382_v38 = vmul.f32 %v11836_v29, %v5339_v46 }
 0x845   : > { %v5405_v20 = vadd.f32 %v5398_v42, %v15857_v0  ;;  %v5399_v49 = vadd.f32 %v11838_v39, %v5384_v44 }
 0x846   : > { %v5403_v58 = vadd.f32 %v5396_v47, %v15848_v14  ;;  %v5397_v45 = vadd.f32 %v11838_v39, %v5382_v38 }
 0x847   : > { %v5412_v51 = vmax.f32 %v5405_v20, 0.0  ;;  %v5406_v52 = vadd.f32 %v5399_v49, %v15867_v18 }
 0x848   : > { %v5410_v55 = vmax.f32 %v5403_v58, 0.0  ;;  %v5404_v63 = vadd.f32 %v5397_v45, %v15855_v16  ;;  %v13384_v53 = vpop.f32.mrb[64].mxu0 }
 0x849   : > { %v5419_v62 = vmul.f32 %v5412_v51, %v15644_v12  ;;  %v5413_v1 = vmax.f32 %v5406_v52, 0.0  ;;  %v5387_v4 = vmul.f32 %v13384_v53, %v11836_v29  ;;  %v5352_v5 = vpop.f32.mrb[65].mxu0 }
 0x84a   : > { %v5417_v9 = vmul.f32 %v5410_v55, %v15634_v61  ;;  %v5411_v10 = vmax.f32 %v5404_v63, 0.0  ;;  %v5385_v0 = vmul.f32 %v11836_v29, %v5352_v5  ;;  %v13385_v11 = vpop.f32.mrb[66].mxu0 }
 0x84b   : > { %5426 = vst.msk [vmem:[#allocation2 + $0x18] sm:$0xff] %vm1003_vm3, %v5419_v62  ;;  %v5420_v14 = vmul.f32 %v5413_v1, %v15650_v30  ;;  %v5402_v13 = vadd.f32 %v11838_v39, %v5387_v4  ;;  %v5355_v18 = vpop.f32.mrb[67].mxu0  ;;  %v14807_v4 = vld [vmem:[%s17397_s8 + $0x248] sm:$0xff]  }
 0x84c   : > { %5424 = vst.msk [vmem:[#allocation2 + $0x8] sm:$0xff] %vm1003_vm3, %v5417_v9  ;;  %v5418_v16 = vmul.f32 %v5411_v10, %v15642_v6  ;;  %v5400_v56 = vadd.f32 %v11838_v39, %v5385_v0  ;;  %v5386_v57 = vmul.f32 %v11836_v29, %v5355_v18  ;;  %v14808_v10 = vld [vmem:[%s17397_s8 + $0x260] sm:$0xff]   ;;  %v14809_v11 = vld [vmem:[%s17397_s8 + $0x268] sm:$0xff]  }
 0x84d   : > { %5427 = vst.msk [vmem:[#allocation2 + $0x20] sm:$0xff] %vm1003_vm3, %v5420_v14  ;;  %v5409_v23 = vadd.f32 %v5402_v13, %v3321_v15  ;;  %v14810_v14 = vld [vmem:[%s17397_s8 + $0x270] sm:$0xff]  }
 0x84e   : > { %5425 = vst.msk [vmem:[#allocation2 + $0x10] sm:$0xff] %vm1003_vm3, %v5418_v16  ;;  %v5407_v17 = vadd.f32 %v5400_v56, %v15869_v3  ;;  %v5401_v19 = vadd.f32 %v11838_v39, %v5386_v57  ;;  %v14811_v57 = vld [vmem:[%s17397_s8 + $0x278] sm:$0xff]  }
 0x84f   : > { %v5416_v24 = vmax.f32 %v5409_v23, 0.0 }
 0x850   : > { %v5414_v54 = vmax.f32 %v5407_v17, 0.0  ;;  %v5408_v25 = vadd.f32 %v5401_v19, %v15877_v22 }
 0x851   : > { %v5423_v27 = vmul.f32 %v5416_v24, %v15658_v43 }
 0x852   : > { %v5421_v32 = vmul.f32 %v5414_v54, %v15646_v21  ;;  %v5415_v33 = vmax.f32 %v5408_v25, 0.0  ;;  %v5433_v48 = vld [vmem:[#allocation2 + $0x18] sm:$0xff] }
 0x853   : > { %5430 = vst.msk [vmem:[#allocation2 + $0x38] sm:$0x1] %vm1012_vm8, %v5423_v27  ;;  %v5431_v34 = vld [vmem:[#allocation2 + $0x8] sm:$0xff]  ;;  %v14812_v27 = vld [vmem:[%s17397_s8 + $0x280] sm:$0xff]  }
 0x854   : > { %5428 = vst.msk [vmem:[#allocation2 + $0x28] sm:$0xff] %vm1003_vm3, %v5421_v32  ;;  %v5422_v35 = vmul.f32 %v5415_v33, %v15663_v50  ;;  %v5434_v36 = vld [vmem:[#allocation2 + $0x20] sm:$0xff]  ;;  %v16222_v3 = vpack.c.bf16 %v5431_v34, %v5569_v31 }
 0x855   : > { %v5432_v59 = vld [vmem:[#allocation2 + $0x10] sm:$0xff]  ;;  %v16230_v29 = vpack.c.bf16 %v5434_v36, %v5433_v48 }
 0x856   : > { %5429 = vst.msk [vmem:[#allocation2 + $0x30] sm:$0xff] %vm1003_vm3, %v5422_v35  ;;  %v16225_v22 = vpack.c.bf16 %v5432_v59, %v5431_v34  ;;  %v16227_v8 = vpack.c.bf16 %v5433_v48, %v5432_v59  ;;  %v5595_v2 = vshll.u32 %v16222_v3, 16  ;;  %v5593_v40 = vshrl.u32 %v16222_v3, 16 }
 0x857   : > { %v5803_v18 = vrot.slane %v16222_v3, 1 }
 0x858   : > { %13390 = vmatprep.mubr.msk.bf16.mxu1 %vm1003_vm3, %v16225_v22  ;;  %v5597_v39 = vrot.slane %v5595_v2, 1  ;;  %v5600_v7 = vshll.u32 %v16227_v8, 16  ;;  %v5604_v63 = vshrl.u32 %v16227_v8, 16  ;;  %v5804_v13 = vrot.slane %v16227_v8, 1 }
 0x859   : > { %13391 = vmatmul.mubr.msk.bf16.vlgmr.msra.gmra.mrb[16].mxu1 %vm1003_vm3, %v16230_v29  ;;  %v5910_v54 = vrot.slane %v5593_v40, 3  ;;  %v5911_v25 = vrot.slane %v5595_v2, 4  ;;  %v14813_v2 = vld [vmem:[%s17397_s8 + $0x288] sm:$0xff]  }
 0x85a   : > { %13399 = vmatpush3.bf16.msra.mxu1 %v16194_v28  ;;  %v5437_v42 = vld [vmem:[#allocation2 + $0x38] sm:$0x1]  ;;  %v5598_v47 = vor.u32 %v5597_v39, %v5593_v40  ;;  %v5602_v38 = vrot.slane %v5600_v7, 1  ;;  %v5805_v16 = vsel %vm1398_vm10, %v5803_v18, %v5804_v13  ;;  %v5913_v19 = vrot.slane %v5604_v63, 3 }
 0x85b   : > { %v5435_v60 = vld [vmem:[#allocation2 + $0x28] sm:$0xff]  ;;  %13400 = vmatprep.subr.bf16.mxu1 %v14805_v26  ;;  %v5441_v58 = vpack.c.bf16 %v5437_v42, %v5437_v42  ;;  %v5914_v24 = vrot.slane %v5600_v7, 4  ;;  %v5912_v32 = vor.u32 %v5911_v25, %v5910_v54  ;;  %v14814_v7 = vld [vmem:[%s17397_s8 + $0x290] sm:$0xff]   ;;  %v14815_v40 = vld [vmem:[%s17397_s8 + $0x298] sm:$0xff]   ;;  %v6129_v42 = vshrl.u32 %v16225_v22, 16 }
 0x85c   : > { %v16247_v44 = vpack.c.bf16 %v5435_v60, %v5434_v36  ;;  %v5603_v45 = vsel %vm1186_vm9, %v5598_v47, %v5602_v38  ;;  %v5606_v1 = vor.u32 %v5604_v63, %v5602_v38  ;;  %v6135_v47 = vshll.u32 %v16230_v29, 16  ;;  %v14816_v38 = vld [vmem:[%s17397_s8 + $0x2a0] sm:$0xff]  }
 0x85d   : > { %v16249_v46 = vld [vmem:[#allocation2 + $0x30] sm:$0xff]  ;;  %v5915_v31 = vor.u32 %v5914_v24, %v5913_v19 }
 0x85e   : > { %v16252_v20 = vpack.c.bf16 %v16249_v46, %v5435_v60  ;;  %13401 = vmatpush3.bf16.msra.mxu1 %v14805_v26  ;;  %v5608_v28 = vshll.u32 %v16247_v44, 16  ;;  %v16257_v49 = vpack.c.bf16 %v16249_v46, %v16249_v46  ;;  %v5612_v55 = vshrl.u32 %v16247_v44, 16 }
 0x85f   : > { %13410 = vmatprep.subr.bf16.mxu1 %v14806_v41  ;;  %v5806_v15 = vrot.slane %v16247_v44, 1  ;;  %v5916_v36 = vsel %vm1506_vm11, %v5912_v32, %v5915_v31  ;;  %v6131_v60 = vshll.u32 %v16225_v22, 16  ;;  %v6370_v24 = vrot.slane %v6135_v47, 4 }
 0x860   : > { %13394 = vmatprep.mubr.msk.bf16.mxu1 %vm1003_vm3, %v16252_v20  ;;  %v5610_v51 = vrot.slane %v5608_v28, 1  ;;  %v5616_v52 = vshll.u32 %v16257_v49, 16  ;;  %v5620_v0 = vshrl.u32 %v16257_v49, 16  ;;  %v5808_v56 = vrot.slane %v16257_v49, 1 }
 0x861   : > { %13395 = vmatmul.mubr.msk.bf16.gmra.mrb[20].mxu1 %vm1003_vm3, %v5441_v58  ;;  %v5807_v23 = vsel %vm1398_vm10, %v5804_v13, %v5806_v15  ;;  %v5917_v33 = vrot.slane %v5612_v55, 3  ;;  %v5918_v34 = vrot.slane %v5608_v28, 4  ;;  %v16340_v28 = vld [vmem:[#allocation2 + $0x38] sm:$0xff]  ;;  %v6142_v58 = vshll.u32 %v16252_v20, 16 }
 0x862   : > { %13402 = vmatprep.mubr.msk.bf16.mxu1 %vm1003_vm3, %v5603_v45  ;;  %v5614_v53 = vor.u32 %v5612_v55, %v5610_v51  ;;  %v5618_v62 = vrot.slane %v5616_v52, 1  ;;  %v5611_v5 = vsel %vm1186_vm9, %v5606_v1, %v5610_v51  ;;  %v5809_v17 = vsel %vm1398_vm10, %v5806_v15, %v5808_v56 }
 0x863   : > { %v5921_v35 = vrot.slane %v5620_v0, 3  ;;  %v5922_v59 = vrot.slane %v5616_v52, 4  ;;  %v6023_v45 = vpack.c.bf16 %v16340_v28, %v16340_v28  ;;  %v6137_v51 = vrot.slane %v6135_v47, 1  ;;  %v14822_v47 = vld [vmem:[%s17397_s8 + $0x2e0] sm:$0xff]  }
 0x864   : > { %v5619_v9 = vsel %vm1186_vm9, %v5614_v53, %v5618_v62  ;;  %v6144_v55 = vrot.slane %v6142_v58, 1  ;;  %v6146_v63 = vshrl.u32 %v16252_v20, 16  ;;  %v6139_v62 = vshrl.u32 %v16230_v29, 16  ;;  %13506 = vmatprep.subr.bf16.mxu0 %v14822_v47 }
 0x865   : > { %v5923_v48 = vor.u32 %v5922_v59, %v5921_v35  ;;  %v6149_v53 = vshll.u32 %v6023_v45, 16  ;;  %v6260_v13 = vrot.slane %v16230_v29, 3  ;;  %v6153_v18 = vshrl.u32 %v6023_v45, 16  ;;  %v14821_v59 = vld [vmem:[%s17397_s8 + $0x2c8] sm:$0xff]   ;;  %13507 = vmatpush3.bf16.msra.mxu0 %v14822_v47 }
 0x866   : > { %v6148_v1 = vor.u32 %v6146_v63, %v6144_v55  ;;  %v6262_v15 = vrot.slane %v16252_v20, 3  ;;  %v6369_v19 = vrot.slane %v6139_v62, 3 }
 0x868   : > { %v6371_v25 = vor.u32 %v6370_v24, %v6369_v19 }
 0x869   : > { %13403 = vmatmul.mubr.msk.bf16.vlgmr.msra.gmra.mrb[24].mxu1 %vm1003_vm3, %v5611_v5  ;;  %v6151_v5 = vrot.slane %v6149_v53, 1 }
 0x86a   : > { %13406 = vmatprep.mubr.msk.bf16.mxu1 %vm1003_vm3, %v5619_v9  ;;  %13411 = vmatpush3.bf16.msra.mxu1 %v14806_v41  ;;  %v6133_v41 = vrot.slane %v6131_v60, 1  ;;  %v14817_v9 = vld [vmem:[%s17397_s8 + $0x2a8] sm:$0xff]  }
 0x86b   : > { %13412 = vmatprep.subr.bf16.mxu1 %v14807_v4 }
 0x86e   : > { %13413 = vmatpush3.bf16.msra.mxu1 %v14807_v4  ;;  %v6141_v4 = vor.u32 %v6139_v62, %v6137_v51 }
 0x86f   : > { %13422 = vmatprep.subr.bf16.mxu1 %v14808_v10 }
 0x871   : > { %13407 = vmatmul.mubr.msk.bf16.gmra.mrb[28].mxu1 %vm1003_vm3, %v5620_v0  ;;  %v6152_v0 = vsel %vm1186_vm9, %v6148_v1, %v6151_v5 }
 0x872   : > { %13414 = vmatprep.mubr.msk.bf16.mxu1 %vm1003_vm3, %v16222_v3  ;;  %v5919_v3 = vor.u32 %v5918_v34, %v5917_v33  ;;  %v6377_v33 = vrot.slane %v6153_v18, 3  ;;  %v6378_v34 = vrot.slane %v6149_v53, 4 }
 0x874   : > { %v5920_v26 = vsel %vm1506_vm11, %v5915_v31, %v5919_v3  ;;  %v5924_v39 = vsel %vm1506_vm11, %v5919_v3, %v5923_v48  ;;  %v6374_v31 = vrot.slane %v6142_v58, 4 }
 0x879   : > { %13415 = vmatmul.mubr.msk.bf16.vlgmr.msra.gmra.mrb[24].mxu1 %vm1003_vm3, %v16227_v8 }
 0x87a   : > { %13418 = vmatprep.mubr.msk.bf16.mxu1 %vm1003_vm3, %v16247_v44  ;;  %13423 = vmatpush3.bf16.msra.mxu1 %v14808_v10  ;;  %v6145_v10 = vsel %vm1186_vm9, %v6141_v4, %v6144_v55 }
 0x87b   : > { %13424 = vmatprep.subr.bf16.mxu1 %v14809_v11 }
 0x87e   : > { %13425 = vmatpush3.bf16.msra.mxu1 %v14809_v11  ;;  %v14818_v11 = vld [vmem:[%s17397_s8 + $0x2b0] sm:$0xff]  }
 0x87f   : > { %13434 = vmatprep.subr.bf16.mxu1 %v14810_v14 }
 0x881   : > { %13419 = vmatmul.mubr.msk.bf16.gmra.mrb[28].mxu1 %vm1003_vm3, %v16257_v49  ;;  %v6134_v49 = vor.u32 %v6133_v41, %v6129_v42 }
 0x882   : > { %13426 = vmatprep.mubr.msk.bf16.mxu1 %vm1003_vm3, %v5805_v16 }
 0x883   : > { %v6138_v52 = vsel %vm1186_vm9, %v6134_v49, %v6137_v51  ;;  %v11938_v49 = vld [vmem:[%s17398_s9 + $0x4] ss:$0 sm:$0xff] }
 0x889   : > { %13427 = vmatmul.mubr.msk.bf16.vlgmr.msra.gmra.mrb[24].mxu1 %vm1003_vm3, %v5807_v23  ;;  %v6366_v23 = vrot.slane %v6129_v42, 3 }
 0x88a   : > { %13430 = vmatprep.mubr.msk.bf16.mxu1 %vm1003_vm3, %v5809_v17  ;;  %13435 = vmatpush3.bf16.msra.mxu1 %v14810_v14  ;;  %v6259_v14 = vrot.slane %v16225_v22, 3  ;;  %v6367_v17 = vrot.slane %v6131_v60, 4 }
 0x88b   : > { %13436 = vmatprep.subr.bf16.mxu1 %v14811_v57 }
 0x88c   : > { %v6261_v16 = vsel %vm1856_vm12, %v6259_v14, %v6260_v13  ;;  %v6368_v54 = vor.u32 %v6367_v17, %v6366_v23 }
 0x88e   : > { %13437 = vmatpush3.bf16.msra.mxu1 %v14811_v57  ;;  %v14819_v57 = vld [vmem:[%s17397_s8 + $0x2b8] sm:$0xff]   ;;  %v6372_v32 = vsel %vm1506_vm11, %v6368_v54, %v6371_v25 }
 0x88f   : > { %13446 = vmatprep.subr.bf16.mxu1 %v14812_v27 }
 0x891   : > { %13431 = vmatmul.mubr.msk.bf16.gmra.mrb[28].mxu1 %vm1003_vm3, %v5808_v56  ;;  %v6264_v56 = vrot.slane %v6023_v45, 3 }
 0x892   : > { %13438 = vmatprep.mubr.msk.bf16.mxu1 %vm1003_vm3, %v5916_v36  ;;  %v6379_v36 = vor.u32 %v6378_v34, %v6377_v33 }
 0x899   : > { %13439 = vmatmul.mubr.msk.bf16.vlgmr.msra.gmra.mrb[24].mxu1 %vm1003_vm3, %v5920_v26  ;;  %v5577_v26 = vld [vmem:[#allocation2 + $0x40] sm:$0x1] }
 0x89a   : > { %13442 = vmatprep.mubr.msk.bf16.mxu1 %vm1003_vm3, %v5924_v39  ;;  %13447 = vmatpush3.bf16.msra.mxu1 %v14812_v27  ;;  %v6373_v27 = vrot.slane %v6146_v63, 3  ;;  %v6477_v39 = vpack.c.bf16 %v5577_v26, %v5577_v26 }
 0x89b   : > { %13448 = vmatprep.subr.bf16.mxu1 %v14813_v2 }
 0x89e   : > { %13449 = vmatpush3.bf16.msra.mxu1 %v14813_v2  ;;  %v6476_v2 = vpack.c.bf16 %v16340_v28, %v16249_v46  ;;  %v16418_v28 = vld [vmem:[%s17397_s8 + $0x2d0] sm:$0xff]  }
 0x89f   : > { %13458 = vmatprep.subr.bf16.mxu1 %v14814_v7 }
 0x8a1   : > { %13443 = vmatmul.mubr.msk.bf16.gmra.mrb[28].mxu1 %vm1003_vm3, %v5921_v35  ;;  %v6375_v35 = vor.u32 %v6374_v31, %v6373_v27 }
 0x8a2   : > { %13450 = vmatprep.mubr.msk.bf16.mxu1 %vm1003_vm3, %v16225_v22  ;;  %v6263_v22 = vsel %vm1856_vm12, %v6260_v13, %v6262_v15 }
 0x8a3   : > { %v6376_v3 = vsel %vm1506_vm11, %v6371_v25, %v6375_v35  ;;  %v6380_v48 = vsel %vm1506_vm11, %v6375_v35, %v6379_v36 }
 0x8a9   : > { %13451 = vmatmul.mubr.msk.bf16.vlgmr.msra.gmra.mrb[24].mxu1 %vm1003_vm3, %v16230_v29  ;;  %v6265_v29 = vsel %vm1856_vm12, %v6262_v15, %v6264_v56 }
 0x8aa   : > { %13454 = vmatprep.mubr.msk.bf16.mxu1 %vm1003_vm3, %v16252_v20  ;;  %13459 = vmatpush3.bf16.msra.mxu1 %v14814_v7  ;;  %v14820_v20 = vld [vmem:[%s17397_s8 + $0x2c0] sm:$0xff]  }
 0x8ab   : > { %13460 = vmatprep.subr.bf16.mxu1 %v14815_v40 }
 0x8ae   : > { %13461 = vmatpush3.bf16.msra.mxu1 %v14815_v40 }
 0x8af   : > { %13470 = vmatprep.subr.bf16.mxu1 %v14816_v38 }
 0x8b1   : > { %13455 = vmatmul.mubr.msk.bf16.gmra.mrb[28].mxu1 %vm1003_vm3, %v6023_v45  ;;  %v11940_v45 = vld [vmem:[%s17399_s10 + $0x4] ss:$0 sm:$0xff] }
 0x8b2   : > { %13462 = vmatprep.mubr.msk.bf16.mxu1 %vm1003_vm3, %v6138_v52 }
 0x8b9   : > { %13463 = vmatmul.mubr.msk.bf16.vlgmr.msra.gmra.mrb[24].mxu1 %vm1003_vm3, %v6145_v10 }
 0x8ba   : > { %13466 = vmatprep.mubr.msk.bf16.mxu1 %vm1003_vm3, %v6152_v0  ;;  %13471 = vmatpush3.bf16.msra.mxu1 %v14816_v38  ;;  %v14823_v38 = vld [vmem:[%s17397_s8 + $0x2e8] sm:$0xff]  }
 0x8bb   : > { %13472 = vmatprep.subr.bf16.mxu1 %v14817_v9  ;;  %13508 = vmatprep.subr.bf16.mxu0 %v14823_v38 }
 0x8bc   : > { %13509 = vmatpush3.bf16.msra.mxu0 %v14823_v38 }
 0x8bd   : > { %13518 = vmatprep.subr.bf16.mxu0 %v16418_v28 }
 0x8be   : > { %13473 = vmatpush3.bf16.msra.mxu1 %v14817_v9 }
 0x8bf   : > { %13482 = vmatprep.subr.bf16.mxu1 %v14818_v11 }
 0x8c1   : > { %13467 = vmatmul.mubr.msk.bf16.gmra.mrb[28].mxu1 %vm1003_vm3, %v6153_v18 }
 0x8c2   : > { %13474 = vmatprep.mubr.msk.bf16.mxu1 %vm1003_vm3, %v6261_v16 }
 0x8c9   : > { %13475 = vmatmul.mubr.msk.bf16.vlgmr.msra.gmra.mrb[24].mxu1 %vm1003_vm3, %v6263_v22 }
 0x8ca   : > { %13478 = vmatprep.mubr.msk.bf16.mxu1 %vm1003_vm3, %v6265_v29  ;;  %13483 = vmatpush3.bf16.msra.mxu1 %v14818_v11 }
 0x8cb   : > { %13484 = vmatprep.subr.bf16.mxu1 %v14819_v57 }
 0x8ce   : > { %13485 = vmatpush3.bf16.msra.mxu1 %v14819_v57 }
 0x8cf   : > { %13494 = vmatprep.subr.bf16.mxu1 %v14820_v20 }
 0x8d1   : > { %13479 = vmatmul.mubr.msk.bf16.gmra.mrb[28].mxu1 %vm1003_vm3, %v6264_v56 }
 0x8d2   : > { %13486 = vmatprep.mubr.msk.bf16.mxu1 %vm1003_vm3, %v6372_v32 }
 0x8d9   : > { %13487 = vmatmul.mubr.msk.bf16.vlgmr.msra.gmra.mrb[24].mxu1 %vm1003_vm3, %v6376_v3 }
 0x8da   : > { %13490 = vmatprep.mubr.msk.bf16.mxu1 %vm1003_vm3, %v6380_v48  ;;  %13495 = vmatpush3.bf16.msra.mxu1 %v14820_v20 }
 0x8db   : > { %13496 = vmatprep.subr.bf16.mxu1 %v14821_v59 }
 0x8de   : > { %13497 = vmatpush3.bf16.msra.mxu1 %v14821_v59 }
 0x8e1   : > { %13491 = vmatmul.mubr.msk.bf16.gmra.mrb[28].mxu1 %vm1003_vm3, %v6377_v33  ;;  %v6623_v33 = vld [vmem:[#allocation3] sm:$0xff] }
 0x8e2   : > { %13498 = vmatprep.mubr.msk.bf16.mxu1 %vm1003_vm3, %v16227_v8 }
 0x8e9   : > { %13499 = vmatmul.mubr.msk.bf16.vlgmr.msra.gmra.mrb[24].mxu1 %vm1003_vm3, %v16247_v44 }
 0x8ea   : > { %13502 = vmatprep.mubr.msk.bf16.mxu1 %vm1003_vm3, %v6476_v2 }
 0x8f1   : > { %13503 = vmatmul.mubr.msk.bf16.gmra.mrb[28].mxu1 %vm1003_vm3, %v6477_v39 }
 0x92c   : > { %v16395_v7 = vpop.f32.mrb[16].mxu1 }
 0x92d   : > { %v16397_v60 = vpop.f32.mrb[17].mxu1 }
 0x92e   : > { %v16399_v40 = vpop.f32.mrb[18].mxu1 }
 0x92f   : > { %v16401_v41 = vpop.f32.mrb[19].mxu1 }
 0x934   : > { %v16403_v8 = vpop.f32.mrb[20].mxu1 }
 0x935   : > { %v16405_v46 = vpop.f32.mrb[21].mxu1 }
 0x936   : > { %v13397_v42 = vpop.f32.mrb[22].mxu1 }
 0x937   : > { %v16407_v44 = vpop.f32.mrb[23].mxu1 }
 0x9bc   : > { %v13500_v58 = vpop.f32.mrb[24].mxu1 }
 0x9bd   : > { %v6582_v51 = vmul.f32 %v13500_v58, %v11938_v49  ;;  %v6535_v52 = vpop.f32.mrb[25].mxu1 }
 0x9be   : > { %v6580_v55 = vmul.f32 %v11938_v49, %v6535_v52  ;;  %v13501_v63 = vpop.f32.mrb[26].mxu1 }
 0x9bf   : > { %v6597_v53 = vadd.f32 %v11940_v45, %v6582_v51  ;;  %v6583_v62 = vmul.f32 %v13501_v63, %v11938_v49  ;;  %v6538_v1 = vpop.f32.mrb[27].mxu1 }
 0x9c0   : > { %v6595_v4 = vadd.f32 %v11940_v45, %v6580_v55  ;;  %v6581_v5 = vmul.f32 %v11938_v49, %v6538_v1 }
 0x9c1   : > { %v6604_v9 = vmax.f32 %v6597_v53, 0.0  ;;  %v6598_v10 = vadd.f32 %v11940_v45, %v6583_v62 }
 0x9c2   : > { %v6602_v0 = vmax.f32 %v6595_v4, 0.0  ;;  %v6596_v11 = vadd.f32 %v11940_v45, %v6581_v5 }
 0x9c3   : > { %v6611_v14 = vmul.f32 %v6604_v9, %v15644_v12  ;;  %v6605_v13 = vmax.f32 %v6598_v10, 0.0 }
 0x9c4   : > { %v6609_v18 = vmul.f32 %v6602_v0, %v15634_v61  ;;  %v6603_v16 = vmax.f32 %v6596_v11, 0.0  ;;  %v13504_v15 = vpop.f32.mrb[28].mxu1  ;;  %v14825_v0 = vld [vmem:[%s17397_s8 + $0x2d8] sm:$0xff]  }
 0x9c5   : > { %6618 = vst.msk [vmem:[#allocation3 + $0x18] sm:$0xff] %vm1003_vm3, %v6611_v14  ;;  %v6612_v56 = vmul.f32 %v6605_v13, %v15650_v30  ;;  %v6586_v57 = vmul.f32 %v13504_v15, %v11938_v49  ;;  %v6551_v22 = vpop.f32.mrb[29].mxu1 }
 0x9c6   : > { %6616 = vst.msk [vmem:[#allocation3 + $0x8] sm:$0xff] %vm1003_vm3, %v6609_v18  ;;  %v6610_v23 = vmul.f32 %v6603_v16, %v15642_v6  ;;  %v6584_v29 = vmul.f32 %v11938_v49, %v6551_v22  ;;  %v13505_v17 = vpop.f32.mrb[30].mxu1  ;;  %v14826_v16 = vld [vmem:[%s17397_s8 + $0x2f0] sm:$0xff]  }
 0x9c7   : > { %6619 = vst.msk [vmem:[#allocation3 + $0x20] sm:$0xff] %vm1003_vm3, %v6612_v56  ;;  %v6601_v19 = vadd.f32 %v11940_v45, %v6586_v57  ;;  %v6554_v24 = vpop.f32.mrb[31].mxu1  ;;  %v14827_v56 = vld [vmem:[%s17397_s8 + $0x2f8] sm:$0xff]  }
 0x9c8   : > { %6617 = vst.msk [vmem:[#allocation3 + $0x10] sm:$0xff] %vm1003_vm3, %v6610_v23  ;;  %v6599_v20 = vadd.f32 %v11940_v45, %v6584_v29  ;;  %v6585_v54 = vmul.f32 %v11938_v49, %v6554_v24 }
 0x9c9   : > { %v6608_v25 = vmax.f32 %v6601_v19, 0.0  ;;  %v14829_v19 = vld [vmem:[%s17397_s8 + $0x308] sm:$0xff]  }
 0x9ca   : > { %v6606_v27 = vmax.f32 %v6599_v20, 0.0  ;;  %v6600_v31 = vadd.f32 %v11940_v45, %v6585_v54 }
 0x9cb   : > { %v6615_v32 = vmul.f32 %v6608_v25, %v15658_v43 }
 0x9cc   : > { %v6613_v34 = vmul.f32 %v6606_v27, %v15646_v21  ;;  %v6607_v35 = vmax.f32 %v6600_v31, 0.0  ;;  %v16447_v2 = vld [vmem:[#allocation3 + $0x18] sm:$0xff] }
 0x9cd   : > { %6622 = vst.msk [vmem:[#allocation3 + $0x38] sm:$0x1] %vm1012_vm8, %v6615_v32  ;;  %v16438_v36 = vld [vmem:[#allocation3 + $0x8] sm:$0xff] }
 0x9ce   : > { %6620 = vst.msk [vmem:[#allocation3 + $0x28] sm:$0xff] %vm1003_vm3, %v6613_v34  ;;  %v6614_v59 = vmul.f32 %v6607_v35, %v15663_v50  ;;  %v16443_v3 = vpack.c.bf16 %v16438_v36, %v6623_v33  ;;  %v16457_v45 = vld [vmem:[#allocation3 + $0x20] sm:$0xff]  ;;  %v14830_v32 = vld [vmem:[%s17397_s8 + $0x310] sm:$0xff]  }
 0x9cf   : > { %v16445_v48 = vld [vmem:[#allocation3 + $0x10] sm:$0xff] }
 0x9d0   : > { %6621 = vst.msk [vmem:[#allocation3 + $0x30] sm:$0xff] %vm1003_vm3, %v6614_v59  ;;  %v16452_v26 = vpack.c.bf16 %v16447_v2, %v16445_v48  ;;  %v6649_v39 = vshll.u32 %v16443_v3, 16  ;;  %v6647_v42 = vshrl.u32 %v16443_v3, 16  ;;  %v6857_v22 = vrot.slane %v16443_v3, 1 }
 0x9d2   : > { %v6651_v47 = vrot.slane %v6649_v39, 1  ;;  %v6654_v38 = vshll.u32 %v16452_v26, 16  ;;  %v6658_v53 = vshrl.u32 %v16452_v26, 16  ;;  %v6858_v57 = vrot.slane %v16452_v26, 1 }
 0x9d3   : > { %v6964_v27 = vrot.slane %v6647_v42, 3  ;;  %v6965_v31 = vrot.slane %v6649_v39, 4 }
 0x9d4   : > { %v6652_v49 = vor.u32 %v6651_v47, %v6647_v42  ;;  %v6656_v58 = vrot.slane %v6654_v38, 1  ;;  %v6859_v23 = vsel %vm1398_vm10, %v6857_v22, %v6858_v57  ;;  %v6967_v54 = vrot.slane %v6658_v53, 3 }
 0x9d5   : > { %v16459_v51 = vld [vmem:[#allocation3 + $0x28] sm:$0xff]  ;;  %v6968_v25 = vrot.slane %v6654_v38, 4  ;;  %v6966_v34 = vor.u32 %v6965_v31, %v6964_v27 }
 0x9d6   : > { %v6657_v52 = vsel %vm1186_vm9, %v6652_v49, %v6656_v58  ;;  %v16464_v55 = vpack.c.bf16 %v16459_v51, %v16457_v45  ;;  %v6660_v4 = vor.u32 %v6658_v53, %v6656_v58  ;;  %v14831_v49 = vld [vmem:[%s17397_s8 + $0x318] sm:$0xff]   ;;  %v14832_v53 = vld [vmem:[%s17397_s8 + $0x320] sm:$0xff]  }
 0x9d7   : > { %13510 = vmatprep.mubr.msk.bf16.mxu0 %vm1003_vm3, %v6657_v52  ;;  %v16467_v63 = vld [vmem:[#allocation3 + $0x30] sm:$0xff]  ;;  %v6969_v33 = vor.u32 %v6968_v25, %v6967_v54 }
 0x9d8   : > { %v6662_v62 = vshll.u32 %v16464_v55, 16  ;;  %v6635_v1 = vpack.c.bf16 %v16467_v63, %v16467_v63  ;;  %v6666_v9 = vshrl.u32 %v16464_v55, 16  ;;  %v6860_v29 = vrot.slane %v16464_v55, 1 }
 0x9d9   : > { %v6970_v47 = vsel %vm1506_vm11, %v6966_v34, %v6969_v33 }
 0x9da   : > { %v6664_v5 = vrot.slane %v6662_v62, 1  ;;  %v6670_v10 = vshll.u32 %v6635_v1, 16  ;;  %v6674_v15 = vshrl.u32 %v6635_v1, 16  ;;  %v6862_v17 = vrot.slane %v6635_v1, 1 }
 0x9db   : > { %v6861_v24 = vsel %vm1398_vm10, %v6858_v57, %v6860_v29  ;;  %v6971_v35 = vrot.slane %v6666_v9, 3  ;;  %v6972_v59 = vrot.slane %v6662_v62, 4  ;;  %v7074_v62 = vpack.c.bf16 %v16445_v48, %v16438_v36 }
 0x9dc   : > { %v6665_v11 = vsel %vm1186_vm9, %v6660_v4, %v6664_v5  ;;  %v6668_v14 = vor.u32 %v6666_v9, %v6664_v5  ;;  %v6672_v13 = vrot.slane %v6670_v10, 1  ;;  %v6863_v20 = vsel %vm1398_vm10, %v6860_v29, %v6862_v17  ;;  %v14833_v5 = vld [vmem:[%s17397_s8 + $0x328] sm:$0xff]  }
 0x9dd   : > { %13511 = vmatmul.mubr.msk.bf16.vlgmr.msra.gmra.mrb[68].mxu0 %vm1003_vm3, %v6665_v11  ;;  %v6976_v38 = vrot.slane %v6670_v10, 4  ;;  %v6973_v39 = vor.u32 %v6972_v59, %v6971_v35  ;;  %v7075_v4 = vpack.c.bf16 %v16457_v45, %v16447_v2  ;;  %v7076_v9 = vpack.c.bf16 %v16467_v63, %v16459_v51  ;;  %v14834_v2 = vld [vmem:[%s17397_s8 + $0x330] sm:$0xff]   ;;  %v16543_v45 = vld [vmem:[#allocation3 + $0x38] sm:$0xff] }
 0x9de   : > { %v6673_v18 = vsel %vm1186_vm9, %v6668_v14, %v6672_v13  ;;  %13519 = vmatpush3.bf16.msra.mxu0 %v16418_v28  ;;  %v14828_v28 = vld [vmem:[%s17397_s8 + $0x300] sm:$0xff]   ;;  %v7183_v36 = vshrl.u32 %v7074_v62, 16  ;;  %v7077_v51 = vpack.c.bf16 %v16543_v45, %v16543_v45 }
 0x9df   : > { %13514 = vmatprep.mubr.msk.bf16.mxu0 %vm1003_vm3, %v6673_v18  ;;  %13520 = vmatprep.subr.bf16.mxu0 %v14825_v0  ;;  %v6974_v58 = vsel %vm1506_vm11, %v6969_v33, %v6973_v39  ;;  %v7189_v48 = vshll.u32 %v7075_v4, 16  ;;  %v7196_v11 = vshll.u32 %v7076_v9, 16  ;;  %v7316_v27 = vrot.slane %v7076_v9, 3 }
 0x9e0   : > { %v7207_v54 = vshrl.u32 %v7077_v51, 16  ;;  %v7318_v31 = vrot.slane %v7077_v51, 3  ;;  %v7420_v34 = vrot.slane %v7183_v36, 3 }
 0x9e1   : > { %v7191_v14 = vrot.slane %v7189_v48, 1  ;;  %v7198_v18 = vrot.slane %v7196_v11, 1 }
 0x9e2   : > { %13521 = vmatpush3.bf16.msra.mxu0 %v14825_v0  ;;  %v7319_v35 = vsel %vm1856_vm12, %v7316_v27, %v7318_v31 }
 0x9e3   : > { %13530 = vmatprep.subr.bf16.mxu0 %v14826_v16 }
 0x9e5   : > { %13515 = vmatmul.mubr.msk.bf16.gmra.mrb[72].mxu0 %vm1003_vm3, %v6674_v15 }
 0x9e6   : > { %13522 = vmatprep.mubr.msk.bf16.mxu0 %vm1003_vm3, %v16443_v3  ;;  %v6975_v3 = vrot.slane %v6674_v15, 3  ;;  %v7203_v15 = vshll.u32 %v7077_v51, 16 }
 0x9e8   : > { %v6977_v42 = vor.u32 %v6976_v38, %v6975_v3  ;;  %v7205_v22 = vrot.slane %v7203_v15, 1  ;;  %v14838_v38 = vld [vmem:[%s17397_s8 + $0x350] sm:$0xff]  }
 0x9ea   : > { %v6978_v52 = vsel %vm1506_vm11, %v6973_v39, %v6977_v42 }
 0x9ed   : > { %13523 = vmatmul.mubr.msk.bf16.vlgmr.msra.gmra.mrb[68].mxu0 %vm1003_vm3, %v16452_v26 }
 0x9ee   : > { %13526 = vmatprep.mubr.msk.bf16.mxu0 %vm1003_vm3, %v16464_v55  ;;  %13531 = vmatpush3.bf16.msra.mxu0 %v14826_v16  ;;  %v7200_v16 = vshrl.u32 %v7076_v9, 16 }
 0x9ef   : > { %13532 = vmatprep.subr.bf16.mxu0 %v14827_v56 }
 0x9f2   : > { %13533 = vmatpush3.bf16.msra.mxu0 %v14827_v56  ;;  %v7193_v56 = vshrl.u32 %v7075_v4, 16 }
 0x9f3   : > { %13542 = vmatprep.subr.bf16.mxu0 %v14828_v28 }
 0x9f4   : > { %v7195_v57 = vor.u32 %v7193_v56, %v7191_v14 }
 0x9f5   : > { %13527 = vmatmul.mubr.msk.bf16.gmra.mrb[72].mxu0 %vm1003_vm3, %v6635_v1  ;;  %v7185_v1 = vshll.u32 %v7074_v62, 16 }
 0x9f6   : > { %13534 = vmatprep.mubr.msk.bf16.mxu0 %vm1003_vm3, %v6859_v23  ;;  %v14835_v23 = vld [vmem:[%s17397_s8 + $0x338] sm:$0xff]   ;;  %v7199_v29 = vsel %vm1186_vm9, %v7195_v57, %v7198_v18 }
 0x9f7   : > { %v7187_v10 = vrot.slane %v7185_v1, 1  ;;  %v7421_v59 = vrot.slane %v7185_v1, 4 }
 0x9f9   : > { %v7188_v0 = vor.u32 %v7187_v10, %v7183_v36  ;;  %v7422_v39 = vor.u32 %v7421_v59, %v7420_v34  ;;  %v7530_v36 = vpack.c.bf16 %v16543_v45, %v16467_v63  ;;  %v11845_v63 = vld [vmem:[%s17401_s12] ss:$0 sm:$0xff] }
 0x9fa   : > { %v5543_v45 = vmul.f32 %v16395_v7, %v11845_v63  ;;  %v12034_v7 = vld [vmem:[%s17399_s10 + $0x5] ss:$0 sm:$0xff] }
 0x9fb   : > { %v7192_v13 = vsel %vm1186_vm9, %v7188_v0, %v7191_v14  ;;  %v14840_v0 = vld [vmem:[%s17397_s8 + $0x370] sm:$0xff]   ;;  %v5544_v14 = vmul.f32 %v16399_v40, %v11845_v63 }
 0x9fc   : > { %13614 = vmatprep.subr.bf16.mxu1 %v14840_v0 }
 0x9fd   : > { %13535 = vmatmul.mubr.msk.bf16.vlgmr.msra.gmra.mrb[68].mxu0 %vm1003_vm3, %v6861_v24  ;;  %v7313_v24 = vrot.slane %v7074_v62, 3  ;;  %13615 = vmatpush3.bf16.msra.mxu1 %v14840_v0 }
 0x9fe   : > { %13538 = vmatprep.mubr.msk.bf16.mxu0 %vm1003_vm3, %v6863_v20  ;;  %13543 = vmatpush3.bf16.msra.mxu0 %v14828_v28  ;;  %v7202_v28 = vor.u32 %v7200_v16, %v7198_v18  ;;  %v7314_v20 = vrot.slane %v7075_v4, 3  ;;  %v12032_v18 = vld [vmem:[%s17398_s9 + $0x5] ss:$0 sm:$0xff] }
 0x9ff   : > { %13544 = vmatprep.subr.bf16.mxu0 %v14829_v19 }
 0xa00   : > { %v7315_v25 = vsel %vm1856_vm12, %v7313_v24, %v7314_v20  ;;  %v7317_v33 = vsel %vm1856_vm12, %v7314_v20, %v7316_v27 }
 0xa02   : > { %13545 = vmatpush3.bf16.msra.mxu0 %v14829_v19  ;;  %v14836_v19 = vld [vmem:[%s17397_s8 + $0x340] sm:$0xff]  }
 0xa03   : > { %13554 = vmatprep.subr.bf16.mxu0 %v14830_v32 }
 0xa05   : > { %13539 = vmatmul.mubr.msk.bf16.gmra.mrb[72].mxu0 %vm1003_vm3, %v6862_v17  ;;  %v7206_v17 = vsel %vm1186_vm9, %v7202_v28, %v7205_v22 }
 0xa06   : > { %13546 = vmatprep.mubr.msk.bf16.mxu0 %vm1003_vm3, %v6970_v47  ;;  %v7424_v47 = vrot.slane %v7189_v48, 4  ;;  %v6631_v48 = vld [vmem:[#allocation3 + $0x40] sm:$0x1] }
 0xa0d   : > { %13547 = vmatmul.mubr.msk.bf16.vlgmr.msra.gmra.mrb[68].mxu0 %vm1003_vm3, %v6974_v58  ;;  %v7428_v58 = vrot.slane %v7196_v11, 4  ;;  %v11846_v11 = vld [vmem:[%s17402_s13] ss:$0 sm:$0xff] }
 0xa0e   : > { %13550 = vmatprep.mubr.msk.bf16.mxu0 %vm1003_vm3, %v6978_v52  ;;  %13555 = vmatpush3.bf16.msra.mxu0 %v14830_v32  ;;  %v14837_v32 = vld [vmem:[%s17397_s8 + $0x348] sm:$0xff]   ;;  %v5558_v28 = vadd.f32 %v11846_v11, %v5544_v14 }
 0xa0f   : > { %13556 = vmatprep.subr.bf16.mxu0 %v14831_v49 }
 0xa12   : > { %13557 = vmatpush3.bf16.msra.mxu0 %v14831_v49  ;;  %v7427_v49 = vrot.slane %v7200_v16, 3  ;;  %v5557_v16 = vadd.f32 %v11846_v11, %v5543_v45 }
 0xa13   : > { %13566 = vmatprep.subr.bf16.mxu0 %v14832_v53 }
 0xa14   : > { %v7429_v1 = vor.u32 %v7428_v58, %v7427_v49  ;;  %v5564_v40 = vmul.f32 %v5557_v16, %v15644_v12 }
 0xa15   : > { %13551 = vmatmul.mubr.msk.bf16.gmra.mrb[72].mxu0 %vm1003_vm3, %v6975_v3  ;;  %v7423_v3 = vrot.slane %v7193_v56, 3 }
 0xa16   : > { %13558 = vmatprep.mubr.msk.bf16.mxu0 %vm1003_vm3, %v7074_v62  ;;  %v7432_v62 = vrot.slane %v7203_v15, 4 }
 0xa17   : > { %v7425_v42 = vor.u32 %v7424_v47, %v7423_v3 }
 0xa19   : > { %v7426_v52 = vsel %vm1506_vm11, %v7422_v39, %v7425_v42 }
 0xa1d   : > { %13559 = vmatmul.mubr.msk.bf16.vlgmr.msra.gmra.mrb[68].mxu0 %vm1003_vm3, %v7075_v4 }
 0xa1e   : > { %13562 = vmatprep.mubr.msk.bf16.mxu0 %vm1003_vm3, %v7076_v9  ;;  %13567 = vmatpush3.bf16.msra.mxu0 %v14832_v53  ;;  %v7431_v53 = vrot.slane %v7207_v54, 3  ;;  %v7430_v9 = vsel %vm1506_vm11, %v7425_v42, %v7429_v1 }
 0xa1f   : > { %13568 = vmatprep.subr.bf16.mxu0 %v14833_v5 }
 0xa20   : > { %v7433_v4 = vor.u32 %v7432_v62, %v7431_v53 }
 0xa22   : > { %13569 = vmatpush3.bf16.msra.mxu0 %v14833_v5  ;;  %v14839_v5 = vld [vmem:[%s17397_s8 + $0x358] sm:$0xff]   ;;  %v7434_v10 = vsel %vm1506_vm11, %v7429_v1, %v7433_v4 }
 0xa23   : > { %13578 = vmatprep.subr.bf16.mxu0 %v14834_v2 }
 0xa25   : > { %13563 = vmatmul.mubr.msk.bf16.gmra.mrb[72].mxu0 %vm1003_vm3, %v7077_v51  ;;  %v5541_v51 = vmul.f32 %v11845_v63, %v16397_v60 }
 0xa26   : > { %13570 = vmatprep.mubr.msk.bf16.mxu0 %vm1003_vm3, %v7192_v13  ;;  %v5542_v13 = vmul.f32 %v11845_v63, %v16401_v41  ;;  %v5547_v41 = vmul.f32 %v16403_v8, %v11845_v63 }
 0xa27   : > { %v5555_v15 = vadd.f32 %v11846_v11, %v5541_v51 }
 0xa28   : > { %v5561_v8 = vadd.f32 %v11846_v11, %v5547_v41 }
 0xa29   : > { %v5562_v20 = vmul.f32 %v5555_v15, %v15634_v61 }
 0xa2d   : > { %13571 = vmatmul.mubr.msk.bf16.vlgmr.msra.gmra.mrb[68].mxu0 %vm1003_vm3, %v7199_v29 }
 0xa2e   : > { %13574 = vmatprep.mubr.msk.bf16.mxu0 %vm1003_vm3, %v7206_v17  ;;  %13579 = vmatpush3.bf16.msra.mxu0 %v14834_v2  ;;  %v7531_v2 = vpack.c.bf16 %v6631_v48, %v6631_v48 }
 0xa2f   : > { %13580 = vmatprep.subr.bf16.mxu0 %v14835_v23 }
 0xa32   : > { %13581 = vmatpush3.bf16.msra.mxu0 %v14835_v23  ;;  %v5556_v23 = vadd.f32 %v11846_v11, %v5542_v13 }
 0xa33   : > { %13590 = vmatprep.subr.bf16.mxu0 %v14836_v19 }
 0xa34   : > { %v5563_v34 = vmul.f32 %v5556_v23, %v15642_v6 }
 0xa35   : > { %13575 = vmatmul.mubr.msk.bf16.gmra.mrb[72].mxu0 %vm1003_vm3, %v7207_v54  ;;  %v5545_v54 = vmul.f32 %v11845_v63, %v16405_v46 }
 0xa36   : > { %13582 = vmatprep.mubr.msk.bf16.mxu0 %vm1003_vm3, %v7315_v25 }
 0xa37   : > { %v5559_v39 = vadd.f32 %v11846_v11, %v5545_v54 }
 0xa39   : > { %v5566_v0 = vmul.f32 %v5559_v39, %v15646_v21 }
 0xa3d   : > { %13583 = vmatmul.mubr.msk.bf16.vlgmr.msra.gmra.mrb[68].mxu0 %vm1003_vm3, %v7317_v33 }
 0xa3e   : > { %13586 = vmatprep.mubr.msk.bf16.mxu0 %vm1003_vm3, %v7319_v35  ;;  %13591 = vmatpush3.bf16.msra.mxu0 %v14836_v19  ;;  %v5546_v35 = vmul.f32 %v11845_v63, %v16407_v44 }
 0xa3f   : > { %13592 = vmatprep.subr.bf16.mxu0 %v14837_v32 }
 0xa40   : > { %v5560_v1 = vadd.f32 %v11846_v11, %v5546_v35 }
 0xa42   : > { %13593 = vmatpush3.bf16.msra.mxu0 %v14837_v32  ;;  %v5567_v51 = vmul.f32 %v5560_v1, %v15663_v50  ;;  %v14845_v1 = vld [vmem:[%s17397_s8 + $0x388] sm:$0xff]  }
 0xa43   : > { %13602 = vmatprep.subr.bf16.mxu0 %v14838_v38 }
 0xa45   : > { %13587 = vmatmul.mubr.msk.bf16.gmra.mrb[72].mxu0 %vm1003_vm3, %v7318_v31  ;;  %v5565_v31 = vmul.f32 %v5558_v28, %v15650_v30 }
 0xa46   : > { %13594 = vmatprep.mubr.msk.bf16.mxu0 %vm1003_vm3, %v7426_v52 }
 0xa4d   : > { %13595 = vmatmul.mubr.msk.bf16.vlgmr.msra.gmra.mrb[68].mxu0 %vm1003_vm3, %v7430_v9 }
 0xa4e   : > { %13598 = vmatprep.mubr.msk.bf16.mxu0 %vm1003_vm3, %v7434_v10  ;;  %13603 = vmatpush3.bf16.msra.mxu0 %v14838_v38  ;;  %v5568_v10 = vmul.f32 %v5561_v8, %v15658_v43 }
 0xa4f   : > { %13604 = vmatprep.subr.bf16.mxu0 %v14839_v5 }
 0xa52   : > { %13605 = vmatpush3.bf16.msra.mxu0 %v14839_v5 }
 0xa55   : > { %13599 = vmatmul.mubr.msk.bf16.gmra.mrb[72].mxu0 %vm1003_vm3, %v7431_v53 }
 0xa56   : > { %13606 = vmatprep.mubr.msk.bf16.mxu0 %vm1003_vm3, %v16452_v26  ;;  %v14841_v26 = vld [vmem:[%s17397_s8 + $0x378] sm:$0xff]  }
 0xa57   : > { %13616 = vmatprep.subr.bf16.mxu1 %v14841_v26 }
 0xa58   : > { %13617 = vmatpush3.bf16.msra.mxu1 %v14841_v26 }
 0xa5d   : > { %13607 = vmatmul.mubr.msk.bf16.vlgmr.msra.gmra.mrb[68].mxu0 %vm1003_vm3, %v16464_v55  ;;  %v16601_v55 = vld [vmem:[%s17397_s8 + $0x360] sm:$0xff]  }
 0xa5e   : > { %13610 = vmatprep.mubr.msk.bf16.mxu0 %vm1003_vm3, %v7530_v36  ;;  %13626 = vmatprep.subr.bf16.mxu1 %v16601_v55 }
 0xa65   : > { %13611 = vmatmul.mubr.msk.bf16.gmra.mrb[72].mxu0 %vm1003_vm3, %v7531_v2 }
 0xb30   : > { %v13608_v56 = vpop.f32.mrb[68].mxu0 }
 0xb31   : > { %v7636_v57 = vmul.f32 %v13608_v56, %v12032_v18  ;;  %v7589_v22 = vpop.f32.mrb[69].mxu0 }
 0xb32   : > { %v7634_v60 = vmul.f32 %v12032_v18, %v7589_v22  ;;  %v13609_v29 = vpop.f32.mrb[70].mxu0 }
 0xb33   : > { %v7651_v17 = vadd.f32 %v12034_v7, %v7636_v57  ;;  %v7637_v19 = vmul.f32 %v13609_v29, %v12032_v18  ;;  %v7592_v24 = vpop.f32.mrb[71].mxu0  ;;  %v7689_v57 = vld [vmem:[#allocation2] sm:$0xff] }
 0xb34   : > { %v7649_v25 = vadd.f32 %v12034_v7, %v7634_v60  ;;  %v7635_v27 = vmul.f32 %v12032_v18, %v7592_v24 }
 0xb35   : > { %v7658_v32 = vadd.f32 %v7651_v17, %v5564_v40  ;;  %v7652_v33 = vadd.f32 %v12034_v7, %v7637_v19 }
 0xb36   : > { %v7656_v59 = vadd.f32 %v7649_v25, %v5562_v20  ;;  %v7650_v3 = vadd.f32 %v12034_v7, %v7635_v27 }
 0xb37   : > { %v7665_v47 = vmax.f32 %v7658_v32, 0.0  ;;  %v7659_v38 = vadd.f32 %v7652_v33, %v5565_v31 }
 0xb38   : > { %v7663_v42 = vmax.f32 %v7656_v59, 0.0  ;;  %v7657_v49 = vadd.f32 %v7650_v3, %v5563_v34  ;;  %v13612_v58 = vpop.f32.mrb[72].mxu0 }
 0xb39   : > { %v7672_v46 = vmul.f32 %v7665_v47, %v15644_v12  ;;  %v7666_v52 = vmax.f32 %v7659_v38, 0.0  ;;  %v7640_v53 = vmul.f32 %v13612_v58, %v12032_v18  ;;  %v7605_v62 = vpop.f32.mrb[73].mxu0 }
 0xb3a   : > { %v7670_v4 = vmul.f32 %v7663_v42, %v15634_v61  ;;  %v7664_v5 = vmax.f32 %v7657_v49, 0.0  ;;  %v7638_v9 = vmul.f32 %v12032_v18, %v7605_v62  ;;  %v13613_v44 = vpop.f32.mrb[74].mxu0  ;;  %v14843_v42 = vld [vmem:[%s17397_s8 + $0x368] sm:$0xff]  }
 0xb3b   : > { %7679 = vst.msk [vmem:[#allocation2 + $0x18] sm:$0xff] %vm1003_vm3, %v7672_v46  ;;  %v7673_v36 = vmul.f32 %v7666_v52, %v15650_v30  ;;  %v7655_v48 = vadd.f32 %v12034_v7, %v7640_v53  ;;  %v7608_v2 = vpop.f32.mrb[75].mxu0  ;;  %v14844_v53 = vld [vmem:[%s17397_s8 + $0x380] sm:$0xff]  }
 0xb3c   : > { %7677 = vst.msk [vmem:[#allocation2 + $0x8] sm:$0xff] %vm1003_vm3, %v7670_v4  ;;  %v7671_v26 = vmul.f32 %v7664_v5, %v15642_v6  ;;  %v7653_v63 = vadd.f32 %v12034_v7, %v7638_v9  ;;  %v7639_v45 = vmul.f32 %v12032_v18, %v7608_v2 }
 0xb3d   : > { %7680 = vst.msk [vmem:[#allocation2 + $0x20] sm:$0xff] %vm1003_vm3, %v7673_v36  ;;  %v7662_v11 = vadd.f32 %v7655_v48, %v5568_v10  ;;  %v14847_v36 = vld [vmem:[%s17397_s8 + $0x398] sm:$0xff]  }
 0xb3e   : > { %7678 = vst.msk [vmem:[#allocation2 + $0x10] sm:$0xff] %vm1003_vm3, %v7671_v26  ;;  %v7660_v14 = vadd.f32 %v7653_v63, %v5566_v0  ;;  %v7654_v13 = vadd.f32 %v12034_v7, %v7639_v45 }
 0xb3f   : > { %v7669_v16 = vmax.f32 %v7662_v11, 0.0  ;;  %v14848_v11 = vld [vmem:[%s17397_s8 + $0x3a0] sm:$0xff]  }
 0xb40   : > { %v7667_v15 = vmax.f32 %v7660_v14, 0.0  ;;  %v7661_v56 = vadd.f32 %v7654_v13, %v5567_v51 }
 0xb41   : > { %v7676_v28 = vmul.f32 %v7669_v16, %v15658_v43 }
 0xb42   : > { %v7674_v22 = vmul.f32 %v7667_v15, %v15646_v21  ;;  %v7668_v23 = vmax.f32 %v7661_v56, 0.0  ;;  %v16650_v40 = vld [vmem:[#allocation2 + $0x18] sm:$0xff] }
 0xb43   : > { %7683 = vst.msk [vmem:[#allocation2 + $0x38] sm:$0x1] %vm1012_vm8, %v7676_v28  ;;  %v16641_v18 = vld [vmem:[#allocation2 + $0x8] sm:$0xff] }
 0xb44   : > { %7681 = vst.msk [vmem:[#allocation2 + $0x28] sm:$0xff] %vm1003_vm3, %v7674_v22  ;;  %v7675_v60 = vmul.f32 %v7668_v23, %v15663_v50  ;;  %v16646_v29 = vpack.c.bf16 %v16641_v18, %v7689_v57  ;;  %v16660_v27 = vld [vmem:[#allocation2 + $0x20] sm:$0xff]  ;;  %v14849_v23 = vld [vmem:[%s17397_s8 + $0x3a8] sm:$0xff]  }
 0xb45   : > { %v16648_v7 = vld [vmem:[#allocation2 + $0x10] sm:$0xff] }
 0xb46   : > { %7682 = vst.msk [vmem:[#allocation2 + $0x30] sm:$0xff] %vm1003_vm3, %v7675_v60  ;;  %v16655_v41 = vpack.c.bf16 %v16650_v40, %v16648_v7  ;;  %v7710_v17 = vshll.u32 %v16646_v29, 16  ;;  %v7708_v19 = vshrl.u32 %v16646_v29, 16  ;;  %v7918_v5 = vrot.slane %v16646_v29, 1 }
 0xb48   : > { %v7712_v24 = vrot.slane %v7710_v17, 1  ;;  %v7715_v20 = vshll.u32 %v16655_v41, 16  ;;  %v7719_v35 = vshrl.u32 %v16655_v41, 16  ;;  %v7919_v4 = vrot.slane %v16655_v41, 1 }
 0xb49   : > { %v8025_v63 = vrot.slane %v7708_v19, 3  ;;  %v8026_v45 = vrot.slane %v7710_v17, 4  ;;  %v14850_v17 = vld [vmem:[%s17397_s8 + $0x3b0] sm:$0xff]  }
 0xb4a   : > { %v7713_v54 = vor.u32 %v7712_v24, %v7708_v19  ;;  %v7717_v25 = vrot.slane %v7715_v20, 1  ;;  %v7920_v9 = vsel %vm1398_vm10, %v7918_v5, %v7919_v4  ;;  %v8028_v0 = vrot.slane %v7719_v35, 3 }
 0xb4b   : > { %v16662_v31 = vld [vmem:[#allocation2 + $0x28] sm:$0xff]  ;;  %v8029_v26 = vrot.slane %v7715_v20, 4  ;;  %v8027_v14 = vor.u32 %v8026_v45, %v8025_v63  ;;  %v8135_v19 = vpack.c.bf16 %v16648_v7, %v16641_v18  ;;  %v8136_v20 = vpack.c.bf16 %v16660_v27, %v16650_v40 }
 0xb4c   : > { %v7718_v32 = vsel %vm1186_vm9, %v7713_v54, %v7717_v25  ;;  %v16667_v33 = vpack.c.bf16 %v16662_v31, %v16660_v27  ;;  %v7721_v8 = vor.u32 %v7719_v35, %v7717_v25  ;;  %v14851_v54 = vld [vmem:[%s17397_s8 + $0x3b8] sm:$0xff]   ;;  %v14852_v27 = vld [vmem:[%s17397_s8 + $0x3c0] sm:$0xff]  }
 0xb4d   : > { %13618 = vmatprep.mubr.msk.bf16.mxu1 %vm1003_vm3, %v7718_v32  ;;  %v16670_v34 = vld [vmem:[#allocation2 + $0x30] sm:$0xff]  ;;  %v8030_v51 = vor.u32 %v8029_v26, %v8028_v0  ;;  %v8246_v24 = vshll.u32 %v8135_v19, 16  ;;  %v8244_v18 = vshrl.u32 %v8135_v19, 16  ;;  %v8250_v35 = vshll.u32 %v8136_v20, 16 }
 0xb4e   : > { %v7723_v59 = vshll.u32 %v16667_v33, 16  ;;  %v7696_v3 = vpack.c.bf16 %v16670_v34, %v16670_v34  ;;  %v7727_v38 = vshrl.u32 %v16667_v33, 16  ;;  %v7921_v44 = vrot.slane %v16667_v33, 1 }
 0xb4f   : > { %v8031_v56 = vsel %vm1506_vm11, %v8027_v14, %v8030_v51  ;;  %v8137_v25 = vpack.c.bf16 %v16670_v34, %v16662_v31  ;;  %v8248_v32 = vrot.slane %v8246_v24, 1  ;;  %v8374_v5 = vrot.slane %v8135_v19, 3  ;;  %v14856_v14 = vld [vmem:[%s17397_s8 + $0x3e0] sm:$0xff]  }
 0xb50   : > { %v7725_v47 = vrot.slane %v7723_v59, 1  ;;  %v7731_v39 = vshll.u32 %v7696_v3, 16  ;;  %v7735_v62 = vshrl.u32 %v7696_v3, 16  ;;  %v7923_v10 = vrot.slane %v7696_v3, 1 }
 0xb51   : > { %v7922_v48 = vsel %vm1398_vm10, %v7919_v4, %v7921_v44  ;;  %v8032_v13 = vrot.slane %v7727_v38, 3  ;;  %v8033_v16 = vrot.slane %v7723_v59, 4  ;;  %v16746_v59 = vld [vmem:[#allocation2 + $0x38] sm:$0xff]  ;;  %v14854_v4 = vld [vmem:[%s17397_s8 + $0x3d0] sm:$0xff]   ;;  %v8481_v26 = vrot.slane %v8244_v18, 3 }
 0xb52   : > { %v7726_v49 = vsel %vm1186_vm9, %v7721_v8, %v7725_v47  ;;  %v7729_v58 = vor.u32 %v7727_v38, %v7725_v47  ;;  %v7733_v46 = vrot.slane %v7731_v39, 1  ;;  %v7924_v2 = vsel %vm1398_vm10, %v7921_v44, %v7923_v10 }
 0xb53   : > { %13619 = vmatmul.mubr.msk.bf16.vlgmr.msra.gmra.mrb[32].mxu1 %vm1003_vm3, %v7726_v49  ;;  %v8036_v15 = vrot.slane %v7735_v62, 3  ;;  %v8037_v28 = vrot.slane %v7731_v39, 4  ;;  %v8034_v57 = vor.u32 %v8033_v16, %v8032_v13  ;;  %v8257_v8 = vshll.u32 %v8137_v25, 16 }
 0xb54   : > { %v7734_v52 = vsel %vm1186_vm9, %v7729_v58, %v7733_v46  ;;  %13627 = vmatpush3.bf16.msra.mxu1 %v16601_v55  ;;  %v14846_v55 = vld [vmem:[%s17397_s8 + $0x390] sm:$0xff]   ;;  %v8138_v31 = vpack.c.bf16 %v16746_v59, %v16746_v59  ;;  %v8252_v47 = vrot.slane %v8250_v35, 1  ;;  %v8254_v58 = vshrl.u32 %v8136_v20, 16 }
 0xb55   : > { %13622 = vmatprep.mubr.msk.bf16.mxu1 %vm1003_vm3, %v7734_v52  ;;  %13628 = vmatprep.subr.bf16.mxu1 %v14843_v42  ;;  %v8038_v22 = vor.u32 %v8037_v28, %v8036_v15  ;;  %v8035_v60 = vsel %vm1506_vm11, %v8030_v51, %v8034_v57  ;;  %v8259_v39 = vrot.slane %v8257_v8, 1  ;;  %v8482_v45 = vrot.slane %v8246_v24, 4 }
 0xb56   : > { %v8264_v49 = vshll.u32 %v8138_v31, 16  ;;  %v8256_v52 = vor.u32 %v8254_v58, %v8252_v47  ;;  %v8268_v44 = vshrl.u32 %v8138_v31, 16  ;;  %v8485_v51 = vrot.slane %v8250_v35, 4 }
 0xb57   : > { %v8483_v13 = vor.u32 %v8482_v45, %v8481_v26  ;;  %v8591_v24 = vpack.c.bf16 %v16746_v59, %v16670_v34  ;;  %v12126_v34 = vld [vmem:[%s17398_s9 + $0x6] ss:$0 sm:$0xff] }
 0xb58   : > { %13629 = vmatpush3.bf16.msra.mxu1 %v14843_v42  ;;  %v8261_v42 = vshrl.u32 %v8137_v25, 16 }
 0xb59   : > { %13638 = vmatprep.subr.bf16.mxu1 %v14844_v53 }
 0xb5a   : > { %v8263_v46 = vor.u32 %v8261_v42, %v8259_v39 }
 0xb5b   : > { %13623 = vmatmul.mubr.msk.bf16.gmra.mrb[36].mxu1 %vm1003_vm3, %v7735_v62  ;;  %v14853_v62 = vld [vmem:[%s17397_s8 + $0x3c8] sm:$0xff]  }
 0xb5c   : > { %13630 = vmatprep.mubr.msk.bf16.mxu1 %vm1003_vm3, %v16646_v29  ;;  %v8039_v29 = vsel %vm1506_vm11, %v8034_v57, %v8038_v22  ;;  %v8492_v57 = vrot.slane %v8268_v44, 3  ;;  %v8493_v22 = vrot.slane %v8264_v49, 4 }
 0xb63   : > { %13631 = vmatmul.mubr.msk.bf16.vlgmr.msra.gmra.mrb[32].mxu1 %vm1003_vm3, %v16655_v41 }
 0xb64   : > { %13634 = vmatprep.mubr.msk.bf16.mxu1 %vm1003_vm3, %v16667_v33  ;;  %13639 = vmatpush3.bf16.msra.mxu1 %v14844_v53  ;;  %v8266_v53 = vrot.slane %v8264_v49, 1 }
 0xb65   : > { %13640 = vmatprep.subr.bf16.mxu1 %v14845_v1 }
 0xb68   : > { %13641 = vmatpush3.bf16.msra.mxu1 %v14845_v1  ;;  %v8260_v1 = vsel %vm1186_vm9, %v8256_v52, %v8259_v39 }
 0xb69   : > { %13650 = vmatprep.subr.bf16.mxu1 %v14846_v55 }
 0xb6b   : > { %13635 = vmatmul.mubr.msk.bf16.gmra.mrb[36].mxu1 %vm1003_vm3, %v7696_v3  ;;  %v8249_v3 = vor.u32 %v8248_v32, %v8244_v18  ;;  %v12128_v18 = vld [vmem:[%s17399_s10 + $0x6] ss:$0 sm:$0xff] }
 0xb6c   : > { %13642 = vmatprep.mubr.msk.bf16.mxu1 %vm1003_vm3, %v7920_v9  ;;  %v8375_v9 = vrot.slane %v8136_v20, 3 }
 0xb6d   : > { %v8253_v38 = vsel %vm1186_vm9, %v8249_v3, %v8252_v47 }
 0xb73   : > { %13643 = vmatmul.mubr.msk.bf16.vlgmr.msra.gmra.mrb[32].mxu1 %vm1003_vm3, %v7922_v48  ;;  %v8379_v48 = vrot.slane %v8138_v31, 3 }
 0xb74   : > { %13646 = vmatprep.mubr.msk.bf16.mxu1 %vm1003_vm3, %v7924_v2  ;;  %13651 = vmatpush3.bf16.msra.mxu1 %v14846_v55  ;;  %v8267_v55 = vsel %vm1186_vm9, %v8263_v46, %v8266_v53  ;;  %v14855_v2 = vld [vmem:[%s17397_s8 + $0x3d8] sm:$0xff]  }
 0xb75   : > { %13652 = vmatprep.subr.bf16.mxu1 %v14847_v36 }
 0xb78   : > { %13653 = vmatpush3.bf16.msra.mxu1 %v14847_v36  ;;  %v8377_v36 = vrot.slane %v8137_v25, 3 }
 0xb79   : > { %13662 = vmatprep.subr.bf16.mxu1 %v14848_v11 }
 0xb7a   : > { %v8378_v0 = vsel %vm1856_vm12, %v8375_v9, %v8377_v36  ;;  %v8380_v63 = vsel %vm1856_vm12, %v8377_v36, %v8379_v48 }
 0xb7b   : > { %13647 = vmatmul.mubr.msk.bf16.gmra.mrb[36].mxu1 %vm1003_vm3, %v7923_v10  ;;  %v8376_v10 = vsel %vm1856_vm12, %v8374_v5, %v8375_v9 }
 0xb7c   : > { %13654 = vmatprep.mubr.msk.bf16.mxu1 %vm1003_vm3, %v8031_v56  ;;  %v8489_v56 = vrot.slane %v8257_v8, 4 }
 0xb83   : > { %13655 = vmatmul.mubr.msk.bf16.vlgmr.msra.gmra.mrb[32].mxu1 %vm1003_vm3, %v8035_v60  ;;  %v8494_v60 = vor.u32 %v8493_v22, %v8492_v57 }
 0xb84   : > { %13658 = vmatprep.mubr.msk.bf16.mxu1 %vm1003_vm3, %v8039_v29  ;;  %13663 = vmatpush3.bf16.msra.mxu1 %v14848_v11  ;;  %v8484_v11 = vrot.slane %v8254_v58, 3  ;;  %v14857_v29 = vld [vmem:[%s17397_s8 + $0x3e8] sm:$0xff]  }
 0xb85   : > { %13664 = vmatprep.subr.bf16.mxu1 %v14849_v23 }
 0xb86   : > { %v8486_v16 = vor.u32 %v8485_v51, %v8484_v11  ;;  %v8738_v51 = vld [vmem:[#allocation3] sm:$0xff] }
 0xb88   : > { %13665 = vmatpush3.bf16.msra.mxu1 %v14849_v23  ;;  %v8487_v28 = vsel %vm1506_vm11, %v8483_v13, %v8486_v16 }
 0xb89   : > { %13674 = vmatprep.subr.bf16.mxu1 %v14850_v17 }
 0xb8b   : > { %13659 = vmatmul.mubr.msk.bf16.gmra.mrb[36].mxu1 %vm1003_vm3, %v8036_v15  ;;  %v8488_v15 = vrot.slane %v8261_v42, 3 }
 0xb8c   : > { %13666 = vmatprep.mubr.msk.bf16.mxu1 %vm1003_vm3, %v8135_v19 }
 0xb8d   : > { %v8490_v23 = vor.u32 %v8489_v56, %v8488_v15 }
 0xb8f   : > { %v8495_v19 = vsel %vm1506_vm11, %v8490_v23, %v8494_v60 }
 0xb93   : > { %13667 = vmatmul.mubr.msk.bf16.vlgmr.msra.gmra.mrb[32].mxu1 %vm1003_vm3, %v8136_v20  ;;  %v7692_v20 = vld [vmem:[#allocation2 + $0x40] sm:$0x1] }
 0xb94   : > { %13670 = vmatprep.mubr.msk.bf16.mxu1 %vm1003_vm3, %v8137_v25  ;;  %13675 = vmatpush3.bf16.msra.mxu1 %v14850_v17  ;;  %v8491_v17 = vsel %vm1506_vm11, %v8486_v16, %v8490_v23  ;;  %v14858_v25 = vld [vmem:[%s17397_s8 + $0x400] sm:$0xff]  }
 0xb95   : > { %13676 = vmatprep.subr.bf16.mxu1 %v14851_v54  ;;  %13722 = vmatprep.subr.bf16.mxu0 %v14858_v25 }
 0xb96   : > { %13723 = vmatpush3.bf16.msra.mxu0 %v14858_v25 }
 0xb98   : > { %13677 = vmatpush3.bf16.msra.mxu1 %v14851_v54  ;;  %v8592_v54 = vpack.c.bf16 %v7692_v20, %v7692_v20 }
 0xb99   : > { %13686 = vmatprep.subr.bf16.mxu1 %v14852_v27 }
 0xb9b   : > { %13671 = vmatmul.mubr.msk.bf16.gmra.mrb[36].mxu1 %vm1003_vm3, %v8138_v31 }
 0xb9c   : > { %13678 = vmatprep.mubr.msk.bf16.mxu1 %vm1003_vm3, %v8253_v38 }
 0xba3   : > { %13679 = vmatmul.mubr.msk.bf16.vlgmr.msra.gmra.mrb[32].mxu1 %vm1003_vm3, %v8260_v1 }
 0xba4   : > { %13682 = vmatprep.mubr.msk.bf16.mxu1 %vm1003_vm3, %v8267_v55  ;;  %13687 = vmatpush3.bf16.msra.mxu1 %v14852_v27 }
 0xba5   : > { %13688 = vmatprep.subr.bf16.mxu1 %v14853_v62 }
 0xba8   : > { %13689 = vmatpush3.bf16.msra.mxu1 %v14853_v62 }
 0xba9   : > { %13698 = vmatprep.subr.bf16.mxu1 %v14854_v4 }
 0xbab   : > { %13683 = vmatmul.mubr.msk.bf16.gmra.mrb[36].mxu1 %vm1003_vm3, %v8268_v44 }
 0xbac   : > { %13690 = vmatprep.mubr.msk.bf16.mxu1 %vm1003_vm3, %v8376_v10 }
 0xbb3   : > { %13691 = vmatmul.mubr.msk.bf16.vlgmr.msra.gmra.mrb[32].mxu1 %vm1003_vm3, %v8378_v0 }
 0xbb4   : > { %13694 = vmatprep.mubr.msk.bf16.mxu1 %vm1003_vm3, %v8380_v63  ;;  %13699 = vmatpush3.bf16.msra.mxu1 %v14854_v4 }
 0xbb5   : > { %13700 = vmatprep.subr.bf16.mxu1 %v14855_v2 }
 0xbb8   : > { %13701 = vmatpush3.bf16.msra.mxu1 %v14855_v2 }
 0xbb9   : > { %13710 = vmatprep.subr.bf16.mxu1 %v14856_v14 }
 0xbbb   : > { %13695 = vmatmul.mubr.msk.bf16.gmra.mrb[36].mxu1 %vm1003_vm3, %v8379_v48 }
 0xbbc   : > { %13702 = vmatprep.mubr.msk.bf16.mxu1 %vm1003_vm3, %v8487_v28 }
 0xbc3   : > { %13703 = vmatmul.mubr.msk.bf16.vlgmr.msra.gmra.mrb[32].mxu1 %vm1003_vm3, %v8491_v17 }
 0xbc4   : > { %13706 = vmatprep.mubr.msk.bf16.mxu1 %vm1003_vm3, %v8495_v19  ;;  %13711 = vmatpush3.bf16.msra.mxu1 %v14856_v14 }
 0xbc5   : > { %13712 = vmatprep.subr.bf16.mxu1 %v14857_v29 }
 0xbc8   : > { %13713 = vmatpush3.bf16.msra.mxu1 %v14857_v29 }
 0xbc9   : > { %13830 = vmatprep.subr.bf16.mxu1 %v14996_v37 }
 0xbcb   : > { %13707 = vmatmul.mubr.msk.bf16.gmra.mrb[36].mxu1 %vm1003_vm3, %v8492_v57 }
 0xbcc   : > { %13714 = vmatprep.mubr.msk.bf16.mxu1 %vm1003_vm3, %v16655_v41  ;;  %v14859_v41 = vld [vmem:[%s17397_s8 + $0x408] sm:$0xff]  }
 0xbcd   : > { %13724 = vmatprep.subr.bf16.mxu0 %v14859_v41 }
 0xbce   : > { %13725 = vmatpush3.bf16.msra.mxu0 %v14859_v41 }
 0xbd3   : > { %13715 = vmatmul.mubr.msk.bf16.vlgmr.msra.gmra.mrb[32].mxu1 %vm1003_vm3, %v16667_v33  ;;  %v16807_v33 = vld [vmem:[%s17397_s8 + $0x3f0] sm:$0xff]  }
 0xbd4   : > { %13718 = vmatprep.mubr.msk.bf16.mxu1 %vm1003_vm3, %v8591_v24  ;;  %13734 = vmatprep.subr.bf16.mxu0 %v16807_v33 }
 0xbdb   : > { %13719 = vmatmul.mubr.msk.bf16.gmra.mrb[36].mxu1 %vm1003_vm3, %v8592_v54 }
 0xbdc   : > { %13834 = vmatprep.mubr.msk.bf16.mxu1 %vm14995_vm2, %v14996_v37 }
 0xca6   : > { %v13716_v32 = vpop.f32.mrb[32].mxu1 }
 0xca7   : > { %v8697_v35 = vmul.f32 %v13716_v32, %v12126_v34  ;;  %v8650_v27 = vpop.f32.mrb[33].mxu1 }
 0xca8   : > { %v8695_v59 = vmul.f32 %v12126_v34, %v8650_v27  ;;  %v13717_v3 = vpop.f32.mrb[34].mxu1 }
 0xca9   : > { %v8712_v8 = vadd.f32 %v12128_v18, %v8697_v35  ;;  %v8698_v31 = vmul.f32 %v13717_v3, %v12126_v34  ;;  %v8653_v47 = vpop.f32.mrb[35].mxu1 }
 0xcaa   : > { %v8710_v38 = vadd.f32 %v12128_v18, %v8695_v59  ;;  %v8696_v39 = vmul.f32 %v12126_v34, %v8653_v47 }
 0xcab   : > { %v8719_v42 = vmax.f32 %v8712_v8, 0.0  ;;  %v8713_v49 = vadd.f32 %v12128_v18, %v8698_v31 }
 0xcac   : > { %v8717_v58 = vmax.f32 %v8710_v38, 0.0  ;;  %v8711_v46 = vadd.f32 %v12128_v18, %v8696_v39 }
 0xcad   : > { %v8726_v52 = vmul.f32 %v8719_v42, %v15644_v12  ;;  %v8720_v53 = vmax.f32 %v8713_v49, 0.0 }
 0xcae   : > { %v8724_v62 = vmul.f32 %v8717_v58, %v15634_v61  ;;  %v8718_v1 = vmax.f32 %v8711_v46, 0.0  ;;  %v13720_v55 = vpop.f32.mrb[36].mxu1 }
 0xcaf   : > { %8733 = vst.msk [vmem:[#allocation3 + $0x18] sm:$0xff] %vm1003_vm3, %v8726_v52  ;;  %v8727_v4 = vmul.f32 %v8720_v53, %v15650_v30  ;;  %v8701_v5 = vmul.f32 %v13720_v55, %v12126_v34  ;;  %v8666_v9 = vpop.f32.mrb[37].mxu1  ;;  %v14861_v53 = vld [vmem:[%s17397_s8 + $0x3f8] sm:$0xff]  }
 0xcb0   : > { %8731 = vst.msk [vmem:[#allocation3 + $0x8] sm:$0xff] %vm1003_vm3, %v8724_v62  ;;  %v8725_v44 = vmul.f32 %v8718_v1, %v15642_v6  ;;  %v8699_v10 = vmul.f32 %v12126_v34, %v8666_v9  ;;  %v13721_v36 = vpop.f32.mrb[38].mxu1 }
 0xcb1   : > { %8734 = vst.msk [vmem:[#allocation3 + $0x20] sm:$0xff] %vm1003_vm3, %v8727_v4  ;;  %v8716_v48 = vadd.f32 %v12128_v18, %v8701_v5  ;;  %v8669_v2 = vpop.f32.mrb[39].mxu1 }
 0xcb2   : > { %8732 = vst.msk [vmem:[#allocation3 + $0x10] sm:$0xff] %vm1003_vm3, %v8725_v44  ;;  %v8714_v61 = vadd.f32 %v12128_v18, %v8699_v10  ;;  %v8700_v0 = vmul.f32 %v12126_v34, %v8669_v2  ;;  %v14862_v2 = vld [vmem:[%s17397_s8 + $0x410] sm:$0xff]  }
 0xcb3   : > { %v8723_v26 = vmax.f32 %v8716_v48, 0.0 }
 0xcb4   : > { %v8721_v63 = vmax.f32 %v8714_v61, 0.0  ;;  %v8715_v45 = vadd.f32 %v12128_v18, %v8700_v0 }
 0xcb5   : > { %v8730_v11 = vmul.f32 %v8723_v26, %v15658_v43 }
 0xcb6   : > { %v8728_v14 = vmul.f32 %v8721_v63, %v15646_v21  ;;  %v8722_v13 = vmax.f32 %v8715_v45, 0.0  ;;  %v8741_v56 = vld [vmem:[#allocation3 + $0x18] sm:$0xff] }
 0xcb7   : > { %8737 = vst.msk [vmem:[#allocation3 + $0x38] sm:$0x1] %vm1012_vm8, %v8730_v11  ;;  %v8739_v16 = vld [vmem:[#allocation3 + $0x8] sm:$0xff] }
 0xcb8   : > { %8735 = vst.msk [vmem:[#allocation3 + $0x28] sm:$0xff] %vm1003_vm3, %v8728_v14  ;;  %v8729_v15 = vmul.f32 %v8722_v13, %v15663_v50  ;;  %v16829_v28 = vpack.c.bf16 %v8739_v16, %v8738_v51  ;;  %v8742_v57 = vld [vmem:[#allocation3 + $0x20] sm:$0xff] }
 0xcb9   : > { %v8740_v22 = vld [vmem:[#allocation3 + $0x10] sm:$0xff]  ;;  %v16831_v23 = vpack.c.bf16 %v8742_v57, %v8741_v56 }
 0xcba   : > { %8736 = vst.msk [vmem:[#allocation3 + $0x30] sm:$0xff] %vm1003_vm3, %v8729_v15  ;;  %v16834_v43 = vpack.c.bf16 %v8741_v56, %v8740_v22  ;;  %v8764_v60 = vshll.u32 %v16829_v28, 16  ;;  %v16837_v29 = vpack.c.bf16 %v8740_v22, %v8739_v16  ;;  %v8762_v17 = vshrl.u32 %v16829_v28, 16 }
 0xcbb   : > { %v9288_v54 = vshll.u32 %v16831_v23, 16  ;;  %v9292_v62 = vshrl.u32 %v16831_v23, 16  ;;  %v9409_v10 = vrot.slane %v16831_v23, 3 }
 0xcbc   : > { %v8766_v19 = vrot.slane %v8764_v60, 1  ;;  %v8769_v24 = vshll.u32 %v16834_v43, 16  ;;  %v9284_v20 = vshll.u32 %v16837_v29, 16  ;;  %v9282_v32 = vshrl.u32 %v16837_v29, 16 }
 0xcbd   : > { %v9290_v8 = vrot.slane %v9288_v54, 1  ;;  %v8773_v31 = vshrl.u32 %v16834_v43, 16  ;;  %v9408_v0 = vrot.slane %v16837_v29, 3  ;;  %v9514_v14 = vrot.slane %v9292_v62, 3 }
 0xcbe   : > { %v8767_v25 = vor.u32 %v8766_v19, %v8762_v17  ;;  %v8771_v41 = vrot.slane %v8769_v24, 1  ;;  %v9286_v18 = vrot.slane %v9284_v20, 1  ;;  %v9511_v45 = vrot.slane %v9282_v32, 3 }
 0xcbf   : > { %v8743_v34 = vld [vmem:[#allocation3 + $0x28] sm:$0xff]  ;;  %v9294_v9 = vor.u32 %v9292_v62, %v9290_v8  ;;  %v16904_v63 = vsel %vm1856_vm12, %v9408_v0, %v9409_v10  ;;  %v9512_v11 = vrot.slane %v9284_v20, 4  ;;  %v9515_v15 = vrot.slane %v9288_v54, 4  ;;  %v14863_v54 = vld [vmem:[%s17397_s8 + $0x418] sm:$0xff]   ;;  %v8745_v0 = vld [vmem:[#allocation3 + $0x38] sm:$0xff] }
 0xcc0   : > { %v8772_v35 = vsel %vm1186_vm9, %v8767_v25, %v8771_v41  ;;  %v16851_v27 = vpack.c.bf16 %v8743_v34, %v8742_v57  ;;  %v9287_v3 = vor.u32 %v9286_v18, %v9282_v32  ;;  %v8775_v49 = vor.u32 %v8773_v31, %v8771_v41  ;;  %v14864_v25 = vld [vmem:[%s17397_s8 + $0x420] sm:$0xff]  }
 0xcc1   : > { %13726 = vmatprep.mubr.msk.bf16.mxu0 %vm1003_vm3, %v8772_v35  ;;  %v16854_v59 = vld [vmem:[#allocation3 + $0x30] sm:$0xff]  ;;  %v9513_v16 = vor.u32 %v9512_v11, %v9511_v45  ;;  %v9516_v57 = vor.u32 %v9515_v15, %v9514_v14  ;;  %v8969_v41 = vrot.slane %v16834_v43, 1  ;;  %v9071_v62 = vrot.slane %v8762_v17, 3 }
 0xcc2   : > { %v8777_v47 = vshll.u32 %v16851_v27, 16  ;;  %v16860_v38 = vpack.c.bf16 %v16854_v59, %v16854_v59  ;;  %v16863_v39 = vpack.c.bf16 %v16854_v59, %v8743_v34  ;;  %v16866_v42 = vsel %vm1186_vm9, %v9287_v3, %v9290_v8  ;;  %v14865_v3 = vld [vmem:[%s17397_s8 + $0x428] sm:$0xff]   ;;  %v14871_v11 = vld [vmem:[%s17397_s8 + $0x458] sm:$0xff]  }
 0xcc3   : > { %v8781_v46 = vshrl.u32 %v16851_v27, 16  ;;  %v16918_v19 = vsel %vm1506_vm11, %v9513_v16, %v9516_v57  ;;  %v8968_v34 = vrot.slane %v16829_v28, 1  ;;  %v8971_v18 = vrot.slane %v16851_v27, 1 }
 0xcc4   : > { %v8779_v58 = vrot.slane %v8777_v47, 1  ;;  %v8785_v52 = vshll.u32 %v16860_v38, 16  ;;  %v9295_v1 = vshll.u32 %v16863_v39, 16  ;;  %v9299_v48 = vshrl.u32 %v16863_v39, 16 }
 0xcc5   : > { %v9411_v26 = vrot.slane %v16863_v39, 3  ;;  %v8789_v13 = vshrl.u32 %v16860_v38, 16  ;;  %v8970_v32 = vsel %vm1398_vm10, %v8968_v34, %v8969_v41  ;;  %v8973_v35 = vrot.slane %v16860_v38, 1 }
 0xcc6   : > { %v8780_v55 = vsel %vm1186_vm9, %v8775_v49, %v8779_v58  ;;  %v8783_v4 = vor.u32 %v8781_v46, %v8779_v58  ;;  %v8787_v5 = vrot.slane %v8785_v52, 1  ;;  %v16885_v44 = vrot.slane %v9295_v1, 1 }
 0xcc7   : > { %13727 = vmatmul.mubr.msk.bf16.vlgmr.msra.gmra.mrb[76].mxu0 %vm1003_vm3, %v8780_v55  ;;  %v16909_v51 = vsel %vm1856_vm12, %v9409_v10, %v9411_v26  ;;  %v9519_v56 = vrot.slane %v9295_v1, 4  ;;  %v8972_v8 = vsel %vm1398_vm10, %v8969_v41, %v8971_v18  ;;  %v8974_v49 = vsel %vm1398_vm10, %v8971_v18, %v8973_v35  ;;  %v14866_v55 = vld [vmem:[%s17397_s8 + $0x430] sm:$0xff]  }
 0xcc8   : > { %v8788_v36 = vsel %vm1186_vm9, %v8783_v4, %v8787_v5  ;;  %13735 = vmatpush3.bf16.msra.mxu0 %v16807_v33  ;;  %v16897_v61 = vsel %vm1186_vm9, %v9294_v9, %v16885_v44  ;;  %v9518_v33 = vrot.slane %v9299_v48, 3  ;;  %v9074_v58 = vrot.slane %v8773_v31, 3 }
 0xcc9   : > { %13730 = vmatprep.mubr.msk.bf16.mxu0 %vm1003_vm3, %v8788_v36  ;;  %13736 = vmatprep.subr.bf16.mxu0 %v14861_v53  ;;  %v9072_v1 = vrot.slane %v8764_v60, 4  ;;  %v9079_v5 = vrot.slane %v8777_v47, 4  ;;  %v9082_v9 = vrot.slane %v8789_v13, 3  ;;  %v9083_v60 = vrot.slane %v8785_v52, 4  ;;  %v14867_v36 = vld [vmem:[%s17397_s8 + $0x438] sm:$0xff]   ;;  %v14869_v52 = vld [vmem:[%s17397_s8 + $0x448] sm:$0xff]  }
 0xcca   : > { %v16913_v22 = vor.u32 %v9519_v56, %v9518_v33  ;;  %v9180_v33 = vpack.c.bf16 %v8745_v0, %v8745_v0  ;;  %v9617_v56 = vpack.c.bf16 %v8745_v0, %v16854_v59  ;;  %v14886_v0 = vld [vmem:[%s17403_s14 + $0x50] sm:$0xff]  }
 0xccb   : > { %v9073_v31 = vor.u32 %v9072_v1, %v9071_v62  ;;  %v9084_v10 = vor.u32 %v9083_v60, %v9082_v9 }
 0xccc   : > { %13737 = vmatpush3.bf16.msra.mxu0 %v14861_v53  ;;  %v16922_v20 = vsel %vm1506_vm11, %v9516_v57, %v16913_v22  ;;  %v9075_v53 = vrot.slane %v8769_v24, 4  ;;  %v9078_v24 = vrot.slane %v8781_v46, 3  ;;  %v8746_v57 = vld [vmem:[#allocation3 + $0x40] sm:$0x1] }
 0xccd   : > { %13746 = vmatprep.subr.bf16.mxu0 %v14862_v2 }
 0xcce   : > { %v9076_v4 = vor.u32 %v9075_v53, %v9074_v58  ;;  %v9080_v17 = vor.u32 %v9079_v5, %v9078_v24 }
 0xccf   : > { %13731 = vmatmul.mubr.msk.bf16.gmra.mrb[80].mxu0 %vm1003_vm3, %v8789_v13 }
 0xcd0   : > { %13738 = vmatprep.mubr.msk.bf16.mxu0 %vm1003_vm3, %v16829_v28  ;;  %v9077_v28 = vsel %vm1506_vm11, %v9073_v31, %v9076_v4  ;;  %v9081_v46 = vsel %vm1506_vm11, %v9076_v4, %v9080_v17  ;;  %v9085_v47 = vsel %vm1506_vm11, %v9080_v17, %v9084_v10  ;;  %v14881_v10 = vld [vmem:[%s17403_s14 + $0x28] sm:$0xff]  }
 0xcd7   : > { %13739 = vmatmul.mubr.msk.bf16.vlgmr.msra.gmra.mrb[76].mxu0 %vm1003_vm3, %v16834_v43 }
 0xcd8   : > { %13742 = vmatprep.mubr.msk.bf16.mxu0 %vm1003_vm3, %v16851_v27  ;;  %13747 = vmatpush3.bf16.msra.mxu0 %v14862_v2  ;;  %v14870_v2 = vld [vmem:[%s17397_s8 + $0x450] sm:$0xff]  }
 0xcd9   : > { %13748 = vmatprep.subr.bf16.mxu0 %v14863_v54 }
 0xcdc   : > { %13749 = vmatpush3.bf16.msra.mxu0 %v14863_v54 }
 0xcdd   : > { %13758 = vmatprep.subr.bf16.mxu0 %v14864_v25 }
 0xcdf   : > { %13743 = vmatmul.mubr.msk.bf16.gmra.mrb[80].mxu0 %vm1003_vm3, %v16860_v38  ;;  %v14868_v38 = vld [vmem:[%s17397_s8 + $0x440] sm:$0xff]  }
 0xce0   : > { %13750 = vmatprep.mubr.msk.bf16.mxu0 %vm1003_vm3, %v8970_v32 }
 0xce7   : > { %13751 = vmatmul.mubr.msk.bf16.vlgmr.msra.gmra.mrb[76].mxu0 %vm1003_vm3, %v8972_v8 }
 0xce8   : > { %13754 = vmatprep.mubr.msk.bf16.mxu0 %vm1003_vm3, %v8974_v49  ;;  %13759 = vmatpush3.bf16.msra.mxu0 %v14864_v25 }
 0xce9   : > { %13760 = vmatprep.subr.bf16.mxu0 %v14865_v3 }
 0xcec   : > { %13761 = vmatpush3.bf16.msra.mxu0 %v14865_v3 }
 0xced   : > { %13770 = vmatprep.subr.bf16.mxu0 %v14866_v55 }
 0xcef   : > { %13755 = vmatmul.mubr.msk.bf16.gmra.mrb[80].mxu0 %vm1003_vm3, %v8973_v35 }
 0xcf0   : > { %13762 = vmatprep.mubr.msk.bf16.mxu0 %vm1003_vm3, %v9077_v28 }
 0xcf7   : > { %13763 = vmatmul.mubr.msk.bf16.vlgmr.msra.gmra.mrb[76].mxu0 %vm1003_vm3, %v9081_v46 }
 0xcf8   : > { %13766 = vmatprep.mubr.msk.bf16.mxu0 %vm1003_vm3, %v9085_v47  ;;  %13771 = vmatpush3.bf16.msra.mxu0 %v14866_v55  ;;  %v14883_v47 = vld [vmem:[%s17403_s14 + $0x38] sm:$0xff]  }
 0xcf9   : > { %13772 = vmatprep.subr.bf16.mxu0 %v14867_v36 }
 0xcfc   : > { %13773 = vmatpush3.bf16.msra.mxu0 %v14867_v36  ;;  %v14882_v36 = vld [vmem:[%s17403_s14 + $0x30] sm:$0xff]  }
 0xcfd   : > { %13782 = vmatprep.subr.bf16.mxu0 %v14868_v38 }
 0xcff   : > { %13767 = vmatmul.mubr.msk.bf16.gmra.mrb[80].mxu0 %vm1003_vm3, %v9082_v9  ;;  %v14878_v9 = vld [vmem:[%s17403_s14 + $0x10] sm:$0xff]  }
 0xd00   : > { %13774 = vmatprep.mubr.msk.bf16.mxu0 %vm1003_vm3, %v16837_v29  ;;  %v9302_v29 = vshll.u32 %v9180_v33, 16 }
 0xd02   : > { %v9304_v45 = vrot.slane %v9302_v29, 1  ;;  %v9523_v16 = vrot.slane %v9302_v29, 4  ;;  %v14887_v29 = vld [vmem:[%s17403_s14 + $0x58] sm:$0xff]  }
 0xd07   : > { %13775 = vmatmul.mubr.msk.bf16.vlgmr.msra.gmra.mrb[76].mxu0 %vm1003_vm3, %v16831_v23  ;;  %v9301_v23 = vor.u32 %v9299_v48, %v16885_v44  ;;  %v9306_v44 = vshrl.u32 %v9180_v33, 16  ;;  %v9413_v48 = vrot.slane %v9180_v33, 3 }
 0xd08   : > { %13778 = vmatprep.mubr.msk.bf16.mxu0 %vm1003_vm3, %v16863_v39  ;;  %13783 = vmatpush3.bf16.msra.mxu0 %v14868_v38  ;;  %v14884_v38 = vld [vmem:[%s17403_s14 + $0x40] sm:$0xff]  }
 0xd09   : > { %13784 = vmatprep.subr.bf16.mxu0 %v14869_v52  ;;  %v9305_v14 = vsel %vm1186_vm9, %v9301_v23, %v9304_v45  ;;  %v9414_v13 = vsel %vm1856_vm12, %v9411_v26, %v9413_v48  ;;  %v14875_v26 = vld [vmem:[%s17397_s8 + $0x478] sm:$0xff]   ;;  %v14888_v23 = vld [vmem:[%s17403_s14 + $0x60] sm:$0xff]  }
 0xd0c   : > { %13785 = vmatpush3.bf16.msra.mxu0 %v14869_v52 }
 0xd0d   : > { %13794 = vmatprep.subr.bf16.mxu0 %v14870_v2 }
 0xd0f   : > { %13779 = vmatmul.mubr.msk.bf16.gmra.mrb[80].mxu0 %vm1003_vm3, %v9180_v33 }
 0xd10   : > { %13786 = vmatprep.mubr.msk.bf16.mxu0 %vm1003_vm3, %v16866_v42  ;;  %v14872_v42 = vld [vmem:[%s17397_s8 + $0x460] sm:$0xff]  }
 0xd17   : > { %13787 = vmatmul.mubr.msk.bf16.vlgmr.msra.gmra.mrb[76].mxu0 %vm1003_vm3, %v16897_v61  ;;  %v14873_v61 = vld [vmem:[%s17397_s8 + $0x468] sm:$0xff]  }
 0xd18   : > { %13790 = vmatprep.mubr.msk.bf16.mxu0 %vm1003_vm3, %v9305_v14  ;;  %13795 = vmatpush3.bf16.msra.mxu0 %v14870_v2  ;;  %v14885_v2 = vld [vmem:[%s17403_s14 + $0x48] sm:$0xff]  }
 0xd19   : > { %13796 = vmatprep.subr.bf16.mxu0 %v14871_v11  ;;  %v14889_v14 = vld [vmem:[%s17403_s14 + $0x68] sm:$0xff]  }
 0xd1c   : > { %13797 = vmatpush3.bf16.msra.mxu0 %v14871_v11 }
 0xd1d   : > { %13806 = vmatprep.subr.bf16.mxu0 %v14872_v42 }
 0xd1f   : > { %13791 = vmatmul.mubr.msk.bf16.gmra.mrb[80].mxu0 %vm1003_vm3, %v9306_v44 }
 0xd20   : > { %13798 = vmatprep.mubr.msk.bf16.mxu0 %vm1003_vm3, %v16904_v63  ;;  %v14874_v63 = vld [vmem:[%s17397_s8 + $0x470] sm:$0xff]  }
 0xd27   : > { %13799 = vmatmul.mubr.msk.bf16.vlgmr.msra.gmra.mrb[76].mxu0 %vm1003_vm3, %v16909_v51  ;;  %v9522_v51 = vrot.slane %v9306_v44, 3 }
 0xd28   : > { %13802 = vmatprep.mubr.msk.bf16.mxu0 %vm1003_vm3, %v9414_v13  ;;  %13807 = vmatpush3.bf16.msra.mxu0 %v14872_v42 }
 0xd29   : > { %13808 = vmatprep.subr.bf16.mxu0 %v14873_v61  ;;  %v9524_v39 = vor.u32 %v9523_v16, %v9522_v51 }
 0xd2b   : > { %v9525_v15 = vsel %vm1506_vm11, %v16913_v22, %v9524_v39  ;;  %v14876_v22 = vld [vmem:[%s17403_s14] sm:$0xff]   ;;  %v14895_v39 = vld [vmem:[%s17403_s14 + $0x98] sm:$0xff]  }
 0xd2c   : > { %13809 = vmatpush3.bf16.msra.mxu0 %v14873_v61  ;;  %13831 = vmatpush3.bf16.msra.mxu1 %v14876_v22  ;;  %v14891_v61 = vld [vmem:[%s17403_s14 + $0x78] sm:$0xff]  }
 0xd2d   : > { %13818 = vmatprep.subr.bf16.mxu0 %v14874_v63  ;;  %13832 = vmatprep.subr.bf16.mxu1 %v14996_v37  ;;  %v14899_v22 = vld [vmem:[%s17403_s14 + $0xb8] sm:$0xff]  }
 0xd2f   : > { %13803 = vmatmul.mubr.msk.bf16.gmra.mrb[80].mxu0 %vm1003_vm3, %v9413_v48 }
 0xd30   : > { %13810 = vmatprep.mubr.msk.bf16.mxu0 %vm1003_vm3, %v16918_v19  ;;  %v9618_v19 = vpack.c.bf16 %v8746_v57, %v8746_v57  ;;  %v14898_v57 = vld [vmem:[%s17403_s14 + $0xb0] sm:$0xff]  }
 0xd37   : > { %13811 = vmatmul.mubr.msk.bf16.vlgmr.msra.gmra.mrb[76].mxu0 %vm1003_vm3, %v16922_v20  ;;  %v12222_v20 = vld [vmem:[%s17399_s10 + $0x7] ss:$0 sm:$0xff] }
 0xd38   : > { %13814 = vmatprep.mubr.msk.bf16.mxu0 %vm1003_vm3, %v9525_v15  ;;  %13819 = vmatpush3.bf16.msra.mxu0 %v14874_v63  ;;  %v14893_v63 = vld [vmem:[%s17403_s14 + $0x88] sm:$0xff]  }
 0xd39   : > { %13820 = vmatprep.subr.bf16.mxu0 %v14875_v26 }
 0xd3c   : > { %13821 = vmatpush3.bf16.msra.mxu0 %v14875_v26  ;;  %v14896_v26 = vld [vmem:[%s17403_s14 + $0xa0] sm:$0xff]  }
 0xd3f   : > { %13815 = vmatmul.mubr.msk.bf16.gmra.mrb[80].mxu0 %vm1003_vm3, %v9522_v51  ;;  %v14894_v51 = vld [vmem:[%s17403_s14 + $0x90] sm:$0xff]  }
 0xd40   : > { %13822 = vmatprep.mubr.msk.bf16.mxu0 %vm1003_vm3, %v16834_v43  ;;  %v14877_v43 = vld [vmem:[%s17403_s14 + $0x8] sm:$0xff]  }
 0xd41   : > { %13833 = vmatpush3.bf16.msra.mxu1 %v14877_v43  ;;  %v14900_v43 = vld [vmem:[%s17403_s14 + $0xc0] sm:$0xff]  }
 0xd42   : > { %13838 = vmatprep.subr.bf16.mxu1 %v14996_v37 }
 0xd47   : > { %13823 = vmatmul.mubr.msk.bf16.vlgmr.msra.gmra.mrb[76].mxu0 %vm1003_vm3, %v16851_v27  ;;  %v12220_v27 = vld [vmem:[%s17398_s9 + $0x7] ss:$0 sm:$0xff] }
 0xd48   : > { %13826 = vmatprep.mubr.msk.bf16.mxu0 %vm1003_vm3, %v9617_v56  ;;  %v14897_v56 = vld [vmem:[%s17403_s14 + $0xa8] sm:$0xff]  }
 0xd4f   : > { %13827 = vmatmul.mubr.msk.bf16.gmra.mrb[80].mxu0 %vm1003_vm3, %v9618_v19 }
 0xe1a   : > { %v13824_v59 = vpop.f32.mrb[76].mxu0 }
 0xe1b   : > { %v9718_v54 = vmul.f32 %v13824_v59, %v12220_v27  ;;  %v9676_v25 = vpop.f32.mrb[77].mxu0 }
 0xe1c   : > { %v13825_v41 = vpop.f32.mrb[78].mxu0 }
 0xe1d   : > { %v17056_v34 = vadd.f32 %v12222_v20, %v9718_v54  ;;  %v9719_v32 = vmul.f32 %v13825_v41, %v12220_v27  ;;  %v9678_v18 = vpop.f32.mrb[79].mxu0  ;;  %v14901_v54 = vld [vmem:[%s17403_s14 + $0xc8] sm:$0xff]  }
 0xe1e   : > { %v9717_v35 = vmul.f32 %v12220_v27, %v9678_v18  ;;  %v14903_v18 = vld [vmem:[%s17403_s14 + $0xd8] sm:$0xff]  }
 0xe1f   : > { %v17058_v3 = vadd.f32 %v12222_v20, %v9719_v32  ;;  %v9736_v45 = vadd.f32 %v17056_v34, %v16650_v40  ;;  %v14890_v40 = vld [vmem:[%s17403_s14 + $0x70] sm:$0xff]  }
 0xe20   : > { %v9730_v8 = vadd.f32 %v12222_v20, %v9717_v35  ;;  %v14902_v34 = vld [vmem:[%s17403_s14 + $0xd0] sm:$0xff]  }
 0xe21   : > { %v9741_v42 = vmax.f32 %v9736_v45, 0.0  ;;  %v14922_v45 = vld [vmem:[%s17403_s14 + $0x170] sm:$0xff]  }
 0xe22   : > { %v9735_v49 = vadd.f32 %v9730_v8, %v16648_v7  ;;  %v13828_v58 = vpop.f32.mrb[80].mxu0  ;;  %v14879_v7 = vld [vmem:[%s17403_s14 + $0x18] sm:$0xff]   ;;  %v14906_v8 = vld [vmem:[%s17403_s14 + $0xf0] sm:$0xff]  }
 0xe23   : > { %v9691_v53 = vpop.f32.mrb[81].mxu0  ;;  %v9746_v44 = vmul.f32 %v9741_v42, %v15644_v12  ;;  %v14892_v12 = vld [vmem:[%s17403_s14 + $0x80] sm:$0xff]   ;;  %v14907_v58 = vld [vmem:[%s17403_s14 + $0xf8] sm:$0xff]  }
 0xe24   : > { %v9740_v62 = vmax.f32 %v9735_v49, 0.0  ;;  %v9720_v1 = vmul.f32 %v12220_v27, %v9691_v53  ;;  %v13829_v55 = vpop.f32.mrb[82].mxu0  ;;  %v14908_v53 = vld [vmem:[%s17403_s14 + $0x100] sm:$0xff]  }
 0xe25   : > { %v9694_v4 = vpop.f32.mrb[83].mxu0  ;;  %v10124_v48 = vpack.c.bf16 %v9746_v44, %v9746_v44  ;;  %v14910_v55 = vld [vmem:[%s17403_s14 + $0x110] sm:$0xff]   ;;  %v14924_v42 = vld [vmem:[%s17403_s14 + $0x180] sm:$0xff]  }
 0xe26   : > { %v9745_v31 = vmul.f32 %v9740_v62, %v15642_v6  ;;  %v17062_v24 = vadd.f32 %v12222_v20, %v9720_v1  ;;  %v9721_v5 = vmul.f32 %v12220_v27, %v9694_v4  ;;  %v14880_v6 = vld [vmem:[%s17403_s14 + $0x20] sm:$0xff]   ;;  %v14909_v1 = vld [vmem:[%s17403_s14 + $0x108] sm:$0xff]   ;;  %v14928_v44 = vld [vmem:[#allocation2 + $0x30] sm:$0xff] }
 0xe27   : > { %v10191_v13 = vshrl.u32 %v10124_v48, 16  ;;  %v10255_v16 = vrot.slane %v10124_v48, 1  ;;  %v10379_v19 = vrot.slane %v10124_v48, 3  ;;  %v14926_v27 = vld [vmem:[#allocation2 + $0x20] sm:$0xff] }
 0xe28   : > { %v9751_v28 = vpack.c.bf16 %v9745_v31, %v9745_v31  ;;  %v17067_v60 = vadd.f32 %v12222_v20, %v9721_v5  ;;  %v9737_v59 = vadd.f32 %v14926_v27, %v17058_v3  ;;  %v14905_v3 = vld [vmem:[%s17403_s14 + $0xe8] sm:$0xff]   ;;  %v14911_v31 = vld [vmem:[%s17403_s14 + $0x118] sm:$0xff]   ;;  %v14912_v5 = vld [vmem:[%s17403_s14 + $0x120] sm:$0xff]  }
 0xe29   : > { %v10317_v15 = vrot.slane %v10191_v13, 1  ;;  %v10441_v20 = vrot.slane %v10191_v13, 3 }
 0xe2a   : > { %13835 = vmatmul.mubr.msk.bf16.vlgmr.msra.gmra.mrb[40].mxu1 %vm1003_vm3, %v9751_v28  ;;  %v9817_v17 = vshrl.u32 %v9751_v28, 16  ;;  %v9881_v46 = vrot.slane %v9751_v28, 1  ;;  %v10005_v33 = vrot.slane %v9751_v28, 2  ;;  %v9742_v25 = vmax.f32 %v9737_v59, 0.0 }
 0xe2b   : > { %13839 = vmatpush3.bf16.msra.mxu1 %v14878_v9  ;;  %13842 = vmatprep.mubr.msk.bf16.mxu1 %vm14995_vm2, %v14996_v37  ;;  %v14927_v9 = vld [vmem:[#allocation2 + $0x28] sm:$0xff] }
 0xe2c   : > { %13840 = vmatprep.subr.bf16.mxu1 %v14996_v37  ;;  %v9943_v52 = vrot.slane %v9817_v17, 1  ;;  %v10067_v11 = vrot.slane %v9817_v17, 3  ;;  %v9747_v41 = vmul.f32 %v9742_v25, %v15650_v30  ;;  %v14904_v30 = vld [vmem:[%s17403_s14 + $0xe0] sm:$0xff]   ;;  %v9738_v28 = vadd.f32 %v14927_v9, %v17062_v24  ;;  %v14914_v24 = vld [vmem:[%s17403_s14 + $0x130] sm:$0xff]  }
 0xe2e   : > { %v10498_v32 = vpack.c.bf16 %v9747_v41, %v9747_v41 }
 0xe2f   : > { %13841 = vmatpush3.bf16.msra.mxu1 %v14879_v7 }
 0xe30   : > { %13846 = vmatprep.subr.bf16.mxu1 %v14996_v37  ;;  %v10565_v35 = vshrl.u32 %v10498_v32, 16  ;;  %v10629_v49 = vrot.slane %v10498_v32, 1  ;;  %v10753_v4 = vrot.slane %v10498_v32, 3 }
 0xe32   : > { %v10691_v62 = vrot.slane %v10565_v35, 2  ;;  %v10815_v7 = vrot.slane %v10565_v35, 3 }
 0xe36   : > { %13843 = vmatmul.mubr.msk.bf16.vlgmr.msra.gmra.mrb[40].mxu1 %vm1003_vm3, %v9817_v17  ;;  %v9743_v17 = vmax.f32 %v9738_v28, 0.0 }
 0xe37   : > { %13847 = vmatpush3.bf16.msra.mxu1 %v14880_v6  ;;  %13850 = vmatprep.mubr.msk.bf16.mxu1 %vm14995_vm2, %v14996_v37  ;;  %v14913_v6 = vld [vmem:[%s17403_s14 + $0x128] sm:$0xff]  }
 0xe38   : > { %13848 = vmatprep.subr.bf16.mxu1 %v14996_v37 }
 0xe3b   : > { %13849 = vmatpush3.bf16.msra.mxu1 %v14881_v10  ;;  %v9748_v10 = vmul.f32 %v9743_v17, %v15646_v21  ;;  %v14916_v21 = vld [vmem:[%s17403_s14 + $0x140] sm:$0xff]  }
 0xe3c   : > { %13854 = vmatprep.subr.bf16.mxu1 %v14996_v37 }
 0xe42   : > { %13851 = vmatmul.mubr.msk.bf16.vlgmr.msra.gmra.mrb[40].mxu1 %vm1003_vm3, %v9881_v46  ;;  %v14915_v46 = vld [vmem:[%s17403_s14 + $0x138] sm:$0xff]  }
 0xe43   : > { %13855 = vmatpush3.bf16.msra.mxu1 %v14882_v36  ;;  %13858 = vmatprep.mubr.msk.bf16.mxu1 %vm14995_vm2, %v14996_v37  ;;  %v10872_v36 = vpack.c.bf16 %v9748_v10, %v9748_v10 }
 0xe44   : > { %13856 = vmatprep.subr.bf16.mxu1 %v14996_v37 }
 0xe47   : > { %13857 = vmatpush3.bf16.msra.mxu1 %v14883_v47  ;;  %v10939_v47 = vshrl.u32 %v10872_v36, 16 }
 0xe48   : > { %13862 = vmatprep.subr.bf16.mxu1 %v14996_v37 }
 0xe4e   : > { %13859 = vmatmul.mubr.msk.bf16.vlgmr.msra.gmra.mrb[40].mxu1 %vm1003_vm3, %v9943_v52  ;;  %v14918_v52 = vld [vmem:[%s17403_s14 + $0x150] sm:$0xff]  }
 0xe4f   : > { %13863 = vmatpush3.bf16.msra.mxu1 %v14884_v38  ;;  %13866 = vmatprep.mubr.msk.bf16.mxu1 %vm14995_vm2, %v14996_v37  ;;  %v14917_v38 = vld [vmem:[%s17403_s14 + $0x148] sm:$0xff]  }
 0xe50   : > { %13864 = vmatprep.subr.bf16.mxu1 %v14996_v37 }
 0xe53   : > { %13865 = vmatpush3.bf16.msra.mxu1 %v14885_v2  ;;  %v11003_v2 = vrot.slane %v10872_v36, 2 }
 0xe54   : > { %13870 = vmatprep.subr.bf16.mxu1 %v14996_v37 }
 0xe5a   : > { %13867 = vmatmul.mubr.msk.bf16.vlgmr.msra.gmra.mrb[40].mxu1 %vm1003_vm3, %v10005_v33  ;;  %v14920_v33 = vld [vmem:[%s17403_s14 + $0x160] sm:$0xff]  }
 0xe5b   : > { %13871 = vmatpush3.bf16.msra.mxu1 %v14886_v0  ;;  %13874 = vmatprep.mubr.msk.bf16.mxu1 %vm14995_vm2, %v14996_v37  ;;  %v14919_v0 = vld [vmem:[%s17403_s14 + $0x158] sm:$0xff]  }
 0xe5c   : > { %13872 = vmatprep.subr.bf16.mxu1 %v14996_v37 }
 0xe5f   : > { %13873 = vmatpush3.bf16.msra.mxu1 %v14887_v29  ;;  %v11065_v29 = vrot.slane %v10939_v47, 2 }
 0xe60   : > { %13878 = vmatprep.subr.bf16.mxu1 %v14996_v37 }
 0xe66   : > { %13875 = vmatmul.mubr.msk.bf16.vlgmr.msra.gmra.mrb[40].mxu1 %vm1003_vm3, %v10067_v11  ;;  %v11127_v11 = vrot.slane %v10872_v36, 3 }
 0xe67   : > { %13879 = vmatpush3.bf16.msra.mxu1 %v14888_v23  ;;  %13882 = vmatprep.mubr.msk.bf16.mxu1 %vm14995_vm2, %v14996_v37  ;;  %v14921_v23 = vld [vmem:[%s17403_s14 + $0x168] sm:$0xff]  }
 0xe68   : > { %13880 = vmatprep.subr.bf16.mxu1 %v14996_v37 }
 0xe6b   : > { %13881 = vmatpush3.bf16.msra.mxu1 %v14889_v14  ;;  %v14923_v14 = vld [vmem:[%s17403_s14 + $0x178] sm:$0xff]  }
 0xe6c   : > { %13886 = vmatprep.subr.bf16.mxu1 %v14996_v37 }
 0xe72   : > { %13883 = vmatmul.mubr.msk.bf16.vlgmr.msra.gmra.mrb[40].mxu1 %vm1003_vm3, %v10124_v48  ;;  %v11189_v48 = vrot.slane %v10939_v47, 3 }
 0xe73   : > { %13887 = vmatpush3.bf16.msra.mxu1 %v14890_v40  ;;  %13890 = vmatprep.mubr.msk.bf16.mxu1 %vm14995_vm2, %v14996_v37  ;;  %v9739_v40 = vadd.f32 %v14928_v44, %v17067_v60  ;;  %v9750_v60 = vld [vmem:[%s17404_s15] sm:$0x1] }
 0xe74   : > { %13888 = vmatprep.subr.bf16.mxu1 %v14996_v37 }
 0xe77   : > { %13889 = vmatpush3.bf16.msra.mxu1 %v14891_v61  ;;  %v14925_v61 = vld [vmem:[%s17403_s14 + $0x188] sm:$0xff]  }
 0xe78   : > { %13894 = vmatprep.subr.bf16.mxu1 %v14996_v37 }
 0xe7e   : > { %13891 = vmatmul.mubr.msk.bf16.vlgmr.msra.gmra.mrb[40].mxu1 %vm1003_vm3, %v10191_v13 }
 0xe7f   : > { %13895 = vmatpush3.bf16.msra.mxu1 %v14892_v12  ;;  %13898 = vmatprep.mubr.msk.bf16.mxu1 %vm14995_vm2, %v14996_v37  ;;  %v9744_v12 = vmax.f32 %v9739_v40, 0.0 }
 0xe80   : > { %13896 = vmatprep.subr.bf16.mxu1 %v14996_v37 }
 0xe81   : > { %v9749_v13 = vmul.f32 %v9744_v12, %v15663_v50 }
 0xe83   : > { %13897 = vmatpush3.bf16.msra.mxu1 %v14893_v63  ;;  %v11246_v63 = vpack.c.bf16 %v9749_v13, %v9749_v13 }
 0xe84   : > { %13902 = vmatprep.subr.bf16.mxu1 %v14996_v37 }
 0xe8a   : > { %13899 = vmatmul.mubr.msk.bf16.vlgmr.msra.gmra.mrb[40].mxu1 %vm1003_vm3, %v10255_v16 }
 0xe8b   : > { %13903 = vmatpush3.bf16.msra.mxu1 %v14894_v51  ;;  %13906 = vmatprep.mubr.msk.bf16.mxu1 %vm14995_vm2, %v14996_v37 }
 0xe8c   : > { %13904 = vmatprep.subr.bf16.mxu1 %v14996_v37 }
 0xe8f   : > { %13905 = vmatpush3.bf16.msra.mxu1 %v14895_v39 }
 0xe90   : > { %13910 = vmatprep.subr.bf16.mxu1 %v14996_v37 }
 0xe96   : > { %13907 = vmatmul.mubr.msk.bf16.vlgmr.msra.gmra.mrb[40].mxu1 %vm1003_vm3, %v10317_v15 }
 0xe97   : > { %13911 = vmatpush3.bf16.msra.mxu1 %v14896_v26  ;;  %13914 = vmatprep.mubr.msk.bf16.mxu1 %vm14995_vm2, %v14996_v37 }
 0xe98   : > { %13912 = vmatprep.subr.bf16.mxu1 %v14996_v37 }
 0xe9b   : > { %13913 = vmatpush3.bf16.msra.mxu1 %v14897_v56 }
 0xe9c   : > { %13918 = vmatprep.subr.bf16.mxu1 %v14996_v37 }
 0xea2   : > { %13915 = vmatmul.mubr.msk.bf16.vlgmr.msra.gmra.mrb[40].mxu1 %vm1003_vm3, %v10379_v19 }
 0xea3   : > { %13919 = vmatpush3.bf16.msra.mxu1 %v14898_v57  ;;  %13922 = vmatprep.mubr.msk.bf16.mxu1 %vm14995_vm2, %v14996_v37 }
 0xea4   : > { %13920 = vmatprep.subr.bf16.mxu1 %v14996_v37 }
 0xea7   : > { %13921 = vmatpush3.bf16.msra.mxu1 %v14899_v22 }
 0xea8   : > { %13926 = vmatprep.subr.bf16.mxu1 %v14996_v37 }
 0xeae   : > { %13923 = vmatmul.mubr.msk.bf16.vlgmr.msra.gmra.mrb[40].mxu1 %vm1003_vm3, %v10441_v20 }
 0xeaf   : > { %13927 = vmatpush3.bf16.msra.mxu1 %v14900_v43  ;;  %13930 = vmatprep.mubr.msk.bf16.mxu1 %vm14995_vm2, %v14996_v37 }
 0xeb0   : > { %13928 = vmatprep.subr.bf16.mxu1 %v14996_v37 }
 0xeb3   : > { %13929 = vmatpush3.bf16.msra.mxu1 %v14901_v54 }
 0xeb4   : > { %13934 = vmatprep.subr.bf16.mxu1 %v14996_v37 }
 0xeba   : > { %13931 = vmatmul.mubr.msk.bf16.vlgmr.msra.gmra.mrb[40].mxu1 %vm1003_vm3, %v10498_v32 }
 0xebb   : > { %13935 = vmatpush3.bf16.msra.mxu1 %v14902_v34  ;;  %13938 = vmatprep.mubr.msk.bf16.mxu1 %vm14995_vm2, %v14996_v37 }
 0xebc   : > { %13936 = vmatprep.subr.bf16.mxu1 %v14996_v37 }
 0xebf   : > { %13937 = vmatpush3.bf16.msra.mxu1 %v14903_v18 }
 0xec0   : > { %13942 = vmatprep.subr.bf16.mxu1 %v14996_v37 }
 0xec6   : > { %13939 = vmatmul.mubr.msk.bf16.vlgmr.msra.gmra.mrb[40].mxu1 %vm1003_vm3, %v10565_v35 }
 0xec7   : > { %13943 = vmatpush3.bf16.msra.mxu1 %v14904_v30  ;;  %13946 = vmatprep.mubr.msk.bf16.mxu1 %vm14995_vm2, %v14996_v37 }
 0xec8   : > { %13944 = vmatprep.subr.bf16.mxu1 %v14996_v37 }
 0xecb   : > { %13945 = vmatpush3.bf16.msra.mxu1 %v14905_v3 }
 0xecc   : > { %13950 = vmatprep.subr.bf16.mxu1 %v14996_v37 }
 0xed2   : > { %13947 = vmatmul.mubr.msk.bf16.vlgmr.msra.gmra.mrb[40].mxu1 %vm1003_vm3, %v10629_v49 }
 0xed3   : > { %13951 = vmatpush3.bf16.msra.mxu1 %v14906_v8  ;;  %13954 = vmatprep.mubr.msk.bf16.mxu1 %vm14995_vm2, %v14996_v37 }
 0xed4   : > { %13952 = vmatprep.subr.bf16.mxu1 %v14996_v37 }
 0xed7   : > { %13953 = vmatpush3.bf16.msra.mxu1 %v14907_v58 }
 0xed8   : > { %13958 = vmatprep.subr.bf16.mxu1 %v14996_v37 }
 0xede   : > { %13955 = vmatmul.mubr.msk.bf16.vlgmr.msra.gmra.mrb[40].mxu1 %vm1003_vm3, %v10691_v62 }
 0xedf   : > { %13959 = vmatpush3.bf16.msra.mxu1 %v14908_v53  ;;  %13962 = vmatprep.mubr.msk.bf16.mxu1 %vm14995_vm2, %v14996_v37 }
 0xee0   : > { %13960 = vmatprep.subr.bf16.mxu1 %v14996_v37 }
 0xee3   : > { %13961 = vmatpush3.bf16.msra.mxu1 %v14909_v1 }
 0xee4   : > { %13966 = vmatprep.subr.bf16.mxu1 %v14996_v37 }
 0xeea   : > { %13963 = vmatmul.mubr.msk.bf16.vlgmr.msra.gmra.mrb[40].mxu1 %vm1003_vm3, %v10753_v4 }
 0xeeb   : > { %13967 = vmatpush3.bf16.msra.mxu1 %v14910_v55  ;;  %13970 = vmatprep.mubr.msk.bf16.mxu1 %vm14995_vm2, %v14996_v37 }
 0xeec   : > { %13968 = vmatprep.subr.bf16.mxu1 %v14996_v37 }
 0xeef   : > { %13969 = vmatpush3.bf16.msra.mxu1 %v14911_v31 }
 0xef0   : > { %13974 = vmatprep.subr.bf16.mxu1 %v14996_v37 }
 0xef6   : > { %13971 = vmatmul.mubr.msk.bf16.vlgmr.msra.gmra.mrb[40].mxu1 %vm1003_vm3, %v10815_v7 }
 0xef7   : > { %13975 = vmatpush3.bf16.msra.mxu1 %v14912_v5  ;;  %13978 = vmatprep.mubr.msk.bf16.mxu1 %vm14995_vm2, %v14996_v37 }
 0xef8   : > { %13976 = vmatprep.subr.bf16.mxu1 %v14996_v37 }
 0xefb   : > { %13977 = vmatpush3.bf16.msra.mxu1 %v14913_v6 }
 0xefc   : > { %13982 = vmatprep.subr.bf16.mxu1 %v14996_v37 }
 0xf02   : > { %13979 = vmatmul.mubr.msk.bf16.vlgmr.msra.gmra.mrb[40].mxu1 %vm1003_vm3, %v10872_v36 }
 0xf03   : > { %13983 = vmatpush3.bf16.msra.mxu1 %v14914_v24  ;;  %13986 = vmatprep.mubr.msk.bf16.mxu1 %vm14995_vm2, %v14996_v37 }
 0xf04   : > { %13984 = vmatprep.subr.bf16.mxu1 %v14996_v37 }
 0xf07   : > { %13985 = vmatpush3.bf16.msra.mxu1 %v14915_v46 }
 0xf08   : > { %13990 = vmatprep.subr.bf16.mxu1 %v14996_v37 }
 0xf0e   : > { %13987 = vmatmul.mubr.msk.bf16.vlgmr.msra.gmra.mrb[40].mxu1 %vm1003_vm3, %v10939_v47 }
 0xf0f   : > { %13991 = vmatpush3.bf16.msra.mxu1 %v14916_v21  ;;  %13994 = vmatprep.mubr.msk.bf16.mxu1 %vm14995_vm2, %v14996_v37 }
 0xf10   : > { %13992 = vmatprep.subr.bf16.mxu1 %v14996_v37 }
 0xf13   : > { %13993 = vmatpush3.bf16.msra.mxu1 %v14917_v38 }
 0xf14   : > { %13998 = vmatprep.subr.bf16.mxu1 %v14996_v37 }
 0xf1a   : > { %13995 = vmatmul.mubr.msk.bf16.vlgmr.msra.gmra.mrb[40].mxu1 %vm1003_vm3, %v11003_v2 }
 0xf1b   : > { %13999 = vmatpush3.bf16.msra.mxu1 %v14918_v52  ;;  %14002 = vmatprep.mubr.msk.bf16.mxu1 %vm14995_vm2, %v14996_v37 }
 0xf1c   : > { %14000 = vmatprep.subr.bf16.mxu1 %v14996_v37 }
 0xf1f   : > { %14001 = vmatpush3.bf16.msra.mxu1 %v14919_v0 }
 0xf20   : > { %14006 = vmatprep.subr.bf16.mxu1 %v14996_v37 }
 0xf26   : > { %14003 = vmatmul.mubr.msk.bf16.vlgmr.msra.gmra.mrb[40].mxu1 %vm1003_vm3, %v11065_v29 }
 0xf27   : > { %14007 = vmatpush3.bf16.msra.mxu1 %v14920_v33  ;;  %14010 = vmatprep.mubr.msk.bf16.mxu1 %vm14995_vm2, %v14996_v37 }
 0xf28   : > { %14008 = vmatprep.subr.bf16.mxu1 %v14996_v37 }
 0xf2b   : > { %14009 = vmatpush3.bf16.msra.mxu1 %v14921_v23 }
 0xf2c   : > { %14014 = vmatprep.subr.bf16.mxu1 %v14996_v37 }
 0xf32   : > { %14011 = vmatmul.mubr.msk.bf16.vlgmr.msra.gmra.mrb[40].mxu1 %vm1003_vm3, %v11127_v11 }
 0xf33   : > { %14015 = vmatpush3.bf16.msra.mxu1 %v14922_v45  ;;  %14018 = vmatprep.mubr.msk.bf16.mxu1 %vm14995_vm2, %v14996_v37 }
 0xf34   : > { %14016 = vmatprep.subr.bf16.mxu1 %v14996_v37 }
 0xf37   : > { %14017 = vmatpush3.bf16.msra.mxu1 %v14923_v14 }
 0xf38   : > { %14022 = vmatprep.subr.bf16.mxu1 %v14996_v37 }
 0xf3e   : > { %14019 = vmatmul.mubr.msk.bf16.vlgmr.msra.gmra.mrb[40].mxu1 %vm1003_vm3, %v11189_v48 }
 0xf3f   : > { %14023 = vmatpush3.bf16.msra.mxu1 %v14924_v42  ;;  %14026 = vmatprep.mubr.msk.bf16.mxu1 %vm14995_vm2, %v14996_v37 }
 0xf40   : > { %14024 = vmatprep.subr.bf16.mxu1 %v14996_v37 }
 0xf43   : > { %14025 = vmatpush3.bf16.msra.mxu1 %v14925_v61 }
 0xf4a   : > { %14027 = vmatmul.mubr.msk.bf16.vlgmr.msra.gmra.mrb[40].mxu1 %vm1003_vm3, %v11246_v63 }
0x101d   : > { %v11301_v51 = vpop.f32.mrb[40].mxu1 }
0x101e   : > { %v14045_v16 = vadd.f32 %v11301_v51, %v9750_v60  ;;  %v14028_v39 = vpop.f32.mrb[41].mxu1 }
0x101f   : > { %v11304_v37 = vpop.f32.mrb[42].mxu1 }
0x1020   : > { %v14029_v50 = vpop.f32.mrb[43].mxu1  ;;  %11309 = vst.msk [vmem:[%s558_s23] sm:$0x1] %vm11308_vm13, %v14045_v16 }
0x1021   : > { %14942 = shalt.err (!%p14939_p3)
}
0x1022   : > { %s14943_s18 = scalar_lea.hbm %s17347_s17, 16  ;;  %s14947_s28 = scalar_lea.hbm %s17405_s16, 32 }
0x1023   : > { %p14944_p4 = scmp.ne.s32.totalorder %s17347_s17, %s14943_s18  ;;  %p14948_p9 = scmp.lt.u32.totalorder %s17347_s17, %s17405_s16 }
0x1024   : > { %p14949_p10 = scmp.lt.u32.totalorder %s14947_s28, %s14943_s18  ;;  %p14951_p12 = scmp.lt.u32.totalorder %s14943_s18, %s17347_s17 }
0x1025   : > { %p14945_p7 = pnand %p14944_p4, %p15122_p5 }
0x1026   : > { %p14950_p11 = por %p14949_p10, %p14948_p9 }
0x1027   : > { %p14946_p8 = pneg %p14945_p7 }
0x1028   : > { %p14952_p13 = por %p14951_p12, %p14950_p11 }
0x102a   : > { %p14953_p0 = pnand %p14952_p13, %p14946_p8 }
0x102c   : > { %14956 = shalt.err (!%p14953_p0)
}
0x102d   : > { %14650 = dma.vmem_to_hbm [thread:$0]  (%p15122_p5), %s17349_s19, 16, %s17347_s17, %s11311_s25  }
0x102e PF: > { %p14656_p1 = scmp.ge.s32.totalorder %s14991_s24, 2  ;;  %s11335_s30 = sand.u32 1, %s14979_s21  }
0x102f   : > { %s11336_s20 = scalar_lea.sflag [#allocation5], %s11335_s30 }
0x1030   : > { %p14653_p2 = pnand %p14656_p1, %p15126_p6 }
0x1032   : > { %14974 = dma.done.wait (!%p14653_p2), %s11336_s20, 16  }
0x1033   : > { %14976 = vsyncadd (!%p14653_p2), %s11336_s20, 4294967280  ;;  %s17421_s24 = sld [smem:[#allocation8_spill]]  ;;  %s17422_s18 = sld [smem:[#allocation7_spill]] }
0x1034   : > { %s17423_s23 = sld [smem:[#allocation9_spill]]  ;;  %s17424_s21 = smov %s14983_s22 }
0x1039   : > { %p26_p3 = scmp.ge.s32.totalorder %s17421_s24, 4   ;;  %s17425_s22 = smov %s17422_s18 }
0x103b   :  { %28 = sbr.rel (!%p26_p3) target bundleno = 6 (0x6), region = 237 }
0x1042   :  { %11340 = vsyncpa [#allocation5], 1 }
0x1043   :  { %11342 = vsyncpa [#allocation5 + $0x1], 1 }

</bundles_post_ra>
